<compile_context>
chip_gen: v6e
topology: v6e:2x2x1
jax: 0.10.0
libtpu: 0.0.40
codegen_flags: <defaults>
</compile_context>

<pallas_src>
import jax
import jax.numpy as jnp
from jax.experimental import pallas as pl
from jax.experimental.pallas import tpu as pltpu

EPS = 1e-5
D_IN = 4096
D_HID = 512
D_OUT = 5
D_OUT_PAD = 128  # lane-dense padded output width


# ----------------------------------------------------------------------------
# Kernel: two MXU matmuls + ReLU (BN folded into weights; x and weights in bf16)
# ----------------------------------------------------------------------------
def head_kernel(x_ref, w1_ref, b1_ref, w2_ref, b2_ref, o_ref):
    # fc1 (+ folded BN1): (TM, 4096)bf16 @ (4096, 512)bf16 -> f32 acc, + f32 bias
    h = jnp.dot(x_ref[...], w1_ref[...],
                preferred_element_type=jnp.float32) + b1_ref[...]
    # ReLU
    h = jnp.maximum(h, 0.0)
    # fc2 (+ folded BN2): (TM, 512)bf16 @ (512, 128-padded)bf16 -> f32 acc, + f32 bias
    o_ref[...] = jnp.dot(h.astype(jnp.bfloat16), w2_ref[...],
                         preferred_element_type=jnp.float32) + b2_ref[...]


# ----------------------------------------------------------------------------
# Tiling choice
# ----------------------------------------------------------------------------
def _round_up(n, m):
    return ((n + m - 1) // m) * m


def _pick_tile(batch):
    """Return (TM, B_pad). B_pad == batch whenever possible (no padded copy of x)."""
    if batch <= 1024:
        # Single tile covering the whole (possibly slightly padded) batch.
        tm = max(8, _round_up(batch, 8))
        return tm, tm
    # Large batch: prefer a multiple-of-8 divisor of B in [256, 1024] -> no padding at all.
    for tm in range(1024, 255, -8):
        if batch % tm == 0:
            return tm, batch
    # Awkward batch size: fall back to the safe explicit-pad path, minimizing padded rows.
    best = min((1024, 512, 256), key=lambda t: (_round_up(batch, t), -t))
    return best, _round_up(batch, best)


# ----------------------------------------------------------------------------
# Wrapper
# ----------------------------------------------------------------------------
def head_forward(x, params):
    """x: (B, 4096) float32/bfloat16. params: prepared (BN-folded, bf16) params. -> (B, 5) f32."""
    B = x.shape[0]
    TM, B_pad = _pick_tile(B)

    # Ship x to the kernel in bf16 (halves HBM read traffic + VMEM footprint).
    xb = x.astype(jnp.bfloat16)
    if B_pad != B:
        # Safe fallback for awkward batch sizes: zero-padded bf16 copy (cast + pad in one copy).
        xb = jnp.zeros((B_pad, D_IN), jnp.bfloat16).at[:B].set(xb)

    grid = (B_pad // TM,)

    def run(weight_pipeline_mode):
        wkw = {} if weight_pipeline_mode is None else {"pipeline_mode": weight_pipeline_mode}
        return pl.pallas_call(
            head_kernel,
            out_shape=jax.ShapeDtypeStruct((B_pad, D_OUT_PAD), jnp.float32),
            grid=grid,
            in_specs=[
                # x tile: pipelined (double-buffered) over the batch grid.
                pl.BlockSpec((TM, D_IN), lambda i: (i, 0)),
                # Weights / biases: constant index_map -> VMEM-resident, single-buffered.
                pl.BlockSpec((D_IN, D_HID), lambda i: (0, 0), **wkw),          # W1' bf16
                pl.BlockSpec((1, D_HID), lambda i: (0, 0), **wkw),             # b1' f32
                pl.BlockSpec((D_HID, D_OUT_PAD), lambda i: (0, 0), **wkw),     # W2' bf16
                pl.BlockSpec((1, D_OUT_PAD), lambda i: (0, 0), **wkw),         # b2' f32
            ],
            out_specs=pl.BlockSpec((TM, D_OUT_PAD), lambda i: (i, 0)),
            compiler_params=pltpu.CompilerParams(
                dimension_semantics=("parallel",),
                vmem_limit_bytes=48 * 1024 * 1024,   # fits v7x's 64 MiB/TC with headroom
            ),
        )(xb, params["w1"], params["b1"], params["w2"], params["b2"])

    try:
        # Single-buffer the VMEM-resident weights (saves ~4 MiB of VMEM for W1).
        out_padded = run(pl.Buffered(1))
    except Exception:
        # Fallback if this JAX build rejects pipeline_mode on a pallas_call BlockSpec.
        out_padded = run(None)

    return out_padded[:B, :D_OUT]


# ----------------------------------------------------------------------------
# Parameter construction (raw, PyTorch-style) and BN-folding / bf16 prep
# ----------------------------------------------------------------------------
def init_params(key):
    ks = jax.random.split(key, 8)
    # BatchNorm1d(4096): slightly non-trivial running stats / affine for a real test.
    bn1_gamma = 1.0 + 0.01 * jax.random.normal(ks[0], (1, D_IN), jnp.float32)
    bn1_beta = 0.01 * jax.random.normal(ks[1], (1, D_IN), jnp.float32)
    bn1_mean = 0.05 * jax.random.normal(ks[2], (1, D_IN), jnp.float32)
    bn1_var = jnp.ones((1, D_IN), jnp.float32) + 0.1 * jax.random.uniform(ks[3], (1, D_IN))

    # fc1: Linear(4096, 512), stored as (in, out) = W^T relative to PyTorch's (out, in).
    fc1_w = jax.random.normal(ks[4], (D_IN, D_HID), jnp.float32) / jnp.sqrt(D_IN)
    fc1_b = 0.01 * jax.random.normal(ks[5], (1, D_HID), jnp.float32)

    # BatchNorm1d(512): default-initialized running stats.
    bn2_gamma = jnp.ones((1, D_HID), jnp.float32)
    bn2_beta = jnp.zeros((1, D_HID), jnp.float32)
    bn2_mean = jnp.zeros((1, D_HID), jnp.float32)
    bn2_var = jnp.ones((1, D_HID), jnp.float32)

    # fc2: Linear(512, 5).
    fc2_w = jax.random.normal(ks[6], (D_HID, D_OUT), jnp.float32) / jnp.sqrt(D_HID)
    fc2_b = 0.01 * jax.random.normal(ks[7], (1, D_OUT), jnp.float32)

    return {
        "bn1_gamma": bn1_gamma, "bn1_beta": bn1_beta, "bn1_mean": bn1_mean, "bn1_var": bn1_var,
        "fc1_w": fc1_w, "fc1_b": fc1_b,
        "bn2_gamma": bn2_gamma, "bn2_beta": bn2_beta, "bn2_mean": bn2_mean, "bn2_var": bn2_var,
        "fc2_w": fc2_w, "fc2_b": fc2_b,
    }


def prepare_params(p):
    """Fold eval-mode BN into the linear layers, pad fc2 to 128 lanes, cast weights to bf16."""
    # BN1(x) = x * s1 + c1  with  s1 = gamma1 * rsqrt(var1+eps),  c1 = beta1 - mean1 * s1
    s1 = p["bn1_gamma"] * jax.lax.rsqrt(p["bn1_var"] + EPS)     # (1, 4096)
    c1 = p["bn1_beta"] - p["bn1_mean"] * s1                     # (1, 4096)
    w1 = p["fc1_w"] * s1.reshape(D_IN, 1)                       # (4096, 512)
    b1 = p["fc1_b"] + c1 @ p["fc1_w"]                           # (1, 512)

    # BN2(z) = z * s2 + c2, then fc2.
    s2 = p["bn2_gamma"] * jax.lax.rsqrt(p["bn2_var"] + EPS)     # (1, 512)
    c2 = p["bn2_beta"] - p["bn2_mean"] * s2                     # (1, 512)
    w2 = p["fc2_w"] * s2.reshape(D_HID, 1)                      # (512, 5)
    b2 = p["fc2_b"] + c2 @ p["fc2_w"]                           # (1, 5)

    # Zero-pad output dim 5 -> 128 for a lane-dense store.
    w2_pad = jnp.zeros((D_HID, D_OUT_PAD), jnp.float32).at[:, :D_OUT].set(w2)
    b2_pad = jnp.zeros((1, D_OUT_PAD), jnp.float32).at[:, :D_OUT].set(b2)

    return {
        "w1": w1.astype(jnp.bfloat16), "b1": b1.astype(jnp.float32),
        "w2": w2_pad.astype(jnp.bfloat16), "b2": b2_pad.astype(jnp.float32),
    }


def head_reference(x, p):
    """Pure-JAX f32 reference of the original forward pass (eval-mode BN, unfolded)."""
    h = (x - p["bn1_mean"]) / jnp.sqrt(p["bn1_var"] + EPS) * p["bn1_gamma"] + p["bn1_beta"]
    h = h @ p["fc1_w"] + p["fc1_b"]
    h = jnp.maximum(h, 0.0)
    h = (h - p["bn2_mean"]) / jnp.sqrt(p["bn2_var"] + EPS) * p["bn2_gamma"] + p["bn2_beta"]
    h = h @ p["fc2_w"] + p["fc2_b"]
    return h


if __name__ == "__main__":
    key = jax.random.PRNGKey(0)
    k_x, k_p = jax.random.split(key)

    B = 8
    x = jax.random.normal(k_x, (B, D_IN), jnp.float32)
    raw_params = init_params(k_p)
    params = prepare_params(raw_params)

    out = head_forward(x, params)
    out = jax.block_until_ready(out)

    ref = head_reference(x, raw_params)
    assert out.shape == (B, D_OUT), out.shape
    max_err = float(jnp.max(jnp.abs(out - ref)))
    # bf16 inputs/weights => expect ~1e-2-level absolute error on O(1) outputs.
    assert jnp.allclose(out, ref, atol=5e-2, rtol=5e-2), max_err

    print("KERNEL_OK")
</pallas_src>

<mosaic_0001>
module attributes {stable_mosaic.version = 11 : i64} {
  func.func @head_kernel(%arg0: i32, %arg1: memref<8x4096xbf16, #tpu.memory_space<vmem>>, %arg2: memref<4096x512xbf16, #tpu.memory_space<vmem>>, %arg3: memref<1x512xf32, #tpu.memory_space<vmem>>, %arg4: memref<512x128xbf16, #tpu.memory_space<vmem>>, %arg5: memref<1x128xf32, #tpu.memory_space<vmem>>, %arg6: memref<8x128xf32, #tpu.memory_space<vmem>>) attributes {dimension_semantics = [#tpu.dimension_semantics<parallel>], iteration_bounds = array<i64: 1>, scalar_prefetch = 0 : i64, scratch_operands = 0 : i64, tpu.core_type = #tpu.core_type<tc>, window_params = [{transform_indices = @transform_0, window_bounds = array<i64: 8, 4096>}, {pipeline_mode = #tpu.pipeline_mode<synchronous>, transform_indices = @transform_1, window_bounds = array<i64: 4096, 512>}, {pipeline_mode = #tpu.pipeline_mode<synchronous>, transform_indices = @transform_2, window_bounds = array<i64: 1, 512>}, {pipeline_mode = #tpu.pipeline_mode<synchronous>, transform_indices = @transform_3, window_bounds = array<i64: 512, 128>}, {pipeline_mode = #tpu.pipeline_mode<synchronous>, transform_indices = @transform_4, window_bounds = array<i64: 1, 128>}, {transform_indices = @transform_5, window_bounds = array<i64: 8, 128>}]} {
    %c0 = arith.constant 0 : index
    %c0_0 = arith.constant 0 : index
    %0 = vector.load %arg1[%c0, %c0_0] : memref<8x4096xbf16, #tpu.memory_space<vmem>>, vector<8x4096xbf16>
    %c0_1 = arith.constant 0 : index
    %c0_2 = arith.constant 0 : index
    %1 = vector.load %arg2[%c0_1, %c0_2] : memref<4096x512xbf16, #tpu.memory_space<vmem>>, vector<4096x512xbf16>
    %cst = arith.constant dense<0.000000e+00> : vector<8x512xf32>
    %2 = tpu.matmul %0, %1, %cst {dimension_numbers = #tpu.dot_dimension_numbers<[1], [0], [0], [1], [0, 0, 1, 1], [], []>} : vector<8x4096xbf16>, vector<4096x512xbf16>, vector<8x512xf32> -> vector<8x512xf32>
    %c0_3 = arith.constant 0 : index
    %c0_4 = arith.constant 0 : index
    %3 = vector.load %arg3[%c0_3, %c0_4] : memref<1x512xf32, #tpu.memory_space<vmem>>, vector<1x512xf32>
    %4 = vector.broadcast %3 : vector<1x512xf32> to vector<8x512xf32>
    %5 = arith.addf %2, %4 : vector<8x512xf32>
    %cst_5 = arith.constant 0.000000e+00 : f32
    %6 = vector.broadcast %cst_5 : f32 to vector<8x512xf32>
    %7 = arith.maximumf %5, %6 : vector<8x512xf32>
    %8 = arith.truncf %7 : vector<8x512xf32> to vector<8x512xbf16>
    %c0_6 = arith.constant 0 : index
    %c0_7 = arith.constant 0 : index
    %9 = vector.load %arg4[%c0_6, %c0_7] : memref<512x128xbf16, #tpu.memory_space<vmem>>, vector<512x128xbf16>
    %cst_8 = arith.constant dense<0.000000e+00> : vector<8x128xf32>
    %10 = tpu.matmul %8, %9, %cst_8 {dimension_numbers = #tpu.dot_dimension_numbers<[1], [0], [0], [1], [0, 0, 1, 1], [], []>} : vector<8x512xbf16>, vector<512x128xbf16>, vector<8x128xf32> -> vector<8x128xf32>
    %c0_9 = arith.constant 0 : index
    %c0_10 = arith.constant 0 : index
    %11 = vector.load %arg5[%c0_9, %c0_10] : memref<1x128xf32, #tpu.memory_space<vmem>>, vector<1x128xf32>
    %12 = vector.broadcast %11 : vector<1x128xf32> to vector<8x128xf32>
    %13 = arith.addf %10, %12 : vector<8x128xf32>
    %c0_11 = arith.constant 0 : index
    %c0_12 = arith.constant 0 : index
    %14 = vector.load %arg6[%c0_11, %c0_12] : memref<8x128xf32, #tpu.memory_space<vmem>>, vector<8x128xf32>
    tpu.vector_store %arg6[%c0_11, %c0_12], %13 {strides = array<i32>} : memref<8x128xf32, #tpu.memory_space<vmem>>, vector<8x128xf32>,
    return
  }
  func.func @transform_0(%arg0: i32) -> (i32, i32) {
    %c0_i32 = arith.constant 0 : i32
    %c0_i32_0 = arith.constant 0 : i32
    return %arg0, %c0_i32 : i32, i32
  }
  func.func @transform_1(%arg0: i32) -> (i32, i32) {
    %c0_i32 = arith.constant 0 : i32
    %c0_i32_0 = arith.constant 0 : i32
    %c0_i32_1 = arith.constant 0 : i32
    return %c0_i32, %c0_i32_0 : i32, i32
  }
  func.func @transform_2(%arg0: i32) -> (i32, i32) {
    %c0_i32 = arith.constant 0 : i32
    %c0_i32_0 = arith.constant 0 : i32
    %c0_i32_1 = arith.constant 0 : i32
    return %c0_i32, %c0_i32_0 : i32, i32
  }
  func.func @transform_3(%arg0: i32) -> (i32, i32) {
    %c0_i32 = arith.constant 0 : i32
    %c0_i32_0 = arith.constant 0 : i32
    %c0_i32_1 = arith.constant 0 : i32
    return %c0_i32, %c0_i32_0 : i32, i32
  }
  func.func @transform_4(%arg0: i32) -> (i32, i32) {
    %c0_i32 = arith.constant 0 : i32
    %c0_i32_0 = arith.constant 0 : i32
    %c0_i32_1 = arith.constant 0 : i32
    return %c0_i32, %c0_i32_0 : i32, i32
  }
  func.func @transform_5(%arg0: i32) -> (i32, i32) {
    %c0_i32 = arith.constant 0 : i32
    %c0_i32_0 = arith.constant 0 : i32
    return %arg0, %c0_i32 : i32, i32
  }
}

module attributes {stable_mosaic.version = 11 : i64} {
  func.func @head_kernel(%arg0: i32, %arg1: memref<8x4096xbf16, #tpu.memory_space<vmem>>, %arg2: memref<4096x512xbf16, #tpu.memory_space<vmem>>, %arg3: memref<1x512xf32, #tpu.memory_space<vmem>>, %arg4: memref<512x128xbf16, #tpu.memory_space<vmem>>, %arg5: memref<1x128xf32, #tpu.memory_space<vmem>>, %arg6: memref<8x128xf32, #tpu.memory_space<vmem>>) attributes {dimension_semantics = [#tpu.dimension_semantics<parallel>], iteration_bounds = array<i64: 1>, scalar_prefetch = 0 : i64, scratch_operands = 0 : i64, tpu.core_type = #tpu.core_type<tc>, window_params = [{transform_indices = @transform_0, window_bounds = array<i64: 8, 4096>}, {pipeline_mode = #tpu.pipeline_mode<synchronous>, transform_indices = @transform_1, window_bounds = array<i64: 4096, 512>}, {pipeline_mode = #tpu.pipeline_mode<synchronous>, transform_indices = @transform_2, window_bounds = array<i64: 1, 512>}, {pipeline_mode = #tpu.pipeline_mode<synchronous>, transform_indices = @transform_3, window_bounds = array<i64: 512, 128>}, {pipeline_mode = #tpu.pipeline_mode<synchronous>, transform_indices = @transform_4, window_bounds = array<i64: 1, 128>}, {transform_indices = @transform_5, window_bounds = array<i64: 8, 128>}]} {
    %c0 = arith.constant 0 : index
    %c0_0 = arith.constant 0 : index
    %0 = vector.load %arg1[%c0, %c0_0] : memref<8x4096xbf16, #tpu.memory_space<vmem>>, vector<8x4096xbf16>
    %c0_1 = arith.constant 0 : index
    %c0_2 = arith.constant 0 : index
    %1 = vector.load %arg2[%c0_1, %c0_2] : memref<4096x512xbf16, #tpu.memory_space<vmem>>, vector<4096x512xbf16>
    %cst = arith.constant dense<0.000000e+00> : vector<8x512xf32>
    %2 = tpu.matmul %0, %1, %cst {dimension_numbers = #tpu.dot_dimension_numbers<[1], [0], [0], [1], [0, 0, 1, 1], [], []>} : vector<8x4096xbf16>, vector<4096x512xbf16>, vector<8x512xf32> -> vector<8x512xf32>
    %c0_3 = arith.constant 0 : index
    %c0_4 = arith.constant 0 : index
    %3 = vector.load %arg3[%c0_3, %c0_4] : memref<1x512xf32, #tpu.memory_space<vmem>>, vector<1x512xf32>
    %4 = vector.broadcast %3 : vector<1x512xf32> to vector<8x512xf32>
    %5 = arith.addf %2, %4 : vector<8x512xf32>
    %cst_5 = arith.constant 0.000000e+00 : f32
    %6 = vector.broadcast %cst_5 : f32 to vector<8x512xf32>
    %7 = arith.maximumf %5, %6 : vector<8x512xf32>
    %8 = arith.truncf %7 : vector<8x512xf32> to vector<8x512xbf16>
    %c0_6 = arith.constant 0 : index
    %c0_7 = arith.constant 0 : index
    %9 = vector.load %arg4[%c0_6, %c0_7] : memref<512x128xbf16, #tpu.memory_space<vmem>>, vector<512x128xbf16>
    %cst_8 = arith.constant dense<0.000000e+00> : vector<8x128xf32>
    %10 = tpu.matmul %8, %9, %cst_8 {dimension_numbers = #tpu.dot_dimension_numbers<[1], [0], [0], [1], [0, 0, 1, 1], [], []>} : vector<8x512xbf16>, vector<512x128xbf16>, vector<8x128xf32> -> vector<8x128xf32>
    %c0_9 = arith.constant 0 : index
    %c0_10 = arith.constant 0 : index
    %11 = vector.load %arg5[%c0_9, %c0_10] : memref<1x128xf32, #tpu.memory_space<vmem>>, vector<1x128xf32>
    %12 = vector.broadcast %11 : vector<1x128xf32> to vector<8x128xf32>
    %13 = arith.addf %10, %12 : vector<8x128xf32>
    %c0_11 = arith.constant 0 : index
    %c0_12 = arith.constant 0 : index
    %14 = vector.load %arg6[%c0_11, %c0_12] : memref<8x128xf32, #tpu.memory_space<vmem>>, vector<8x128xf32>
    tpu.vector_store %arg6[%c0_11, %c0_12], %13 {strides = array<i32>} : memref<8x128xf32, #tpu.memory_space<vmem>>, vector<8x128xf32>,
    return
  }
  func.func @transform_0(%arg0: i32) -> (i32, i32) {
    %c0_i32 = arith.constant 0 : i32
    %c0_i32_0 = arith.constant 0 : i32
    return %arg0, %c0_i32 : i32, i32
  }
  func.func @transform_1(%arg0: i32) -> (i32, i32) {
    %c0_i32 = arith.constant 0 : i32
    %c0_i32_0 = arith.constant 0 : i32
    %c0_i32_1 = arith.constant 0 : i32
    return %c0_i32, %c0_i32_0 : i32, i32
  }
  func.func @transform_2(%arg0: i32) -> (i32, i32) {
    %c0_i32 = arith.constant 0 : i32
    %c0_i32_0 = arith.constant 0 : i32
    %c0_i32_1 = arith.constant 0 : i32
    return %c0_i32, %c0_i32_0 : i32, i32
  }
  func.func @transform_3(%arg0: i32) -> (i32, i32) {
    %c0_i32 = arith.constant 0 : i32
    %c0_i32_0 = arith.constant 0 : i32
    %c0_i32_1 = arith.constant 0 : i32
    return %c0_i32, %c0_i32_0 : i32, i32
  }
  func.func @transform_4(%arg0: i32) -> (i32, i32) {
    %c0_i32 = arith.constant 0 : i32
    %c0_i32_0 = arith.constant 0 : i32
    %c0_i32_1 = arith.constant 0 : i32
    return %c0_i32, %c0_i32_0 : i32, i32
  }
  func.func @transform_5(%arg0: i32) -> (i32, i32) {
    %c0_i32 = arith.constant 0 : i32
    %c0_i32_0 = arith.constant 0 : i32
    return %arg0, %c0_i32 : i32, i32
  }
}

</mosaic_0001>

<bundles_post_ra>
// kernel: tpu_custom_call.1
= control target key start
LH: loop header
LB: loop body
LE: loop exit
PB: predicated region body
PF: predicated region fallthrough
CT: control target
= control target key end

     0   :  { %10 = vsyncpa [#allocation3], 0  ;;  %s11279_s0 = inlined_call_operand.hbm [shape: bf16[8,4096], index: 0, kind: input, shape index: {}]   ;;  %s11280_s1 = inlined_call_operand.hbm [shape: bf16[4096,512], index: 1, kind: input, shape index: {}]   ;;  %s11281_s2 = inlined_call_operand.hbm [shape: f32[1,512], index: 2, kind: input, shape index: {}]   ;;  %s11282_s3 = inlined_call_operand.hbm [shape: bf16[512,128], index: 3, kind: input, shape index: {}]   ;;  %s11283_s4 = inlined_call_operand.hbm [shape: f32[1,128], index: 4, kind: input, shape index: {}]   ;;  %s11284_s5 = inlined_call_operand.hbm [shape: f32[8,128], index: 5, kind: output, shape index: {}]  }
   0x1   :  { %11 = vsyncpa [#allocation6], 0 }
   0x2   :  { %12 = vsyncpa [#allocation9], 0 }
   0x3   :  { %13 = vsyncpa [#allocation4], 0  ;;  %s10931_s18 = smov [#allocation5]  }
   0x4   :  { %s29_s19 = sshll.u32 %s10931_s18, 4  ;;  %s30_s19 = int_to_ptr.vmem [resolvable:$true] %s29_s19 }
   0x5   :  { %s10811_s20 = scalar_lea.vmem %s30_s19, 131072  ;;  %p10816_p1 = scmp.lt.s32.totalorder %s30_s19, %s30_s19 }
   0x6   :  { %p10812_p0 = scmp.ne.s32.totalorder %s30_s19, %s10811_s20  ;;  %p10817_p2 = scmp.lt.s32.totalorder %s10811_s20, %s10811_s20 }
   0x8   :  { %p10818_p3 = por %p10817_p2, %p10816_p1 }
   0xa   :  { %p10819_p4 = pnand %p10818_p3, %p10812_p0 }
   0xc   :  { %10822 = shalt.err (!%p10819_p4)
}
   0xd   :  { %s10932_s21 = smov 256   ;;  %s10933_s22 = smov 16  }
   0xe   :  { %35 = dma.hbm_to_vmem [thread:$0]  %s11280_s1, 131072, %s30_s19, [#allocation6], %s10932_s21, %s10932_s21, %s10933_s22  }
   0xf   :  { %s10934_s25 = smov [#allocation8]  }
  0x10   :  { %s51_s26 = sshll.u32 %s10934_s25, 4  ;;  %s52_s26 = int_to_ptr.vmem [resolvable:$true] %s51_s26 }
  0x11   :  { %s10831_s27 = scalar_lea.vmem %s52_s26, 4096  ;;  %p10836_p6 = scmp.lt.s32.totalorder %s52_s26, %s52_s26 }
  0x12   :  { %p10832_p5 = scmp.ne.s32.totalorder %s52_s26, %s10831_s27  ;;  %p10837_p7 = scmp.lt.s32.totalorder %s10831_s27, %s10831_s27 }
  0x14   :  { %p10838_p8 = por %p10837_p7, %p10836_p6 }
  0x16   :  { %p10839_p9 = pnand %p10838_p8, %p10832_p5 }
  0x18   :  { %10842 = shalt.err (!%p10839_p9)
}
  0x19   :  { %s10935_s28 = smov 64   ;;  %s10936_s29 = smov 4  }
  0x1a   :  { %57 = dma.hbm_to_vmem [thread:$0]  %s11282_s3, 4096, %s52_s26, [#allocation9], %s10935_s28, %s10935_s28, %s10936_s29  }
  0x1b   :  { %s10937_s7 = smov [#allocation2]   ;;  %s10938_s9 = smov [#allocation7]  }
  0x1c   :  { %s20_s8 = sshll.u32 %s10937_s7, 4  ;;  %s42_s1 = sshll.u32 %s10938_s9, 4  ;;  %s21_s8 = int_to_ptr.vmem [resolvable:$true] %s20_s8  ;;  %s43_s1 = int_to_ptr.vmem [resolvable:$true] %s42_s1 }
  0x1d   :  { %s10851_s10 = scalar_lea.vmem %s21_s8, 2048  ;;  %p10856_p11 = scmp.lt.s32.totalorder %s21_s8, %s21_s8 }
  0x1e   :  { %p10852_p10 = scmp.ne.s32.totalorder %s21_s8, %s10851_s10  ;;  %p10857_p12 = scmp.lt.s32.totalorder %s10851_s10, %s10851_s10 }
  0x20   :  { %p10858_p13 = por %p10857_p12, %p10856_p11 }
  0x22   :  { %p10859_p0 = pnand %p10858_p13, %p10852_p10 }
  0x24   :  { %10862 = shalt.err (!%p10859_p0)
}
  0x25   :  { %23 = dma.hbm_to_vmem [thread:$0]  %s11279_s0, 2048, %s21_s8, [#allocation3]  }
  0x26   :  { %s10871_s13 = scalar_lea.vmem %s43_s1, 64  ;;  %p10876_p2 = scmp.lt.s32.totalorder %s43_s1, %s43_s1 }
  0x27   :  { %p10872_p1 = scmp.ne.s32.totalorder %s43_s1, %s10871_s13  ;;  %p10877_p3 = scmp.lt.s32.totalorder %s10871_s13, %s10871_s13 }
  0x29   :  { %p10878_p4 = por %p10877_p3, %p10876_p2 }
  0x2b   :  { %p10879_p5 = pnand %p10878_p4, %p10872_p1 }
  0x2d   :  { %10882 = shalt.err (!%p10879_p5)
}
  0x2e   :  { %45 = dma.hbm_to_vmem [thread:$0]  %s11281_s2, 64, %s43_s1, [#allocation6]  }
  0x2f   :  { %s10939_s15 = smov [#allocation10]  }
  0x30   :  { %s64_s16 = sshll.u32 %s10939_s15, 4  ;;  %s65_s16 = int_to_ptr.vmem [resolvable:$true] %s64_s16 }
  0x31   :  { %s10891_s17 = scalar_lea.vmem %s65_s16, 16  ;;  %s10895_s18 = scalar_lea.vmem %s65_s16, 32 }
  0x32   :  { %p10892_p6 = scmp.ne.s32.totalorder %s65_s16, %s10891_s17  ;;  %p10896_p7 = scmp.lt.s32.totalorder %s65_s16, %s65_s16 }
  0x33   :  { %p10897_p8 = scmp.lt.s32.totalorder %s10895_s18, %s10891_s17 }
  0x35   :  { %p10898_p9 = por %p10897_p8, %p10896_p7 }
  0x37   :  { %p10899_p10 = pnand %p10898_p9, %p10892_p6 }
  0x39   :  { %10902 = shalt.err (!%p10899_p10)
}
  0x3a   :  { %67 = dma.hbm_to_vmem [thread:$0]  %s11283_s4, 16, %s65_s16, [#allocation9]  }
  0x3b   :  { %10923 = dma.done.wait [#allocation3], 2048  }
  0x3c   :  { %10924 = vsyncadd [#allocation3], 4294965248 }
  0x3d   :  { %10925 = dma.done.wait [#allocation6], 131136  }
  0x3e   :  { %10926 = vsyncadd [#allocation6], 4294836160 }
  0x3f   :  { %10927 = dma.done.wait [#allocation9], 4112  }
  0x40   :  { %10928 = vsyncadd [#allocation9], 4294963184  ;;  %v9202_v0 = vld [vmem:[#allocation5 + $0xe4] ss:$16 sps:$4 sm:$0xff]   ;;  %v9206_v2 = vld [vmem:[#allocation5 + $0xe0] ss:$16 sps:$4 sm:$0xff]  }
  0x41   :  { %v9204_v1 = vld [vmem:[#allocation5 + $0x2e4] ss:$16 sps:$4 sm:$0xff]   ;;  %6378 = vmatprep.subr.bf16.mxu0 %v9202_v0  ;;  %v9207_v3 = vld [vmem:[#allocation5 + $0x2e0] ss:$16 sps:$4 sm:$0xff]   ;;  %v85_v48 = vld [vmem:[#allocation2 + $0x8] sm:$0xff]  ;;  %s10940_s2 = smov [#allocation11]  }
  0x42   :  { %6419 = vmatprep.subr.bf16.mxu1 %v9204_v1  ;;  %v9208_v4 = vld [vmem:[#allocation5 + $0xc4] ss:$16 sps:$4 sm:$0xff]   ;;  %6379 = vmatpush1.bf16.msra.mxu0 %v9206_v2  ;;  %v9212_v6 = vld [vmem:[#allocation5 + $0xc0] ss:$16 sps:$4 sm:$0xff]   ;;  %v10988_v51 = vcombine.high %v85_v48, %v85_v48  ;;  %s8048_s4 = sshll.u32 %s10940_s2, 4  ;;  %s8049_s4 = int_to_ptr.vmem [resolvable:$true] %s8048_s4 }
  0x43   :  { %6420 = vmatpush1.bf16.msra.mxu1 %v9207_v3  ;;  %v9210_v5 = vld [vmem:[#allocation5 + $0x2c4] ss:$16 sps:$4 sm:$0xff]   ;;  %6380 = vmatprep.subr.bf16.mxu0 %v9208_v4  ;;  %v9213_v7 = vld [vmem:[#allocation5 + $0x2c0] ss:$16 sps:$4 sm:$0xff]   ;;  %s10903_s20 = scalar_lea.vmem %s8049_s4, 128  ;;  %p10908_p12 = scmp.lt.s32.totalorder %s8049_s4, %s8049_s4 }
  0x44   :  { %6421 = vmatprep.subr.bf16.mxu1 %v9210_v5  ;;  %v9214_v8 = vld [vmem:[#allocation5 + $0xa4] ss:$16 sps:$4 sm:$0xff]   ;;  %v9218_v10 = vld [vmem:[#allocation5 + $0xa0] ss:$16 sps:$4 sm:$0xff]   ;;  %6451 = vmatprep.mubr.bf16.mxu1 %v10988_v51  ;;  %p10904_p11 = scmp.ne.s32.totalorder %s8049_s4, %s10903_s20  ;;  %p10909_p13 = scmp.lt.s32.totalorder %s10903_s20, %s10903_s20 }
  0x45   :  { %v9216_v9 = vld [vmem:[#allocation5 + $0x2a4] ss:$16 sps:$4 sm:$0xff]   ;;  %v9219_v11 = vld [vmem:[#allocation5 + $0x2a0] ss:$16 sps:$4 sm:$0xff]  }
  0x46   :  { %6381 = vmatpush1.bf16.msra.mxu0 %v9212_v6  ;;  %v9220_v12 = vld [vmem:[#allocation5 + $0x84] ss:$16 sps:$4 sm:$0xff]   ;;  %v9224_v14 = vld [vmem:[#allocation5 + $0x80] ss:$16 sps:$4 sm:$0xff]   ;;  %p10910_p0 = por %p10909_p13, %p10908_p12 }
  0x47   :  { %6422 = vmatpush1.bf16.msra.mxu1 %v9213_v7  ;;  %6382 = vmatprep.subr.bf16.mxu0 %v9214_v8  ;;  %v9222_v13 = vld [vmem:[#allocation5 + $0x284] ss:$16 sps:$4 sm:$0xff]   ;;  %v9225_v15 = vld [vmem:[#allocation5 + $0x280] ss:$16 sps:$4 sm:$0xff]   ;;  %v10994_v7 = vcombine.low %v85_v48, %v85_v48 }
  0x48   :  { %6423 = vmatprep.subr.bf16.mxu1 %v9216_v9  ;;  %v9226_v16 = vld [vmem:[#allocation5 + $0x64] ss:$16 sps:$4 sm:$0xff]   ;;  %v9230_v18 = vld [vmem:[#allocation5 + $0x60] ss:$16 sps:$4 sm:$0xff]   ;;  %p10911_p1 = pnand %p10910_p0, %p10904_p11 }
  0x49   :  { %v9228_v17 = vld [vmem:[#allocation5 + $0x264] ss:$16 sps:$4 sm:$0xff]   ;;  %v9231_v19 = vld [vmem:[#allocation5 + $0x260] ss:$16 sps:$4 sm:$0xff]  }
  0x4a   :  { %6383 = vmatpush1.bf16.msra.mxu0 %v9218_v10  ;;  %v9232_v20 = vld [vmem:[#allocation5 + $0x44] ss:$16 sps:$4 sm:$0xff]   ;;  %v9236_v22 = vld [vmem:[#allocation5 + $0x40] ss:$16 sps:$4 sm:$0xff]  }
  0x4b   :  { %6424 = vmatpush1.bf16.msra.mxu1 %v9219_v11  ;;  %6384 = vmatprep.subr.bf16.mxu0 %v9220_v12  ;;  %v9234_v21 = vld [vmem:[#allocation5 + $0x244] ss:$16 sps:$4 sm:$0xff]   ;;  %v9237_v23 = vld [vmem:[#allocation5 + $0x240] ss:$16 sps:$4 sm:$0xff]  }
  0x4c   :  { %6425 = vmatprep.subr.bf16.mxu1 %v9222_v13  ;;  %v9238_v24 = vld [vmem:[#allocation5 + $0x24] ss:$16 sps:$4 sm:$0xff]   ;;  %v9242_v26 = vld [vmem:[#allocation5 + $0x20] ss:$16 sps:$4 sm:$0xff]  }
  0x4d   :  { %v9240_v25 = vld [vmem:[#allocation5 + $0x224] ss:$16 sps:$4 sm:$0xff]   ;;  %v9243_v27 = vld [vmem:[#allocation5 + $0x220] ss:$16 sps:$4 sm:$0xff]  }
  0x4e   :  { %6385 = vmatpush1.bf16.msra.mxu0 %v9224_v14  ;;  %v9244_v28 = vld [vmem:[#allocation5 + $0x4] ss:$16 sps:$4 sm:$0xff]   ;;  %v9248_v30 = vld [vmem:[#allocation5] ss:$16 sps:$4 sm:$0xff]  }
  0x4f   :  { %6426 = vmatpush1.bf16.msra.mxu1 %v9225_v15  ;;  %6386 = vmatprep.subr.bf16.mxu0 %v9226_v16  ;;  %v9246_v29 = vld [vmem:[#allocation5 + $0x204] ss:$16 sps:$4 sm:$0xff]   ;;  %v9249_v31 = vld [vmem:[#allocation5 + $0x200] ss:$16 sps:$4 sm:$0xff]  }
  0x50   :  { %6427 = vmatprep.subr.bf16.mxu1 %v9228_v17  ;;  %v9250_v32 = vld [vmem:[#allocation5 + $0x1e4] ss:$16 sps:$4 sm:$0xff]   ;;  %v9254_v34 = vld [vmem:[#allocation5 + $0x1e0] ss:$16 sps:$4 sm:$0xff]  }
  0x51   :  { %v9252_v33 = vld [vmem:[#allocation5 + $0x3e4] ss:$16 sps:$4 sm:$0xff]   ;;  %v9255_v35 = vld [vmem:[#allocation5 + $0x3e0] ss:$16 sps:$4 sm:$0xff]  }
  0x52   :  { %6387 = vmatpush1.bf16.msra.mxu0 %v9230_v18  ;;  %v9256_v36 = vld [vmem:[#allocation5 + $0x1c4] ss:$16 sps:$4 sm:$0xff]   ;;  %v9260_v38 = vld [vmem:[#allocation5 + $0x1c0] ss:$16 sps:$4 sm:$0xff]  }
  0x53   :  { %6428 = vmatpush1.bf16.msra.mxu1 %v9231_v19  ;;  %6388 = vmatprep.subr.bf16.mxu0 %v9232_v20  ;;  %v9258_v37 = vld [vmem:[#allocation5 + $0x3c4] ss:$16 sps:$4 sm:$0xff]   ;;  %v9261_v39 = vld [vmem:[#allocation5 + $0x3c0] ss:$16 sps:$4 sm:$0xff]  }
  0x54   :  { %6429 = vmatprep.subr.bf16.mxu1 %v9234_v21  ;;  %v9262_v40 = vld [vmem:[#allocation5 + $0x1a4] ss:$16 sps:$4 sm:$0xff]   ;;  %v9266_v42 = vld [vmem:[#allocation5 + $0x1a0] ss:$16 sps:$4 sm:$0xff]  }
  0x55   :  { %v9264_v41 = vld [vmem:[#allocation5 + $0x3a4] ss:$16 sps:$4 sm:$0xff]   ;;  %v9267_v43 = vld [vmem:[#allocation5 + $0x3a0] ss:$16 sps:$4 sm:$0xff]  }
  0x56   :  { %6389 = vmatpush1.bf16.msra.mxu0 %v9236_v22  ;;  %v9268_v44 = vld [vmem:[#allocation5 + $0x184] ss:$16 sps:$4 sm:$0xff]   ;;  %v9272_v49 = vld [vmem:[#allocation5 + $0x180] ss:$16 sps:$4 sm:$0xff]  }
  0x57   :  { %6430 = vmatpush1.bf16.msra.mxu1 %v9237_v23  ;;  %6390 = vmatprep.subr.bf16.mxu0 %v9238_v24  ;;  %v9270_v45 = vld [vmem:[#allocation5 + $0x384] ss:$16 sps:$4 sm:$0xff]   ;;  %v9273_v50 = vld [vmem:[#allocation5 + $0x380] ss:$16 sps:$4 sm:$0xff]  }
  0x58   :  { %6431 = vmatprep.subr.bf16.mxu1 %v9240_v25  ;;  %v84_v46 = vld [vmem:[#allocation2] sm:$0xff] }
  0x59   :  { %v10986_v47 = vcombine.high %v84_v46, %v84_v46  ;;  %v9274_v52 = vld [vmem:[#allocation5 + $0x164] ss:$16 sps:$4 sm:$0xff]   ;;  %v9278_v54 = vld [vmem:[#allocation5 + $0x160] ss:$16 sps:$4 sm:$0xff]   ;;  %v10992_v6 = vcombine.low %v84_v46, %v84_v46 }
  0x5a   :  { %6391 = vmatpush1.bf16.msra.mxu0 %v9242_v26  ;;  %v9276_v53 = vld [vmem:[#allocation5 + $0x364] ss:$16 sps:$4 sm:$0xff]   ;;  %v9279_v55 = vld [vmem:[#allocation5 + $0x360] ss:$16 sps:$4 sm:$0xff]  }
  0x5b   :  { %6432 = vmatpush1.bf16.msra.mxu1 %v9243_v27  ;;  %6392 = vmatprep.subr.bf16.mxu0 %v9244_v28  ;;  %v9280_v56 = vld [vmem:[#allocation5 + $0x144] ss:$16 sps:$4 sm:$0xff]   ;;  %v9284_v58 = vld [vmem:[#allocation5 + $0x140] ss:$16 sps:$4 sm:$0xff]  }
  0x5c   :  { %6433 = vmatprep.subr.bf16.mxu1 %v9246_v29  ;;  %6410 = vmatprep.mubr.bf16.mxu0 %v10986_v47  ;;  %v9282_v57 = vld [vmem:[#allocation5 + $0x344] ss:$16 sps:$4 sm:$0xff]   ;;  %v9285_v59 = vld [vmem:[#allocation5 + $0x340] ss:$16 sps:$4 sm:$0xff]  }
  0x5d   :  { %v9286_v60 = vld [vmem:[#allocation5 + $0x124] ss:$16 sps:$4 sm:$0xff]   ;;  %v9290_v62 = vld [vmem:[#allocation5 + $0x120] ss:$16 sps:$4 sm:$0xff]  }
  0x5e   :  { %6393 = vmatpush1.bf16.msra.mxu0 %v9248_v30  ;;  %v9288_v61 = vld [vmem:[#allocation5 + $0x324] ss:$16 sps:$4 sm:$0xff]   ;;  %v9291_v63 = vld [vmem:[#allocation5 + $0x320] ss:$16 sps:$4 sm:$0xff]  }
  0x5f   :  { %6434 = vmatpush1.bf16.msra.mxu1 %v9249_v31  ;;  %6394 = vmatprep.subr.bf16.mxu0 %v9250_v32  ;;  %v9292_v0 = vld [vmem:[#allocation5 + $0x104] ss:$16 sps:$4 sm:$0xff]   ;;  %v9296_v2 = vld [vmem:[#allocation5 + $0x100] ss:$16 sps:$4 sm:$0xff]  }
  0x60   :  { %6435 = vmatprep.subr.bf16.mxu1 %v9252_v33  ;;  %v9294_v1 = vld [vmem:[#allocation5 + $0x304] ss:$16 sps:$4 sm:$0xff]   ;;  %v9297_v3 = vld [vmem:[#allocation5 + $0x300] ss:$16 sps:$4 sm:$0xff]   ;;  %v11000_v33 = vld [vmem:[#allocation2 + $0x18] sm:$0xff] }
  0x61   :  { %v9304_v4 = vld [vmem:[#allocation5 + $0x4e4] ss:$16 sps:$4 sm:$0xff]   ;;  %v9302_v8 = vld [vmem:[#allocation5 + $0x4e0] ss:$16 sps:$4 sm:$0xff]  }
  0x62   :  { %6395 = vmatpush2.bf16.msra.mxu0 %v9254_v34  ;;  %v9307_v5 = vld [vmem:[#allocation5 + $0x6e4] ss:$16 sps:$4 sm:$0xff]   ;;  %v9305_v9 = vld [vmem:[#allocation5 + $0x6e0] ss:$16 sps:$4 sm:$0xff]  }
  0x63   :  { %6436 = vmatpush2.bf16.msra.mxu1 %v9255_v35  ;;  %6396 = vmatprep.subr.bf16.mxu0 %v9256_v36  ;;  %v9310_v10 = vld [vmem:[#allocation5 + $0x4c4] ss:$16 sps:$4 sm:$0xff]   ;;  %v9308_v12 = vld [vmem:[#allocation5 + $0x4c0] ss:$16 sps:$4 sm:$0xff]  }
  0x64   :  { %6437 = vmatprep.subr.bf16.mxu1 %v9258_v37  ;;  %v9313_v11 = vld [vmem:[#allocation5 + $0x6c4] ss:$16 sps:$4 sm:$0xff]   ;;  %v9311_v13 = vld [vmem:[#allocation5 + $0x6c0] ss:$16 sps:$4 sm:$0xff]   ;;  %v11008_v37 = vcombine.high %v11000_v33, %v11000_v33 }
  0x65   :  { %v9316_v14 = vld [vmem:[#allocation5 + $0x4a4] ss:$16 sps:$4 sm:$0xff]   ;;  %v9314_v16 = vld [vmem:[#allocation5 + $0x4a0] ss:$16 sps:$4 sm:$0xff]  }
  0x66   :  { %6397 = vmatpush2.bf16.msra.mxu0 %v9260_v38  ;;  %v9319_v15 = vld [vmem:[#allocation5 + $0x6a4] ss:$16 sps:$4 sm:$0xff]   ;;  %v9317_v17 = vld [vmem:[#allocation5 + $0x6a0] ss:$16 sps:$4 sm:$0xff]  }
  0x67   :  { %6438 = vmatpush2.bf16.msra.mxu1 %v9261_v39  ;;  %6398 = vmatprep.subr.bf16.mxu0 %v9262_v40  ;;  %v9322_v18 = vld [vmem:[#allocation5 + $0x484] ss:$16 sps:$4 sm:$0xff]   ;;  %v9320_v20 = vld [vmem:[#allocation5 + $0x480] ss:$16 sps:$4 sm:$0xff]  }
  0x68   :  { %6439 = vmatprep.subr.bf16.mxu1 %v9264_v41  ;;  %v9325_v19 = vld [vmem:[#allocation5 + $0x684] ss:$16 sps:$4 sm:$0xff]   ;;  %v9323_v21 = vld [vmem:[#allocation5 + $0x680] ss:$16 sps:$4 sm:$0xff]  }
  0x69   :  { %v9328_v22 = vld [vmem:[#allocation5 + $0x464] ss:$16 sps:$4 sm:$0xff]   ;;  %v9326_v24 = vld [vmem:[#allocation5 + $0x460] ss:$16 sps:$4 sm:$0xff]  }
  0x6a   :  { %6399 = vmatpush2.bf16.msra.mxu0 %v9266_v42  ;;  %v9331_v23 = vld [vmem:[#allocation5 + $0x664] ss:$16 sps:$4 sm:$0xff]   ;;  %v9329_v25 = vld [vmem:[#allocation5 + $0x660] ss:$16 sps:$4 sm:$0xff]  }
  0x6b   :  { %6440 = vmatpush2.bf16.msra.mxu1 %v9267_v43  ;;  %6400 = vmatprep.subr.bf16.mxu0 %v9268_v44  ;;  %v9334_v26 = vld [vmem:[#allocation5 + $0x444] ss:$16 sps:$4 sm:$0xff]   ;;  %v9332_v28 = vld [vmem:[#allocation5 + $0x440] ss:$16 sps:$4 sm:$0xff]  }
  0x6c   :  { %6441 = vmatprep.subr.bf16.mxu1 %v9270_v45  ;;  %v9337_v27 = vld [vmem:[#allocation5 + $0x644] ss:$16 sps:$4 sm:$0xff]   ;;  %v9335_v29 = vld [vmem:[#allocation5 + $0x640] ss:$16 sps:$4 sm:$0xff]  }
  0x6d   :  { %v9340_v30 = vld [vmem:[#allocation5 + $0x424] ss:$16 sps:$4 sm:$0xff]   ;;  %v9338_v34 = vld [vmem:[#allocation5 + $0x420] ss:$16 sps:$4 sm:$0xff]  }
  0x6e   :  { %6401 = vmatpush2.bf16.msra.mxu0 %v9272_v49  ;;  %v9343_v31 = vld [vmem:[#allocation5 + $0x624] ss:$16 sps:$4 sm:$0xff]   ;;  %v9341_v35 = vld [vmem:[#allocation5 + $0x620] ss:$16 sps:$4 sm:$0xff]  }
  0x6f   :  { %6442 = vmatpush2.bf16.msra.mxu1 %v9273_v50  ;;  %6402 = vmatprep.subr.bf16.mxu0 %v9274_v52  ;;  %v10998_v32 = vld [vmem:[#allocation2 + $0x10] sm:$0xff] }
  0x70   :  { %6443 = vmatprep.subr.bf16.mxu1 %v9276_v53  ;;  %v11004_v36 = vcombine.high %v10998_v32, %v10998_v32  ;;  %v9346_v38 = vld [vmem:[#allocation5 + $0x404] ss:$16 sps:$4 sm:$0xff]   ;;  %v9344_v40 = vld [vmem:[#allocation5 + $0x400] ss:$16 sps:$4 sm:$0xff]  }
  0x71   :  { %v9349_v39 = vld [vmem:[#allocation5 + $0x604] ss:$16 sps:$4 sm:$0xff]   ;;  %v9347_v41 = vld [vmem:[#allocation5 + $0x600] ss:$16 sps:$4 sm:$0xff]  }
  0x72   :  { %6403 = vmatpush2.bf16.msra.mxu0 %v9278_v54  ;;  %v9352_v42 = vld [vmem:[#allocation5 + $0x5e4] ss:$16 sps:$4 sm:$0xff]   ;;  %v9350_v44 = vld [vmem:[#allocation5 + $0x5e0] ss:$16 sps:$4 sm:$0xff]  }
  0x73   :  { %6444 = vmatpush2.bf16.msra.mxu1 %v9279_v55  ;;  %6404 = vmatprep.subr.bf16.mxu0 %v9280_v56  ;;  %v9355_v43 = vld [vmem:[#allocation5 + $0x7e4] ss:$16 sps:$4 sm:$0xff]   ;;  %v9353_v45 = vld [vmem:[#allocation5 + $0x7e0] ss:$16 sps:$4 sm:$0xff]  }
  0x74   :  { %6445 = vmatprep.subr.bf16.mxu1 %v9282_v57  ;;  %v9358_v46 = vld [vmem:[#allocation5 + $0x5c4] ss:$16 sps:$4 sm:$0xff]   ;;  %v9356_v49 = vld [vmem:[#allocation5 + $0x5c0] ss:$16 sps:$4 sm:$0xff]  }
  0x75   :  { %v9361_v48 = vld [vmem:[#allocation5 + $0x7c4] ss:$16 sps:$4 sm:$0xff]   ;;  %v9359_v50 = vld [vmem:[#allocation5 + $0x7c0] ss:$16 sps:$4 sm:$0xff]  }
  0x76   :  { %6405 = vmatpush2.bf16.msra.mxu0 %v9284_v58  ;;  %v9364_v52 = vld [vmem:[#allocation5 + $0x5a4] ss:$16 sps:$4 sm:$0xff]   ;;  %v9362_v54 = vld [vmem:[#allocation5 + $0x5a0] ss:$16 sps:$4 sm:$0xff]  }
  0x77   :  { %6446 = vmatpush2.bf16.msra.mxu1 %v9285_v59  ;;  %6406 = vmatprep.subr.bf16.mxu0 %v9286_v60  ;;  %v9367_v53 = vld [vmem:[#allocation5 + $0x7a4] ss:$16 sps:$4 sm:$0xff]   ;;  %v9365_v55 = vld [vmem:[#allocation5 + $0x7a0] ss:$16 sps:$4 sm:$0xff]  }
  0x78   :  { %6447 = vmatprep.subr.bf16.mxu1 %v9288_v61  ;;  %v9370_v56 = vld [vmem:[#allocation5 + $0x584] ss:$16 sps:$4 sm:$0xff]   ;;  %v9368_v58 = vld [vmem:[#allocation5 + $0x580] ss:$16 sps:$4 sm:$0xff]  }
  0x79   :  { %v9373_v57 = vld [vmem:[#allocation5 + $0x784] ss:$16 sps:$4 sm:$0xff]   ;;  %v9371_v59 = vld [vmem:[#allocation5 + $0x780] ss:$16 sps:$4 sm:$0xff]  }
  0x7a   :  { %6407 = vmatpush2.bf16.msra.mxu0 %v9290_v62  ;;  %v9376_v60 = vld [vmem:[#allocation5 + $0x564] ss:$16 sps:$4 sm:$0xff]   ;;  %v9374_v62 = vld [vmem:[#allocation5 + $0x560] ss:$16 sps:$4 sm:$0xff]  }
  0x7b   :  { %6448 = vmatpush2.bf16.msra.mxu1 %v9291_v63  ;;  %6408 = vmatprep.subr.bf16.mxu0 %v9292_v0  ;;  %v9379_v61 = vld [vmem:[#allocation5 + $0x764] ss:$16 sps:$4 sm:$0xff]   ;;  %v9377_v63 = vld [vmem:[#allocation5 + $0x760] ss:$16 sps:$4 sm:$0xff]  }
  0x7c   :  { %6449 = vmatprep.subr.bf16.mxu1 %v9294_v1  ;;  %v9382_v0 = vld [vmem:[#allocation5 + $0x544] ss:$16 sps:$4 sm:$0xff]  }
  0x7d   :  { %v9385_v1 = vld [vmem:[#allocation5 + $0x744] ss:$16 sps:$4 sm:$0xff]  }
  0x7e   :  { %6409 = vmatpush2.bf16.msra.mxu0 %v9296_v2  ;;  %v9380_v2 = vld [vmem:[#allocation5 + $0x540] ss:$16 sps:$4 sm:$0xff]  }
  0x7f   :  { %6450 = vmatpush2.bf16.msra.mxu1 %v9297_v3  ;;  %6460 = vmatprep.subr.bf16.mxu0 %v9304_v4  ;;  %v9383_v3 = vld [vmem:[#allocation5 + $0x740] ss:$16 sps:$4 sm:$0xff]   ;;  %v9388_v4 = vld [vmem:[#allocation5 + $0x524] ss:$16 sps:$4 sm:$0xff]  }
  0x80   :  { %6501 = vmatprep.subr.bf16.mxu1 %v9307_v5  ;;  %v9391_v5 = vld [vmem:[#allocation5 + $0x724] ss:$16 sps:$4 sm:$0xff]  }
  0x81   :  { %6411 = vmatmul.mubr.bf16.vlgmr.msra.gmra.mxu0 %v10992_v6 }
  0x82   :  { %6452 = vmatmul.mubr.bf16.vlgmr.msra.gmra.mxu1 %v10994_v7  ;;  %6461 = vmatpush1.bf16.msra.mxu0 %v9302_v8  ;;  %v9386_v8 = vld [vmem:[#allocation5 + $0x520] ss:$16 sps:$4 sm:$0xff]  }
  0x83   :  { %6502 = vmatpush1.bf16.msra.mxu1 %v9305_v9  ;;  %6462 = vmatprep.subr.bf16.mxu0 %v9310_v10  ;;  %v9389_v9 = vld [vmem:[#allocation5 + $0x720] ss:$16 sps:$4 sm:$0xff]   ;;  %v9394_v10 = vld [vmem:[#allocation5 + $0x504] ss:$16 sps:$4 sm:$0xff]  }
  0x84   :  { %6503 = vmatprep.subr.bf16.mxu1 %v9313_v11  ;;  %6492 = vmatprep.mubr.bf16.mxu0 %v11004_v36  ;;  %v9397_v11 = vld [vmem:[#allocation5 + $0x704] ss:$16 sps:$4 sm:$0xff]  }
  0x85   :  { %6533 = vmatprep.mubr.bf16.mxu1 %v11008_v37 }
  0x86   :  { %6463 = vmatpush1.bf16.msra.mxu0 %v9308_v12  ;;  %v9392_v12 = vld [vmem:[#allocation5 + $0x500] ss:$16 sps:$4 sm:$0xff]  }
  0x87   :  { %6504 = vmatpush1.bf16.msra.mxu1 %v9311_v13  ;;  %6464 = vmatprep.subr.bf16.mxu0 %v9316_v14  ;;  %v9395_v13 = vld [vmem:[#allocation5 + $0x700] ss:$16 sps:$4 sm:$0xff]   ;;  %v9404_v14 = vld [vmem:[#allocation5 + $0x8e4] ss:$16 sps:$4 sm:$0xff]  }
  0x88   :  { %6505 = vmatprep.subr.bf16.mxu1 %v9319_v15  ;;  %v9407_v15 = vld [vmem:[#allocation5 + $0xae4] ss:$16 sps:$4 sm:$0xff]  }
  0x8a   :  { %6465 = vmatpush1.bf16.msra.mxu0 %v9314_v16  ;;  %v11014_v16 = vcombine.low %v10998_v32, %v10998_v32  ;;  %v9422_v32 = vld [vmem:[#allocation5 + $0x884] ss:$16 sps:$4 sm:$0xff]  }
  0x8b   :  { %6506 = vmatpush1.bf16.msra.mxu1 %v9317_v17  ;;  %6466 = vmatprep.subr.bf16.mxu0 %v9322_v18  ;;  %v11018_v17 = vcombine.low %v11000_v33, %v11000_v33  ;;  %v9402_v18 = vld [vmem:[#allocation5 + $0x8e0] ss:$16 sps:$4 sm:$0xff]   ;;  %v9425_v33 = vld [vmem:[#allocation5 + $0xa84] ss:$16 sps:$4 sm:$0xff]  }
  0x8c   :  { %6507 = vmatprep.subr.bf16.mxu1 %v9325_v19  ;;  %v9405_v19 = vld [vmem:[#allocation5 + $0xae0] ss:$16 sps:$4 sm:$0xff]  }
  0x8e   :  { %6467 = vmatpush1.bf16.msra.mxu0 %v9320_v20  ;;  %v9410_v20 = vld [vmem:[#allocation5 + $0x8c4] ss:$16 sps:$4 sm:$0xff]  }
  0x8f   :  { %6508 = vmatpush1.bf16.msra.mxu1 %v9323_v21  ;;  %6468 = vmatprep.subr.bf16.mxu0 %v9328_v22  ;;  %v9413_v21 = vld [vmem:[#allocation5 + $0xac4] ss:$16 sps:$4 sm:$0xff]  }
  0x90   :  { %6509 = vmatprep.subr.bf16.mxu1 %v9331_v23  ;;  %v11020_v22 = vld [vmem:[#allocation2 + $0x20] sm:$0xff]  ;;  %v11022_v23 = vld [vmem:[#allocation2 + $0x28] sm:$0xff] }
  0x92   :  { %6469 = vmatpush1.bf16.msra.mxu0 %v9326_v24  ;;  %v11026_v24 = vcombine.high %v11020_v22, %v11020_v22 }
  0x93   :  { %6510 = vmatpush1.bf16.msra.mxu1 %v9329_v25  ;;  %6470 = vmatprep.subr.bf16.mxu0 %v9334_v26  ;;  %v11030_v25 = vcombine.high %v11022_v23, %v11022_v23  ;;  %v9408_v26 = vld [vmem:[#allocation5 + $0x8c0] ss:$16 sps:$4 sm:$0xff]  }
  0x94   :  { %6511 = vmatprep.subr.bf16.mxu1 %v9337_v27  ;;  %v9411_v27 = vld [vmem:[#allocation5 + $0xac0] ss:$16 sps:$4 sm:$0xff]  }
  0x96   :  { %6471 = vmatpush1.bf16.msra.mxu0 %v9332_v28  ;;  %v9416_v28 = vld [vmem:[#allocation5 + $0x8a4] ss:$16 sps:$4 sm:$0xff]  }
  0x97   :  { %6512 = vmatpush1.bf16.msra.mxu1 %v9335_v29  ;;  %6472 = vmatprep.subr.bf16.mxu0 %v9340_v30  ;;  %v9419_v29 = vld [vmem:[#allocation5 + $0xaa4] ss:$16 sps:$4 sm:$0xff]   ;;  %v9414_v30 = vld [vmem:[#allocation5 + $0x8a0] ss:$16 sps:$4 sm:$0xff]  }
  0x98   :  { %6513 = vmatprep.subr.bf16.mxu1 %v9343_v31  ;;  %v9417_v31 = vld [vmem:[#allocation5 + $0xaa0] ss:$16 sps:$4 sm:$0xff]  }
  0x9a   :  { %6473 = vmatpush1.bf16.msra.mxu0 %v9338_v34  ;;  %v9420_v34 = vld [vmem:[#allocation5 + $0x880] ss:$16 sps:$4 sm:$0xff]  }
  0x9b   :  { %6514 = vmatpush1.bf16.msra.mxu1 %v9341_v35  ;;  %6474 = vmatprep.subr.bf16.mxu0 %v9346_v38  ;;  %v9423_v35 = vld [vmem:[#allocation5 + $0xa80] ss:$16 sps:$4 sm:$0xff]   ;;  %v9428_v38 = vld [vmem:[#allocation5 + $0x864] ss:$16 sps:$4 sm:$0xff]  }
  0x9c   :  { %6515 = vmatprep.subr.bf16.mxu1 %v9349_v39  ;;  %v9431_v39 = vld [vmem:[#allocation5 + $0xa64] ss:$16 sps:$4 sm:$0xff]  }
  0x9e   :  { %6475 = vmatpush1.bf16.msra.mxu0 %v9344_v40  ;;  %v9426_v40 = vld [vmem:[#allocation5 + $0x860] ss:$16 sps:$4 sm:$0xff]  }
  0x9f   :  { %6516 = vmatpush1.bf16.msra.mxu1 %v9347_v41  ;;  %6476 = vmatprep.subr.bf16.mxu0 %v9352_v42  ;;  %v9429_v41 = vld [vmem:[#allocation5 + $0xa60] ss:$16 sps:$4 sm:$0xff]   ;;  %v9434_v42 = vld [vmem:[#allocation5 + $0x844] ss:$16 sps:$4 sm:$0xff]  }
  0xa0   :  { %6517 = vmatprep.subr.bf16.mxu1 %v9355_v43  ;;  %v9437_v43 = vld [vmem:[#allocation5 + $0xa44] ss:$16 sps:$4 sm:$0xff]  }
  0xa2   :  { %6477 = vmatpush2.bf16.msra.mxu0 %v9350_v44  ;;  %v9432_v44 = vld [vmem:[#allocation5 + $0x840] ss:$16 sps:$4 sm:$0xff]  }
  0xa3   :  { %6518 = vmatpush2.bf16.msra.mxu1 %v9353_v45  ;;  %6478 = vmatprep.subr.bf16.mxu0 %v9358_v46  ;;  %v9435_v45 = vld [vmem:[#allocation5 + $0xa40] ss:$16 sps:$4 sm:$0xff]   ;;  %v9440_v46 = vld [vmem:[#allocation5 + $0x824] ss:$16 sps:$4 sm:$0xff]  }
  0xa4   :  { %6519 = vmatprep.subr.bf16.mxu1 %v9361_v48  ;;  %v9443_v48 = vld [vmem:[#allocation5 + $0xa24] ss:$16 sps:$4 sm:$0xff]  }
  0xa6   :  { %6479 = vmatpush2.bf16.msra.mxu0 %v9356_v49  ;;  %v9438_v49 = vld [vmem:[#allocation5 + $0x820] ss:$16 sps:$4 sm:$0xff]  }
  0xa7   :  { %6520 = vmatpush2.bf16.msra.mxu1 %v9359_v50  ;;  %6480 = vmatprep.subr.bf16.mxu0 %v9364_v52  ;;  %v9441_v50 = vld [vmem:[#allocation5 + $0xa20] ss:$16 sps:$4 sm:$0xff]   ;;  %v9446_v52 = vld [vmem:[#allocation5 + $0x804] ss:$16 sps:$4 sm:$0xff]  }
  0xa8   :  { %6521 = vmatprep.subr.bf16.mxu1 %v9367_v53  ;;  %v9449_v53 = vld [vmem:[#allocation5 + $0xa04] ss:$16 sps:$4 sm:$0xff]  }
  0xaa   :  { %6481 = vmatpush2.bf16.msra.mxu0 %v9362_v54  ;;  %v9444_v54 = vld [vmem:[#allocation5 + $0x800] ss:$16 sps:$4 sm:$0xff]  }
  0xab   :  { %6522 = vmatpush2.bf16.msra.mxu1 %v9365_v55  ;;  %6482 = vmatprep.subr.bf16.mxu0 %v9370_v56  ;;  %v9447_v55 = vld [vmem:[#allocation5 + $0xa00] ss:$16 sps:$4 sm:$0xff]   ;;  %v9452_v56 = vld [vmem:[#allocation5 + $0x9e4] ss:$16 sps:$4 sm:$0xff]  }
  0xac   :  { %6523 = vmatprep.subr.bf16.mxu1 %v9373_v57  ;;  %v9455_v57 = vld [vmem:[#allocation5 + $0xbe4] ss:$16 sps:$4 sm:$0xff]  }
  0xae   :  { %6483 = vmatpush2.bf16.msra.mxu0 %v9368_v58  ;;  %v9450_v58 = vld [vmem:[#allocation5 + $0x9e0] ss:$16 sps:$4 sm:$0xff]  }
  0xaf   :  { %6524 = vmatpush2.bf16.msra.mxu1 %v9371_v59  ;;  %6484 = vmatprep.subr.bf16.mxu0 %v9376_v60  ;;  %v9453_v59 = vld [vmem:[#allocation5 + $0xbe0] ss:$16 sps:$4 sm:$0xff]   ;;  %v9458_v60 = vld [vmem:[#allocation5 + $0x9c4] ss:$16 sps:$4 sm:$0xff]  }
  0xb0   :  { %6525 = vmatprep.subr.bf16.mxu1 %v9379_v61  ;;  %v9461_v61 = vld [vmem:[#allocation5 + $0xbc4] ss:$16 sps:$4 sm:$0xff]  }
  0xb2   :  { %6485 = vmatpush2.bf16.msra.mxu0 %v9374_v62  ;;  %v9456_v62 = vld [vmem:[#allocation5 + $0x9c0] ss:$16 sps:$4 sm:$0xff]  }
  0xb3   :  { %6526 = vmatpush2.bf16.msra.mxu1 %v9377_v63  ;;  %6486 = vmatprep.subr.bf16.mxu0 %v9382_v0  ;;  %v9459_v63 = vld [vmem:[#allocation5 + $0xbc0] ss:$16 sps:$4 sm:$0xff]   ;;  %v9464_v0 = vld [vmem:[#allocation5 + $0x9a4] ss:$16 sps:$4 sm:$0xff]  }
  0xb4   :  { %6527 = vmatprep.subr.bf16.mxu1 %v9385_v1  ;;  %v9467_v1 = vld [vmem:[#allocation5 + $0xba4] ss:$16 sps:$4 sm:$0xff]  }
  0xb6   :  { %6487 = vmatpush2.bf16.msra.mxu0 %v9380_v2  ;;  %v9462_v2 = vld [vmem:[#allocation5 + $0x9a0] ss:$16 sps:$4 sm:$0xff]  }
  0xb7   :  { %6528 = vmatpush2.bf16.msra.mxu1 %v9383_v3  ;;  %6488 = vmatprep.subr.bf16.mxu0 %v9388_v4  ;;  %v9465_v3 = vld [vmem:[#allocation5 + $0xba0] ss:$16 sps:$4 sm:$0xff]   ;;  %v9470_v4 = vld [vmem:[#allocation5 + $0x984] ss:$16 sps:$4 sm:$0xff]  }
  0xb8   :  { %6529 = vmatprep.subr.bf16.mxu1 %v9391_v5  ;;  %v9473_v5 = vld [vmem:[#allocation5 + $0xb84] ss:$16 sps:$4 sm:$0xff]  }
  0xba   :  { %6489 = vmatpush2.bf16.msra.mxu0 %v9386_v8  ;;  %v9468_v8 = vld [vmem:[#allocation5 + $0x980] ss:$16 sps:$4 sm:$0xff]  }
  0xbb   :  { %6530 = vmatpush2.bf16.msra.mxu1 %v9389_v9  ;;  %6490 = vmatprep.subr.bf16.mxu0 %v9394_v10  ;;  %v9471_v9 = vld [vmem:[#allocation5 + $0xb80] ss:$16 sps:$4 sm:$0xff]   ;;  %v9476_v10 = vld [vmem:[#allocation5 + $0x964] ss:$16 sps:$4 sm:$0xff]  }
  0xbc   :  { %6531 = vmatprep.subr.bf16.mxu1 %v9397_v11  ;;  %v9479_v11 = vld [vmem:[#allocation5 + $0xb64] ss:$16 sps:$4 sm:$0xff]  }
  0xbe   :  { %6491 = vmatpush2.bf16.msra.mxu0 %v9392_v12  ;;  %v9474_v12 = vld [vmem:[#allocation5 + $0x960] ss:$16 sps:$4 sm:$0xff]  }
  0xbf   :  { %6532 = vmatpush2.bf16.msra.mxu1 %v9395_v13  ;;  %6542 = vmatprep.subr.bf16.mxu0 %v9404_v14  ;;  %v9477_v13 = vld [vmem:[#allocation5 + $0xb60] ss:$16 sps:$4 sm:$0xff]   ;;  %v9482_v14 = vld [vmem:[#allocation5 + $0x944] ss:$16 sps:$4 sm:$0xff]  }
  0xc0   :  { %6583 = vmatprep.subr.bf16.mxu1 %v9407_v15  ;;  %v9485_v15 = vld [vmem:[#allocation5 + $0xb44] ss:$16 sps:$4 sm:$0xff]  }
  0xc1   :  { %6493 = vmatmul.mubr.bf16.vlgmr.msra.gmra.mxu0 %v11014_v16 }
  0xc2   :  { %6534 = vmatmul.mubr.bf16.vlgmr.msra.gmra.mxu1 %v11018_v17  ;;  %6543 = vmatpush1.bf16.msra.mxu0 %v9402_v18  ;;  %v9480_v18 = vld [vmem:[#allocation5 + $0x940] ss:$16 sps:$4 sm:$0xff]  }
  0xc3   :  { %6584 = vmatpush1.bf16.msra.mxu1 %v9405_v19  ;;  %6544 = vmatprep.subr.bf16.mxu0 %v9410_v20  ;;  %v9483_v19 = vld [vmem:[#allocation5 + $0xb40] ss:$16 sps:$4 sm:$0xff]   ;;  %v9488_v20 = vld [vmem:[#allocation5 + $0x924] ss:$16 sps:$4 sm:$0xff]  }
  0xc4   :  { %6585 = vmatprep.subr.bf16.mxu1 %v9413_v21  ;;  %6574 = vmatprep.mubr.bf16.mxu0 %v11026_v24  ;;  %v9491_v21 = vld [vmem:[#allocation5 + $0xb24] ss:$16 sps:$4 sm:$0xff]  }
  0xc5   :  { %6615 = vmatprep.mubr.bf16.mxu1 %v11030_v25 }
  0xc6   :  { %6545 = vmatpush1.bf16.msra.mxu0 %v9408_v26  ;;  %v9486_v26 = vld [vmem:[#allocation5 + $0x920] ss:$16 sps:$4 sm:$0xff]  }
  0xc7   :  { %6586 = vmatpush1.bf16.msra.mxu1 %v9411_v27  ;;  %6546 = vmatprep.subr.bf16.mxu0 %v9416_v28  ;;  %v9489_v27 = vld [vmem:[#allocation5 + $0xb20] ss:$16 sps:$4 sm:$0xff]   ;;  %v9494_v28 = vld [vmem:[#allocation5 + $0x904] ss:$16 sps:$4 sm:$0xff]  }
  0xc8   :  { %6587 = vmatprep.subr.bf16.mxu1 %v9419_v29  ;;  %v9497_v29 = vld [vmem:[#allocation5 + $0xb04] ss:$16 sps:$4 sm:$0xff]  }
  0xca   :  { %6547 = vmatpush1.bf16.msra.mxu0 %v9414_v30  ;;  %v9492_v30 = vld [vmem:[#allocation5 + $0x900] ss:$16 sps:$4 sm:$0xff]  }
  0xcb   :  { %6588 = vmatpush1.bf16.msra.mxu1 %v9417_v31  ;;  %6548 = vmatprep.subr.bf16.mxu0 %v9422_v32  ;;  %v9495_v31 = vld [vmem:[#allocation5 + $0xb00] ss:$16 sps:$4 sm:$0xff]   ;;  %v9504_v32 = vld [vmem:[#allocation5 + $0xce4] ss:$16 sps:$4 sm:$0xff]  }
  0xcc   :  { %6589 = vmatprep.subr.bf16.mxu1 %v9425_v33  ;;  %v9507_v33 = vld [vmem:[#allocation5 + $0xee4] ss:$16 sps:$4 sm:$0xff]  }
  0xce   :  { %6549 = vmatpush1.bf16.msra.mxu0 %v9420_v34  ;;  %v9502_v34 = vld [vmem:[#allocation5 + $0xce0] ss:$16 sps:$4 sm:$0xff]  }
  0xcf   :  { %6590 = vmatpush1.bf16.msra.mxu1 %v9423_v35  ;;  %6550 = vmatprep.subr.bf16.mxu0 %v9428_v38  ;;  %v11036_v35 = vld [vmem:[#allocation2 + $0x30] sm:$0xff]  ;;  %v11040_v38 = vcombine.low %v11020_v22, %v11020_v22 }
  0xd0   :  { %6591 = vmatprep.subr.bf16.mxu1 %v9431_v39  ;;  %v11044_v39 = vcombine.low %v11022_v23, %v11022_v23  ;;  %v9508_v23 = vld [vmem:[#allocation5 + $0xcc0] ss:$16 sps:$4 sm:$0xff]  }
  0xd2   :  { %6551 = vmatpush1.bf16.msra.mxu0 %v9426_v40  ;;  %v11046_v40 = vld [vmem:[#allocation2 + $0x38] sm:$0xff] }
  0xd3   :  { %6592 = vmatpush1.bf16.msra.mxu1 %v9429_v41  ;;  %6552 = vmatprep.subr.bf16.mxu0 %v9434_v42  ;;  %v9505_v41 = vld [vmem:[#allocation5 + $0xee0] ss:$16 sps:$4 sm:$0xff]   ;;  %v9510_v42 = vld [vmem:[#allocation5 + $0xcc4] ss:$16 sps:$4 sm:$0xff]   ;;  %v11054_v22 = vcombine.high %v11046_v40, %v11046_v40 }
  0xd4   :  { %6593 = vmatprep.subr.bf16.mxu1 %v9437_v43  ;;  %v9513_v43 = vld [vmem:[#allocation5 + $0xec4] ss:$16 sps:$4 sm:$0xff]  }
  0xd6   :  { %6553 = vmatpush1.bf16.msra.mxu0 %v9432_v44  ;;  %v11050_v44 = vcombine.high %v11036_v35, %v11036_v35 }
  0xd7   :  { %6594 = vmatpush1.bf16.msra.mxu1 %v9435_v45  ;;  %6554 = vmatprep.subr.bf16.mxu0 %v9440_v46  ;;  %v9511_v45 = vld [vmem:[#allocation5 + $0xec0] ss:$16 sps:$4 sm:$0xff]   ;;  %v9516_v46 = vld [vmem:[#allocation5 + $0xca4] ss:$16 sps:$4 sm:$0xff]  }
  0xd8   :  { %6595 = vmatprep.subr.bf16.mxu1 %v9443_v48  ;;  %v9519_v48 = vld [vmem:[#allocation5 + $0xea4] ss:$16 sps:$4 sm:$0xff]  }
  0xda   :  { %6555 = vmatpush1.bf16.msra.mxu0 %v9438_v49  ;;  %v9514_v49 = vld [vmem:[#allocation5 + $0xca0] ss:$16 sps:$4 sm:$0xff]  }
  0xdb   :  { %6596 = vmatpush1.bf16.msra.mxu1 %v9441_v50  ;;  %6556 = vmatprep.subr.bf16.mxu0 %v9446_v52  ;;  %v9517_v50 = vld [vmem:[#allocation5 + $0xea0] ss:$16 sps:$4 sm:$0xff]   ;;  %v9522_v52 = vld [vmem:[#allocation5 + $0xc84] ss:$16 sps:$4 sm:$0xff]  }
  0xdc   :  { %6597 = vmatprep.subr.bf16.mxu1 %v9449_v53  ;;  %v9525_v53 = vld [vmem:[#allocation5 + $0xe84] ss:$16 sps:$4 sm:$0xff]  }
  0xde   :  { %6557 = vmatpush1.bf16.msra.mxu0 %v9444_v54  ;;  %v9520_v54 = vld [vmem:[#allocation5 + $0xc80] ss:$16 sps:$4 sm:$0xff]  }
  0xdf   :  { %6598 = vmatpush1.bf16.msra.mxu1 %v9447_v55  ;;  %6558 = vmatprep.subr.bf16.mxu0 %v9452_v56  ;;  %v9523_v55 = vld [vmem:[#allocation5 + $0xe80] ss:$16 sps:$4 sm:$0xff]   ;;  %v9528_v56 = vld [vmem:[#allocation5 + $0xc64] ss:$16 sps:$4 sm:$0xff]  }
  0xe0   :  { %6599 = vmatprep.subr.bf16.mxu1 %v9455_v57  ;;  %v9531_v57 = vld [vmem:[#allocation5 + $0xe64] ss:$16 sps:$4 sm:$0xff]  }
  0xe2   :  { %6559 = vmatpush2.bf16.msra.mxu0 %v9450_v58  ;;  %v9526_v58 = vld [vmem:[#allocation5 + $0xc60] ss:$16 sps:$4 sm:$0xff]  }
  0xe3   :  { %6600 = vmatpush2.bf16.msra.mxu1 %v9453_v59  ;;  %6560 = vmatprep.subr.bf16.mxu0 %v9458_v60  ;;  %v9529_v59 = vld [vmem:[#allocation5 + $0xe60] ss:$16 sps:$4 sm:$0xff]   ;;  %v9534_v60 = vld [vmem:[#allocation5 + $0xc44] ss:$16 sps:$4 sm:$0xff]  }
  0xe4   :  { %6601 = vmatprep.subr.bf16.mxu1 %v9461_v61  ;;  %v9537_v61 = vld [vmem:[#allocation5 + $0xe44] ss:$16 sps:$4 sm:$0xff]  }
  0xe6   :  { %6561 = vmatpush2.bf16.msra.mxu0 %v9456_v62  ;;  %v9532_v62 = vld [vmem:[#allocation5 + $0xc40] ss:$16 sps:$4 sm:$0xff]  }
  0xe7   :  { %6602 = vmatpush2.bf16.msra.mxu1 %v9459_v63  ;;  %6562 = vmatprep.subr.bf16.mxu0 %v9464_v0  ;;  %v9535_v63 = vld [vmem:[#allocation5 + $0xe40] ss:$16 sps:$4 sm:$0xff]   ;;  %v9540_v0 = vld [vmem:[#allocation5 + $0xc24] ss:$16 sps:$4 sm:$0xff]  }
  0xe8   :  { %6603 = vmatprep.subr.bf16.mxu1 %v9467_v1  ;;  %v9543_v1 = vld [vmem:[#allocation5 + $0xe24] ss:$16 sps:$4 sm:$0xff]  }
  0xea   :  { %6563 = vmatpush2.bf16.msra.mxu0 %v9462_v2  ;;  %v9538_v2 = vld [vmem:[#allocation5 + $0xc20] ss:$16 sps:$4 sm:$0xff]  }
  0xeb   :  { %6604 = vmatpush2.bf16.msra.mxu1 %v9465_v3  ;;  %6564 = vmatprep.subr.bf16.mxu0 %v9470_v4  ;;  %v9541_v3 = vld [vmem:[#allocation5 + $0xe20] ss:$16 sps:$4 sm:$0xff]   ;;  %v9546_v4 = vld [vmem:[#allocation5 + $0xc04] ss:$16 sps:$4 sm:$0xff]  }
  0xec   :  { %6605 = vmatprep.subr.bf16.mxu1 %v9473_v5  ;;  %v9549_v5 = vld [vmem:[#allocation5 + $0xe04] ss:$16 sps:$4 sm:$0xff]  }
  0xee   :  { %6565 = vmatpush2.bf16.msra.mxu0 %v9468_v8  ;;  %v9544_v8 = vld [vmem:[#allocation5 + $0xc00] ss:$16 sps:$4 sm:$0xff]  }
  0xef   :  { %6606 = vmatpush2.bf16.msra.mxu1 %v9471_v9  ;;  %6566 = vmatprep.subr.bf16.mxu0 %v9476_v10  ;;  %v9547_v9 = vld [vmem:[#allocation5 + $0xe00] ss:$16 sps:$4 sm:$0xff]   ;;  %v9552_v10 = vld [vmem:[#allocation5 + $0xde4] ss:$16 sps:$4 sm:$0xff]  }
  0xf0   :  { %6607 = vmatprep.subr.bf16.mxu1 %v9479_v11  ;;  %v9555_v11 = vld [vmem:[#allocation5 + $0xfe4] ss:$16 sps:$4 sm:$0xff]  }
  0xf2   :  { %6567 = vmatpush2.bf16.msra.mxu0 %v9474_v12  ;;  %v9550_v12 = vld [vmem:[#allocation5 + $0xde0] ss:$16 sps:$4 sm:$0xff]  }
  0xf3   :  { %6608 = vmatpush2.bf16.msra.mxu1 %v9477_v13  ;;  %6568 = vmatprep.subr.bf16.mxu0 %v9482_v14  ;;  %v9553_v13 = vld [vmem:[#allocation5 + $0xfe0] ss:$16 sps:$4 sm:$0xff]   ;;  %v9558_v14 = vld [vmem:[#allocation5 + $0xdc4] ss:$16 sps:$4 sm:$0xff]  }
  0xf4   :  { %6609 = vmatprep.subr.bf16.mxu1 %v9485_v15  ;;  %v9561_v15 = vld [vmem:[#allocation5 + $0xfc4] ss:$16 sps:$4 sm:$0xff]  }
  0xf6   :  { %6569 = vmatpush2.bf16.msra.mxu0 %v9480_v18  ;;  %v9556_v18 = vld [vmem:[#allocation5 + $0xdc0] ss:$16 sps:$4 sm:$0xff]  }
  0xf7   :  { %6610 = vmatpush2.bf16.msra.mxu1 %v9483_v19  ;;  %6570 = vmatprep.subr.bf16.mxu0 %v9488_v20  ;;  %v9559_v19 = vld [vmem:[#allocation5 + $0xfc0] ss:$16 sps:$4 sm:$0xff]   ;;  %v9564_v20 = vld [vmem:[#allocation5 + $0xda4] ss:$16 sps:$4 sm:$0xff]  }
  0xf8   :  { %6611 = vmatprep.subr.bf16.mxu1 %v9491_v21  ;;  %v9567_v21 = vld [vmem:[#allocation5 + $0xfa4] ss:$16 sps:$4 sm:$0xff]  }
  0xfa   :  { %6571 = vmatpush2.bf16.msra.mxu0 %v9486_v26  ;;  %v9562_v26 = vld [vmem:[#allocation5 + $0xda0] ss:$16 sps:$4 sm:$0xff]  }
  0xfb   :  { %6612 = vmatpush2.bf16.msra.mxu1 %v9489_v27  ;;  %6572 = vmatprep.subr.bf16.mxu0 %v9494_v28  ;;  %v9565_v27 = vld [vmem:[#allocation5 + $0xfa0] ss:$16 sps:$4 sm:$0xff]   ;;  %v9570_v28 = vld [vmem:[#allocation5 + $0xd84] ss:$16 sps:$4 sm:$0xff]  }
  0xfc   :  { %6613 = vmatprep.subr.bf16.mxu1 %v9497_v29  ;;  %v9573_v29 = vld [vmem:[#allocation5 + $0xf84] ss:$16 sps:$4 sm:$0xff]  }
  0xfe   :  { %6573 = vmatpush2.bf16.msra.mxu0 %v9492_v30  ;;  %v9568_v30 = vld [vmem:[#allocation5 + $0xd80] ss:$16 sps:$4 sm:$0xff]  }
  0xff   :  { %6614 = vmatpush2.bf16.msra.mxu1 %v9495_v31  ;;  %6624 = vmatprep.subr.bf16.mxu0 %v9504_v32  ;;  %v9571_v31 = vld [vmem:[#allocation5 + $0xf80] ss:$16 sps:$4 sm:$0xff]   ;;  %v9576_v32 = vld [vmem:[#allocation5 + $0xd64] ss:$16 sps:$4 sm:$0xff]  }
 0x100   :  { %6665 = vmatprep.subr.bf16.mxu1 %v9507_v33  ;;  %v9579_v33 = vld [vmem:[#allocation5 + $0xf64] ss:$16 sps:$4 sm:$0xff]  }
 0x101   :  { %6575 = vmatmul.mubr.bf16.vlgmr.msra.gmra.mxu0 %v11040_v38 }
 0x102   :  { %6616 = vmatmul.mubr.bf16.vlgmr.msra.gmra.mxu1 %v11044_v39  ;;  %6625 = vmatpush1.bf16.msra.mxu0 %v9502_v34  ;;  %v9574_v34 = vld [vmem:[#allocation5 + $0xd60] ss:$16 sps:$4 sm:$0xff]  }
 0x103   :  { %6666 = vmatpush1.bf16.msra.mxu1 %v9505_v41  ;;  %6626 = vmatprep.subr.bf16.mxu0 %v9510_v42  ;;  %v9577_v41 = vld [vmem:[#allocation5 + $0xf60] ss:$16 sps:$4 sm:$0xff]   ;;  %v9582_v42 = vld [vmem:[#allocation5 + $0xd44] ss:$16 sps:$4 sm:$0xff]  }
 0x104   :  { %6667 = vmatprep.subr.bf16.mxu1 %v9513_v43  ;;  %6656 = vmatprep.mubr.bf16.mxu0 %v11050_v44  ;;  %v9585_v43 = vld [vmem:[#allocation5 + $0xf44] ss:$16 sps:$4 sm:$0xff]  }
 0x105   :  { %6697 = vmatprep.mubr.bf16.mxu1 %v11054_v22 }
 0x106   :  { %6627 = vmatpush1.bf16.msra.mxu0 %v9508_v23  ;;  %v9580_v23 = vld [vmem:[#allocation5 + $0xd40] ss:$16 sps:$4 sm:$0xff]  }
 0x107   :  { %6668 = vmatpush1.bf16.msra.mxu1 %v9511_v45  ;;  %6628 = vmatprep.subr.bf16.mxu0 %v9516_v46  ;;  %v9583_v45 = vld [vmem:[#allocation5 + $0xf40] ss:$16 sps:$4 sm:$0xff]   ;;  %v9588_v46 = vld [vmem:[#allocation5 + $0xd24] ss:$16 sps:$4 sm:$0xff]  }
 0x108   :  { %6669 = vmatprep.subr.bf16.mxu1 %v9519_v48  ;;  %v1126_v48 = vlaneseq }
 0x10a   :  { %6629 = vmatpush1.bf16.msra.mxu0 %v9514_v49  ;;  %v9591_v49 = vld [vmem:[#allocation5 + $0xf24] ss:$16 sps:$4 sm:$0xff]  }
 0x10b   :  { %6670 = vmatpush1.bf16.msra.mxu1 %v9517_v50  ;;  %6630 = vmatprep.subr.bf16.mxu0 %v9522_v52  ;;  %v9586_v50 = vld [vmem:[#allocation5 + $0xd20] ss:$16 sps:$4 sm:$0xff]  }
 0x10c   :  { %6671 = vmatprep.subr.bf16.mxu1 %v9525_v53  ;;  %v9589_v52 = vld [vmem:[#allocation5 + $0xf20] ss:$16 sps:$4 sm:$0xff]   ;;  %v9594_v53 = vld [vmem:[#allocation5 + $0xd04] ss:$16 sps:$4 sm:$0xff]  }
 0x10e   :  { %6631 = vmatpush1.bf16.msra.mxu0 %v9520_v54  ;;  %v11060_v54 = vshrl.u32 %v1126_v48, 7  ;;  %v9626_v48 = vld [vmem:[#allocation5 + $0x1060] ss:$16 sps:$4 sm:$0xff]  }
 0x10f   :  { %6672 = vmatpush1.bf16.msra.mxu1 %v9523_v55  ;;  %6632 = vmatprep.subr.bf16.mxu0 %v9528_v56  ;;  %v9597_v55 = vld [vmem:[#allocation5 + $0xf04] ss:$16 sps:$4 sm:$0xff]   ;;  %v9592_v56 = vld [vmem:[#allocation5 + $0xd00] ss:$16 sps:$4 sm:$0xff]  }
 0x110   :  { %6673 = vmatprep.subr.bf16.mxu1 %v9531_v57  ;;  %v9595_v57 = vld [vmem:[#allocation5 + $0xf00] ss:$16 sps:$4 sm:$0xff]  }
 0x112   :  { %6633 = vmatpush1.bf16.msra.mxu0 %v9526_v58  ;;  %v1124_v58 = vld [vmem:[#allocation7] sm:$0xf] }
 0x113   :  { %6674 = vmatpush1.bf16.msra.mxu1 %v9529_v59  ;;  %6634 = vmatprep.subr.bf16.mxu0 %v9534_v60  ;;  %v1128_v59 = vsub.s32 0, %v11060_v54  ;;  %v9604_v60 = vld [vmem:[#allocation5 + $0x10e4] ss:$16 sps:$4 sm:$0xff]  }
 0x114   :  { %6675 = vmatprep.subr.bf16.mxu1 %v9537_v61  ;;  %v9607_v61 = vld [vmem:[#allocation5 + $0x12e4] ss:$16 sps:$4 sm:$0xff]  }
 0x116   :  { %6635 = vmatpush1.bf16.msra.mxu0 %v9532_v62  ;;  %v9602_v62 = vld [vmem:[#allocation5 + $0x10e0] ss:$16 sps:$4 sm:$0xff]  }
 0x117   :  { %6676 = vmatpush1.bf16.msra.mxu1 %v9535_v63  ;;  %6636 = vmatprep.subr.bf16.mxu0 %v9540_v0  ;;  %v1132_v63 = vsub.s32 1, %v11060_v54  ;;  %v11066_v0 = vcombine.low %v11036_v35, %v11036_v35 }
 0x118   :  { %6677 = vmatprep.subr.bf16.mxu1 %v9543_v1  ;;  %v11070_v1 = vcombine.low %v11046_v40, %v11046_v40 }
 0x11a   :  { %6637 = vmatpush1.bf16.msra.mxu0 %v9538_v2  ;;  %v11072_v2 = vld [vmem:[#allocation2 + $0x40] sm:$0xff] }
 0x11b   :  { %6678 = vmatpush1.bf16.msra.mxu1 %v9541_v3  ;;  %6638 = vmatprep.subr.bf16.mxu0 %v9546_v4  ;;  %v11074_v3 = vld [vmem:[#allocation2 + $0x48] sm:$0xff]  ;;  %v1129_v4 = vrot.slane %v1124_v58, %v1128_v59  ;;  %v11078_v35 = vcombine.high %v11072_v2, %v11072_v2  ;;  %v9641_v59 = vld [vmem:[#allocation5 + $0x1220] ss:$16 sps:$4 sm:$0xff]  }
 0x11c   :  { %6679 = vmatprep.subr.bf16.mxu1 %v9549_v5  ;;  %v9605_v5 = vld [vmem:[#allocation5 + $0x12e0] ss:$16 sps:$4 sm:$0xff]   ;;  %v11082_v40 = vcombine.high %v11074_v3, %v11074_v3 }
 0x11e   :  { %6639 = vmatpush1.bf16.msra.mxu0 %v9544_v8  ;;  %v9610_v8 = vld [vmem:[#allocation5 + $0x10c4] ss:$16 sps:$4 sm:$0xff]  }
 0x11f   :  { %6680 = vmatpush1.bf16.msra.mxu1 %v9547_v9  ;;  %6640 = vmatprep.subr.bf16.mxu0 %v9552_v10  ;;  %v9613_v9 = vld [vmem:[#allocation5 + $0x12c4] ss:$16 sps:$4 sm:$0xff]   ;;  %v1133_v10 = vrot.slane %v1124_v58, %v1132_v63  ;;  %v9638_v58 = vld [vmem:[#allocation5 + $0x1020] ss:$16 sps:$4 sm:$0xff]  }
 0x120   :  { %6681 = vmatprep.subr.bf16.mxu1 %v9555_v11  ;;  %v9647_v63 = vld [vmem:[#allocation5 + $0x1200] ss:$16 sps:$4 sm:$0xff]  }
 0x122   :  { %6641 = vmatpush2.bf16.msra.mxu0 %v9550_v12 }
 0x123   :  { %6682 = vmatpush2.bf16.msra.mxu1 %v9553_v13  ;;  %6642 = vmatprep.subr.bf16.mxu0 %v9558_v14  ;;  %v9608_v13 = vld [vmem:[#allocation5 + $0x10c0] ss:$16 sps:$4 sm:$0xff]  }
 0x124   :  { %6683 = vmatprep.subr.bf16.mxu1 %v9561_v15  ;;  %v9611_v15 = vld [vmem:[#allocation5 + $0x12c0] ss:$16 sps:$4 sm:$0xff]  }
 0x126   :  { %6643 = vmatpush2.bf16.msra.mxu0 %v9556_v18 }
 0x127   :  { %6684 = vmatpush2.bf16.msra.mxu1 %v9559_v19  ;;  %6644 = vmatprep.subr.bf16.mxu0 %v9564_v20  ;;  %v9616_v20 = vld [vmem:[#allocation5 + $0x10a4] ss:$16 sps:$4 sm:$0xff]  }
 0x128   :  { %6685 = vmatprep.subr.bf16.mxu1 %v9567_v21  ;;  %v9619_v21 = vld [vmem:[#allocation5 + $0x12a4] ss:$16 sps:$4 sm:$0xff]  }
 0x12a   :  { %6645 = vmatpush2.bf16.msra.mxu0 %v9562_v26 }
 0x12b   :  { %6686 = vmatpush2.bf16.msra.mxu1 %v9565_v27  ;;  %6646 = vmatprep.subr.bf16.mxu0 %v9570_v28 }
 0x12c   :  { %6687 = vmatprep.subr.bf16.mxu1 %v9573_v29 }
 0x12e   :  { %6647 = vmatpush2.bf16.msra.mxu0 %v9568_v30  ;;  %v9614_v30 = vld [vmem:[#allocation5 + $0x10a0] ss:$16 sps:$4 sm:$0xff]  }
 0x12f   :  { %6688 = vmatpush2.bf16.msra.mxu1 %v9571_v31  ;;  %6648 = vmatprep.subr.bf16.mxu0 %v9576_v32  ;;  %v9617_v32 = vld [vmem:[#allocation5 + $0x12a0] ss:$16 sps:$4 sm:$0xff]  }
 0x130   :  { %6689 = vmatprep.subr.bf16.mxu1 %v9579_v33 }
 0x132   :  { %6649 = vmatpush2.bf16.msra.mxu0 %v9574_v34 }
 0x133   :  { %6690 = vmatpush2.bf16.msra.mxu1 %v9577_v41  ;;  %6650 = vmatprep.subr.bf16.mxu0 %v9582_v42  ;;  %v9622_v41 = vld [vmem:[#allocation5 + $0x1084] ss:$16 sps:$4 sm:$0xff]  }
 0x134   :  { %6691 = vmatprep.subr.bf16.mxu1 %v9585_v43  ;;  %v9625_v42 = vld [vmem:[#allocation5 + $0x1284] ss:$16 sps:$4 sm:$0xff]   ;;  %v9620_v43 = vld [vmem:[#allocation5 + $0x1080] ss:$16 sps:$4 sm:$0xff]  }
 0x136   :  { %6651 = vmatpush2.bf16.msra.mxu0 %v9580_v23  ;;  %v9623_v23 = vld [vmem:[#allocation5 + $0x1280] ss:$16 sps:$4 sm:$0xff]  }
 0x137   :  { %6692 = vmatpush2.bf16.msra.mxu1 %v9583_v45  ;;  %6652 = vmatprep.subr.bf16.mxu0 %v9588_v46  ;;  %v9628_v45 = vld [vmem:[#allocation5 + $0x1064] ss:$16 sps:$4 sm:$0xff]  }
 0x138   :  { %6693 = vmatprep.subr.bf16.mxu1 %v9591_v49  ;;  %v9631_v46 = vld [vmem:[#allocation5 + $0x1264] ss:$16 sps:$4 sm:$0xff]   ;;  %v9629_v49 = vld [vmem:[#allocation5 + $0x1260] ss:$16 sps:$4 sm:$0xff]  }
 0x13a   :  { %6653 = vmatpush2.bf16.msra.mxu0 %v9586_v50  ;;  %v9634_v50 = vld [vmem:[#allocation5 + $0x1044] ss:$16 sps:$4 sm:$0xff]  }
 0x13b   :  { %6694 = vmatpush2.bf16.msra.mxu1 %v9589_v52  ;;  %6654 = vmatprep.subr.bf16.mxu0 %v9594_v53  ;;  %v9637_v52 = vld [vmem:[#allocation5 + $0x1244] ss:$16 sps:$4 sm:$0xff]   ;;  %v9632_v53 = vld [vmem:[#allocation5 + $0x1040] ss:$16 sps:$4 sm:$0xff]  }
 0x13c   :  { %6695 = vmatprep.subr.bf16.mxu1 %v9597_v55  ;;  %v9635_v55 = vld [vmem:[#allocation5 + $0x1240] ss:$16 sps:$4 sm:$0xff]  }
 0x13e   :  { %6655 = vmatpush2.bf16.msra.mxu0 %v9592_v56  ;;  %v9640_v56 = vld [vmem:[#allocation5 + $0x1024] ss:$16 sps:$4 sm:$0xff]  }
 0x13f   :  { %6696 = vmatpush2.bf16.msra.mxu1 %v9595_v57  ;;  %6706 = vmatprep.subr.bf16.mxu0 %v9604_v60  ;;  %v9643_v57 = vld [vmem:[#allocation5 + $0x1224] ss:$16 sps:$4 sm:$0xff]  }
 0x140   :  { %6747 = vmatprep.subr.bf16.mxu1 %v9607_v61  ;;  %v9646_v60 = vld [vmem:[#allocation5 + $0x1004] ss:$16 sps:$4 sm:$0xff]  }
 0x141   :  { %v6412_v11 = vpop.f32.mrf.mxu0  ;;  %6657 = vmatmul.mubr.bf16.vlgmr.msra.gmra.mxu0 %v11066_v0  ;;  %v9649_v61 = vld [vmem:[#allocation5 + $0x1204] ss:$16 sps:$4 sm:$0xff]  }
 0x142   :  { %v6453_v12 = vpop.f32.mrf.mxu1  ;;  %6698 = vmatmul.mubr.bf16.vlgmr.msra.gmra.mxu1 %v11070_v1  ;;  %v6413_v14 = vadd.f32 %v6412_v11, %v1129_v4  ;;  %6707 = vmatpush1.bf16.msra.mxu0 %v9602_v62  ;;  %v9644_v62 = vld [vmem:[#allocation5 + $0x1000] ss:$16 sps:$4 sm:$0xff]   ;;  %v9652_v4 = vld [vmem:[#allocation5 + $0x11e4] ss:$16 sps:$4 sm:$0xff]  }
 0x143   :  { %6748 = vmatpush1.bf16.msra.mxu1 %v9605_v5  ;;  %v6414_v18 = vpop.f32.mrf.mxu0  ;;  %6708 = vmatprep.subr.bf16.mxu0 %v9610_v8  ;;  %v9655_v5 = vld [vmem:[#allocation5 + $0x13e4] ss:$16 sps:$4 sm:$0xff]   ;;  %v9650_v8 = vld [vmem:[#allocation5 + $0x11e0] ss:$16 sps:$4 sm:$0xff]  }
 0x144   :  { %v6455_v19 = vpop.f32.mrf.mxu1  ;;  %6749 = vmatprep.subr.bf16.mxu1 %v9613_v9  ;;  %v11086_v26 = vadd.f32 %v6453_v12, %v6413_v14  ;;  %v6415_v27 = vadd.f32 %v6414_v18, %v1133_v10  ;;  %6738 = vmatprep.mubr.bf16.mxu0 %v11078_v35  ;;  %v9653_v9 = vld [vmem:[#allocation5 + $0x13e0] ss:$16 sps:$4 sm:$0xff]   ;;  %v9658_v10 = vld [vmem:[#allocation5 + $0x11c4] ss:$16 sps:$4 sm:$0xff]  }
 0x145   :  { %6779 = vmatprep.mubr.bf16.mxu1 %v11082_v40  ;;  %v6416_v28 = vpop.f32.mrf.mxu0  ;;  %v9661_v11 = vld [vmem:[#allocation5 + $0x13c4] ss:$16 sps:$4 sm:$0xff]   ;;  %v9656_v12 = vld [vmem:[#allocation5 + $0x11c0] ss:$16 sps:$4 sm:$0xff]  }
 0x146   :  { %v6457_v29 = vpop.f32.mrf.mxu1  ;;  %v11090_v31 = vadd.f32 %v6455_v19, %v6415_v27  ;;  %6709 = vmatpush1.bf16.msra.mxu0 %v9608_v13  ;;  %v9659_v13 = vld [vmem:[#allocation5 + $0x13c0] ss:$16 sps:$4 sm:$0xff]   ;;  %v9664_v14 = vld [vmem:[#allocation5 + $0x11a4] ss:$16 sps:$4 sm:$0xff]  }
 0x147   :  { %6750 = vmatpush1.bf16.msra.mxu1 %v9611_v15  ;;  %v6417_v33 = vpop.f32.mrf.mxu0  ;;  %6710 = vmatprep.subr.bf16.mxu0 %v9616_v20  ;;  %v9667_v15 = vld [vmem:[#allocation5 + $0x13a4] ss:$16 sps:$4 sm:$0xff]   ;;  %v9662_v18 = vld [vmem:[#allocation5 + $0x11a0] ss:$16 sps:$4 sm:$0xff]  }
 0x148   :  { %v6458_v34 = vpop.f32.mrf.mxu1  ;;  %6751 = vmatprep.subr.bf16.mxu1 %v9619_v21  ;;  %v9665_v19 = vld [vmem:[#allocation5 + $0x13a0] ss:$16 sps:$4 sm:$0xff]   ;;  %v9670_v20 = vld [vmem:[#allocation5 + $0x1184] ss:$16 sps:$4 sm:$0xff]  }
 0x149   :  { %v9673_v21 = vld [vmem:[#allocation5 + $0x1384] ss:$16 sps:$4 sm:$0xff]   ;;  %v9668_v27 = vld [vmem:[#allocation5 + $0x1180] ss:$16 sps:$4 sm:$0xff]  }
 0x14a   :  { %6711 = vmatpush1.bf16.msra.mxu0 %v9614_v30  ;;  %v9671_v28 = vld [vmem:[#allocation5 + $0x1380] ss:$16 sps:$4 sm:$0xff]   ;;  %v9676_v29 = vld [vmem:[#allocation5 + $0x1164] ss:$16 sps:$4 sm:$0xff]  }
 0x14b   :  { %6752 = vmatpush1.bf16.msra.mxu1 %v9617_v32  ;;  %6712 = vmatprep.subr.bf16.mxu0 %v9622_v41  ;;  %v9679_v30 = vld [vmem:[#allocation5 + $0x1364] ss:$16 sps:$4 sm:$0xff]   ;;  %v9674_v32 = vld [vmem:[#allocation5 + $0x1160] ss:$16 sps:$4 sm:$0xff]  }
 0x14c   :  { %6753 = vmatprep.subr.bf16.mxu1 %v9625_v42  ;;  %v9677_v33 = vld [vmem:[#allocation5 + $0x1360] ss:$16 sps:$4 sm:$0xff]   ;;  %v9682_v34 = vld [vmem:[#allocation5 + $0x1144] ss:$16 sps:$4 sm:$0xff]  }
 0x14d   :  { %v9685_v41 = vld [vmem:[#allocation5 + $0x1344] ss:$16 sps:$4 sm:$0xff]   ;;  %v9680_v42 = vld [vmem:[#allocation5 + $0x1140] ss:$16 sps:$4 sm:$0xff]  }
 0x14e   :  { %6713 = vmatpush1.bf16.msra.mxu0 %v9620_v43  ;;  %v9683_v43 = vld [vmem:[#allocation5 + $0x1340] ss:$16 sps:$4 sm:$0xff]  }
 0x14f   :  { %6754 = vmatpush1.bf16.msra.mxu1 %v9623_v23  ;;  %6714 = vmatprep.subr.bf16.mxu0 %v9628_v45  ;;  %v9688_v23 = vld [vmem:[#allocation5 + $0x1124] ss:$16 sps:$4 sm:$0xff]  }
 0x150   :  { %6755 = vmatprep.subr.bf16.mxu1 %v9631_v46  ;;  %v9691_v45 = vld [vmem:[#allocation5 + $0x1324] ss:$16 sps:$4 sm:$0xff]   ;;  %v9686_v46 = vld [vmem:[#allocation5 + $0x1120] ss:$16 sps:$4 sm:$0xff]  }
 0x152   :  { %6715 = vmatpush1.bf16.msra.mxu0 %v9626_v48  ;;  %v9689_v48 = vld [vmem:[#allocation5 + $0x1320] ss:$16 sps:$4 sm:$0xff]  }
 0x153   :  { %6756 = vmatpush1.bf16.msra.mxu1 %v9629_v49  ;;  %6716 = vmatprep.subr.bf16.mxu0 %v9634_v50  ;;  %v9694_v49 = vld [vmem:[#allocation5 + $0x1104] ss:$16 sps:$4 sm:$0xff]  }
 0x154   :  { %6757 = vmatprep.subr.bf16.mxu1 %v9637_v52  ;;  %v9697_v50 = vld [vmem:[#allocation5 + $0x1304] ss:$16 sps:$4 sm:$0xff]   ;;  %v9692_v52 = vld [vmem:[#allocation5 + $0x1100] ss:$16 sps:$4 sm:$0xff]  }
 0x156   :  { %6717 = vmatpush1.bf16.msra.mxu0 %v9632_v53  ;;  %v9695_v53 = vld [vmem:[#allocation5 + $0x1300] ss:$16 sps:$4 sm:$0xff]  }
 0x157   :  { %6758 = vmatpush1.bf16.msra.mxu1 %v9635_v55  ;;  %6718 = vmatprep.subr.bf16.mxu0 %v9640_v56  ;;  %v9704_v55 = vld [vmem:[#allocation5 + $0x14e4] ss:$16 sps:$4 sm:$0xff]  }
 0x158   :  { %6759 = vmatprep.subr.bf16.mxu1 %v9643_v57  ;;  %v9707_v56 = vld [vmem:[#allocation5 + $0x16e4] ss:$16 sps:$4 sm:$0xff]   ;;  %v9702_v57 = vld [vmem:[#allocation5 + $0x14e0] ss:$16 sps:$4 sm:$0xff]  }
 0x15a   :  { %6719 = vmatpush1.bf16.msra.mxu0 %v9638_v58  ;;  %v9705_v58 = vld [vmem:[#allocation5 + $0x16e0] ss:$16 sps:$4 sm:$0xff]  }
 0x15b   :  { %6760 = vmatpush1.bf16.msra.mxu1 %v9641_v59  ;;  %6720 = vmatprep.subr.bf16.mxu0 %v9646_v60  ;;  %v11094_v59 = vcombine.low %v11072_v2, %v11072_v2  ;;  %v11098_v60 = vcombine.low %v11074_v3, %v11074_v3 }
 0x15c   :  { %6761 = vmatprep.subr.bf16.mxu1 %v9649_v61  ;;  %v11100_v61 = vld [vmem:[#allocation2 + $0x50] sm:$0xff] }
 0x15d   :  { %v11106_v2 = vcombine.high %v11100_v61, %v11100_v61 }
 0x15e   :  { %6721 = vmatpush1.bf16.msra.mxu0 %v9644_v62  ;;  %v11102_v62 = vld [vmem:[#allocation2 + $0x58] sm:$0xff] }
 0x15f   :  { %6762 = vmatpush1.bf16.msra.mxu1 %v9647_v63  ;;  %6722 = vmatprep.subr.bf16.mxu0 %v9652_v4  ;;  %v9710_v63 = vld [vmem:[#allocation5 + $0x14c4] ss:$16 sps:$4 sm:$0xff]   ;;  %v11110_v3 = vcombine.high %v11102_v62, %v11102_v62 }
 0x160   :  { %6763 = vmatprep.subr.bf16.mxu1 %v9655_v5  ;;  %v9713_v4 = vld [vmem:[#allocation5 + $0x16c4] ss:$16 sps:$4 sm:$0xff]   ;;  %v9708_v5 = vld [vmem:[#allocation5 + $0x14c0] ss:$16 sps:$4 sm:$0xff]  }
 0x162   :  { %6723 = vmatpush2.bf16.msra.mxu0 %v9650_v8  ;;  %v9711_v8 = vld [vmem:[#allocation5 + $0x16c0] ss:$16 sps:$4 sm:$0xff]  }
 0x163   :  { %6764 = vmatpush2.bf16.msra.mxu1 %v9653_v9  ;;  %6724 = vmatprep.subr.bf16.mxu0 %v9658_v10 }
 0x164   :  { %6765 = vmatprep.subr.bf16.mxu1 %v9661_v11 }
 0x166   :  { %6725 = vmatpush2.bf16.msra.mxu0 %v9656_v12 }
 0x167   :  { %6766 = vmatpush2.bf16.msra.mxu1 %v9659_v13  ;;  %6726 = vmatprep.subr.bf16.mxu0 %v9664_v14  ;;  %v9716_v14 = vld [vmem:[#allocation5 + $0x14a4] ss:$16 sps:$4 sm:$0xff]  }
 0x168   :  { %6767 = vmatprep.subr.bf16.mxu1 %v9667_v15  ;;  %v9719_v15 = vld [vmem:[#allocation5 + $0x16a4] ss:$16 sps:$4 sm:$0xff]  }
 0x16a   :  { %6727 = vmatpush2.bf16.msra.mxu0 %v9662_v18 }
 0x16b   :  { %6768 = vmatpush2.bf16.msra.mxu1 %v9665_v19  ;;  %6728 = vmatprep.subr.bf16.mxu0 %v9670_v20  ;;  %v9714_v20 = vld [vmem:[#allocation5 + $0x14a0] ss:$16 sps:$4 sm:$0xff]  }
 0x16c   :  { %6769 = vmatprep.subr.bf16.mxu1 %v9673_v21  ;;  %v9717_v21 = vld [vmem:[#allocation5 + $0x16a0] ss:$16 sps:$4 sm:$0xff]  }
 0x16e   :  { %6729 = vmatpush2.bf16.msra.mxu0 %v9668_v27 }
 0x16f   :  { %6770 = vmatpush2.bf16.msra.mxu1 %v9671_v28  ;;  %6730 = vmatprep.subr.bf16.mxu0 %v9676_v29 }
 0x170   :  { %6771 = vmatprep.subr.bf16.mxu1 %v9679_v30 }
 0x172   :  { %6731 = vmatpush2.bf16.msra.mxu0 %v9674_v32  ;;  %v9722_v32 = vld [vmem:[#allocation5 + $0x1484] ss:$16 sps:$4 sm:$0xff]  }
 0x173   :  { %6772 = vmatpush2.bf16.msra.mxu1 %v9677_v33  ;;  %6732 = vmatprep.subr.bf16.mxu0 %v9682_v34  ;;  %v9725_v33 = vld [vmem:[#allocation5 + $0x1684] ss:$16 sps:$4 sm:$0xff]   ;;  %v9723_v34 = vld [vmem:[#allocation5 + $0x1680] ss:$16 sps:$4 sm:$0xff]  }
 0x174   :  { %6773 = vmatprep.subr.bf16.mxu1 %v9685_v41  ;;  %v9728_v41 = vld [vmem:[#allocation5 + $0x1464] ss:$16 sps:$4 sm:$0xff]  }
 0x176   :  { %6733 = vmatpush2.bf16.msra.mxu0 %v9680_v42  ;;  %v9731_v42 = vld [vmem:[#allocation5 + $0x1664] ss:$16 sps:$4 sm:$0xff]  }
 0x177   :  { %6774 = vmatpush2.bf16.msra.mxu1 %v9683_v43  ;;  %6734 = vmatprep.subr.bf16.mxu0 %v9688_v23  ;;  %v9726_v43 = vld [vmem:[#allocation5 + $0x1460] ss:$16 sps:$4 sm:$0xff]  }
 0x178   :  { %6775 = vmatprep.subr.bf16.mxu1 %v9691_v45  ;;  %v9729_v23 = vld [vmem:[#allocation5 + $0x1660] ss:$16 sps:$4 sm:$0xff]   ;;  %v9734_v45 = vld [vmem:[#allocation5 + $0x1444] ss:$16 sps:$4 sm:$0xff]  }
 0x17a   :  { %6735 = vmatpush2.bf16.msra.mxu0 %v9686_v46  ;;  %v9737_v46 = vld [vmem:[#allocation5 + $0x1644] ss:$16 sps:$4 sm:$0xff]  }
 0x17b   :  { %6776 = vmatpush2.bf16.msra.mxu1 %v9689_v48  ;;  %6736 = vmatprep.subr.bf16.mxu0 %v9694_v49  ;;  %v9732_v48 = vld [vmem:[#allocation5 + $0x1440] ss:$16 sps:$4 sm:$0xff]  }
 0x17c   :  { %6777 = vmatprep.subr.bf16.mxu1 %v9697_v50  ;;  %v9735_v49 = vld [vmem:[#allocation5 + $0x1640] ss:$16 sps:$4 sm:$0xff]   ;;  %v9740_v50 = vld [vmem:[#allocation5 + $0x1424] ss:$16 sps:$4 sm:$0xff]  }
 0x17e   :  { %6737 = vmatpush2.bf16.msra.mxu0 %v9692_v52  ;;  %v9743_v52 = vld [vmem:[#allocation5 + $0x1624] ss:$16 sps:$4 sm:$0xff]  }
 0x17f   :  { %6778 = vmatpush2.bf16.msra.mxu1 %v9695_v53  ;;  %6788 = vmatprep.subr.bf16.mxu0 %v9704_v55  ;;  %v9738_v53 = vld [vmem:[#allocation5 + $0x1420] ss:$16 sps:$4 sm:$0xff]  }
 0x180   :  { %6829 = vmatprep.subr.bf16.mxu1 %v9707_v56  ;;  %v9741_v55 = vld [vmem:[#allocation5 + $0x1620] ss:$16 sps:$4 sm:$0xff]   ;;  %v9746_v56 = vld [vmem:[#allocation5 + $0x1404] ss:$16 sps:$4 sm:$0xff]  }
 0x181   :  { %v6494_v9 = vpop.f32.mrf.mxu0  ;;  %6739 = vmatmul.mubr.bf16.vlgmr.msra.gmra.mxu0 %v11094_v59 }
 0x182   :  { %v6535_v10 = vpop.f32.mrf.mxu1  ;;  %6780 = vmatmul.mubr.bf16.vlgmr.msra.gmra.mxu1 %v11098_v60  ;;  %v6495_v11 = vadd.f32 %v6494_v9, %v11086_v26  ;;  %6789 = vmatpush1.bf16.msra.mxu0 %v9702_v57  ;;  %v9749_v57 = vld [vmem:[#allocation5 + $0x1604] ss:$16 sps:$4 sm:$0xff]   ;;  %v9753_v9 = vld [vmem:[#allocation5 + $0x17e0] ss:$16 sps:$4 sm:$0xff]  }
 0x183   :  { %6830 = vmatpush1.bf16.msra.mxu1 %v9705_v58  ;;  %v6496_v12 = vpop.f32.mrf.mxu0  ;;  %6790 = vmatprep.subr.bf16.mxu0 %v9710_v63  ;;  %v9744_v58 = vld [vmem:[#allocation5 + $0x1400] ss:$16 sps:$4 sm:$0xff]  }
 0x184   :  { %v6537_v13 = vpop.f32.mrf.mxu1  ;;  %6831 = vmatprep.subr.bf16.mxu1 %v9713_v4  ;;  %v11115_v18 = vadd.f32 %v6535_v10, %v6495_v11  ;;  %v6497_v19 = vadd.f32 %v6496_v12, %v11090_v31  ;;  %6820 = vmatprep.mubr.bf16.mxu0 %v11106_v2  ;;  %v9720_v31 = vld [vmem:[#allocation5 + $0x1480] ss:$16 sps:$4 sm:$0xff]   ;;  %v9752_v4 = vld [vmem:[#allocation5 + $0x15e4] ss:$16 sps:$4 sm:$0xff]  }
 0x185   :  { %6861 = vmatprep.mubr.bf16.mxu1 %v11110_v3  ;;  %v6498_v27 = vpop.f32.mrf.mxu0  ;;  %v9747_v63 = vld [vmem:[#allocation5 + $0x1600] ss:$16 sps:$4 sm:$0xff]   ;;  %v9758_v10 = vld [vmem:[#allocation5 + $0x15c4] ss:$16 sps:$4 sm:$0xff]  }
 0x186   :  { %v6539_v26 = vpop.f32.mrf.mxu1  ;;  %v11120_v28 = vadd.f32 %v6537_v13, %v6497_v19  ;;  %6791 = vmatpush1.bf16.msra.mxu0 %v9708_v5  ;;  %v9755_v5 = vld [vmem:[#allocation5 + $0x17e4] ss:$16 sps:$4 sm:$0xff]   ;;  %v9756_v12 = vld [vmem:[#allocation5 + $0x15c0] ss:$16 sps:$4 sm:$0xff]  }
 0x187   :  { %6832 = vmatpush1.bf16.msra.mxu1 %v9711_v8  ;;  %v6499_v29 = vpop.f32.mrf.mxu0  ;;  %6792 = vmatprep.subr.bf16.mxu0 %v9716_v14  ;;  %v9750_v8 = vld [vmem:[#allocation5 + $0x15e0] ss:$16 sps:$4 sm:$0xff]   ;;  %v9761_v11 = vld [vmem:[#allocation5 + $0x17c4] ss:$16 sps:$4 sm:$0xff]  }
 0x188   :  { %v6540_v30 = vpop.f32.mrf.mxu1  ;;  %6833 = vmatprep.subr.bf16.mxu1 %v9719_v15  ;;  %v9759_v13 = vld [vmem:[#allocation5 + $0x17c0] ss:$16 sps:$4 sm:$0xff]   ;;  %v9764_v14 = vld [vmem:[#allocation5 + $0x15a4] ss:$16 sps:$4 sm:$0xff]  }
 0x189   :  { %v9767_v15 = vld [vmem:[#allocation5 + $0x17a4] ss:$16 sps:$4 sm:$0xff]   ;;  %v9762_v19 = vld [vmem:[#allocation5 + $0x15a0] ss:$16 sps:$4 sm:$0xff]  }
 0x18a   :  { %6793 = vmatpush1.bf16.msra.mxu0 %v9714_v20  ;;  %v9765_v20 = vld [vmem:[#allocation5 + $0x17a0] ss:$16 sps:$4 sm:$0xff]   ;;  %v9773_v27 = vld [vmem:[#allocation5 + $0x1784] ss:$16 sps:$4 sm:$0xff]  }
 0x18b   :  { %6834 = vmatpush1.bf16.msra.mxu1 %v9717_v21  ;;  %6794 = vmatprep.subr.bf16.mxu0 %v9722_v32  ;;  %v9770_v21 = vld [vmem:[#allocation5 + $0x1584] ss:$16 sps:$4 sm:$0xff]   ;;  %v9768_v26 = vld [vmem:[#allocation5 + $0x1580] ss:$16 sps:$4 sm:$0xff]  }
 0x18c   :  { %6835 = vmatprep.subr.bf16.mxu1 %v9725_v33  ;;  %v9771_v29 = vld [vmem:[#allocation5 + $0x1780] ss:$16 sps:$4 sm:$0xff]   ;;  %v9776_v30 = vld [vmem:[#allocation5 + $0x1564] ss:$16 sps:$4 sm:$0xff]  }
 0x18d   :  { %v9779_v32 = vld [vmem:[#allocation5 + $0x1764] ss:$16 sps:$4 sm:$0xff]   ;;  %v9774_v33 = vld [vmem:[#allocation5 + $0x1560] ss:$16 sps:$4 sm:$0xff]  }
 0x18e   :  { %6795 = vmatpush1.bf16.msra.mxu0 %v9720_v31  ;;  %v9777_v31 = vld [vmem:[#allocation5 + $0x1760] ss:$16 sps:$4 sm:$0xff]  }
 0x18f   :  { %6836 = vmatpush1.bf16.msra.mxu1 %v9723_v34  ;;  %6796 = vmatprep.subr.bf16.mxu0 %v9728_v41  ;;  %v9782_v34 = vld [vmem:[#allocation5 + $0x1544] ss:$16 sps:$4 sm:$0xff]  }
 0x190   :  { %6837 = vmatprep.subr.bf16.mxu1 %v9731_v42  ;;  %v9785_v41 = vld [vmem:[#allocation5 + $0x1744] ss:$16 sps:$4 sm:$0xff]   ;;  %v9780_v42 = vld [vmem:[#allocation5 + $0x1540] ss:$16 sps:$4 sm:$0xff]  }
 0x192   :  { %6797 = vmatpush1.bf16.msra.mxu0 %v9726_v43  ;;  %v9783_v43 = vld [vmem:[#allocation5 + $0x1740] ss:$16 sps:$4 sm:$0xff]  }
 0x193   :  { %6838 = vmatpush1.bf16.msra.mxu1 %v9729_v23  ;;  %6798 = vmatprep.subr.bf16.mxu0 %v9734_v45  ;;  %v9788_v23 = vld [vmem:[#allocation5 + $0x1524] ss:$16 sps:$4 sm:$0xff]  }
 0x194   :  { %6839 = vmatprep.subr.bf16.mxu1 %v9737_v46  ;;  %v9791_v45 = vld [vmem:[#allocation5 + $0x1724] ss:$16 sps:$4 sm:$0xff]   ;;  %v9786_v46 = vld [vmem:[#allocation5 + $0x1520] ss:$16 sps:$4 sm:$0xff]  }
 0x196   :  { %6799 = vmatpush1.bf16.msra.mxu0 %v9732_v48  ;;  %v9789_v48 = vld [vmem:[#allocation5 + $0x1720] ss:$16 sps:$4 sm:$0xff]  }
 0x197   :  { %6840 = vmatpush1.bf16.msra.mxu1 %v9735_v49  ;;  %6800 = vmatprep.subr.bf16.mxu0 %v9740_v50  ;;  %v9794_v49 = vld [vmem:[#allocation5 + $0x1504] ss:$16 sps:$4 sm:$0xff]  }
 0x198   :  { %6841 = vmatprep.subr.bf16.mxu1 %v9743_v52  ;;  %v9797_v50 = vld [vmem:[#allocation5 + $0x1704] ss:$16 sps:$4 sm:$0xff]   ;;  %v9792_v52 = vld [vmem:[#allocation5 + $0x1500] ss:$16 sps:$4 sm:$0xff]  }
 0x19a   :  { %6801 = vmatpush1.bf16.msra.mxu0 %v9738_v53  ;;  %v9795_v53 = vld [vmem:[#allocation5 + $0x1700] ss:$16 sps:$4 sm:$0xff]  }
 0x19b   :  { %6842 = vmatpush1.bf16.msra.mxu1 %v9741_v55  ;;  %6802 = vmatprep.subr.bf16.mxu0 %v9746_v56  ;;  %v9804_v55 = vld [vmem:[#allocation5 + $0x18e4] ss:$16 sps:$4 sm:$0xff]  }
 0x19c   :  { %6843 = vmatprep.subr.bf16.mxu1 %v9749_v57  ;;  %v9807_v56 = vld [vmem:[#allocation5 + $0x1ae4] ss:$16 sps:$4 sm:$0xff]   ;;  %v9802_v57 = vld [vmem:[#allocation5 + $0x18e0] ss:$16 sps:$4 sm:$0xff]  }
 0x19e   :  { %6803 = vmatpush1.bf16.msra.mxu0 %v9744_v58  ;;  %v9805_v58 = vld [vmem:[#allocation5 + $0x1ae0] ss:$16 sps:$4 sm:$0xff]  }
 0x19f   :  { %6844 = vmatpush1.bf16.msra.mxu1 %v9747_v63  ;;  %6804 = vmatprep.subr.bf16.mxu0 %v9752_v4  ;;  %v11124_v63 = vcombine.low %v11100_v61, %v11100_v61  ;;  %v11128_v4 = vcombine.low %v11102_v62, %v11102_v62 }
 0x1a0   :  { %6845 = vmatprep.subr.bf16.mxu1 %v9755_v5  ;;  %v11130_v5 = vld [vmem:[#allocation2 + $0x60] sm:$0xff] }
 0x1a1   :  { %v11136_v61 = vcombine.high %v11130_v5, %v11130_v5 }
 0x1a2   :  { %6805 = vmatpush2.bf16.msra.mxu0 %v9750_v8  ;;  %v11132_v8 = vld [vmem:[#allocation2 + $0x68] sm:$0xff] }
 0x1a3   :  { %6846 = vmatpush2.bf16.msra.mxu1 %v9753_v9  ;;  %6806 = vmatprep.subr.bf16.mxu0 %v9758_v10  ;;  %v9810_v9 = vld [vmem:[#allocation5 + $0x18c4] ss:$16 sps:$4 sm:$0xff]   ;;  %v11140_v62 = vcombine.high %v11132_v8, %v11132_v8 }
 0x1a4   :  { %6847 = vmatprep.subr.bf16.mxu1 %v9761_v11  ;;  %v9813_v10 = vld [vmem:[#allocation5 + $0x1ac4] ss:$16 sps:$4 sm:$0xff]   ;;  %v9808_v11 = vld [vmem:[#allocation5 + $0x18c0] ss:$16 sps:$4 sm:$0xff]  }
 0x1a6   :  { %6807 = vmatpush2.bf16.msra.mxu0 %v9756_v12  ;;  %v9811_v12 = vld [vmem:[#allocation5 + $0x1ac0] ss:$16 sps:$4 sm:$0xff]  }
 0x1a7   :  { %6848 = vmatpush2.bf16.msra.mxu1 %v9759_v13  ;;  %6808 = vmatprep.subr.bf16.mxu0 %v9764_v14 }
 0x1a8   :  { %6849 = vmatprep.subr.bf16.mxu1 %v9767_v15 }
 0x1aa   :  { %6809 = vmatpush2.bf16.msra.mxu0 %v9762_v19 }
 0x1ab   :  { %6850 = vmatpush2.bf16.msra.mxu1 %v9765_v20  ;;  %6810 = vmatprep.subr.bf16.mxu0 %v9770_v21  ;;  %v9816_v21 = vld [vmem:[#allocation5 + $0x18a4] ss:$16 sps:$4 sm:$0xff]  }
 0x1ac   :  { %6851 = vmatprep.subr.bf16.mxu1 %v9773_v27  ;;  %v9819_v27 = vld [vmem:[#allocation5 + $0x1aa4] ss:$16 sps:$4 sm:$0xff]  }
 0x1ae   :  { %6811 = vmatpush2.bf16.msra.mxu0 %v9768_v26 }
 0x1af   :  { %6852 = vmatpush2.bf16.msra.mxu1 %v9771_v29  ;;  %6812 = vmatprep.subr.bf16.mxu0 %v9776_v30  ;;  %v9814_v30 = vld [vmem:[#allocation5 + $0x18a0] ss:$16 sps:$4 sm:$0xff]  }
 0x1b0   :  { %6853 = vmatprep.subr.bf16.mxu1 %v9779_v32  ;;  %v9817_v32 = vld [vmem:[#allocation5 + $0x1aa0] ss:$16 sps:$4 sm:$0xff]  }
 0x1b2   :  { %6813 = vmatpush2.bf16.msra.mxu0 %v9774_v33 }
 0x1b3   :  { %6854 = vmatpush2.bf16.msra.mxu1 %v9777_v31  ;;  %6814 = vmatprep.subr.bf16.mxu0 %v9782_v34 }
 0x1b4   :  { %6855 = vmatprep.subr.bf16.mxu1 %v9785_v41 }
 0x1b6   :  { %6815 = vmatpush2.bf16.msra.mxu0 %v9780_v42  ;;  %v9822_v42 = vld [vmem:[#allocation5 + $0x1884] ss:$16 sps:$4 sm:$0xff]  }
 0x1b7   :  { %6856 = vmatpush2.bf16.msra.mxu1 %v9783_v43  ;;  %6816 = vmatprep.subr.bf16.mxu0 %v9788_v23  ;;  %v9825_v43 = vld [vmem:[#allocation5 + $0x1a84] ss:$16 sps:$4 sm:$0xff]   ;;  %v9823_v23 = vld [vmem:[#allocation5 + $0x1a80] ss:$16 sps:$4 sm:$0xff]  }
 0x1b8   :  { %6857 = vmatprep.subr.bf16.mxu1 %v9791_v45  ;;  %v9828_v45 = vld [vmem:[#allocation5 + $0x1864] ss:$16 sps:$4 sm:$0xff]  }
 0x1ba   :  { %6817 = vmatpush2.bf16.msra.mxu0 %v9786_v46  ;;  %v9831_v46 = vld [vmem:[#allocation5 + $0x1a64] ss:$16 sps:$4 sm:$0xff]  }
 0x1bb   :  { %6858 = vmatpush2.bf16.msra.mxu1 %v9789_v48  ;;  %6818 = vmatprep.subr.bf16.mxu0 %v9794_v49  ;;  %v9826_v48 = vld [vmem:[#allocation5 + $0x1860] ss:$16 sps:$4 sm:$0xff]  }
 0x1bc   :  { %6859 = vmatprep.subr.bf16.mxu1 %v9797_v50  ;;  %v9829_v49 = vld [vmem:[#allocation5 + $0x1a60] ss:$16 sps:$4 sm:$0xff]   ;;  %v9834_v50 = vld [vmem:[#allocation5 + $0x1844] ss:$16 sps:$4 sm:$0xff]  }
 0x1be   :  { %6819 = vmatpush2.bf16.msra.mxu0 %v9792_v52  ;;  %v9837_v52 = vld [vmem:[#allocation5 + $0x1a44] ss:$16 sps:$4 sm:$0xff]  }
 0x1bf   :  { %6860 = vmatpush2.bf16.msra.mxu1 %v9795_v53  ;;  %6870 = vmatprep.subr.bf16.mxu0 %v9804_v55  ;;  %v9832_v53 = vld [vmem:[#allocation5 + $0x1840] ss:$16 sps:$4 sm:$0xff]  }
 0x1c0   :  { %6911 = vmatprep.subr.bf16.mxu1 %v9807_v56  ;;  %v9835_v55 = vld [vmem:[#allocation5 + $0x1a40] ss:$16 sps:$4 sm:$0xff]   ;;  %v9840_v56 = vld [vmem:[#allocation5 + $0x1824] ss:$16 sps:$4 sm:$0xff]  }
 0x1c1   :  { %v6576_v13 = vpop.f32.mrf.mxu0  ;;  %6821 = vmatmul.mubr.bf16.vlgmr.msra.gmra.mxu0 %v11124_v63 }
 0x1c2   :  { %v6617_v14 = vpop.f32.mrf.mxu1  ;;  %6862 = vmatmul.mubr.bf16.vlgmr.msra.gmra.mxu1 %v11128_v4  ;;  %v6577_v15 = vadd.f32 %v6576_v13, %v11115_v18  ;;  %6871 = vmatpush1.bf16.msra.mxu0 %v9802_v57  ;;  %v9843_v57 = vld [vmem:[#allocation5 + $0x1a24] ss:$16 sps:$4 sm:$0xff]   ;;  %v9847_v13 = vld [vmem:[#allocation5 + $0x1a00] ss:$16 sps:$4 sm:$0xff]  }
 0x1c3   :  { %6912 = vmatpush1.bf16.msra.mxu1 %v9805_v58  ;;  %v6578_v19 = vpop.f32.mrf.mxu0  ;;  %6872 = vmatprep.subr.bf16.mxu0 %v9810_v9  ;;  %v9838_v58 = vld [vmem:[#allocation5 + $0x1820] ss:$16 sps:$4 sm:$0xff]  }
 0x1c4   :  { %v6619_v20 = vpop.f32.mrf.mxu1  ;;  %6913 = vmatprep.subr.bf16.mxu1 %v9813_v10  ;;  %v11145_v26 = vadd.f32 %v6617_v14, %v6577_v15  ;;  %v6579_v29 = vadd.f32 %v6578_v19, %v11120_v28  ;;  %6902 = vmatprep.mubr.bf16.mxu0 %v11136_v61  ;;  %v9820_v28 = vld [vmem:[#allocation5 + $0x1880] ss:$16 sps:$4 sm:$0xff]   ;;  %v9846_v10 = vld [vmem:[#allocation5 + $0x1804] ss:$16 sps:$4 sm:$0xff]  }
 0x1c5   :  { %6943 = vmatprep.mubr.bf16.mxu1 %v11140_v62  ;;  %v6580_v33 = vpop.f32.mrf.mxu0  ;;  %v9841_v9 = vld [vmem:[#allocation5 + $0x1a20] ss:$16 sps:$4 sm:$0xff]   ;;  %v9852_v14 = vld [vmem:[#allocation5 + $0x19e4] ss:$16 sps:$4 sm:$0xff]  }
 0x1c6   :  { %v6621_v18 = vpop.f32.mrf.mxu1  ;;  %v11150_v31 = vadd.f32 %v6619_v20, %v6579_v29  ;;  %6873 = vmatpush1.bf16.msra.mxu0 %v9808_v11  ;;  %v9849_v11 = vld [vmem:[#allocation5 + $0x1a04] ss:$16 sps:$4 sm:$0xff]   ;;  %v9850_v19 = vld [vmem:[#allocation5 + $0x19e0] ss:$16 sps:$4 sm:$0xff]  }
 0x1c7   :  { %6914 = vmatpush1.bf16.msra.mxu1 %v9811_v12  ;;  %v6581_v34 = vpop.f32.mrf.mxu0  ;;  %6874 = vmatprep.subr.bf16.mxu0 %v9816_v21  ;;  %v9844_v12 = vld [vmem:[#allocation5 + $0x1800] ss:$16 sps:$4 sm:$0xff]   ;;  %v9855_v15 = vld [vmem:[#allocation5 + $0x1be4] ss:$16 sps:$4 sm:$0xff]  }
 0x1c8   :  { %v6622_v41 = vpop.f32.mrf.mxu1  ;;  %6915 = vmatprep.subr.bf16.mxu1 %v9819_v27  ;;  %v9853_v20 = vld [vmem:[#allocation5 + $0x1be0] ss:$16 sps:$4 sm:$0xff]   ;;  %v9858_v21 = vld [vmem:[#allocation5 + $0x19c4] ss:$16 sps:$4 sm:$0xff]  }
 0x1c9   :  { %v9861_v27 = vld [vmem:[#allocation5 + $0x1bc4] ss:$16 sps:$4 sm:$0xff]   ;;  %v9856_v29 = vld [vmem:[#allocation5 + $0x19c0] ss:$16 sps:$4 sm:$0xff]  }
 0x1ca   :  { %6875 = vmatpush1.bf16.msra.mxu0 %v9814_v30  ;;  %v9859_v30 = vld [vmem:[#allocation5 + $0x1bc0] ss:$16 sps:$4 sm:$0xff]   ;;  %v9867_v33 = vld [vmem:[#allocation5 + $0x1ba4] ss:$16 sps:$4 sm:$0xff]  }
 0x1cb   :  { %6916 = vmatpush1.bf16.msra.mxu1 %v9817_v32  ;;  %6876 = vmatprep.subr.bf16.mxu0 %v9822_v42  ;;  %v9864_v32 = vld [vmem:[#allocation5 + $0x19a4] ss:$16 sps:$4 sm:$0xff]   ;;  %v9862_v18 = vld [vmem:[#allocation5 + $0x19a0] ss:$16 sps:$4 sm:$0xff]  }
 0x1cc   :  { %6917 = vmatprep.subr.bf16.mxu1 %v9825_v43  ;;  %v9865_v34 = vld [vmem:[#allocation5 + $0x1ba0] ss:$16 sps:$4 sm:$0xff]   ;;  %v9870_v41 = vld [vmem:[#allocation5 + $0x1984] ss:$16 sps:$4 sm:$0xff]  }
 0x1cd   :  { %v9873_v42 = vld [vmem:[#allocation5 + $0x1b84] ss:$16 sps:$4 sm:$0xff]   ;;  %v9868_v43 = vld [vmem:[#allocation5 + $0x1980] ss:$16 sps:$4 sm:$0xff]  }
 0x1ce   :  { %6877 = vmatpush1.bf16.msra.mxu0 %v9820_v28  ;;  %v9871_v28 = vld [vmem:[#allocation5 + $0x1b80] ss:$16 sps:$4 sm:$0xff]  }
 0x1cf   :  { %6918 = vmatpush1.bf16.msra.mxu1 %v9823_v23  ;;  %6878 = vmatprep.subr.bf16.mxu0 %v9828_v45  ;;  %v9876_v23 = vld [vmem:[#allocation5 + $0x1964] ss:$16 sps:$4 sm:$0xff]  }
 0x1d0   :  { %6919 = vmatprep.subr.bf16.mxu1 %v9831_v46  ;;  %v9879_v45 = vld [vmem:[#allocation5 + $0x1b64] ss:$16 sps:$4 sm:$0xff]   ;;  %v9874_v46 = vld [vmem:[#allocation5 + $0x1960] ss:$16 sps:$4 sm:$0xff]  }
 0x1d2   :  { %6879 = vmatpush1.bf16.msra.mxu0 %v9826_v48  ;;  %v9877_v48 = vld [vmem:[#allocation5 + $0x1b60] ss:$16 sps:$4 sm:$0xff]  }
 0x1d3   :  { %6920 = vmatpush1.bf16.msra.mxu1 %v9829_v49  ;;  %6880 = vmatprep.subr.bf16.mxu0 %v9834_v50  ;;  %v9882_v49 = vld [vmem:[#allocation5 + $0x1944] ss:$16 sps:$4 sm:$0xff]  }
 0x1d4   :  { %6921 = vmatprep.subr.bf16.mxu1 %v9837_v52  ;;  %v9885_v50 = vld [vmem:[#allocation5 + $0x1b44] ss:$16 sps:$4 sm:$0xff]   ;;  %v9880_v52 = vld [vmem:[#allocation5 + $0x1940] ss:$16 sps:$4 sm:$0xff]  }
 0x1d6   :  { %6881 = vmatpush1.bf16.msra.mxu0 %v9832_v53  ;;  %v9883_v53 = vld [vmem:[#allocation5 + $0x1b40] ss:$16 sps:$4 sm:$0xff]  }
 0x1d7   :  { %6922 = vmatpush1.bf16.msra.mxu1 %v9835_v55  ;;  %6882 = vmatprep.subr.bf16.mxu0 %v9840_v56  ;;  %v9888_v55 = vld [vmem:[#allocation5 + $0x1924] ss:$16 sps:$4 sm:$0xff]  }
 0x1d8   :  { %6923 = vmatprep.subr.bf16.mxu1 %v9843_v57  ;;  %v9891_v56 = vld [vmem:[#allocation5 + $0x1b24] ss:$16 sps:$4 sm:$0xff]   ;;  %v9886_v57 = vld [vmem:[#allocation5 + $0x1920] ss:$16 sps:$4 sm:$0xff]  }
 0x1da   :  { %6883 = vmatpush1.bf16.msra.mxu0 %v9838_v58  ;;  %v9889_v58 = vld [vmem:[#allocation5 + $0x1b20] ss:$16 sps:$4 sm:$0xff]  }
 0x1db   :  { %6924 = vmatpush1.bf16.msra.mxu1 %v9841_v9  ;;  %6884 = vmatprep.subr.bf16.mxu0 %v9846_v10  ;;  %v9894_v9 = vld [vmem:[#allocation5 + $0x1904] ss:$16 sps:$4 sm:$0xff]  }
 0x1dc   :  { %6925 = vmatprep.subr.bf16.mxu1 %v9849_v11  ;;  %v9897_v10 = vld [vmem:[#allocation5 + $0x1b04] ss:$16 sps:$4 sm:$0xff]   ;;  %v9892_v11 = vld [vmem:[#allocation5 + $0x1900] ss:$16 sps:$4 sm:$0xff]  }
 0x1de   :  { %6885 = vmatpush1.bf16.msra.mxu0 %v9844_v12  ;;  %v9895_v12 = vld [vmem:[#allocation5 + $0x1b00] ss:$16 sps:$4 sm:$0xff]  }
 0x1df   :  { %6926 = vmatpush1.bf16.msra.mxu1 %v9847_v13  ;;  %6886 = vmatprep.subr.bf16.mxu0 %v9852_v14  ;;  %v9904_v13 = vld [vmem:[#allocation5 + $0x1ce4] ss:$16 sps:$4 sm:$0xff]  }
 0x1e0   :  { %6927 = vmatprep.subr.bf16.mxu1 %v9855_v15  ;;  %v9907_v14 = vld [vmem:[#allocation5 + $0x1ee4] ss:$16 sps:$4 sm:$0xff]  }
 0x1e1   :  { %v11152_v15 = vld [vmem:[#allocation2 + $0x70] sm:$0xff] }
 0x1e2   :  { %6887 = vmatpush2.bf16.msra.mxu0 %v9850_v19  ;;  %v11154_v19 = vld [vmem:[#allocation2 + $0x78] sm:$0xff] }
 0x1e3   :  { %6928 = vmatpush2.bf16.msra.mxu1 %v9853_v20  ;;  %6888 = vmatprep.subr.bf16.mxu0 %v9858_v21  ;;  %v9902_v20 = vld [vmem:[#allocation5 + $0x1ce0] ss:$16 sps:$4 sm:$0xff]  }
 0x1e4   :  { %6929 = vmatprep.subr.bf16.mxu1 %v9861_v27  ;;  %v9905_v21 = vld [vmem:[#allocation5 + $0x1ee0] ss:$16 sps:$4 sm:$0xff]   ;;  %v11158_v27 = vcombine.low %v11130_v5, %v11130_v5  ;;  %v11170_v5 = vcombine.high %v11154_v19, %v11154_v19 }
 0x1e6   :  { %6889 = vmatpush2.bf16.msra.mxu0 %v9856_v29  ;;  %v11162_v29 = vcombine.low %v11132_v8, %v11132_v8 }
 0x1e7   :  { %6930 = vmatpush2.bf16.msra.mxu1 %v9859_v30  ;;  %6890 = vmatprep.subr.bf16.mxu0 %v9864_v32  ;;  %v9910_v30 = vld [vmem:[#allocation5 + $0x1cc4] ss:$16 sps:$4 sm:$0xff]  }
 0x1e8   :  { %6931 = vmatprep.subr.bf16.mxu1 %v9867_v33  ;;  %v9913_v32 = vld [vmem:[#allocation5 + $0x1ec4] ss:$16 sps:$4 sm:$0xff]   ;;  %v9908_v33 = vld [vmem:[#allocation5 + $0x1cc0] ss:$16 sps:$4 sm:$0xff]  }
 0x1ea   :  { %6891 = vmatpush2.bf16.msra.mxu0 %v9862_v18  ;;  %v9911_v18 = vld [vmem:[#allocation5 + $0x1ec0] ss:$16 sps:$4 sm:$0xff]  }
 0x1eb   :  { %6932 = vmatpush2.bf16.msra.mxu1 %v9865_v34  ;;  %6892 = vmatprep.subr.bf16.mxu0 %v9870_v41  ;;  %v11166_v34 = vcombine.high %v11152_v15, %v11152_v15 }
 0x1ec   :  { %6933 = vmatprep.subr.bf16.mxu1 %v9873_v42 }
 0x1ee   :  { %6893 = vmatpush2.bf16.msra.mxu0 %v9868_v43 }
 0x1ef   :  { %6934 = vmatpush2.bf16.msra.mxu1 %v9871_v28  ;;  %6894 = vmatprep.subr.bf16.mxu0 %v9876_v23  ;;  %v9916_v23 = vld [vmem:[#allocation5 + $0x1ca4] ss:$16 sps:$4 sm:$0xff]  }
 0x1f0   :  { %6935 = vmatprep.subr.bf16.mxu1 %v9879_v45  ;;  %v9919_v45 = vld [vmem:[#allocation5 + $0x1ea4] ss:$16 sps:$4 sm:$0xff]  }
 0x1f2   :  { %6895 = vmatpush2.bf16.msra.mxu0 %v9874_v46 }
 0x1f3   :  { %6936 = vmatpush2.bf16.msra.mxu1 %v9877_v48  ;;  %6896 = vmatprep.subr.bf16.mxu0 %v9882_v49  ;;  %v9914_v49 = vld [vmem:[#allocation5 + $0x1ca0] ss:$16 sps:$4 sm:$0xff]  }
 0x1f4   :  { %6937 = vmatprep.subr.bf16.mxu1 %v9885_v50  ;;  %v9917_v50 = vld [vmem:[#allocation5 + $0x1ea0] ss:$16 sps:$4 sm:$0xff]  }
 0x1f6   :  { %6897 = vmatpush2.bf16.msra.mxu0 %v9880_v52 }
 0x1f7   :  { %6938 = vmatpush2.bf16.msra.mxu1 %v9883_v53  ;;  %6898 = vmatprep.subr.bf16.mxu0 %v9888_v55 }
 0x1f8   :  { %6939 = vmatprep.subr.bf16.mxu1 %v9891_v56 }
 0x1fa   :  { %6899 = vmatpush2.bf16.msra.mxu0 %v9886_v57  ;;  %v9922_v57 = vld [vmem:[#allocation5 + $0x1c84] ss:$16 sps:$4 sm:$0xff]  }
 0x1fb   :  { %6940 = vmatpush2.bf16.msra.mxu1 %v9889_v58  ;;  %6900 = vmatprep.subr.bf16.mxu0 %v9894_v9  ;;  %v9925_v58 = vld [vmem:[#allocation5 + $0x1e84] ss:$16 sps:$4 sm:$0xff]   ;;  %v9923_v9 = vld [vmem:[#allocation5 + $0x1e80] ss:$16 sps:$4 sm:$0xff]  }
 0x1fc   :  { %6941 = vmatprep.subr.bf16.mxu1 %v9897_v10  ;;  %v9928_v10 = vld [vmem:[#allocation5 + $0x1c64] ss:$16 sps:$4 sm:$0xff]  }
 0x1fe   :  { %6901 = vmatpush2.bf16.msra.mxu0 %v9892_v11  ;;  %v9931_v11 = vld [vmem:[#allocation5 + $0x1e64] ss:$16 sps:$4 sm:$0xff]  }
 0x1ff   :  { %6942 = vmatpush2.bf16.msra.mxu1 %v9895_v12  ;;  %6952 = vmatprep.subr.bf16.mxu0 %v9904_v13  ;;  %v9926_v12 = vld [vmem:[#allocation5 + $0x1c60] ss:$16 sps:$4 sm:$0xff]  }
 0x200   :  { %6993 = vmatprep.subr.bf16.mxu1 %v9907_v14  ;;  %v9929_v13 = vld [vmem:[#allocation5 + $0x1e60] ss:$16 sps:$4 sm:$0xff]   ;;  %v9934_v14 = vld [vmem:[#allocation5 + $0x1c44] ss:$16 sps:$4 sm:$0xff]  }
 0x201   :  { %v6658_v41 = vpop.f32.mrf.mxu0  ;;  %6903 = vmatmul.mubr.bf16.vlgmr.msra.gmra.mxu0 %v11158_v27 }
 0x202   :  { %v6699_v42 = vpop.f32.mrf.mxu1  ;;  %6944 = vmatmul.mubr.bf16.vlgmr.msra.gmra.mxu1 %v11162_v29  ;;  %v6659_v8 = vadd.f32 %v6658_v41, %v11145_v26  ;;  %6953 = vmatpush1.bf16.msra.mxu0 %v9902_v20  ;;  %v9937_v20 = vld [vmem:[#allocation5 + $0x1e44] ss:$16 sps:$4 sm:$0xff]   ;;  %v9941_v41 = vld [vmem:[#allocation5 + $0x1e20] ss:$16 sps:$4 sm:$0xff]  }
 0x203   :  { %6994 = vmatpush1.bf16.msra.mxu1 %v9905_v21  ;;  %v6660_v43 = vpop.f32.mrf.mxu0  ;;  %6954 = vmatprep.subr.bf16.mxu0 %v9910_v30  ;;  %v9932_v21 = vld [vmem:[#allocation5 + $0x1c40] ss:$16 sps:$4 sm:$0xff]  }
 0x204   :  { %v6701_v28 = vpop.f32.mrf.mxu1  ;;  %6995 = vmatprep.subr.bf16.mxu1 %v9913_v32  ;;  %v11175_v46 = vadd.f32 %v6699_v42, %v6659_v8  ;;  %v6661_v48 = vadd.f32 %v6660_v43, %v11150_v31  ;;  %6984 = vmatprep.mubr.bf16.mxu0 %v11166_v34  ;;  %v9920_v31 = vld [vmem:[#allocation5 + $0x1c80] ss:$16 sps:$4 sm:$0xff]   ;;  %v9940_v32 = vld [vmem:[#allocation5 + $0x1c24] ss:$16 sps:$4 sm:$0xff]  }
 0x205   :  { %7025 = vmatprep.mubr.bf16.mxu1 %v11170_v5  ;;  %v6662_v52 = vpop.f32.mrf.mxu0  ;;  %v9935_v30 = vld [vmem:[#allocation5 + $0x1e40] ss:$16 sps:$4 sm:$0xff]   ;;  %v9946_v42 = vld [vmem:[#allocation5 + $0x1c04] ss:$16 sps:$4 sm:$0xff]  }
 0x206   :  { %v6703_v26 = vpop.f32.mrf.mxu1  ;;  %v11180_v53 = vadd.f32 %v6701_v28, %v6661_v48  ;;  %6955 = vmatpush1.bf16.msra.mxu0 %v9908_v33  ;;  %v9943_v33 = vld [vmem:[#allocation5 + $0x1e24] ss:$16 sps:$4 sm:$0xff]   ;;  %v9944_v43 = vld [vmem:[#allocation5 + $0x1c00] ss:$16 sps:$4 sm:$0xff]  }
 0x207   :  { %6996 = vmatpush1.bf16.msra.mxu1 %v9911_v18  ;;  %v6663_v55 = vpop.f32.mrf.mxu0  ;;  %6956 = vmatprep.subr.bf16.mxu0 %v9916_v23  ;;  %v9938_v18 = vld [vmem:[#allocation5 + $0x1c20] ss:$16 sps:$4 sm:$0xff]   ;;  %v9949_v8 = vld [vmem:[#allocation5 + $0x1e04] ss:$16 sps:$4 sm:$0xff]  }
 0x208   :  { %v6704_v56 = vpop.f32.mrf.mxu1  ;;  %6997 = vmatprep.subr.bf16.mxu1 %v9919_v45  ;;  %v9947_v28 = vld [vmem:[#allocation5 + $0x1e00] ss:$16 sps:$4 sm:$0xff]   ;;  %v9952_v23 = vld [vmem:[#allocation5 + $0x1de4] ss:$16 sps:$4 sm:$0xff]  }
 0x209   :  { %v9955_v45 = vld [vmem:[#allocation5 + $0x1fe4] ss:$16 sps:$4 sm:$0xff]   ;;  %v9950_v48 = vld [vmem:[#allocation5 + $0x1de0] ss:$16 sps:$4 sm:$0xff]  }
 0x20a   :  { %6957 = vmatpush1.bf16.msra.mxu0 %v9914_v49  ;;  %v9953_v49 = vld [vmem:[#allocation5 + $0x1fe0] ss:$16 sps:$4 sm:$0xff]   ;;  %v9961_v52 = vld [vmem:[#allocation5 + $0x1fc4] ss:$16 sps:$4 sm:$0xff]  }
 0x20b   :  { %6998 = vmatpush1.bf16.msra.mxu1 %v9917_v50  ;;  %6958 = vmatprep.subr.bf16.mxu0 %v9922_v57  ;;  %v9958_v50 = vld [vmem:[#allocation5 + $0x1dc4] ss:$16 sps:$4 sm:$0xff]   ;;  %v9956_v26 = vld [vmem:[#allocation5 + $0x1dc0] ss:$16 sps:$4 sm:$0xff]  }
 0x20c   :  { %6999 = vmatprep.subr.bf16.mxu1 %v9925_v58  ;;  %v9959_v55 = vld [vmem:[#allocation5 + $0x1fc0] ss:$16 sps:$4 sm:$0xff]   ;;  %v9964_v56 = vld [vmem:[#allocation5 + $0x1da4] ss:$16 sps:$4 sm:$0xff]  }
 0x20d   :  { %v9967_v57 = vld [vmem:[#allocation5 + $0x1fa4] ss:$16 sps:$4 sm:$0xff]   ;;  %v9962_v58 = vld [vmem:[#allocation5 + $0x1da0] ss:$16 sps:$4 sm:$0xff]  }
 0x20e   :  { %6959 = vmatpush1.bf16.msra.mxu0 %v9920_v31  ;;  %v9965_v31 = vld [vmem:[#allocation5 + $0x1fa0] ss:$16 sps:$4 sm:$0xff]  }
 0x20f   :  { %7000 = vmatpush1.bf16.msra.mxu1 %v9923_v9  ;;  %6960 = vmatprep.subr.bf16.mxu0 %v9928_v10  ;;  %v9970_v9 = vld [vmem:[#allocation5 + $0x1d84] ss:$16 sps:$4 sm:$0xff]  }
 0x210   :  { %7001 = vmatprep.subr.bf16.mxu1 %v9931_v11  ;;  %v9973_v10 = vld [vmem:[#allocation5 + $0x1f84] ss:$16 sps:$4 sm:$0xff]   ;;  %v9968_v11 = vld [vmem:[#allocation5 + $0x1d80] ss:$16 sps:$4 sm:$0xff]  }
 0x212   :  { %6961 = vmatpush1.bf16.msra.mxu0 %v9926_v12  ;;  %v9971_v12 = vld [vmem:[#allocation5 + $0x1f80] ss:$16 sps:$4 sm:$0xff]  }
 0x213   :  { %7002 = vmatpush1.bf16.msra.mxu1 %v9929_v13  ;;  %6962 = vmatprep.subr.bf16.mxu0 %v9934_v14  ;;  %v9976_v13 = vld [vmem:[#allocation5 + $0x1d64] ss:$16 sps:$4 sm:$0xff]  }
 0x214   :  { %7003 = vmatprep.subr.bf16.mxu1 %v9937_v20  ;;  %v9979_v14 = vld [vmem:[#allocation5 + $0x1f64] ss:$16 sps:$4 sm:$0xff]   ;;  %v9974_v20 = vld [vmem:[#allocation5 + $0x1d60] ss:$16 sps:$4 sm:$0xff]  }
 0x216   :  { %6963 = vmatpush1.bf16.msra.mxu0 %v9932_v21  ;;  %v9977_v21 = vld [vmem:[#allocation5 + $0x1f60] ss:$16 sps:$4 sm:$0xff]  }
 0x217   :  { %7004 = vmatpush1.bf16.msra.mxu1 %v9935_v30  ;;  %6964 = vmatprep.subr.bf16.mxu0 %v9940_v32  ;;  %v9982_v30 = vld [vmem:[#allocation5 + $0x1d44] ss:$16 sps:$4 sm:$0xff]  }
 0x218   :  { %7005 = vmatprep.subr.bf16.mxu1 %v9943_v33  ;;  %v9985_v32 = vld [vmem:[#allocation5 + $0x1f44] ss:$16 sps:$4 sm:$0xff]   ;;  %v9980_v33 = vld [vmem:[#allocation5 + $0x1d40] ss:$16 sps:$4 sm:$0xff]  }
 0x21a   :  { %6965 = vmatpush1.bf16.msra.mxu0 %v9938_v18  ;;  %v9983_v18 = vld [vmem:[#allocation5 + $0x1f40] ss:$16 sps:$4 sm:$0xff]  }
 0x21b   :  { %7006 = vmatpush1.bf16.msra.mxu1 %v9941_v41  ;;  %6966 = vmatprep.subr.bf16.mxu0 %v9946_v42  ;;  %v9988_v41 = vld [vmem:[#allocation5 + $0x1d24] ss:$16 sps:$4 sm:$0xff]  }
 0x21c   :  { %7007 = vmatprep.subr.bf16.mxu1 %v9949_v8  ;;  %v9991_v42 = vld [vmem:[#allocation5 + $0x1f24] ss:$16 sps:$4 sm:$0xff]   ;;  %v9986_v8 = vld [vmem:[#allocation5 + $0x1d20] ss:$16 sps:$4 sm:$0xff]  }
 0x21e   :  { %6967 = vmatpush1.bf16.msra.mxu0 %v9944_v43  ;;  %v9989_v43 = vld [vmem:[#allocation5 + $0x1f20] ss:$16 sps:$4 sm:$0xff]  }
 0x21f   :  { %7008 = vmatpush1.bf16.msra.mxu1 %v9947_v28  ;;  %6968 = vmatprep.subr.bf16.mxu0 %v9952_v23  ;;  %v9994_v28 = vld [vmem:[#allocation5 + $0x1d04] ss:$16 sps:$4 sm:$0xff]  }
 0x220   :  { %7009 = vmatprep.subr.bf16.mxu1 %v9955_v45  ;;  %v9997_v23 = vld [vmem:[#allocation5 + $0x1f04] ss:$16 sps:$4 sm:$0xff]   ;;  %v9992_v45 = vld [vmem:[#allocation5 + $0x1d00] ss:$16 sps:$4 sm:$0xff]  }
 0x222   :  { %6969 = vmatpush2.bf16.msra.mxu0 %v9950_v48  ;;  %v9995_v48 = vld [vmem:[#allocation5 + $0x1f00] ss:$16 sps:$4 sm:$0xff]  }
 0x223   :  { %7010 = vmatpush2.bf16.msra.mxu1 %v9953_v49  ;;  %6970 = vmatprep.subr.bf16.mxu0 %v9958_v50  ;;  %v10004_v49 = vld [vmem:[#allocation5 + $0xec] ss:$16 sps:$4 sm:$0xff]  }
 0x224   :  { %7011 = vmatprep.subr.bf16.mxu1 %v9961_v52  ;;  %v10007_v50 = vld [vmem:[#allocation5 + $0x2ec] ss:$16 sps:$4 sm:$0xff]   ;;  %v10002_v52 = vld [vmem:[#allocation5 + $0xe8] ss:$16 sps:$4 sm:$0xff]  }
 0x226   :  { %6971 = vmatpush2.bf16.msra.mxu0 %v9956_v26  ;;  %v10005_v26 = vld [vmem:[#allocation5 + $0x2e8] ss:$16 sps:$4 sm:$0xff]  }
 0x227   :  { %7012 = vmatpush2.bf16.msra.mxu1 %v9959_v55  ;;  %6972 = vmatprep.subr.bf16.mxu0 %v9964_v56  ;;  %v11184_v55 = vcombine.low %v11152_v15, %v11152_v15  ;;  %v11188_v56 = vcombine.low %v11154_v19, %v11154_v19 }
 0x228   :  { %7013 = vmatprep.subr.bf16.mxu1 %v9967_v57  ;;  %v10010_v57 = vld [vmem:[#allocation5 + $0xcc] ss:$16 sps:$4 sm:$0xff]  }
 0x22a   :  { %6973 = vmatpush2.bf16.msra.mxu0 %v9962_v58  ;;  %v10013_v58 = vld [vmem:[#allocation5 + $0x2cc] ss:$16 sps:$4 sm:$0xff]  }
 0x22b   :  { %7014 = vmatpush2.bf16.msra.mxu1 %v9965_v31  ;;  %6974 = vmatprep.subr.bf16.mxu0 %v9970_v9  ;;  %v10008_v31 = vld [vmem:[#allocation5 + $0xc8] ss:$16 sps:$4 sm:$0xff]  }
 0x22c   :  { %7015 = vmatprep.subr.bf16.mxu1 %v9973_v10  ;;  %v10011_v9 = vld [vmem:[#allocation5 + $0x2c8] ss:$16 sps:$4 sm:$0xff]  }
 0x22e   :  { %6975 = vmatpush2.bf16.msra.mxu0 %v9968_v11 }
 0x22f   :  { %7016 = vmatpush2.bf16.msra.mxu1 %v9971_v12  ;;  %6976 = vmatprep.subr.bf16.mxu0 %v9976_v13  ;;  %v10016_v13 = vld [vmem:[#allocation5 + $0xac] ss:$16 sps:$4 sm:$0xff]  }
 0x230   :  { %7017 = vmatprep.subr.bf16.mxu1 %v9979_v14  ;;  %v10019_v14 = vld [vmem:[#allocation5 + $0x2ac] ss:$16 sps:$4 sm:$0xff]  }
 0x232   :  { %6977 = vmatpush2.bf16.msra.mxu0 %v9974_v20 }
 0x233   :  { %7018 = vmatpush2.bf16.msra.mxu1 %v9977_v21  ;;  %6978 = vmatprep.subr.bf16.mxu0 %v9982_v30  ;;  %v10014_v30 = vld [vmem:[#allocation5 + $0xa8] ss:$16 sps:$4 sm:$0xff]  }
 0x234   :  { %7019 = vmatprep.subr.bf16.mxu1 %v9985_v32  ;;  %v10017_v32 = vld [vmem:[#allocation5 + $0x2a8] ss:$16 sps:$4 sm:$0xff]  }
 0x236   :  { %6979 = vmatpush2.bf16.msra.mxu0 %v9980_v33 }
 0x237   :  { %7020 = vmatpush2.bf16.msra.mxu1 %v9983_v18  ;;  %6980 = vmatprep.subr.bf16.mxu0 %v9988_v41 }
 0x238   :  { %7021 = vmatprep.subr.bf16.mxu1 %v9991_v42 }
 0x23a   :  { %6981 = vmatpush2.bf16.msra.mxu0 %v9986_v8  ;;  %v10022_v8 = vld [vmem:[#allocation5 + $0x8c] ss:$16 sps:$4 sm:$0xff]  }
 0x23b   :  { %7022 = vmatpush2.bf16.msra.mxu1 %v9989_v43  ;;  %6982 = vmatprep.subr.bf16.mxu0 %v9994_v28  ;;  %v10025_v43 = vld [vmem:[#allocation5 + $0x28c] ss:$16 sps:$4 sm:$0xff]   ;;  %v10023_v28 = vld [vmem:[#allocation5 + $0x288] ss:$16 sps:$4 sm:$0xff]  }
 0x23c   :  { %7023 = vmatprep.subr.bf16.mxu1 %v9997_v23  ;;  %v10026_v23 = vld [vmem:[#allocation5 + $0x68] ss:$16 sps:$4 sm:$0xff]  }
 0x23e   :  { %6983 = vmatpush2.bf16.msra.mxu0 %v9992_v45  ;;  %v10029_v45 = vld [vmem:[#allocation5 + $0x268] ss:$16 sps:$4 sm:$0xff]  }
 0x23f   :  { %7024 = vmatpush2.bf16.msra.mxu1 %v9995_v48  ;;  %7034 = vmatprep.subr.bf16.mxu0 %v10004_v49  ;;  %v10034_v48 = vld [vmem:[#allocation5 + $0x4c] ss:$16 sps:$4 sm:$0xff]  }
 0x240   :  { %7075 = vmatprep.subr.bf16.mxu1 %v10007_v50  ;;  %v10037_v49 = vld [vmem:[#allocation5 + $0x24c] ss:$16 sps:$4 sm:$0xff]   ;;  %v10032_v50 = vld [vmem:[#allocation5 + $0x48] ss:$16 sps:$4 sm:$0xff]  }
 0x241   :  { %v6740_v10 = vpop.f32.mrf.mxu0  ;;  %6985 = vmatmul.mubr.bf16.vlgmr.msra.gmra.mxu0 %v11184_v55 }
 0x242   :  { %v6781_v11 = vpop.f32.mrf.mxu1  ;;  %7026 = vmatmul.mubr.bf16.vlgmr.msra.gmra.mxu1 %v11188_v56  ;;  %v6741_v15 = vadd.f32 %v6740_v10, %v11175_v46  ;;  %7035 = vmatpush1.bf16.msra.mxu0 %v10002_v52  ;;  %v10035_v52 = vld [vmem:[#allocation5 + $0x248] ss:$16 sps:$4 sm:$0xff]   ;;  %v10049_v10 = vld [vmem:[#allocation5 + $0x20c] ss:$16 sps:$4 sm:$0xff]  }
 0x243   :  { %7076 = vmatpush1.bf16.msra.mxu1 %v10005_v26  ;;  %v6742_v19 = vpop.f32.mrf.mxu0  ;;  %7036 = vmatprep.subr.bf16.mxu0 %v10010_v57  ;;  %v10040_v26 = vld [vmem:[#allocation5 + $0x2c] ss:$16 sps:$4 sm:$0xff]  }
 0x244   :  { %v6783_v12 = vpop.f32.mrf.mxu1  ;;  %7077 = vmatprep.subr.bf16.mxu1 %v10013_v58  ;;  %v11193_v20 = vadd.f32 %v6781_v11, %v6741_v15  ;;  %v6743_v21 = vadd.f32 %v6742_v19, %v11180_v53  ;;  %7066 = vmatprep.mubr.bf16.mxu0 %v10986_v47  ;;  %v10020_v53 = vld [vmem:[#allocation5 + $0x88] ss:$16 sps:$4 sm:$0xff]   ;;  %v10028_v47 = vld [vmem:[#allocation5 + $0x6c] ss:$16 sps:$4 sm:$0xff]  }
 0x245   :  { %7107 = vmatprep.mubr.bf16.mxu1 %v10988_v51  ;;  %v6744_v33 = vpop.f32.mrf.mxu0  ;;  %v10031_v51 = vld [vmem:[#allocation5 + $0x26c] ss:$16 sps:$4 sm:$0xff]   ;;  %v10038_v58 = vld [vmem:[#allocation5 + $0x28] ss:$16 sps:$4 sm:$0xff]  }
 0x246   :  { %v6785_v46 = vpop.f32.mrf.mxu1  ;;  %v11198_v18 = vadd.f32 %v6783_v12, %v6743_v21  ;;  %7037 = vmatpush1.bf16.msra.mxu0 %v10008_v31  ;;  %v10043_v57 = vld [vmem:[#allocation5 + $0x22c] ss:$16 sps:$4 sm:$0xff]   ;;  %v10041_v31 = vld [vmem:[#allocation5 + $0x228] ss:$16 sps:$4 sm:$0xff]  }
 0x247   :  { %7078 = vmatpush1.bf16.msra.mxu1 %v10011_v9  ;;  %v6745_v41 = vpop.f32.mrf.mxu0  ;;  %7038 = vmatprep.subr.bf16.mxu0 %v10016_v13  ;;  %v10046_v9 = vld [vmem:[#allocation5 + $0xc] ss:$16 sps:$4 sm:$0xff]   ;;  %v10044_v11 = vld [vmem:[#allocation5 + $0x8] ss:$16 sps:$4 sm:$0xff]  }
 0x248   :  { %v6786_v42 = vpop.f32.mrf.mxu1  ;;  %7079 = vmatprep.subr.bf16.mxu1 %v10019_v14  ;;  %v10047_v15 = vld [vmem:[#allocation5 + $0x208] ss:$16 sps:$4 sm:$0xff]   ;;  %v10052_v19 = vld [vmem:[#allocation5 + $0x1ec] ss:$16 sps:$4 sm:$0xff]  }
 0x249   :  { %v10055_v12 = vld [vmem:[#allocation5 + $0x3ec] ss:$16 sps:$4 sm:$0xff]   ;;  %v10050_v13 = vld [vmem:[#allocation5 + $0x1e8] ss:$16 sps:$4 sm:$0xff]  }
 0x24a   :  { %7039 = vmatpush1.bf16.msra.mxu0 %v10014_v30  ;;  %v10053_v14 = vld [vmem:[#allocation5 + $0x3e8] ss:$16 sps:$4 sm:$0xff]   ;;  %v10058_v21 = vld [vmem:[#allocation5 + $0x1cc] ss:$16 sps:$4 sm:$0xff]  }
 0x24b   :  { %7080 = vmatpush1.bf16.msra.mxu1 %v10017_v32  ;;  %7040 = vmatprep.subr.bf16.mxu0 %v10022_v8  ;;  %v10061_v30 = vld [vmem:[#allocation5 + $0x3cc] ss:$16 sps:$4 sm:$0xff]   ;;  %v10056_v32 = vld [vmem:[#allocation5 + $0x1c8] ss:$16 sps:$4 sm:$0xff]  }
 0x24c   :  { %7081 = vmatprep.subr.bf16.mxu1 %v10025_v43  ;;  %v10059_v33 = vld [vmem:[#allocation5 + $0x3c8] ss:$16 sps:$4 sm:$0xff]   ;;  %v10064_v46 = vld [vmem:[#allocation5 + $0x1ac] ss:$16 sps:$4 sm:$0xff]  }
 0x24d   :  { %v10067_v41 = vld [vmem:[#allocation5 + $0x3ac] ss:$16 sps:$4 sm:$0xff]   ;;  %v10062_v42 = vld [vmem:[#allocation5 + $0x1a8] ss:$16 sps:$4 sm:$0xff]  }
 0x24e   :  { %7041 = vmatpush1.bf16.msra.mxu0 %v10020_v53  ;;  %v10065_v8 = vld [vmem:[#allocation5 + $0x3a8] ss:$16 sps:$4 sm:$0xff]   ;;  %v10070_v43 = vld [vmem:[#allocation5 + $0x18c] ss:$16 sps:$4 sm:$0xff]  }
 0x24f   :  { %7082 = vmatpush1.bf16.msra.mxu1 %v10023_v28  ;;  %7042 = vmatprep.subr.bf16.mxu0 %v10028_v47  ;;  %v10073_v53 = vld [vmem:[#allocation5 + $0x38c] ss:$16 sps:$4 sm:$0xff]   ;;  %v10068_v28 = vld [vmem:[#allocation5 + $0x188] ss:$16 sps:$4 sm:$0xff]  }
 0x250   :  { %7083 = vmatprep.subr.bf16.mxu1 %v10031_v51  ;;  %v10071_v47 = vld [vmem:[#allocation5 + $0x388] ss:$16 sps:$4 sm:$0xff]   ;;  %v10076_v51 = vld [vmem:[#allocation5 + $0x16c] ss:$16 sps:$4 sm:$0xff]  }
 0x252   :  { %7043 = vmatpush1.bf16.msra.mxu0 %v10026_v23  ;;  %v10079_v23 = vld [vmem:[#allocation5 + $0x36c] ss:$16 sps:$4 sm:$0xff]  }
 0x253   :  { %7084 = vmatpush1.bf16.msra.mxu1 %v10029_v45  ;;  %7044 = vmatprep.subr.bf16.mxu0 %v10034_v48  ;;  %v10074_v45 = vld [vmem:[#allocation5 + $0x168] ss:$16 sps:$4 sm:$0xff]  }
 0x254   :  { %7085 = vmatprep.subr.bf16.mxu1 %v10037_v49  ;;  %v10077_v48 = vld [vmem:[#allocation5 + $0x368] ss:$16 sps:$4 sm:$0xff]   ;;  %v10082_v49 = vld [vmem:[#allocation5 + $0x14c] ss:$16 sps:$4 sm:$0xff]  }
 0x256   :  { %7045 = vmatpush1.bf16.msra.mxu0 %v10032_v50  ;;  %v10085_v50 = vld [vmem:[#allocation5 + $0x34c] ss:$16 sps:$4 sm:$0xff]  }
 0x257   :  { %7086 = vmatpush1.bf16.msra.mxu1 %v10035_v52  ;;  %7046 = vmatprep.subr.bf16.mxu0 %v10040_v26  ;;  %v10080_v52 = vld [vmem:[#allocation5 + $0x148] ss:$16 sps:$4 sm:$0xff]  }
 0x258   :  { %7087 = vmatprep.subr.bf16.mxu1 %v10043_v57  ;;  %v10083_v26 = vld [vmem:[#allocation5 + $0x348] ss:$16 sps:$4 sm:$0xff]   ;;  %v10088_v57 = vld [vmem:[#allocation5 + $0x12c] ss:$16 sps:$4 sm:$0xff]  }
 0x25a   :  { %7047 = vmatpush1.bf16.msra.mxu0 %v10038_v58  ;;  %v10091_v58 = vld [vmem:[#allocation5 + $0x32c] ss:$16 sps:$4 sm:$0xff]  }
 0x25b   :  { %7088 = vmatpush1.bf16.msra.mxu1 %v10041_v31  ;;  %7048 = vmatprep.subr.bf16.mxu0 %v10046_v9  ;;  %v10086_v31 = vld [vmem:[#allocation5 + $0x128] ss:$16 sps:$4 sm:$0xff]  }
 0x25c   :  { %7089 = vmatprep.subr.bf16.mxu1 %v10049_v10  ;;  %v10089_v9 = vld [vmem:[#allocation5 + $0x328] ss:$16 sps:$4 sm:$0xff]   ;;  %v10094_v10 = vld [vmem:[#allocation5 + $0x10c] ss:$16 sps:$4 sm:$0xff]  }
 0x25e   :  { %7049 = vmatpush1.bf16.msra.mxu0 %v10044_v11  ;;  %v10097_v11 = vld [vmem:[#allocation5 + $0x30c] ss:$16 sps:$4 sm:$0xff]  }
 0x25f   :  { %7090 = vmatpush1.bf16.msra.mxu1 %v10047_v15  ;;  %7050 = vmatprep.subr.bf16.mxu0 %v10052_v19  ;;  %v10092_v15 = vld [vmem:[#allocation5 + $0x108] ss:$16 sps:$4 sm:$0xff]  }
 0x260   :  { %7091 = vmatprep.subr.bf16.mxu1 %v10055_v12  ;;  %v10095_v19 = vld [vmem:[#allocation5 + $0x308] ss:$16 sps:$4 sm:$0xff]   ;;  %v10100_v12 = vld [vmem:[#allocation5 + $0x4ec] ss:$16 sps:$4 sm:$0xff]  }
 0x262   :  { %7051 = vmatpush2.bf16.msra.mxu0 %v10050_v13  ;;  %v10103_v13 = vld [vmem:[#allocation5 + $0x6ec] ss:$16 sps:$4 sm:$0xff]  }
 0x263   :  { %7092 = vmatpush2.bf16.msra.mxu1 %v10053_v14  ;;  %7052 = vmatprep.subr.bf16.mxu0 %v10058_v21  ;;  %v10098_v14 = vld [vmem:[#allocation5 + $0x4e8] ss:$16 sps:$4 sm:$0xff]  }
 0x264   :  { %7093 = vmatprep.subr.bf16.mxu1 %v10061_v30  ;;  %v10101_v21 = vld [vmem:[#allocation5 + $0x6e8] ss:$16 sps:$4 sm:$0xff]   ;;  %v10106_v30 = vld [vmem:[#allocation5 + $0x4cc] ss:$16 sps:$4 sm:$0xff]  }
 0x266   :  { %7053 = vmatpush2.bf16.msra.mxu0 %v10056_v32  ;;  %v10109_v32 = vld [vmem:[#allocation5 + $0x6cc] ss:$16 sps:$4 sm:$0xff]  }
 0x267   :  { %7094 = vmatpush2.bf16.msra.mxu1 %v10059_v33  ;;  %7054 = vmatprep.subr.bf16.mxu0 %v10064_v46  ;;  %v10104_v33 = vld [vmem:[#allocation5 + $0x4c8] ss:$16 sps:$4 sm:$0xff]  }
 0x268   :  { %7095 = vmatprep.subr.bf16.mxu1 %v10067_v41  ;;  %v10107_v46 = vld [vmem:[#allocation5 + $0x6c8] ss:$16 sps:$4 sm:$0xff]  }
 0x26a   :  { %7055 = vmatpush2.bf16.msra.mxu0 %v10062_v42 }
 0x26b   :  { %7096 = vmatpush2.bf16.msra.mxu1 %v10065_v8  ;;  %7056 = vmatprep.subr.bf16.mxu0 %v10070_v43 }
 0x26c   :  { %7097 = vmatprep.subr.bf16.mxu1 %v10073_v53 }
 0x26e   :  { %7057 = vmatpush2.bf16.msra.mxu0 %v10068_v28  ;;  %v10112_v28 = vld [vmem:[#allocation5 + $0x4ac] ss:$16 sps:$4 sm:$0xff]  }
 0x26f   :  { %7098 = vmatpush2.bf16.msra.mxu1 %v10071_v47  ;;  %7058 = vmatprep.subr.bf16.mxu0 %v10076_v51  ;;  %v10115_v47 = vld [vmem:[#allocation5 + $0x6ac] ss:$16 sps:$4 sm:$0xff]  }
 0x270   :  { %7099 = vmatprep.subr.bf16.mxu1 %v10079_v23 }
 0x272   :  { %7059 = vmatpush2.bf16.msra.mxu0 %v10074_v45  ;;  %v10110_v45 = vld [vmem:[#allocation5 + $0x4a8] ss:$16 sps:$4 sm:$0xff]  }
 0x273   :  { %7100 = vmatpush2.bf16.msra.mxu1 %v10077_v48  ;;  %7060 = vmatprep.subr.bf16.mxu0 %v10082_v49  ;;  %v10113_v48 = vld [vmem:[#allocation5 + $0x6a8] ss:$16 sps:$4 sm:$0xff]  }
 0x274   :  { %7101 = vmatprep.subr.bf16.mxu1 %v10085_v50 }
 0x276   :  { %7061 = vmatpush2.bf16.msra.mxu0 %v10080_v52  ;;  %v10118_v52 = vld [vmem:[#allocation5 + $0x48c] ss:$16 sps:$4 sm:$0xff]  }
 0x277   :  { %7102 = vmatpush2.bf16.msra.mxu1 %v10083_v26  ;;  %7062 = vmatprep.subr.bf16.mxu0 %v10088_v57  ;;  %v10121_v26 = vld [vmem:[#allocation5 + $0x68c] ss:$16 sps:$4 sm:$0xff]   ;;  %v10119_v57 = vld [vmem:[#allocation5 + $0x688] ss:$16 sps:$4 sm:$0xff]  }
 0x278   :  { %7103 = vmatprep.subr.bf16.mxu1 %v10091_v58  ;;  %v10122_v58 = vld [vmem:[#allocation5 + $0x468] ss:$16 sps:$4 sm:$0xff]  }
 0x27a   :  { %7063 = vmatpush2.bf16.msra.mxu0 %v10086_v31  ;;  %v10125_v31 = vld [vmem:[#allocation5 + $0x668] ss:$16 sps:$4 sm:$0xff]  }
 0x27b   :  { %7104 = vmatpush2.bf16.msra.mxu1 %v10089_v9  ;;  %7064 = vmatprep.subr.bf16.mxu0 %v10094_v10  ;;  %v10130_v9 = vld [vmem:[#allocation5 + $0x44c] ss:$16 sps:$4 sm:$0xff]  }
 0x27c   :  { %7105 = vmatprep.subr.bf16.mxu1 %v10097_v11  ;;  %v10133_v10 = vld [vmem:[#allocation5 + $0x64c] ss:$16 sps:$4 sm:$0xff]   ;;  %v10128_v11 = vld [vmem:[#allocation5 + $0x448] ss:$16 sps:$4 sm:$0xff]  }
 0x27e   :  { %7065 = vmatpush2.bf16.msra.mxu0 %v10092_v15  ;;  %v10131_v15 = vld [vmem:[#allocation5 + $0x648] ss:$16 sps:$4 sm:$0xff]  }
 0x27f   :  { %7106 = vmatpush2.bf16.msra.mxu1 %v10095_v19  ;;  %7116 = vmatprep.subr.bf16.mxu0 %v10100_v12  ;;  %v10136_v19 = vld [vmem:[#allocation5 + $0x42c] ss:$16 sps:$4 sm:$0xff]  }
 0x280   :  { %7157 = vmatprep.subr.bf16.mxu1 %v10103_v13  ;;  %v10139_v12 = vld [vmem:[#allocation5 + $0x62c] ss:$16 sps:$4 sm:$0xff]   ;;  %v10134_v13 = vld [vmem:[#allocation5 + $0x428] ss:$16 sps:$4 sm:$0xff]  }
 0x281   :  { %v6822_v41 = vpop.f32.mrf.mxu0  ;;  %7067 = vmatmul.mubr.bf16.vlgmr.msra.gmra.mxu0 %v10992_v6 }
 0x282   :  { %v6863_v42 = vpop.f32.mrf.mxu1  ;;  %7108 = vmatmul.mubr.bf16.vlgmr.msra.gmra.mxu1 %v10994_v7  ;;  %v6823_v8 = vadd.f32 %v6822_v41, %v11193_v20  ;;  %7117 = vmatpush1.bf16.msra.mxu0 %v10098_v14  ;;  %v10137_v14 = vld [vmem:[#allocation5 + $0x628] ss:$16 sps:$4 sm:$0xff]   ;;  %v10151_v41 = vld [vmem:[#allocation5 + $0x7ec] ss:$16 sps:$4 sm:$0xff]  }
 0x283   :  { %7158 = vmatpush1.bf16.msra.mxu1 %v10101_v21  ;;  %v6824_v43 = vpop.f32.mrf.mxu0  ;;  %7118 = vmatprep.subr.bf16.mxu0 %v10106_v30  ;;  %v10142_v21 = vld [vmem:[#allocation5 + $0x40c] ss:$16 sps:$4 sm:$0xff]  }
 0x284   :  { %v6865_v53 = vpop.f32.mrf.mxu1  ;;  %7159 = vmatprep.subr.bf16.mxu1 %v10109_v32  ;;  %v11203_v51 = vadd.f32 %v6863_v42, %v6823_v8  ;;  %v6825_v23 = vadd.f32 %v6824_v43, %v11198_v18  ;;  %7148 = vmatprep.mubr.bf16.mxu0 %v11004_v36  ;;  %v10116_v18 = vld [vmem:[#allocation5 + $0x488] ss:$16 sps:$4 sm:$0xff]   ;;  %v10124_v36 = vld [vmem:[#allocation5 + $0x46c] ss:$16 sps:$4 sm:$0xff]  }
 0x285   :  { %7189 = vmatprep.mubr.bf16.mxu1 %v11008_v37  ;;  %v6826_v6 = vpop.f32.mrf.mxu0  ;;  %v10127_v37 = vld [vmem:[#allocation5 + $0x66c] ss:$16 sps:$4 sm:$0xff]   ;;  %v10140_v32 = vld [vmem:[#allocation5 + $0x408] ss:$16 sps:$4 sm:$0xff]  }
 0x286   :  { %v6867_v7 = vpop.f32.mrf.mxu1  ;;  %v11208_v20 = vadd.f32 %v6865_v53, %v6825_v23  ;;  %7119 = vmatpush1.bf16.msra.mxu0 %v10104_v33  ;;  %v10145_v30 = vld [vmem:[#allocation5 + $0x60c] ss:$16 sps:$4 sm:$0xff]   ;;  %v10143_v33 = vld [vmem:[#allocation5 + $0x608] ss:$16 sps:$4 sm:$0xff]  }
 0x287   :  { %7160 = vmatpush1.bf16.msra.mxu1 %v10107_v46  ;;  %v6827_v49 = vpop.f32.mrf.mxu0  ;;  %7120 = vmatprep.subr.bf16.mxu0 %v10112_v28  ;;  %v10148_v46 = vld [vmem:[#allocation5 + $0x5ec] ss:$16 sps:$4 sm:$0xff]   ;;  %v10146_v42 = vld [vmem:[#allocation5 + $0x5e8] ss:$16 sps:$4 sm:$0xff]  }
 0x288   :  { %v6868_v50 = vpop.f32.mrf.mxu1  ;;  %7161 = vmatprep.subr.bf16.mxu1 %v10115_v47  ;;  %v10149_v8 = vld [vmem:[#allocation5 + $0x7e8] ss:$16 sps:$4 sm:$0xff]   ;;  %v10154_v43 = vld [vmem:[#allocation5 + $0x5cc] ss:$16 sps:$4 sm:$0xff]  }
 0x289   :  { %v10157_v53 = vld [vmem:[#allocation5 + $0x7cc] ss:$16 sps:$4 sm:$0xff]   ;;  %v10152_v28 = vld [vmem:[#allocation5 + $0x5c8] ss:$16 sps:$4 sm:$0xff]  }
 0x28a   :  { %7121 = vmatpush1.bf16.msra.mxu0 %v10110_v45  ;;  %v10155_v47 = vld [vmem:[#allocation5 + $0x7c8] ss:$16 sps:$4 sm:$0xff]   ;;  %v10160_v23 = vld [vmem:[#allocation5 + $0x5ac] ss:$16 sps:$4 sm:$0xff]  }
 0x28b   :  { %7162 = vmatpush1.bf16.msra.mxu1 %v10113_v48  ;;  %7122 = vmatprep.subr.bf16.mxu0 %v10118_v52  ;;  %v10163_v45 = vld [vmem:[#allocation5 + $0x7ac] ss:$16 sps:$4 sm:$0xff]   ;;  %v10158_v48 = vld [vmem:[#allocation5 + $0x5a8] ss:$16 sps:$4 sm:$0xff]  }
 0x28c   :  { %7163 = vmatprep.subr.bf16.mxu1 %v10121_v26  ;;  %v10161_v6 = vld [vmem:[#allocation5 + $0x7a8] ss:$16 sps:$4 sm:$0xff]   ;;  %v10166_v7 = vld [vmem:[#allocation5 + $0x58c] ss:$16 sps:$4 sm:$0xff]  }
 0x28d   :  { %v10169_v49 = vld [vmem:[#allocation5 + $0x78c] ss:$16 sps:$4 sm:$0xff]   ;;  %v10164_v50 = vld [vmem:[#allocation5 + $0x588] ss:$16 sps:$4 sm:$0xff]  }
 0x28e   :  { %7123 = vmatpush1.bf16.msra.mxu0 %v10116_v18  ;;  %v10167_v52 = vld [vmem:[#allocation5 + $0x788] ss:$16 sps:$4 sm:$0xff]   ;;  %v10172_v26 = vld [vmem:[#allocation5 + $0x56c] ss:$16 sps:$4 sm:$0xff]  }
 0x28f   :  { %7164 = vmatpush1.bf16.msra.mxu1 %v10119_v57  ;;  %7124 = vmatprep.subr.bf16.mxu0 %v10124_v36  ;;  %v10175_v18 = vld [vmem:[#allocation5 + $0x76c] ss:$16 sps:$4 sm:$0xff]   ;;  %v10170_v57 = vld [vmem:[#allocation5 + $0x568] ss:$16 sps:$4 sm:$0xff]  }
 0x290   :  { %7165 = vmatprep.subr.bf16.mxu1 %v10127_v37  ;;  %v10173_v36 = vld [vmem:[#allocation5 + $0x768] ss:$16 sps:$4 sm:$0xff]   ;;  %v10178_v37 = vld [vmem:[#allocation5 + $0x54c] ss:$16 sps:$4 sm:$0xff]  }
 0x292   :  { %7125 = vmatpush1.bf16.msra.mxu0 %v10122_v58  ;;  %v10181_v58 = vld [vmem:[#allocation5 + $0x74c] ss:$16 sps:$4 sm:$0xff]  }
 0x293   :  { %7166 = vmatpush1.bf16.msra.mxu1 %v10125_v31  ;;  %7126 = vmatprep.subr.bf16.mxu0 %v10130_v9  ;;  %v10176_v31 = vld [vmem:[#allocation5 + $0x548] ss:$16 sps:$4 sm:$0xff]  }
 0x294   :  { %7167 = vmatprep.subr.bf16.mxu1 %v10133_v10  ;;  %v10179_v9 = vld [vmem:[#allocation5 + $0x748] ss:$16 sps:$4 sm:$0xff]   ;;  %v10184_v10 = vld [vmem:[#allocation5 + $0x52c] ss:$16 sps:$4 sm:$0xff]  }
 0x296   :  { %7127 = vmatpush1.bf16.msra.mxu0 %v10128_v11  ;;  %v10187_v11 = vld [vmem:[#allocation5 + $0x72c] ss:$16 sps:$4 sm:$0xff]  }
 0x297   :  { %7168 = vmatpush1.bf16.msra.mxu1 %v10131_v15  ;;  %7128 = vmatprep.subr.bf16.mxu0 %v10136_v19  ;;  %v10182_v15 = vld [vmem:[#allocation5 + $0x528] ss:$16 sps:$4 sm:$0xff]  }
 0x298   :  { %7169 = vmatprep.subr.bf16.mxu1 %v10139_v12  ;;  %v10185_v19 = vld [vmem:[#allocation5 + $0x728] ss:$16 sps:$4 sm:$0xff]   ;;  %v10190_v12 = vld [vmem:[#allocation5 + $0x50c] ss:$16 sps:$4 sm:$0xff]  }
 0x29a   :  { %7129 = vmatpush1.bf16.msra.mxu0 %v10134_v13  ;;  %v10193_v13 = vld [vmem:[#allocation5 + $0x70c] ss:$16 sps:$4 sm:$0xff]  }
 0x29b   :  { %7170 = vmatpush1.bf16.msra.mxu1 %v10137_v14  ;;  %7130 = vmatprep.subr.bf16.mxu0 %v10142_v21  ;;  %v10188_v14 = vld [vmem:[#allocation5 + $0x508] ss:$16 sps:$4 sm:$0xff]  }
 0x29c   :  { %7171 = vmatprep.subr.bf16.mxu1 %v10145_v30  ;;  %v10191_v21 = vld [vmem:[#allocation5 + $0x708] ss:$16 sps:$4 sm:$0xff]   ;;  %v10196_v30 = vld [vmem:[#allocation5 + $0x8ec] ss:$16 sps:$4 sm:$0xff]  }
 0x29e   :  { %7131 = vmatpush1.bf16.msra.mxu0 %v10140_v32  ;;  %v10199_v32 = vld [vmem:[#allocation5 + $0xaec] ss:$16 sps:$4 sm:$0xff]  }
 0x29f   :  { %7172 = vmatpush1.bf16.msra.mxu1 %v10143_v33  ;;  %7132 = vmatprep.subr.bf16.mxu0 %v10148_v46  ;;  %v10194_v33 = vld [vmem:[#allocation5 + $0x8e8] ss:$16 sps:$4 sm:$0xff]  }
 0x2a0   :  { %7173 = vmatprep.subr.bf16.mxu1 %v10151_v41  ;;  %v10197_v46 = vld [vmem:[#allocation5 + $0xae8] ss:$16 sps:$4 sm:$0xff]   ;;  %v10202_v41 = vld [vmem:[#allocation5 + $0x8cc] ss:$16 sps:$4 sm:$0xff]  }
 0x2a2   :  { %7133 = vmatpush2.bf16.msra.mxu0 %v10146_v42  ;;  %v10205_v42 = vld [vmem:[#allocation5 + $0xacc] ss:$16 sps:$4 sm:$0xff]  }
 0x2a3   :  { %7174 = vmatpush2.bf16.msra.mxu1 %v10149_v8  ;;  %7134 = vmatprep.subr.bf16.mxu0 %v10154_v43 }
 0x2a4   :  { %7175 = vmatprep.subr.bf16.mxu1 %v10157_v53 }
 0x2a6   :  { %7135 = vmatpush2.bf16.msra.mxu0 %v10152_v28  ;;  %v10200_v28 = vld [vmem:[#allocation5 + $0x8c8] ss:$16 sps:$4 sm:$0xff]  }
 0x2a7   :  { %7176 = vmatpush2.bf16.msra.mxu1 %v10155_v47  ;;  %7136 = vmatprep.subr.bf16.mxu0 %v10160_v23  ;;  %v10203_v47 = vld [vmem:[#allocation5 + $0xac8] ss:$16 sps:$4 sm:$0xff]  }
 0x2a8   :  { %7177 = vmatprep.subr.bf16.mxu1 %v10163_v45 }
 0x2aa   :  { %7137 = vmatpush2.bf16.msra.mxu0 %v10158_v48  ;;  %v10208_v48 = vld [vmem:[#allocation5 + $0x8ac] ss:$16 sps:$4 sm:$0xff]  }
 0x2ab   :  { %7178 = vmatpush2.bf16.msra.mxu1 %v10161_v6  ;;  %7138 = vmatprep.subr.bf16.mxu0 %v10166_v7  ;;  %v10211_v6 = vld [vmem:[#allocation5 + $0xaac] ss:$16 sps:$4 sm:$0xff]  }
 0x2ac   :  { %7179 = vmatprep.subr.bf16.mxu1 %v10169_v49 }
 0x2ae   :  { %7139 = vmatpush2.bf16.msra.mxu0 %v10164_v50  ;;  %v10206_v50 = vld [vmem:[#allocation5 + $0x8a8] ss:$16 sps:$4 sm:$0xff]  }
 0x2af   :  { %7180 = vmatpush2.bf16.msra.mxu1 %v10167_v52  ;;  %7140 = vmatprep.subr.bf16.mxu0 %v10172_v26  ;;  %v10209_v52 = vld [vmem:[#allocation5 + $0xaa8] ss:$16 sps:$4 sm:$0xff]  }
 0x2b0   :  { %7181 = vmatprep.subr.bf16.mxu1 %v10175_v18 }
 0x2b2   :  { %7141 = vmatpush2.bf16.msra.mxu0 %v10170_v57  ;;  %v10214_v57 = vld [vmem:[#allocation5 + $0x88c] ss:$16 sps:$4 sm:$0xff]  }
 0x2b3   :  { %7182 = vmatpush2.bf16.msra.mxu1 %v10173_v36  ;;  %7142 = vmatprep.subr.bf16.mxu0 %v10178_v37  ;;  %v10217_v36 = vld [vmem:[#allocation5 + $0xa8c] ss:$16 sps:$4 sm:$0xff]  }
 0x2b4   :  { %7183 = vmatprep.subr.bf16.mxu1 %v10181_v58  ;;  %v10223_v37 = vld [vmem:[#allocation5 + $0xa6c] ss:$16 sps:$4 sm:$0xff]   ;;  %v10218_v58 = vld [vmem:[#allocation5 + $0x868] ss:$16 sps:$4 sm:$0xff]  }
 0x2b6   :  { %7143 = vmatpush2.bf16.msra.mxu0 %v10176_v31  ;;  %v10221_v31 = vld [vmem:[#allocation5 + $0xa68] ss:$16 sps:$4 sm:$0xff]  }
 0x2b7   :  { %7184 = vmatpush2.bf16.msra.mxu1 %v10179_v9  ;;  %7144 = vmatprep.subr.bf16.mxu0 %v10184_v10  ;;  %v10226_v9 = vld [vmem:[#allocation5 + $0x84c] ss:$16 sps:$4 sm:$0xff]  }
 0x2b8   :  { %7185 = vmatprep.subr.bf16.mxu1 %v10187_v11  ;;  %v10229_v10 = vld [vmem:[#allocation5 + $0xa4c] ss:$16 sps:$4 sm:$0xff]   ;;  %v10224_v11 = vld [vmem:[#allocation5 + $0x848] ss:$16 sps:$4 sm:$0xff]  }
 0x2ba   :  { %7145 = vmatpush2.bf16.msra.mxu0 %v10182_v15  ;;  %v10227_v15 = vld [vmem:[#allocation5 + $0xa48] ss:$16 sps:$4 sm:$0xff]  }
 0x2bb   :  { %7186 = vmatpush2.bf16.msra.mxu1 %v10185_v19  ;;  %7146 = vmatprep.subr.bf16.mxu0 %v10190_v12  ;;  %v10232_v19 = vld [vmem:[#allocation5 + $0x82c] ss:$16 sps:$4 sm:$0xff]  }
 0x2bc   :  { %7187 = vmatprep.subr.bf16.mxu1 %v10193_v13  ;;  %v10235_v12 = vld [vmem:[#allocation5 + $0xa2c] ss:$16 sps:$4 sm:$0xff]   ;;  %v10230_v13 = vld [vmem:[#allocation5 + $0x828] ss:$16 sps:$4 sm:$0xff]  }
 0x2be   :  { %7147 = vmatpush2.bf16.msra.mxu0 %v10188_v14  ;;  %v10233_v14 = vld [vmem:[#allocation5 + $0xa28] ss:$16 sps:$4 sm:$0xff]  }
 0x2bf   :  { %7188 = vmatpush2.bf16.msra.mxu1 %v10191_v21  ;;  %7198 = vmatprep.subr.bf16.mxu0 %v10196_v30  ;;  %v10238_v21 = vld [vmem:[#allocation5 + $0x80c] ss:$16 sps:$4 sm:$0xff]  }
 0x2c0   :  { %7239 = vmatprep.subr.bf16.mxu1 %v10199_v32  ;;  %v10241_v30 = vld [vmem:[#allocation5 + $0xa0c] ss:$16 sps:$4 sm:$0xff]   ;;  %v10236_v32 = vld [vmem:[#allocation5 + $0x808] ss:$16 sps:$4 sm:$0xff]  }
 0x2c1   :  { %v6904_v8 = vpop.f32.mrf.mxu0  ;;  %7149 = vmatmul.mubr.bf16.vlgmr.msra.gmra.mxu0 %v11014_v16 }
 0x2c2   :  { %v6945_v43 = vpop.f32.mrf.mxu1  ;;  %7190 = vmatmul.mubr.bf16.vlgmr.msra.gmra.mxu1 %v11018_v17  ;;  %v6905_v53 = vadd.f32 %v6904_v8, %v11203_v51  ;;  %7199 = vmatpush1.bf16.msra.mxu0 %v10194_v33  ;;  %v10239_v33 = vld [vmem:[#allocation5 + $0xa08] ss:$16 sps:$4 sm:$0xff]  }
 0x2c3   :  { %7240 = vmatpush1.bf16.msra.mxu1 %v10197_v46  ;;  %v6906_v23 = vpop.f32.mrf.mxu0  ;;  %7200 = vmatprep.subr.bf16.mxu0 %v10202_v41  ;;  %v10244_v46 = vld [vmem:[#allocation5 + $0x9ec] ss:$16 sps:$4 sm:$0xff]   ;;  %v10245_v8 = vld [vmem:[#allocation5 + $0xbe8] ss:$16 sps:$4 sm:$0xff]  }
 0x2c4   :  { %v6947_v45 = vpop.f32.mrf.mxu1  ;;  %7241 = vmatprep.subr.bf16.mxu1 %v10205_v42  ;;  %v11213_v7 = vadd.f32 %v6945_v43, %v6905_v53  ;;  %v6907_v49 = vadd.f32 %v6906_v23, %v11208_v20  ;;  %7230 = vmatprep.mubr.bf16.mxu0 %v11026_v24  ;;  %v10212_v20 = vld [vmem:[#allocation5 + $0x888] ss:$16 sps:$4 sm:$0xff]   ;;  %v10247_v41 = vld [vmem:[#allocation5 + $0xbec] ss:$16 sps:$4 sm:$0xff]  }
 0x2c5   :  { %7271 = vmatprep.mubr.bf16.mxu1 %v11030_v25  ;;  %v6908_v16 = vpop.f32.mrf.mxu0  ;;  %v10215_v24 = vld [vmem:[#allocation5 + $0xa88] ss:$16 sps:$4 sm:$0xff]   ;;  %v10220_v25 = vld [vmem:[#allocation5 + $0x86c] ss:$16 sps:$4 sm:$0xff]  }
 0x2c6   :  { %v6949_v17 = vpop.f32.mrf.mxu1  ;;  %v11218_v51 = vadd.f32 %v6947_v45, %v6907_v49  ;;  %7201 = vmatpush1.bf16.msra.mxu0 %v10200_v28  ;;  %v10242_v42 = vld [vmem:[#allocation5 + $0x9e8] ss:$16 sps:$4 sm:$0xff]   ;;  %v10250_v43 = vld [vmem:[#allocation5 + $0x9cc] ss:$16 sps:$4 sm:$0xff]  }
 0x2c7   :  { %7242 = vmatpush1.bf16.msra.mxu1 %v10203_v47  ;;  %v6909_v26 = vpop.f32.mrf.mxu0  ;;  %7202 = vmatprep.subr.bf16.mxu0 %v10208_v48  ;;  %v10253_v53 = vld [vmem:[#allocation5 + $0xbcc] ss:$16 sps:$4 sm:$0xff]   ;;  %v10248_v28 = vld [vmem:[#allocation5 + $0x9c8] ss:$16 sps:$4 sm:$0xff]  }
 0x2c8   :  { %v6950_v18 = vpop.f32.mrf.mxu1  ;;  %7243 = vmatprep.subr.bf16.mxu1 %v10211_v6  ;;  %v10251_v47 = vld [vmem:[#allocation5 + $0xbc8] ss:$16 sps:$4 sm:$0xff]   ;;  %v10256_v23 = vld [vmem:[#allocation5 + $0x9ac] ss:$16 sps:$4 sm:$0xff]  }
 0x2c9   :  { %v10259_v45 = vld [vmem:[#allocation5 + $0xbac] ss:$16 sps:$4 sm:$0xff]   ;;  %v10254_v48 = vld [vmem:[#allocation5 + $0x9a8] ss:$16 sps:$4 sm:$0xff]  }
 0x2ca   :  { %7203 = vmatpush1.bf16.msra.mxu0 %v10206_v50  ;;  %v10257_v6 = vld [vmem:[#allocation5 + $0xba8] ss:$16 sps:$4 sm:$0xff]   ;;  %v10262_v49 = vld [vmem:[#allocation5 + $0x98c] ss:$16 sps:$4 sm:$0xff]  }
 0x2cb   :  { %7244 = vmatpush1.bf16.msra.mxu1 %v10209_v52  ;;  %7204 = vmatprep.subr.bf16.mxu0 %v10214_v57  ;;  %v10265_v16 = vld [vmem:[#allocation5 + $0xb8c] ss:$16 sps:$4 sm:$0xff]   ;;  %v10260_v17 = vld [vmem:[#allocation5 + $0x988] ss:$16 sps:$4 sm:$0xff]  }
 0x2cc   :  { %7245 = vmatprep.subr.bf16.mxu1 %v10217_v36  ;;  %v10263_v50 = vld [vmem:[#allocation5 + $0xb88] ss:$16 sps:$4 sm:$0xff]   ;;  %v10268_v52 = vld [vmem:[#allocation5 + $0x96c] ss:$16 sps:$4 sm:$0xff]  }
 0x2cd   :  { %v10271_v26 = vld [vmem:[#allocation5 + $0xb6c] ss:$16 sps:$4 sm:$0xff]   ;;  %v10266_v18 = vld [vmem:[#allocation5 + $0x968] ss:$16 sps:$4 sm:$0xff]  }
 0x2ce   :  { %7205 = vmatpush1.bf16.msra.mxu0 %v10212_v20  ;;  %v10269_v57 = vld [vmem:[#allocation5 + $0xb68] ss:$16 sps:$4 sm:$0xff]   ;;  %v10274_v36 = vld [vmem:[#allocation5 + $0x94c] ss:$16 sps:$4 sm:$0xff]  }
 0x2cf   :  { %7246 = vmatpush1.bf16.msra.mxu1 %v10215_v24  ;;  %7206 = vmatprep.subr.bf16.mxu0 %v10220_v25  ;;  %v10277_v20 = vld [vmem:[#allocation5 + $0xb4c] ss:$16 sps:$4 sm:$0xff]   ;;  %v10272_v24 = vld [vmem:[#allocation5 + $0x948] ss:$16 sps:$4 sm:$0xff]  }
 0x2d0   :  { %7247 = vmatprep.subr.bf16.mxu1 %v10223_v37  ;;  %v10275_v25 = vld [vmem:[#allocation5 + $0xb48] ss:$16 sps:$4 sm:$0xff]   ;;  %v10280_v37 = vld [vmem:[#allocation5 + $0x92c] ss:$16 sps:$4 sm:$0xff]  }
 0x2d2   :  { %7207 = vmatpush1.bf16.msra.mxu0 %v10218_v58  ;;  %v10283_v58 = vld [vmem:[#allocation5 + $0xb2c] ss:$16 sps:$4 sm:$0xff]  }
 0x2d3   :  { %7248 = vmatpush1.bf16.msra.mxu1 %v10221_v31  ;;  %7208 = vmatprep.subr.bf16.mxu0 %v10226_v9  ;;  %v10278_v31 = vld [vmem:[#allocation5 + $0x928] ss:$16 sps:$4 sm:$0xff]  }
 0x2d4   :  { %7249 = vmatprep.subr.bf16.mxu1 %v10229_v10  ;;  %v10281_v9 = vld [vmem:[#allocation5 + $0xb28] ss:$16 sps:$4 sm:$0xff]   ;;  %v10286_v10 = vld [vmem:[#allocation5 + $0x90c] ss:$16 sps:$4 sm:$0xff]  }
 0x2d6   :  { %7209 = vmatpush1.bf16.msra.mxu0 %v10224_v11  ;;  %v10289_v11 = vld [vmem:[#allocation5 + $0xb0c] ss:$16 sps:$4 sm:$0xff]  }
 0x2d7   :  { %7250 = vmatpush1.bf16.msra.mxu1 %v10227_v15  ;;  %7210 = vmatprep.subr.bf16.mxu0 %v10232_v19  ;;  %v10284_v15 = vld [vmem:[#allocation5 + $0x908] ss:$16 sps:$4 sm:$0xff]  }
 0x2d8   :  { %7251 = vmatprep.subr.bf16.mxu1 %v10235_v12  ;;  %v10287_v19 = vld [vmem:[#allocation5 + $0xb08] ss:$16 sps:$4 sm:$0xff]   ;;  %v10292_v12 = vld [vmem:[#allocation5 + $0xcec] ss:$16 sps:$4 sm:$0xff]  }
 0x2da   :  { %7211 = vmatpush1.bf16.msra.mxu0 %v10230_v13  ;;  %v10295_v13 = vld [vmem:[#allocation5 + $0xeec] ss:$16 sps:$4 sm:$0xff]  }
 0x2db   :  { %7252 = vmatpush1.bf16.msra.mxu1 %v10233_v14  ;;  %7212 = vmatprep.subr.bf16.mxu0 %v10238_v21  ;;  %v10290_v14 = vld [vmem:[#allocation5 + $0xce8] ss:$16 sps:$4 sm:$0xff]  }
 0x2dc   :  { %7253 = vmatprep.subr.bf16.mxu1 %v10241_v30  ;;  %v10293_v21 = vld [vmem:[#allocation5 + $0xee8] ss:$16 sps:$4 sm:$0xff]   ;;  %v10298_v30 = vld [vmem:[#allocation5 + $0xccc] ss:$16 sps:$4 sm:$0xff]  }
 0x2de   :  { %7213 = vmatpush1.bf16.msra.mxu0 %v10236_v32  ;;  %v10301_v32 = vld [vmem:[#allocation5 + $0xecc] ss:$16 sps:$4 sm:$0xff]  }
 0x2df   :  { %7254 = vmatpush1.bf16.msra.mxu1 %v10239_v33  ;;  %7214 = vmatprep.subr.bf16.mxu0 %v10244_v46 }
 0x2e0   :  { %7255 = vmatprep.subr.bf16.mxu1 %v10247_v41 }
 0x2e2   :  { %7215 = vmatpush2.bf16.msra.mxu0 %v10242_v42  ;;  %v10296_v42 = vld [vmem:[#allocation5 + $0xcc8] ss:$16 sps:$4 sm:$0xff]  }
 0x2e3   :  { %7256 = vmatpush2.bf16.msra.mxu1 %v10245_v8  ;;  %7216 = vmatprep.subr.bf16.mxu0 %v10250_v43  ;;  %v10299_v8 = vld [vmem:[#allocation5 + $0xec8] ss:$16 sps:$4 sm:$0xff]  }
 0x2e4   :  { %7257 = vmatprep.subr.bf16.mxu1 %v10253_v53 }
 0x2e6   :  { %7217 = vmatpush2.bf16.msra.mxu0 %v10248_v28  ;;  %v10304_v28 = vld [vmem:[#allocation5 + $0xcac] ss:$16 sps:$4 sm:$0xff]  }
 0x2e7   :  { %7258 = vmatpush2.bf16.msra.mxu1 %v10251_v47  ;;  %7218 = vmatprep.subr.bf16.mxu0 %v10256_v23  ;;  %v10307_v47 = vld [vmem:[#allocation5 + $0xeac] ss:$16 sps:$4 sm:$0xff]  }
 0x2e8   :  { %7259 = vmatprep.subr.bf16.mxu1 %v10259_v45 }
 0x2ea   :  { %7219 = vmatpush2.bf16.msra.mxu0 %v10254_v48  ;;  %v10302_v48 = vld [vmem:[#allocation5 + $0xca8] ss:$16 sps:$4 sm:$0xff]  }
 0x2eb   :  { %7260 = vmatpush2.bf16.msra.mxu1 %v10257_v6  ;;  %7220 = vmatprep.subr.bf16.mxu0 %v10262_v49  ;;  %v10305_v6 = vld [vmem:[#allocation5 + $0xea8] ss:$16 sps:$4 sm:$0xff]  }
 0x2ec   :  { %7261 = vmatprep.subr.bf16.mxu1 %v10265_v16 }
 0x2ee   :  { %7221 = vmatpush2.bf16.msra.mxu0 %v10260_v17  ;;  %v10310_v17 = vld [vmem:[#allocation5 + $0xc8c] ss:$16 sps:$4 sm:$0xff]  }
 0x2ef   :  { %7262 = vmatpush2.bf16.msra.mxu1 %v10263_v50  ;;  %7222 = vmatprep.subr.bf16.mxu0 %v10268_v52  ;;  %v10313_v50 = vld [vmem:[#allocation5 + $0xe8c] ss:$16 sps:$4 sm:$0xff]  }
 0x2f0   :  { %7263 = vmatprep.subr.bf16.mxu1 %v10271_v26  ;;  %v10319_v52 = vld [vmem:[#allocation5 + $0xe6c] ss:$16 sps:$4 sm:$0xff]   ;;  %v10314_v26 = vld [vmem:[#allocation5 + $0xc68] ss:$16 sps:$4 sm:$0xff]  }
 0x2f2   :  { %7223 = vmatpush2.bf16.msra.mxu0 %v10266_v18  ;;  %v10317_v18 = vld [vmem:[#allocation5 + $0xe68] ss:$16 sps:$4 sm:$0xff]  }
 0x2f3   :  { %7264 = vmatpush2.bf16.msra.mxu1 %v10269_v57  ;;  %7224 = vmatprep.subr.bf16.mxu0 %v10274_v36  ;;  %v10322_v57 = vld [vmem:[#allocation5 + $0xc4c] ss:$16 sps:$4 sm:$0xff]  }
 0x2f4   :  { %7265 = vmatprep.subr.bf16.mxu1 %v10277_v20  ;;  %v10325_v36 = vld [vmem:[#allocation5 + $0xe4c] ss:$16 sps:$4 sm:$0xff]   ;;  %v10320_v20 = vld [vmem:[#allocation5 + $0xc48] ss:$16 sps:$4 sm:$0xff]  }
 0x2f6   :  { %7225 = vmatpush2.bf16.msra.mxu0 %v10272_v24  ;;  %v10323_v24 = vld [vmem:[#allocation5 + $0xe48] ss:$16 sps:$4 sm:$0xff]  }
 0x2f7   :  { %7266 = vmatpush2.bf16.msra.mxu1 %v10275_v25  ;;  %7226 = vmatprep.subr.bf16.mxu0 %v10280_v37  ;;  %v10328_v25 = vld [vmem:[#allocation5 + $0xc2c] ss:$16 sps:$4 sm:$0xff]  }
 0x2f8   :  { %7267 = vmatprep.subr.bf16.mxu1 %v10283_v58  ;;  %v10331_v37 = vld [vmem:[#allocation5 + $0xe2c] ss:$16 sps:$4 sm:$0xff]   ;;  %v10326_v58 = vld [vmem:[#allocation5 + $0xc28] ss:$16 sps:$4 sm:$0xff]  }
 0x2fa   :  { %7227 = vmatpush2.bf16.msra.mxu0 %v10278_v31  ;;  %v10329_v31 = vld [vmem:[#allocation5 + $0xe28] ss:$16 sps:$4 sm:$0xff]  }
 0x2fb   :  { %7268 = vmatpush2.bf16.msra.mxu1 %v10281_v9  ;;  %7228 = vmatprep.subr.bf16.mxu0 %v10286_v10  ;;  %v10334_v9 = vld [vmem:[#allocation5 + $0xc0c] ss:$16 sps:$4 sm:$0xff]  }
 0x2fc   :  { %7269 = vmatprep.subr.bf16.mxu1 %v10289_v11  ;;  %v10337_v10 = vld [vmem:[#allocation5 + $0xe0c] ss:$16 sps:$4 sm:$0xff]   ;;  %v10332_v11 = vld [vmem:[#allocation5 + $0xc08] ss:$16 sps:$4 sm:$0xff]  }
 0x2fe   :  { %7229 = vmatpush2.bf16.msra.mxu0 %v10284_v15  ;;  %v10335_v15 = vld [vmem:[#allocation5 + $0xe08] ss:$16 sps:$4 sm:$0xff]  }
 0x2ff   :  { %7270 = vmatpush2.bf16.msra.mxu1 %v10287_v19  ;;  %7280 = vmatprep.subr.bf16.mxu0 %v10292_v12  ;;  %v10340_v19 = vld [vmem:[#allocation5 + $0xdec] ss:$16 sps:$4 sm:$0xff]  }
 0x300   :  { %7321 = vmatprep.subr.bf16.mxu1 %v10295_v13  ;;  %v10343_v12 = vld [vmem:[#allocation5 + $0xfec] ss:$16 sps:$4 sm:$0xff]   ;;  %v10338_v13 = vld [vmem:[#allocation5 + $0xde8] ss:$16 sps:$4 sm:$0xff]  }
 0x301   :  { %v6986_v33 = vpop.f32.mrf.mxu0  ;;  %7231 = vmatmul.mubr.bf16.vlgmr.msra.gmra.mxu0 %v11040_v38 }
 0x302   :  { %v7027_v46 = vpop.f32.mrf.mxu1  ;;  %7272 = vmatmul.mubr.bf16.vlgmr.msra.gmra.mxu1 %v11044_v39  ;;  %v6987_v41 = vadd.f32 %v6986_v33, %v11213_v7  ;;  %7281 = vmatpush1.bf16.msra.mxu0 %v10290_v14  ;;  %v10341_v14 = vld [vmem:[#allocation5 + $0xfe8] ss:$16 sps:$4 sm:$0xff]  }
 0x303   :  { %7322 = vmatpush1.bf16.msra.mxu1 %v10293_v21  ;;  %v6988_v43 = vpop.f32.mrf.mxu0  ;;  %7282 = vmatprep.subr.bf16.mxu0 %v10298_v30  ;;  %v10346_v21 = vld [vmem:[#allocation5 + $0xdcc] ss:$16 sps:$4 sm:$0xff]   ;;  %v10347_v33 = vld [vmem:[#allocation5 + $0xfc8] ss:$16 sps:$4 sm:$0xff]  }
 0x304   :  { %v7029_v53 = vpop.f32.mrf.mxu1  ;;  %7323 = vmatprep.subr.bf16.mxu1 %v10301_v32  ;;  %v11223_v23 = vadd.f32 %v7027_v46, %v6987_v41  ;;  %v6989_v45 = vadd.f32 %v6988_v43, %v11218_v51  ;;  %7312 = vmatprep.mubr.bf16.mxu0 %v11050_v44  ;;  %v10308_v51 = vld [vmem:[#allocation5 + $0xc88] ss:$16 sps:$4 sm:$0xff]   ;;  %v10349_v30 = vld [vmem:[#allocation5 + $0xfcc] ss:$16 sps:$4 sm:$0xff]  }
 0x305   :  { %7353 = vmatprep.mubr.bf16.mxu1 %v11054_v22  ;;  %v6990_v38 = vpop.f32.mrf.mxu0  ;;  %v10311_v44 = vld [vmem:[#allocation5 + $0xe88] ss:$16 sps:$4 sm:$0xff]   ;;  %v10316_v22 = vld [vmem:[#allocation5 + $0xc6c] ss:$16 sps:$4 sm:$0xff]  }
 0x306   :  { %v7031_v39 = vpop.f32.mrf.mxu1  ;;  %v11228_v7 = vadd.f32 %v7029_v53, %v6989_v45  ;;  %7283 = vmatpush1.bf16.msra.mxu0 %v10296_v42  ;;  %v10344_v32 = vld [vmem:[#allocation5 + $0xdc8] ss:$16 sps:$4 sm:$0xff]   ;;  %v10352_v46 = vld [vmem:[#allocation5 + $0xdac] ss:$16 sps:$4 sm:$0xff]  }
 0x307   :  { %7324 = vmatpush1.bf16.msra.mxu1 %v10299_v8  ;;  %v6991_v49 = vpop.f32.mrf.mxu0  ;;  %7284 = vmatprep.subr.bf16.mxu0 %v10304_v28  ;;  %v10355_v41 = vld [vmem:[#allocation5 + $0xfac] ss:$16 sps:$4 sm:$0xff]   ;;  %v10350_v42 = vld [vmem:[#allocation5 + $0xda8] ss:$16 sps:$4 sm:$0xff]  }
 0x308   :  { %v7032_v16 = vpop.f32.mrf.mxu1  ;;  %7325 = vmatprep.subr.bf16.mxu1 %v10307_v47  ;;  %v10353_v8 = vld [vmem:[#allocation5 + $0xfa8] ss:$16 sps:$4 sm:$0xff]   ;;  %v10358_v43 = vld [vmem:[#allocation5 + $0xd8c] ss:$16 sps:$4 sm:$0xff]  }
 0x309   :  { %v10361_v53 = vld [vmem:[#allocation5 + $0xf8c] ss:$16 sps:$4 sm:$0xff]   ;;  %v10356_v28 = vld [vmem:[#allocation5 + $0xd88] ss:$16 sps:$4 sm:$0xff]  }
 0x30a   :  { %7285 = vmatpush1.bf16.msra.mxu0 %v10302_v48  ;;  %v10359_v47 = vld [vmem:[#allocation5 + $0xf88] ss:$16 sps:$4 sm:$0xff]   ;;  %v10364_v45 = vld [vmem:[#allocation5 + $0xd6c] ss:$16 sps:$4 sm:$0xff]  }
 0x30b   :  { %7326 = vmatpush1.bf16.msra.mxu1 %v10305_v6  ;;  %7286 = vmatprep.subr.bf16.mxu0 %v10310_v17  ;;  %v10367_v38 = vld [vmem:[#allocation5 + $0xf6c] ss:$16 sps:$4 sm:$0xff]   ;;  %v10362_v39 = vld [vmem:[#allocation5 + $0xd68] ss:$16 sps:$4 sm:$0xff]  }
 0x30c   :  { %7327 = vmatprep.subr.bf16.mxu1 %v10313_v50  ;;  %v10365_v48 = vld [vmem:[#allocation5 + $0xf68] ss:$16 sps:$4 sm:$0xff]   ;;  %v10370_v6 = vld [vmem:[#allocation5 + $0xd4c] ss:$16 sps:$4 sm:$0xff]  }
 0x30d   :  { %v10373_v49 = vld [vmem:[#allocation5 + $0xf4c] ss:$16 sps:$4 sm:$0xff]   ;;  %v10368_v16 = vld [vmem:[#allocation5 + $0xd48] ss:$16 sps:$4 sm:$0xff]  }
 0x30e   :  { %7287 = vmatpush1.bf16.msra.mxu0 %v10308_v51  ;;  %v10371_v17 = vld [vmem:[#allocation5 + $0xf48] ss:$16 sps:$4 sm:$0xff]   ;;  %v10376_v50 = vld [vmem:[#allocation5 + $0xd2c] ss:$16 sps:$4 sm:$0xff]  }
 0x30f   :  { %7328 = vmatpush1.bf16.msra.mxu1 %v10311_v44  ;;  %7288 = vmatprep.subr.bf16.mxu0 %v10316_v22  ;;  %v10379_v51 = vld [vmem:[#allocation5 + $0xf2c] ss:$16 sps:$4 sm:$0xff]   ;;  %v10374_v44 = vld [vmem:[#allocation5 + $0xd28] ss:$16 sps:$4 sm:$0xff]  }
 0x310   :  { %7329 = vmatprep.subr.bf16.mxu1 %v10319_v52  ;;  %v10377_v22 = vld [vmem:[#allocation5 + $0xf28] ss:$16 sps:$4 sm:$0xff]   ;;  %v10382_v52 = vld [vmem:[#allocation5 + $0xd0c] ss:$16 sps:$4 sm:$0xff]  }
 0x312   :  { %7289 = vmatpush1.bf16.msra.mxu0 %v10314_v26  ;;  %v10385_v26 = vld [vmem:[#allocation5 + $0xf0c] ss:$16 sps:$4 sm:$0xff]  }
 0x313   :  { %7330 = vmatpush1.bf16.msra.mxu1 %v10317_v18  ;;  %7290 = vmatprep.subr.bf16.mxu0 %v10322_v57  ;;  %v10380_v18 = vld [vmem:[#allocation5 + $0xd08] ss:$16 sps:$4 sm:$0xff]  }
 0x314   :  { %7331 = vmatprep.subr.bf16.mxu1 %v10325_v36  ;;  %v10383_v57 = vld [vmem:[#allocation5 + $0xf08] ss:$16 sps:$4 sm:$0xff]   ;;  %v1136_v36 = vsub.s32 2, %v11060_v54 }
 0x316   :  { %7291 = vmatpush1.bf16.msra.mxu0 %v10320_v20  ;;  %v10388_v20 = vld [vmem:[#allocation5 + $0x10ec] ss:$16 sps:$4 sm:$0xff]  }
 0x317   :  { %7332 = vmatpush1.bf16.msra.mxu1 %v10323_v24  ;;  %7292 = vmatprep.subr.bf16.mxu0 %v10328_v25  ;;  %v10391_v24 = vld [vmem:[#allocation5 + $0x12ec] ss:$16 sps:$4 sm:$0xff]   ;;  %v1140_v25 = vsub.s32 3, %v11060_v54  ;;  %v10392_v54 = vld [vmem:[#allocation5 + $0x10c8] ss:$16 sps:$4 sm:$0xff]  }
 0x318   :  { %7333 = vmatprep.subr.bf16.mxu1 %v10331_v37  ;;  %v10802_v37 = vld [vmem:[#allocation7] sm:$0xf] }
 0x31a   :  { %7293 = vmatpush1.bf16.msra.mxu0 %v10326_v58  ;;  %v1137_v58 = vrot.slane %v10802_v37, %v1136_v36  ;;  %v10431_v36 = vld [vmem:[#allocation5 + $0x1208] ss:$16 sps:$4 sm:$0xff]  }
 0x31b   :  { %7334 = vmatpush1.bf16.msra.mxu1 %v10329_v31  ;;  %7294 = vmatprep.subr.bf16.mxu0 %v10334_v9  ;;  %v10386_v31 = vld [vmem:[#allocation5 + $0x10e8] ss:$16 sps:$4 sm:$0xff]  }
 0x31c   :  { %7335 = vmatprep.subr.bf16.mxu1 %v10337_v10  ;;  %v10389_v9 = vld [vmem:[#allocation5 + $0x12e8] ss:$16 sps:$4 sm:$0xff]   ;;  %v10394_v10 = vld [vmem:[#allocation5 + $0x10cc] ss:$16 sps:$4 sm:$0xff]  }
 0x31e   :  { %7295 = vmatpush1.bf16.msra.mxu0 %v10332_v11  ;;  %v10397_v11 = vld [vmem:[#allocation5 + $0x12cc] ss:$16 sps:$4 sm:$0xff]  }
 0x31f   :  { %7336 = vmatpush1.bf16.msra.mxu1 %v10335_v15  ;;  %7296 = vmatprep.subr.bf16.mxu0 %v10340_v19  ;;  %v1141_v15 = vrot.slane %v10802_v37, %v1140_v25  ;;  %v10434_v25 = vld [vmem:[#allocation5 + $0x11e8] ss:$16 sps:$4 sm:$0xff]  }
 0x320   :  { %7337 = vmatprep.subr.bf16.mxu1 %v10343_v12  ;;  %v10437_v37 = vld [vmem:[#allocation5 + $0x13e8] ss:$16 sps:$4 sm:$0xff]  }
 0x322   :  { %7297 = vmatpush2.bf16.msra.mxu0 %v10338_v13 }
 0x323   :  { %7338 = vmatpush2.bf16.msra.mxu1 %v10341_v14  ;;  %7298 = vmatprep.subr.bf16.mxu0 %v10346_v21  ;;  %v10395_v14 = vld [vmem:[#allocation5 + $0x12c8] ss:$16 sps:$4 sm:$0xff]  }
 0x324   :  { %7339 = vmatprep.subr.bf16.mxu1 %v10349_v30 }
 0x326   :  { %7299 = vmatpush2.bf16.msra.mxu0 %v10344_v32  ;;  %v10400_v32 = vld [vmem:[#allocation5 + $0x10ac] ss:$16 sps:$4 sm:$0xff]  }
 0x327   :  { %7340 = vmatpush2.bf16.msra.mxu1 %v10347_v33  ;;  %7300 = vmatprep.subr.bf16.mxu0 %v10352_v46  ;;  %v10403_v33 = vld [vmem:[#allocation5 + $0x12ac] ss:$16 sps:$4 sm:$0xff]  }
 0x328   :  { %7341 = vmatprep.subr.bf16.mxu1 %v10355_v41 }
 0x32a   :  { %7301 = vmatpush2.bf16.msra.mxu0 %v10350_v42 }
 0x32b   :  { %7342 = vmatpush2.bf16.msra.mxu1 %v10353_v8  ;;  %7302 = vmatprep.subr.bf16.mxu0 %v10358_v43  ;;  %v10398_v8 = vld [vmem:[#allocation5 + $0x10a8] ss:$16 sps:$4 sm:$0xff]  }
 0x32c   :  { %7343 = vmatprep.subr.bf16.mxu1 %v10361_v53  ;;  %v10401_v43 = vld [vmem:[#allocation5 + $0x12a8] ss:$16 sps:$4 sm:$0xff]  }
 0x32e   :  { %7303 = vmatpush2.bf16.msra.mxu0 %v10356_v28 }
 0x32f   :  { %7344 = vmatpush2.bf16.msra.mxu1 %v10359_v47  ;;  %7304 = vmatprep.subr.bf16.mxu0 %v10364_v45  ;;  %v10406_v47 = vld [vmem:[#allocation5 + $0x108c] ss:$16 sps:$4 sm:$0xff]  }
 0x330   :  { %7345 = vmatprep.subr.bf16.mxu1 %v10367_v38  ;;  %v10409_v45 = vld [vmem:[#allocation5 + $0x128c] ss:$16 sps:$4 sm:$0xff]   ;;  %v10404_v38 = vld [vmem:[#allocation5 + $0x1088] ss:$16 sps:$4 sm:$0xff]  }
 0x332   :  { %7305 = vmatpush2.bf16.msra.mxu0 %v10362_v39  ;;  %v10415_v39 = vld [vmem:[#allocation5 + $0x126c] ss:$16 sps:$4 sm:$0xff]  }
 0x333   :  { %7346 = vmatpush2.bf16.msra.mxu1 %v10365_v48  ;;  %7306 = vmatprep.subr.bf16.mxu0 %v10370_v6  ;;  %v10410_v48 = vld [vmem:[#allocation5 + $0x1068] ss:$16 sps:$4 sm:$0xff]  }
 0x334   :  { %7347 = vmatprep.subr.bf16.mxu1 %v10373_v49  ;;  %v10413_v6 = vld [vmem:[#allocation5 + $0x1268] ss:$16 sps:$4 sm:$0xff]   ;;  %v10418_v49 = vld [vmem:[#allocation5 + $0x104c] ss:$16 sps:$4 sm:$0xff]  }
 0x336   :  { %7307 = vmatpush2.bf16.msra.mxu0 %v10368_v16  ;;  %v10421_v16 = vld [vmem:[#allocation5 + $0x124c] ss:$16 sps:$4 sm:$0xff]  }
 0x337   :  { %7348 = vmatpush2.bf16.msra.mxu1 %v10371_v17  ;;  %7308 = vmatprep.subr.bf16.mxu0 %v10376_v50  ;;  %v10416_v17 = vld [vmem:[#allocation5 + $0x1048] ss:$16 sps:$4 sm:$0xff]  }
 0x338   :  { %7349 = vmatprep.subr.bf16.mxu1 %v10379_v51  ;;  %v10419_v50 = vld [vmem:[#allocation5 + $0x1248] ss:$16 sps:$4 sm:$0xff]   ;;  %v10424_v51 = vld [vmem:[#allocation5 + $0x102c] ss:$16 sps:$4 sm:$0xff]  }
 0x33a   :  { %7309 = vmatpush2.bf16.msra.mxu0 %v10374_v44  ;;  %v10427_v44 = vld [vmem:[#allocation5 + $0x122c] ss:$16 sps:$4 sm:$0xff]  }
 0x33b   :  { %7350 = vmatpush2.bf16.msra.mxu1 %v10377_v22  ;;  %7310 = vmatprep.subr.bf16.mxu0 %v10382_v52  ;;  %v10422_v22 = vld [vmem:[#allocation5 + $0x1028] ss:$16 sps:$4 sm:$0xff]  }
 0x33c   :  { %7351 = vmatprep.subr.bf16.mxu1 %v10385_v26  ;;  %v10425_v52 = vld [vmem:[#allocation5 + $0x1228] ss:$16 sps:$4 sm:$0xff]   ;;  %v10430_v26 = vld [vmem:[#allocation5 + $0x100c] ss:$16 sps:$4 sm:$0xff]  }
 0x33e   :  { %7311 = vmatpush2.bf16.msra.mxu0 %v10380_v18  ;;  %v10433_v18 = vld [vmem:[#allocation5 + $0x120c] ss:$16 sps:$4 sm:$0xff]  }
 0x33f   :  { %7352 = vmatpush2.bf16.msra.mxu1 %v10383_v57  ;;  %7362 = vmatprep.subr.bf16.mxu0 %v10388_v20  ;;  %v10428_v57 = vld [vmem:[#allocation5 + $0x1008] ss:$16 sps:$4 sm:$0xff]   ;;  %v10436_v20 = vld [vmem:[#allocation5 + $0x11ec] ss:$16 sps:$4 sm:$0xff]  }
 0x340   :  { %7403 = vmatprep.subr.bf16.mxu1 %v10391_v24  ;;  %v10439_v24 = vld [vmem:[#allocation5 + $0x13ec] ss:$16 sps:$4 sm:$0xff]  }
 0x341   :  { %v7068_v19 = vpop.f32.mrf.mxu0  ;;  %7313 = vmatmul.mubr.bf16.vlgmr.msra.gmra.mxu0 %v11066_v0 }
 0x342   :  { %v7109_v12 = vpop.f32.mrf.mxu1  ;;  %7354 = vmatmul.mubr.bf16.vlgmr.msra.gmra.mxu1 %v11070_v1  ;;  %v7069_v13 = vadd.f32 %v7068_v19, %v1137_v58  ;;  %7363 = vmatpush1.bf16.msra.mxu0 %v10386_v31  ;;  %v10442_v58 = vld [vmem:[#allocation5 + $0x11cc] ss:$16 sps:$4 sm:$0xff]   ;;  %v10446_v19 = vld [vmem:[#allocation5 + $0x11a8] ss:$16 sps:$4 sm:$0xff]  }
 0x343   :  { %7404 = vmatpush1.bf16.msra.mxu1 %v10389_v9  ;;  %v7070_v21 = vpop.f32.mrf.mxu0  ;;  %7364 = vmatprep.subr.bf16.mxu0 %v10394_v10  ;;  %v10445_v31 = vld [vmem:[#allocation5 + $0x13cc] ss:$16 sps:$4 sm:$0xff]   ;;  %v10440_v9 = vld [vmem:[#allocation5 + $0x11c8] ss:$16 sps:$4 sm:$0xff]  }
 0x344   :  { %v7111_v30 = vpop.f32.mrf.mxu1  ;;  %7405 = vmatprep.subr.bf16.mxu1 %v10397_v11  ;;  %v11234_v46 = vadd.f32 %v7109_v12, %v7069_v13  ;;  %v7071_v41 = vadd.f32 %v7070_v21, %v1141_v15  ;;  %7394 = vmatprep.mubr.bf16.mxu0 %v11078_v35  ;;  %v10407_v35 = vld [vmem:[#allocation5 + $0x1288] ss:$16 sps:$4 sm:$0xff]   ;;  %v10448_v11 = vld [vmem:[#allocation5 + $0x11ac] ss:$16 sps:$4 sm:$0xff]  }
 0x345   :  { %7435 = vmatprep.mubr.bf16.mxu1 %v11082_v40  ;;  %v7072_v0 = vpop.f32.mrf.mxu0  ;;  %v10412_v40 = vld [vmem:[#allocation5 + $0x106c] ss:$16 sps:$4 sm:$0xff]   ;;  %v10443_v10 = vld [vmem:[#allocation5 + $0x13c8] ss:$16 sps:$4 sm:$0xff]  }
 0x346   :  { %v7113_v1 = vpop.f32.mrf.mxu1  ;;  %v11238_v42 = vadd.f32 %v7111_v30, %v7071_v41  ;;  %7365 = vmatpush1.bf16.msra.mxu0 %v10392_v54  ;;  %v10451_v15 = vld [vmem:[#allocation5 + $0x13ac] ss:$16 sps:$4 sm:$0xff]   ;;  %v10449_v12 = vld [vmem:[#allocation5 + $0x13a8] ss:$16 sps:$4 sm:$0xff]  }
 0x347   :  { %7406 = vmatpush1.bf16.msra.mxu1 %v10395_v14  ;;  %v7073_v53 = vpop.f32.mrf.mxu0  ;;  %7366 = vmatprep.subr.bf16.mxu0 %v10400_v32  ;;  %v10454_v13 = vld [vmem:[#allocation5 + $0x118c] ss:$16 sps:$4 sm:$0xff]   ;;  %v10452_v14 = vld [vmem:[#allocation5 + $0x1188] ss:$16 sps:$4 sm:$0xff]  }
 0x348   :  { %v7114_v28 = vpop.f32.mrf.mxu1  ;;  %7407 = vmatprep.subr.bf16.mxu1 %v10403_v33  ;;  %v10457_v54 = vld [vmem:[#allocation5 + $0x138c] ss:$16 sps:$4 sm:$0xff]   ;;  %v10455_v21 = vld [vmem:[#allocation5 + $0x1388] ss:$16 sps:$4 sm:$0xff]  }
 0x349   :  { %v10460_v30 = vld [vmem:[#allocation5 + $0x116c] ss:$16 sps:$4 sm:$0xff]   ;;  %v10458_v33 = vld [vmem:[#allocation5 + $0x1168] ss:$16 sps:$4 sm:$0xff]  }
 0x34a   :  { %7367 = vmatpush1.bf16.msra.mxu0 %v10398_v8  ;;  %v10463_v32 = vld [vmem:[#allocation5 + $0x136c] ss:$16 sps:$4 sm:$0xff]   ;;  %v10461_v41 = vld [vmem:[#allocation5 + $0x1368] ss:$16 sps:$4 sm:$0xff]  }
 0x34b   :  { %7408 = vmatpush1.bf16.msra.mxu1 %v10401_v43  ;;  %7368 = vmatprep.subr.bf16.mxu0 %v10406_v47  ;;  %v10466_v0 = vld [vmem:[#allocation5 + $0x114c] ss:$16 sps:$4 sm:$0xff]   ;;  %v10464_v8 = vld [vmem:[#allocation5 + $0x1148] ss:$16 sps:$4 sm:$0xff]  }
 0x34c   :  { %7409 = vmatprep.subr.bf16.mxu1 %v10409_v45  ;;  %v10469_v1 = vld [vmem:[#allocation5 + $0x134c] ss:$16 sps:$4 sm:$0xff]   ;;  %v10467_v43 = vld [vmem:[#allocation5 + $0x1348] ss:$16 sps:$4 sm:$0xff]  }
 0x34d   :  { %v10472_v53 = vld [vmem:[#allocation5 + $0x112c] ss:$16 sps:$4 sm:$0xff]   ;;  %v10470_v47 = vld [vmem:[#allocation5 + $0x1128] ss:$16 sps:$4 sm:$0xff]  }
 0x34e   :  { %7369 = vmatpush1.bf16.msra.mxu0 %v10404_v38  ;;  %v10475_v28 = vld [vmem:[#allocation5 + $0x132c] ss:$16 sps:$4 sm:$0xff]   ;;  %v10473_v45 = vld [vmem:[#allocation5 + $0x1328] ss:$16 sps:$4 sm:$0xff]  }
 0x34f   :  { %7410 = vmatpush1.bf16.msra.mxu1 %v10407_v35  ;;  %7370 = vmatprep.subr.bf16.mxu0 %v10412_v40  ;;  %v10478_v38 = vld [vmem:[#allocation5 + $0x110c] ss:$16 sps:$4 sm:$0xff]   ;;  %v10476_v40 = vld [vmem:[#allocation5 + $0x1108] ss:$16 sps:$4 sm:$0xff]  }
 0x350   :  { %7411 = vmatprep.subr.bf16.mxu1 %v10415_v39  ;;  %v10481_v35 = vld [vmem:[#allocation5 + $0x130c] ss:$16 sps:$4 sm:$0xff]   ;;  %v10479_v39 = vld [vmem:[#allocation5 + $0x1308] ss:$16 sps:$4 sm:$0xff]  }
 0x352   :  { %7371 = vmatpush1.bf16.msra.mxu0 %v10410_v48  ;;  %v10484_v48 = vld [vmem:[#allocation5 + $0x14ec] ss:$16 sps:$4 sm:$0xff]  }
 0x353   :  { %7412 = vmatpush1.bf16.msra.mxu1 %v10413_v6  ;;  %7372 = vmatprep.subr.bf16.mxu0 %v10418_v49  ;;  %v10487_v6 = vld [vmem:[#allocation5 + $0x16ec] ss:$16 sps:$4 sm:$0xff]   ;;  %v10482_v49 = vld [vmem:[#allocation5 + $0x14e8] ss:$16 sps:$4 sm:$0xff]  }
 0x354   :  { %7413 = vmatprep.subr.bf16.mxu1 %v10421_v16  ;;  %v10485_v16 = vld [vmem:[#allocation5 + $0x16e8] ss:$16 sps:$4 sm:$0xff]  }
 0x356   :  { %7373 = vmatpush1.bf16.msra.mxu0 %v10416_v17  ;;  %v10490_v17 = vld [vmem:[#allocation5 + $0x14cc] ss:$16 sps:$4 sm:$0xff]  }
 0x357   :  { %7414 = vmatpush1.bf16.msra.mxu1 %v10419_v50  ;;  %7374 = vmatprep.subr.bf16.mxu0 %v10424_v51  ;;  %v10493_v50 = vld [vmem:[#allocation5 + $0x16cc] ss:$16 sps:$4 sm:$0xff]  }
 0x358   :  { %7415 = vmatprep.subr.bf16.mxu1 %v10427_v44 }
 0x35a   :  { %7375 = vmatpush1.bf16.msra.mxu0 %v10422_v22 }
 0x35b   :  { %7416 = vmatpush1.bf16.msra.mxu1 %v10425_v52  ;;  %7376 = vmatprep.subr.bf16.mxu0 %v10430_v26  ;;  %v10488_v52 = vld [vmem:[#allocation5 + $0x14c8] ss:$16 sps:$4 sm:$0xff]  }
 0x35c   :  { %7417 = vmatprep.subr.bf16.mxu1 %v10433_v18  ;;  %v10491_v26 = vld [vmem:[#allocation5 + $0x16c8] ss:$16 sps:$4 sm:$0xff]  }
 0x35e   :  { %7377 = vmatpush1.bf16.msra.mxu0 %v10428_v57 }
 0x35f   :  { %7418 = vmatpush1.bf16.msra.mxu1 %v10431_v36  ;;  %7378 = vmatprep.subr.bf16.mxu0 %v10436_v20  ;;  %v10496_v36 = vld [vmem:[#allocation5 + $0x14ac] ss:$16 sps:$4 sm:$0xff]  }
 0x360   :  { %7419 = vmatprep.subr.bf16.mxu1 %v10439_v24  ;;  %v10499_v20 = vld [vmem:[#allocation5 + $0x16ac] ss:$16 sps:$4 sm:$0xff]  }
 0x362   :  { %7379 = vmatpush2.bf16.msra.mxu0 %v10434_v25 }
 0x363   :  { %7420 = vmatpush2.bf16.msra.mxu1 %v10437_v37  ;;  %7380 = vmatprep.subr.bf16.mxu0 %v10442_v58  ;;  %v10494_v37 = vld [vmem:[#allocation5 + $0x14a8] ss:$16 sps:$4 sm:$0xff]  }
 0x364   :  { %7421 = vmatprep.subr.bf16.mxu1 %v10445_v31  ;;  %v10497_v58 = vld [vmem:[#allocation5 + $0x16a8] ss:$16 sps:$4 sm:$0xff]  }
 0x366   :  { %7381 = vmatpush2.bf16.msra.mxu0 %v10440_v9 }
 0x367   :  { %7422 = vmatpush2.bf16.msra.mxu1 %v10443_v10  ;;  %7382 = vmatprep.subr.bf16.mxu0 %v10448_v11  ;;  %v10502_v10 = vld [vmem:[#allocation5 + $0x148c] ss:$16 sps:$4 sm:$0xff]  }
 0x368   :  { %7423 = vmatprep.subr.bf16.mxu1 %v10451_v15  ;;  %v10505_v11 = vld [vmem:[#allocation5 + $0x168c] ss:$16 sps:$4 sm:$0xff]  }
 0x369   :  { %v10511_v15 = vld [vmem:[#allocation5 + $0x166c] ss:$16 sps:$4 sm:$0xff]  }
 0x36a   :  { %7383 = vmatpush2.bf16.msra.mxu0 %v10446_v19  ;;  %v10506_v19 = vld [vmem:[#allocation5 + $0x1468] ss:$16 sps:$4 sm:$0xff]  }
 0x36b   :  { %7424 = vmatpush2.bf16.msra.mxu1 %v10449_v12  ;;  %7384 = vmatprep.subr.bf16.mxu0 %v10454_v13  ;;  %v10509_v12 = vld [vmem:[#allocation5 + $0x1668] ss:$16 sps:$4 sm:$0xff]   ;;  %v10514_v13 = vld [vmem:[#allocation5 + $0x144c] ss:$16 sps:$4 sm:$0xff]  }
 0x36c   :  { %7425 = vmatprep.subr.bf16.mxu1 %v10457_v54  ;;  %v10517_v54 = vld [vmem:[#allocation5 + $0x164c] ss:$16 sps:$4 sm:$0xff]  }
 0x36e   :  { %7385 = vmatpush2.bf16.msra.mxu0 %v10452_v14  ;;  %v10512_v14 = vld [vmem:[#allocation5 + $0x1448] ss:$16 sps:$4 sm:$0xff]  }
 0x36f   :  { %7426 = vmatpush2.bf16.msra.mxu1 %v10455_v21  ;;  %7386 = vmatprep.subr.bf16.mxu0 %v10460_v30  ;;  %v10515_v21 = vld [vmem:[#allocation5 + $0x1648] ss:$16 sps:$4 sm:$0xff]   ;;  %v10520_v30 = vld [vmem:[#allocation5 + $0x142c] ss:$16 sps:$4 sm:$0xff]  }
 0x370   :  { %7427 = vmatprep.subr.bf16.mxu1 %v10463_v32  ;;  %v10523_v32 = vld [vmem:[#allocation5 + $0x162c] ss:$16 sps:$4 sm:$0xff]  }
 0x372   :  { %7387 = vmatpush2.bf16.msra.mxu0 %v10458_v33  ;;  %v10518_v33 = vld [vmem:[#allocation5 + $0x1428] ss:$16 sps:$4 sm:$0xff]  }
 0x373   :  { %7428 = vmatpush2.bf16.msra.mxu1 %v10461_v41  ;;  %7388 = vmatprep.subr.bf16.mxu0 %v10466_v0  ;;  %v10521_v41 = vld [vmem:[#allocation5 + $0x1628] ss:$16 sps:$4 sm:$0xff]   ;;  %v10526_v0 = vld [vmem:[#allocation5 + $0x140c] ss:$16 sps:$4 sm:$0xff]  }
 0x374   :  { %7429 = vmatprep.subr.bf16.mxu1 %v10469_v1  ;;  %v10529_v1 = vld [vmem:[#allocation5 + $0x160c] ss:$16 sps:$4 sm:$0xff]  }
 0x376   :  { %7389 = vmatpush2.bf16.msra.mxu0 %v10464_v8  ;;  %v10524_v8 = vld [vmem:[#allocation5 + $0x1408] ss:$16 sps:$4 sm:$0xff]  }
 0x377   :  { %7430 = vmatpush2.bf16.msra.mxu1 %v10467_v43  ;;  %7390 = vmatprep.subr.bf16.mxu0 %v10472_v53  ;;  %v10527_v43 = vld [vmem:[#allocation5 + $0x1608] ss:$16 sps:$4 sm:$0xff]   ;;  %v10532_v53 = vld [vmem:[#allocation5 + $0x15ec] ss:$16 sps:$4 sm:$0xff]  }
 0x378   :  { %7431 = vmatprep.subr.bf16.mxu1 %v10475_v28  ;;  %v10535_v28 = vld [vmem:[#allocation5 + $0x17ec] ss:$16 sps:$4 sm:$0xff]  }
 0x37a   :  { %7391 = vmatpush2.bf16.msra.mxu0 %v10470_v47  ;;  %v10530_v47 = vld [vmem:[#allocation5 + $0x15e8] ss:$16 sps:$4 sm:$0xff]  }
 0x37b   :  { %7432 = vmatpush2.bf16.msra.mxu1 %v10473_v45  ;;  %7392 = vmatprep.subr.bf16.mxu0 %v10478_v38  ;;  %v10533_v45 = vld [vmem:[#allocation5 + $0x17e8] ss:$16 sps:$4 sm:$0xff]   ;;  %v10538_v38 = vld [vmem:[#allocation5 + $0x15cc] ss:$16 sps:$4 sm:$0xff]  }
 0x37c   :  { %7433 = vmatprep.subr.bf16.mxu1 %v10481_v35  ;;  %v10541_v35 = vld [vmem:[#allocation5 + $0x17cc] ss:$16 sps:$4 sm:$0xff]  }
 0x37e   :  { %7393 = vmatpush2.bf16.msra.mxu0 %v10476_v40  ;;  %v10536_v40 = vld [vmem:[#allocation5 + $0x15c8] ss:$16 sps:$4 sm:$0xff]  }
 0x37f   :  { %7434 = vmatpush2.bf16.msra.mxu1 %v10479_v39  ;;  %7444 = vmatprep.subr.bf16.mxu0 %v10484_v48  ;;  %v10539_v39 = vld [vmem:[#allocation5 + $0x17c8] ss:$16 sps:$4 sm:$0xff]   ;;  %v10544_v48 = vld [vmem:[#allocation5 + $0x15ac] ss:$16 sps:$4 sm:$0xff]  }
 0x380   :  { %7485 = vmatprep.subr.bf16.mxu1 %v10487_v6  ;;  %v10547_v6 = vld [vmem:[#allocation5 + $0x17ac] ss:$16 sps:$4 sm:$0xff]  }
 0x381   :  { %v7150_v51 = vpop.f32.mrf.mxu0  ;;  %7395 = vmatmul.mubr.bf16.vlgmr.msra.gmra.mxu0 %v11094_v59 }
 0x382   :  { %v7191_v44 = vpop.f32.mrf.mxu1  ;;  %7436 = vmatmul.mubr.bf16.vlgmr.msra.gmra.mxu1 %v11098_v60  ;;  %v7151_v22 = vadd.f32 %v7150_v51, %v11234_v46  ;;  %7445 = vmatpush1.bf16.msra.mxu0 %v10482_v49  ;;  %v10542_v49 = vld [vmem:[#allocation5 + $0x15a8] ss:$16 sps:$4 sm:$0xff]  }
 0x383   :  { %7486 = vmatpush1.bf16.msra.mxu1 %v10485_v16  ;;  %v7152_v18 = vpop.f32.mrf.mxu0  ;;  %7446 = vmatprep.subr.bf16.mxu0 %v10490_v17  ;;  %v10545_v16 = vld [vmem:[#allocation5 + $0x17a8] ss:$16 sps:$4 sm:$0xff]   ;;  %v10550_v17 = vld [vmem:[#allocation5 + $0x158c] ss:$16 sps:$4 sm:$0xff]  }
 0x384   :  { %v7193_v57 = vpop.f32.mrf.mxu1  ;;  %7487 = vmatprep.subr.bf16.mxu1 %v10493_v50  ;;  %v11243_v24 = vadd.f32 %v7191_v44, %v7151_v22  ;;  %v7153_v25 = vadd.f32 %v7152_v18, %v11238_v42  ;;  %7476 = vmatprep.mubr.bf16.mxu0 %v11106_v2  ;;  %v10500_v42 = vld [vmem:[#allocation5 + $0x1488] ss:$16 sps:$4 sm:$0xff]   ;;  %v10553_v50 = vld [vmem:[#allocation5 + $0x178c] ss:$16 sps:$4 sm:$0xff]  }
 0x385   :  { %7517 = vmatprep.mubr.bf16.mxu1 %v11110_v3  ;;  %v7154_v59 = vpop.f32.mrf.mxu0  ;;  %v10503_v2 = vld [vmem:[#allocation5 + $0x1688] ss:$16 sps:$4 sm:$0xff]   ;;  %v10508_v3 = vld [vmem:[#allocation5 + $0x146c] ss:$16 sps:$4 sm:$0xff]  }
 0x386   :  { %v7195_v60 = vpop.f32.mrf.mxu1  ;;  %v11248_v46 = vadd.f32 %v7193_v57, %v7153_v25  ;;  %7447 = vmatpush1.bf16.msra.mxu0 %v10488_v52  ;;  %v10548_v51 = vld [vmem:[#allocation5 + $0x1588] ss:$16 sps:$4 sm:$0xff]   ;;  %v10556_v22 = vld [vmem:[#allocation5 + $0x156c] ss:$16 sps:$4 sm:$0xff]  }
 0x387   :  { %7488 = vmatpush1.bf16.msra.mxu1 %v10491_v26  ;;  %v7155_v31 = vpop.f32.mrf.mxu0  ;;  %7448 = vmatprep.subr.bf16.mxu0 %v10496_v36  ;;  %v10551_v44 = vld [vmem:[#allocation5 + $0x1788] ss:$16 sps:$4 sm:$0xff]   ;;  %v10559_v52 = vld [vmem:[#allocation5 + $0x176c] ss:$16 sps:$4 sm:$0xff]  }
 0x388   :  { %v7196_v9 = vpop.f32.mrf.mxu1  ;;  %7489 = vmatprep.subr.bf16.mxu1 %v10499_v20  ;;  %v10554_v26 = vld [vmem:[#allocation5 + $0x1568] ss:$16 sps:$4 sm:$0xff]   ;;  %v10562_v57 = vld [vmem:[#allocation5 + $0x154c] ss:$16 sps:$4 sm:$0xff]  }
 0x389   :  { %v10557_v18 = vld [vmem:[#allocation5 + $0x1768] ss:$16 sps:$4 sm:$0xff]   ;;  %v10565_v36 = vld [vmem:[#allocation5 + $0x174c] ss:$16 sps:$4 sm:$0xff]  }
 0x38a   :  { %7449 = vmatpush1.bf16.msra.mxu0 %v10494_v37  ;;  %v10560_v20 = vld [vmem:[#allocation5 + $0x1548] ss:$16 sps:$4 sm:$0xff]   ;;  %v10568_v59 = vld [vmem:[#allocation5 + $0x152c] ss:$16 sps:$4 sm:$0xff]  }
 0x38b   :  { %7490 = vmatpush1.bf16.msra.mxu1 %v10497_v58  ;;  %7450 = vmatprep.subr.bf16.mxu0 %v10502_v10  ;;  %v10563_v25 = vld [vmem:[#allocation5 + $0x1748] ss:$16 sps:$4 sm:$0xff]   ;;  %v10571_v60 = vld [vmem:[#allocation5 + $0x172c] ss:$16 sps:$4 sm:$0xff]  }
 0x38c   :  { %7491 = vmatprep.subr.bf16.mxu1 %v10505_v11  ;;  %v10566_v37 = vld [vmem:[#allocation5 + $0x1528] ss:$16 sps:$4 sm:$0xff]   ;;  %v10574_v31 = vld [vmem:[#allocation5 + $0x150c] ss:$16 sps:$4 sm:$0xff]  }
 0x38d   :  { %v10569_v58 = vld [vmem:[#allocation5 + $0x1728] ss:$16 sps:$4 sm:$0xff]   ;;  %v10577_v9 = vld [vmem:[#allocation5 + $0x170c] ss:$16 sps:$4 sm:$0xff]  }
 0x38e   :  { %7451 = vmatpush1.bf16.msra.mxu0 %v10500_v42  ;;  %v10572_v10 = vld [vmem:[#allocation5 + $0x1508] ss:$16 sps:$4 sm:$0xff]   ;;  %v10580_v42 = vld [vmem:[#allocation5 + $0x18ec] ss:$16 sps:$4 sm:$0xff]  }
 0x38f   :  { %7492 = vmatpush1.bf16.msra.mxu1 %v10503_v2  ;;  %7452 = vmatprep.subr.bf16.mxu0 %v10508_v3  ;;  %v10575_v11 = vld [vmem:[#allocation5 + $0x1708] ss:$16 sps:$4 sm:$0xff]   ;;  %v10583_v2 = vld [vmem:[#allocation5 + $0x1aec] ss:$16 sps:$4 sm:$0xff]  }
 0x390   :  { %7493 = vmatprep.subr.bf16.mxu1 %v10511_v15  ;;  %v10578_v3 = vld [vmem:[#allocation5 + $0x18e8] ss:$16 sps:$4 sm:$0xff]  }
 0x391   :  { %v10581_v15 = vld [vmem:[#allocation5 + $0x1ae8] ss:$16 sps:$4 sm:$0xff]  }
 0x392   :  { %7453 = vmatpush1.bf16.msra.mxu0 %v10506_v19  ;;  %v10586_v19 = vld [vmem:[#allocation5 + $0x18cc] ss:$16 sps:$4 sm:$0xff]  }
 0x393   :  { %7494 = vmatpush1.bf16.msra.mxu1 %v10509_v12  ;;  %7454 = vmatprep.subr.bf16.mxu0 %v10514_v13  ;;  %v10589_v12 = vld [vmem:[#allocation5 + $0x1acc] ss:$16 sps:$4 sm:$0xff]  }
 0x394   :  { %7495 = vmatprep.subr.bf16.mxu1 %v10517_v54 }
 0x396   :  { %7455 = vmatpush1.bf16.msra.mxu0 %v10512_v14 }
 0x397   :  { %7496 = vmatpush1.bf16.msra.mxu1 %v10515_v21  ;;  %7456 = vmatprep.subr.bf16.mxu0 %v10520_v30  ;;  %v10584_v21 = vld [vmem:[#allocation5 + $0x18c8] ss:$16 sps:$4 sm:$0xff]  }
 0x398   :  { %7497 = vmatprep.subr.bf16.mxu1 %v10523_v32  ;;  %v10587_v30 = vld [vmem:[#allocation5 + $0x1ac8] ss:$16 sps:$4 sm:$0xff]  }
 0x39a   :  { %7457 = vmatpush1.bf16.msra.mxu0 %v10518_v33 }
 0x39b   :  { %7498 = vmatpush1.bf16.msra.mxu1 %v10521_v41  ;;  %7458 = vmatprep.subr.bf16.mxu0 %v10526_v0  ;;  %v10592_v41 = vld [vmem:[#allocation5 + $0x18ac] ss:$16 sps:$4 sm:$0xff]  }
 0x39c   :  { %7499 = vmatprep.subr.bf16.mxu1 %v10529_v1  ;;  %v10595_v0 = vld [vmem:[#allocation5 + $0x1aac] ss:$16 sps:$4 sm:$0xff]  }
 0x39e   :  { %7459 = vmatpush1.bf16.msra.mxu0 %v10524_v8 }
 0x39f   :  { %7500 = vmatpush1.bf16.msra.mxu1 %v10527_v43  ;;  %7460 = vmatprep.subr.bf16.mxu0 %v10532_v53  ;;  %v10590_v43 = vld [vmem:[#allocation5 + $0x18a8] ss:$16 sps:$4 sm:$0xff]  }
 0x3a0   :  { %7501 = vmatprep.subr.bf16.mxu1 %v10535_v28  ;;  %v10593_v53 = vld [vmem:[#allocation5 + $0x1aa8] ss:$16 sps:$4 sm:$0xff]  }
 0x3a2   :  { %7461 = vmatpush2.bf16.msra.mxu0 %v10530_v47 }
 0x3a3   :  { %7502 = vmatpush2.bf16.msra.mxu1 %v10533_v45  ;;  %7462 = vmatprep.subr.bf16.mxu0 %v10538_v38  ;;  %v10598_v45 = vld [vmem:[#allocation5 + $0x188c] ss:$16 sps:$4 sm:$0xff]  }
 0x3a4   :  { %7503 = vmatprep.subr.bf16.mxu1 %v10541_v35  ;;  %v10601_v38 = vld [vmem:[#allocation5 + $0x1a8c] ss:$16 sps:$4 sm:$0xff]  }
 0x3a5   :  { %v10607_v35 = vld [vmem:[#allocation5 + $0x1a6c] ss:$16 sps:$4 sm:$0xff]  }
 0x3a6   :  { %7463 = vmatpush2.bf16.msra.mxu0 %v10536_v40  ;;  %v10602_v40 = vld [vmem:[#allocation5 + $0x1868] ss:$16 sps:$4 sm:$0xff]  }
 0x3a7   :  { %7504 = vmatpush2.bf16.msra.mxu1 %v10539_v39  ;;  %7464 = vmatprep.subr.bf16.mxu0 %v10544_v48  ;;  %v10605_v39 = vld [vmem:[#allocation5 + $0x1a68] ss:$16 sps:$4 sm:$0xff]   ;;  %v10610_v48 = vld [vmem:[#allocation5 + $0x184c] ss:$16 sps:$4 sm:$0xff]  }
 0x3a8   :  { %7505 = vmatprep.subr.bf16.mxu1 %v10547_v6  ;;  %v10613_v6 = vld [vmem:[#allocation5 + $0x1a4c] ss:$16 sps:$4 sm:$0xff]  }
 0x3aa   :  { %7465 = vmatpush2.bf16.msra.mxu0 %v10542_v49  ;;  %v10608_v49 = vld [vmem:[#allocation5 + $0x1848] ss:$16 sps:$4 sm:$0xff]  }
 0x3ab   :  { %7506 = vmatpush2.bf16.msra.mxu1 %v10545_v16  ;;  %7466 = vmatprep.subr.bf16.mxu0 %v10550_v17  ;;  %v10611_v16 = vld [vmem:[#allocation5 + $0x1a48] ss:$16 sps:$4 sm:$0xff]   ;;  %v10616_v17 = vld [vmem:[#allocation5 + $0x182c] ss:$16 sps:$4 sm:$0xff]  }
 0x3ac   :  { %7507 = vmatprep.subr.bf16.mxu1 %v10553_v50  ;;  %v10619_v50 = vld [vmem:[#allocation5 + $0x1a2c] ss:$16 sps:$4 sm:$0xff]  }
 0x3ae   :  { %7467 = vmatpush2.bf16.msra.mxu0 %v10548_v51  ;;  %v10614_v51 = vld [vmem:[#allocation5 + $0x1828] ss:$16 sps:$4 sm:$0xff]  }
 0x3af   :  { %7508 = vmatpush2.bf16.msra.mxu1 %v10551_v44  ;;  %7468 = vmatprep.subr.bf16.mxu0 %v10556_v22  ;;  %v10617_v44 = vld [vmem:[#allocation5 + $0x1a28] ss:$16 sps:$4 sm:$0xff]   ;;  %v10622_v22 = vld [vmem:[#allocation5 + $0x180c] ss:$16 sps:$4 sm:$0xff]  }
 0x3b0   :  { %7509 = vmatprep.subr.bf16.mxu1 %v10559_v52  ;;  %v10625_v52 = vld [vmem:[#allocation5 + $0x1a0c] ss:$16 sps:$4 sm:$0xff]  }
 0x3b2   :  { %7469 = vmatpush2.bf16.msra.mxu0 %v10554_v26  ;;  %v10620_v26 = vld [vmem:[#allocation5 + $0x1808] ss:$16 sps:$4 sm:$0xff]  }
 0x3b3   :  { %7510 = vmatpush2.bf16.msra.mxu1 %v10557_v18  ;;  %7470 = vmatprep.subr.bf16.mxu0 %v10562_v57  ;;  %v10623_v18 = vld [vmem:[#allocation5 + $0x1a08] ss:$16 sps:$4 sm:$0xff]   ;;  %v10628_v57 = vld [vmem:[#allocation5 + $0x19ec] ss:$16 sps:$4 sm:$0xff]  }
 0x3b4   :  { %7511 = vmatprep.subr.bf16.mxu1 %v10565_v36  ;;  %v10631_v36 = vld [vmem:[#allocation5 + $0x1bec] ss:$16 sps:$4 sm:$0xff]  }
 0x3b6   :  { %7471 = vmatpush2.bf16.msra.mxu0 %v10560_v20  ;;  %v10626_v20 = vld [vmem:[#allocation5 + $0x19e8] ss:$16 sps:$4 sm:$0xff]  }
 0x3b7   :  { %7512 = vmatpush2.bf16.msra.mxu1 %v10563_v25  ;;  %7472 = vmatprep.subr.bf16.mxu0 %v10568_v59  ;;  %v10629_v25 = vld [vmem:[#allocation5 + $0x1be8] ss:$16 sps:$4 sm:$0xff]   ;;  %v10634_v59 = vld [vmem:[#allocation5 + $0x19cc] ss:$16 sps:$4 sm:$0xff]  }
 0x3b8   :  { %7513 = vmatprep.subr.bf16.mxu1 %v10571_v60  ;;  %v10637_v60 = vld [vmem:[#allocation5 + $0x1bcc] ss:$16 sps:$4 sm:$0xff]  }
 0x3ba   :  { %7473 = vmatpush2.bf16.msra.mxu0 %v10566_v37  ;;  %v10632_v37 = vld [vmem:[#allocation5 + $0x19c8] ss:$16 sps:$4 sm:$0xff]  }
 0x3bb   :  { %7514 = vmatpush2.bf16.msra.mxu1 %v10569_v58  ;;  %7474 = vmatprep.subr.bf16.mxu0 %v10574_v31  ;;  %v10635_v58 = vld [vmem:[#allocation5 + $0x1bc8] ss:$16 sps:$4 sm:$0xff]   ;;  %v10640_v31 = vld [vmem:[#allocation5 + $0x19ac] ss:$16 sps:$4 sm:$0xff]  }
 0x3bc   :  { %7515 = vmatprep.subr.bf16.mxu1 %v10577_v9  ;;  %v10643_v9 = vld [vmem:[#allocation5 + $0x1bac] ss:$16 sps:$4 sm:$0xff]  }
 0x3be   :  { %7475 = vmatpush2.bf16.msra.mxu0 %v10572_v10  ;;  %v10638_v10 = vld [vmem:[#allocation5 + $0x19a8] ss:$16 sps:$4 sm:$0xff]  }
 0x3bf   :  { %7516 = vmatpush2.bf16.msra.mxu1 %v10575_v11  ;;  %7526 = vmatprep.subr.bf16.mxu0 %v10580_v42  ;;  %v10641_v11 = vld [vmem:[#allocation5 + $0x1ba8] ss:$16 sps:$4 sm:$0xff]   ;;  %v10646_v42 = vld [vmem:[#allocation5 + $0x198c] ss:$16 sps:$4 sm:$0xff]  }
 0x3c0   :  { %7567 = vmatprep.subr.bf16.mxu1 %v10583_v2  ;;  %v10649_v2 = vld [vmem:[#allocation5 + $0x1b8c] ss:$16 sps:$4 sm:$0xff]  }
 0x3c1   :  { %v7232_v13 = vpop.f32.mrf.mxu0  ;;  %7477 = vmatmul.mubr.bf16.vlgmr.msra.gmra.mxu0 %v11124_v63 }
 0x3c2   :  { %v7273_v54 = vpop.f32.mrf.mxu1  ;;  %7518 = vmatmul.mubr.bf16.vlgmr.msra.gmra.mxu1 %v11128_v4  ;;  %v7233_v14 = vadd.f32 %v7232_v13, %v11243_v24  ;;  %7527 = vmatpush1.bf16.msra.mxu0 %v10578_v3  ;;  %v10644_v3 = vld [vmem:[#allocation5 + $0x1988] ss:$16 sps:$4 sm:$0xff]  }
 0x3c3   :  { %7568 = vmatpush1.bf16.msra.mxu1 %v10581_v15  ;;  %v7234_v32 = vpop.f32.mrf.mxu0  ;;  %7528 = vmatprep.subr.bf16.mxu0 %v10586_v19  ;;  %v10647_v15 = vld [vmem:[#allocation5 + $0x1b88] ss:$16 sps:$4 sm:$0xff]   ;;  %v10652_v19 = vld [vmem:[#allocation5 + $0x196c] ss:$16 sps:$4 sm:$0xff]  }
 0x3c4   :  { %v7275_v33 = vpop.f32.mrf.mxu1  ;;  %7569 = vmatprep.subr.bf16.mxu1 %v10589_v12  ;;  %v11253_v1 = vadd.f32 %v7273_v54, %v7233_v14  ;;  %v7235_v8 = vadd.f32 %v7234_v32, %v11248_v46  ;;  %7558 = vmatprep.mubr.bf16.mxu0 %v11136_v61  ;;  %v10596_v46 = vld [vmem:[#allocation5 + $0x1888] ss:$16 sps:$4 sm:$0xff]   ;;  %v10655_v12 = vld [vmem:[#allocation5 + $0x1b6c] ss:$16 sps:$4 sm:$0xff]  }
 0x3c5   :  { %7599 = vmatprep.mubr.bf16.mxu1 %v11140_v62  ;;  %v7236_v63 = vpop.f32.mrf.mxu0  ;;  %v10599_v61 = vld [vmem:[#allocation5 + $0x1a88] ss:$16 sps:$4 sm:$0xff]   ;;  %v10604_v62 = vld [vmem:[#allocation5 + $0x186c] ss:$16 sps:$4 sm:$0xff]  }
 0x3c6   :  { %v7277_v4 = vpop.f32.mrf.mxu1  ;;  %v11258_v24 = vadd.f32 %v7275_v33, %v7235_v8  ;;  %7529 = vmatpush1.bf16.msra.mxu0 %v10584_v21  ;;  %v10650_v13 = vld [vmem:[#allocation5 + $0x1968] ss:$16 sps:$4 sm:$0xff]   ;;  %v10658_v14 = vld [vmem:[#allocation5 + $0x194c] ss:$16 sps:$4 sm:$0xff]  }
 0x3c7   :  { %7570 = vmatpush1.bf16.msra.mxu1 %v10587_v30  ;;  %v7237_v28 = vpop.f32.mrf.mxu0  ;;  %7530 = vmatprep.subr.bf16.mxu0 %v10592_v41  ;;  %v10653_v54 = vld [vmem:[#allocation5 + $0x1b68] ss:$16 sps:$4 sm:$0xff]   ;;  %v10661_v21 = vld [vmem:[#allocation5 + $0x1b4c] ss:$16 sps:$4 sm:$0xff]  }
 0x3c8   :  { %v7278_v47 = vpop.f32.mrf.mxu1  ;;  %7571 = vmatprep.subr.bf16.mxu1 %v10595_v0  ;;  %v10656_v30 = vld [vmem:[#allocation5 + $0x1948] ss:$16 sps:$4 sm:$0xff]   ;;  %v10664_v33 = vld [vmem:[#allocation5 + $0x192c] ss:$16 sps:$4 sm:$0xff]  }
 0x3c9   :  { %v10659_v32 = vld [vmem:[#allocation5 + $0x1b48] ss:$16 sps:$4 sm:$0xff]   ;;  %v10667_v41 = vld [vmem:[#allocation5 + $0x1b2c] ss:$16 sps:$4 sm:$0xff]  }
 0x3ca   :  { %7531 = vmatpush1.bf16.msra.mxu0 %v10590_v43  ;;  %v10662_v0 = vld [vmem:[#allocation5 + $0x1928] ss:$16 sps:$4 sm:$0xff]   ;;  %v10670_v63 = vld [vmem:[#allocation5 + $0x190c] ss:$16 sps:$4 sm:$0xff]  }
 0x3cb   :  { %7572 = vmatpush1.bf16.msra.mxu1 %v10593_v53  ;;  %7532 = vmatprep.subr.bf16.mxu0 %v10598_v45  ;;  %v10665_v8 = vld [vmem:[#allocation5 + $0x1b28] ss:$16 sps:$4 sm:$0xff]   ;;  %v10673_v4 = vld [vmem:[#allocation5 + $0x1b0c] ss:$16 sps:$4 sm:$0xff]  }
 0x3cc   :  { %7573 = vmatprep.subr.bf16.mxu1 %v10601_v38  ;;  %v10668_v43 = vld [vmem:[#allocation5 + $0x1908] ss:$16 sps:$4 sm:$0xff]   ;;  %v10676_v28 = vld [vmem:[#allocation5 + $0x1cec] ss:$16 sps:$4 sm:$0xff]  }
 0x3cd   :  { %v10671_v53 = vld [vmem:[#allocation5 + $0x1b08] ss:$16 sps:$4 sm:$0xff]   ;;  %v10679_v47 = vld [vmem:[#allocation5 + $0x1eec] ss:$16 sps:$4 sm:$0xff]  }
 0x3ce   :  { %7533 = vmatpush1.bf16.msra.mxu0 %v10596_v46  ;;  %v10674_v45 = vld [vmem:[#allocation5 + $0x1ce8] ss:$16 sps:$4 sm:$0xff]   ;;  %v10682_v46 = vld [vmem:[#allocation5 + $0x1ccc] ss:$16 sps:$4 sm:$0xff]  }
 0x3cf   :  { %7574 = vmatpush1.bf16.msra.mxu1 %v10599_v61  ;;  %7534 = vmatprep.subr.bf16.mxu0 %v10604_v62  ;;  %v10677_v38 = vld [vmem:[#allocation5 + $0x1ee8] ss:$16 sps:$4 sm:$0xff]   ;;  %v10685_v61 = vld [vmem:[#allocation5 + $0x1ecc] ss:$16 sps:$4 sm:$0xff]  }
 0x3d0   :  { %7575 = vmatprep.subr.bf16.mxu1 %v10607_v35 }
 0x3d2   :  { %7535 = vmatpush1.bf16.msra.mxu0 %v10602_v40 }
 0x3d3   :  { %7576 = vmatpush1.bf16.msra.mxu1 %v10605_v39  ;;  %7536 = vmatprep.subr.bf16.mxu0 %v10610_v48  ;;  %v10680_v39 = vld [vmem:[#allocation5 + $0x1cc8] ss:$16 sps:$4 sm:$0xff]  }
 0x3d4   :  { %7577 = vmatprep.subr.bf16.mxu1 %v10613_v6  ;;  %v10683_v48 = vld [vmem:[#allocation5 + $0x1ec8] ss:$16 sps:$4 sm:$0xff]  }
 0x3d6   :  { %7537 = vmatpush1.bf16.msra.mxu0 %v10608_v49 }
 0x3d7   :  { %7578 = vmatpush1.bf16.msra.mxu1 %v10611_v16  ;;  %7538 = vmatprep.subr.bf16.mxu0 %v10616_v17  ;;  %v10688_v16 = vld [vmem:[#allocation5 + $0x1cac] ss:$16 sps:$4 sm:$0xff]  }
 0x3d8   :  { %7579 = vmatprep.subr.bf16.mxu1 %v10619_v50  ;;  %v10691_v17 = vld [vmem:[#allocation5 + $0x1eac] ss:$16 sps:$4 sm:$0xff]  }
 0x3da   :  { %7539 = vmatpush1.bf16.msra.mxu0 %v10614_v51 }
 0x3db   :  { %7580 = vmatpush1.bf16.msra.mxu1 %v10617_v44  ;;  %7540 = vmatprep.subr.bf16.mxu0 %v10622_v22  ;;  %v10686_v44 = vld [vmem:[#allocation5 + $0x1ca8] ss:$16 sps:$4 sm:$0xff]  }
 0x3dc   :  { %7581 = vmatprep.subr.bf16.mxu1 %v10625_v52  ;;  %v10689_v22 = vld [vmem:[#allocation5 + $0x1ea8] ss:$16 sps:$4 sm:$0xff]  }
 0x3de   :  { %7541 = vmatpush1.bf16.msra.mxu0 %v10620_v26 }
 0x3df   :  { %7582 = vmatpush1.bf16.msra.mxu1 %v10623_v18  ;;  %7542 = vmatprep.subr.bf16.mxu0 %v10628_v57  ;;  %v10694_v18 = vld [vmem:[#allocation5 + $0x1c8c] ss:$16 sps:$4 sm:$0xff]  }
 0x3e0   :  { %7583 = vmatprep.subr.bf16.mxu1 %v10631_v36  ;;  %v10697_v57 = vld [vmem:[#allocation5 + $0x1e8c] ss:$16 sps:$4 sm:$0xff]  }
 0x3e1   :  { %v10703_v36 = vld [vmem:[#allocation5 + $0x1e6c] ss:$16 sps:$4 sm:$0xff]  }
 0x3e2   :  { %7543 = vmatpush2.bf16.msra.mxu0 %v10626_v20  ;;  %v10698_v20 = vld [vmem:[#allocation5 + $0x1c68] ss:$16 sps:$4 sm:$0xff]  }
 0x3e3   :  { %7584 = vmatpush2.bf16.msra.mxu1 %v10629_v25  ;;  %7544 = vmatprep.subr.bf16.mxu0 %v10634_v59  ;;  %v10701_v25 = vld [vmem:[#allocation5 + $0x1e68] ss:$16 sps:$4 sm:$0xff]   ;;  %v10706_v59 = vld [vmem:[#allocation5 + $0x1c4c] ss:$16 sps:$4 sm:$0xff]  }
 0x3e4   :  { %7585 = vmatprep.subr.bf16.mxu1 %v10637_v60  ;;  %v10709_v60 = vld [vmem:[#allocation5 + $0x1e4c] ss:$16 sps:$4 sm:$0xff]  }
 0x3e6   :  { %7545 = vmatpush2.bf16.msra.mxu0 %v10632_v37  ;;  %v10704_v37 = vld [vmem:[#allocation5 + $0x1c48] ss:$16 sps:$4 sm:$0xff]  }
 0x3e7   :  { %7586 = vmatpush2.bf16.msra.mxu1 %v10635_v58  ;;  %7546 = vmatprep.subr.bf16.mxu0 %v10640_v31  ;;  %v10707_v58 = vld [vmem:[#allocation5 + $0x1e48] ss:$16 sps:$4 sm:$0xff]   ;;  %v10712_v31 = vld [vmem:[#allocation5 + $0x1c2c] ss:$16 sps:$4 sm:$0xff]  }
 0x3e8   :  { %7587 = vmatprep.subr.bf16.mxu1 %v10643_v9  ;;  %v10715_v9 = vld [vmem:[#allocation5 + $0x1e2c] ss:$16 sps:$4 sm:$0xff]  }
 0x3ea   :  { %7547 = vmatpush2.bf16.msra.mxu0 %v10638_v10  ;;  %v10710_v10 = vld [vmem:[#allocation5 + $0x1c28] ss:$16 sps:$4 sm:$0xff]  }
 0x3eb   :  { %7588 = vmatpush2.bf16.msra.mxu1 %v10641_v11  ;;  %7548 = vmatprep.subr.bf16.mxu0 %v10646_v42  ;;  %v10713_v11 = vld [vmem:[#allocation5 + $0x1e28] ss:$16 sps:$4 sm:$0xff]   ;;  %v10718_v42 = vld [vmem:[#allocation5 + $0x1c0c] ss:$16 sps:$4 sm:$0xff]  }
 0x3ec   :  { %7589 = vmatprep.subr.bf16.mxu1 %v10649_v2  ;;  %v10721_v2 = vld [vmem:[#allocation5 + $0x1e0c] ss:$16 sps:$4 sm:$0xff]  }
 0x3ee   :  { %7549 = vmatpush2.bf16.msra.mxu0 %v10644_v3  ;;  %v10716_v3 = vld [vmem:[#allocation5 + $0x1c08] ss:$16 sps:$4 sm:$0xff]  }
 0x3ef   :  { %7590 = vmatpush2.bf16.msra.mxu1 %v10647_v15  ;;  %7550 = vmatprep.subr.bf16.mxu0 %v10652_v19  ;;  %v10719_v15 = vld [vmem:[#allocation5 + $0x1e08] ss:$16 sps:$4 sm:$0xff]   ;;  %v10724_v19 = vld [vmem:[#allocation5 + $0x1dec] ss:$16 sps:$4 sm:$0xff]  }
 0x3f0   :  { %7591 = vmatprep.subr.bf16.mxu1 %v10655_v12  ;;  %v10727_v12 = vld [vmem:[#allocation5 + $0x1fec] ss:$16 sps:$4 sm:$0xff]  }
 0x3f2   :  { %7551 = vmatpush2.bf16.msra.mxu0 %v10650_v13  ;;  %v10722_v13 = vld [vmem:[#allocation5 + $0x1de8] ss:$16 sps:$4 sm:$0xff]  }
 0x3f3   :  { %7592 = vmatpush2.bf16.msra.mxu1 %v10653_v54  ;;  %7552 = vmatprep.subr.bf16.mxu0 %v10658_v14  ;;  %v10725_v54 = vld [vmem:[#allocation5 + $0x1fe8] ss:$16 sps:$4 sm:$0xff]   ;;  %v10730_v14 = vld [vmem:[#allocation5 + $0x1dcc] ss:$16 sps:$4 sm:$0xff]  }
 0x3f4   :  { %7593 = vmatprep.subr.bf16.mxu1 %v10661_v21  ;;  %v10733_v21 = vld [vmem:[#allocation5 + $0x1fcc] ss:$16 sps:$4 sm:$0xff]  }
 0x3f6   :  { %7553 = vmatpush2.bf16.msra.mxu0 %v10656_v30  ;;  %v10728_v30 = vld [vmem:[#allocation5 + $0x1dc8] ss:$16 sps:$4 sm:$0xff]  }
 0x3f7   :  { %7594 = vmatpush2.bf16.msra.mxu1 %v10659_v32  ;;  %7554 = vmatprep.subr.bf16.mxu0 %v10664_v33  ;;  %v10731_v32 = vld [vmem:[#allocation5 + $0x1fc8] ss:$16 sps:$4 sm:$0xff]   ;;  %v10736_v33 = vld [vmem:[#allocation5 + $0x1dac] ss:$16 sps:$4 sm:$0xff]  }
 0x3f8   :  { %7595 = vmatprep.subr.bf16.mxu1 %v10667_v41  ;;  %v10739_v41 = vld [vmem:[#allocation5 + $0x1fac] ss:$16 sps:$4 sm:$0xff]  }
 0x3fa   :  { %7555 = vmatpush2.bf16.msra.mxu0 %v10662_v0  ;;  %v10734_v0 = vld [vmem:[#allocation5 + $0x1da8] ss:$16 sps:$4 sm:$0xff]  }
 0x3fb   :  { %7596 = vmatpush2.bf16.msra.mxu1 %v10665_v8  ;;  %7556 = vmatprep.subr.bf16.mxu0 %v10670_v63  ;;  %v10737_v8 = vld [vmem:[#allocation5 + $0x1fa8] ss:$16 sps:$4 sm:$0xff]   ;;  %v10742_v63 = vld [vmem:[#allocation5 + $0x1d8c] ss:$16 sps:$4 sm:$0xff]  }
 0x3fc   :  { %7597 = vmatprep.subr.bf16.mxu1 %v10673_v4  ;;  %v10745_v4 = vld [vmem:[#allocation5 + $0x1f8c] ss:$16 sps:$4 sm:$0xff]  }
 0x3fe   :  { %7557 = vmatpush2.bf16.msra.mxu0 %v10668_v43  ;;  %v10740_v43 = vld [vmem:[#allocation5 + $0x1d88] ss:$16 sps:$4 sm:$0xff]  }
 0x3ff   :  { %7598 = vmatpush2.bf16.msra.mxu1 %v10671_v53  ;;  %7608 = vmatprep.subr.bf16.mxu0 %v10676_v28  ;;  %v10743_v53 = vld [vmem:[#allocation5 + $0x1f88] ss:$16 sps:$4 sm:$0xff]   ;;  %v10748_v28 = vld [vmem:[#allocation5 + $0x1d6c] ss:$16 sps:$4 sm:$0xff]  }
 0x400   :  { %7649 = vmatprep.subr.bf16.mxu1 %v10679_v47  ;;  %v10751_v47 = vld [vmem:[#allocation5 + $0x1f6c] ss:$16 sps:$4 sm:$0xff]  }
 0x401   :  { %v7314_v62 = vpop.f32.mrf.mxu0  ;;  %7559 = vmatmul.mubr.bf16.vlgmr.msra.gmra.mxu0 %v11158_v27 }
 0x402   :  { %v7355_v35 = vpop.f32.mrf.mxu1  ;;  %7600 = vmatmul.mubr.bf16.vlgmr.msra.gmra.mxu1 %v11162_v29  ;;  %v7315_v40 = vadd.f32 %v7314_v62, %v11253_v1  ;;  %7609 = vmatpush1.bf16.msra.mxu0 %v10674_v45  ;;  %v10746_v45 = vld [vmem:[#allocation5 + $0x1d68] ss:$16 sps:$4 sm:$0xff]  }
 0x403   :  { %7650 = vmatpush1.bf16.msra.mxu1 %v10677_v38  ;;  %v7316_v6 = vpop.f32.mrf.mxu0  ;;  %7610 = vmatprep.subr.bf16.mxu0 %v10682_v46  ;;  %v10749_v38 = vld [vmem:[#allocation5 + $0x1f68] ss:$16 sps:$4 sm:$0xff]   ;;  %v10754_v46 = vld [vmem:[#allocation5 + $0x1d4c] ss:$16 sps:$4 sm:$0xff]  }
 0x404   :  { %v7357_v49 = vpop.f32.mrf.mxu1  ;;  %7651 = vmatprep.subr.bf16.mxu1 %v10685_v61  ;;  %v11263_v50 = vadd.f32 %v7355_v35, %v7315_v40  ;;  %v7317_v51 = vadd.f32 %v7316_v6, %v11258_v24  ;;  %7640 = vmatprep.mubr.bf16.mxu0 %v11166_v34  ;;  %v10692_v24 = vld [vmem:[#allocation5 + $0x1c88] ss:$16 sps:$4 sm:$0xff]   ;;  %v10757_v61 = vld [vmem:[#allocation5 + $0x1f4c] ss:$16 sps:$4 sm:$0xff]  }
 0x405   :  { %7681 = vmatprep.mubr.bf16.mxu1 %v11170_v5  ;;  %v7318_v27 = vpop.f32.mrf.mxu0  ;;  %v10695_v34 = vld [vmem:[#allocation5 + $0x1e88] ss:$16 sps:$4 sm:$0xff]   ;;  %v10700_v5 = vld [vmem:[#allocation5 + $0x1c6c] ss:$16 sps:$4 sm:$0xff]  }
 0x406   :  { %v7359_v29 = vpop.f32.mrf.mxu1  ;;  %v11268_v1 = vadd.f32 %v7357_v49, %v7317_v51  ;;  %7611 = vmatpush1.bf16.msra.mxu0 %v10680_v39  ;;  %v10752_v62 = vld [vmem:[#allocation5 + $0x1d48] ss:$16 sps:$4 sm:$0xff]   ;;  %v10760_v40 = vld [vmem:[#allocation5 + $0x1d2c] ss:$16 sps:$4 sm:$0xff]  }
 0x407   :  { %7652 = vmatpush1.bf16.msra.mxu1 %v10683_v48  ;;  %v7319_v52 = vpop.f32.mrf.mxu0  ;;  %7612 = vmatprep.subr.bf16.mxu0 %v10688_v16  ;;  %v10755_v35 = vld [vmem:[#allocation5 + $0x1f48] ss:$16 sps:$4 sm:$0xff]   ;;  %v10763_v39 = vld [vmem:[#allocation5 + $0x1f2c] ss:$16 sps:$4 sm:$0xff]   ;;  %v7691_v29 = vmax.f32 %v11228_v7, 0.0 }
 0x408   :  { %v7360_v26 = vpop.f32.mrf.mxu1  ;;  %7653 = vmatprep.subr.bf16.mxu1 %v10691_v17  ;;  %v10758_v48 = vld [vmem:[#allocation5 + $0x1d28] ss:$16 sps:$4 sm:$0xff]   ;;  %v10766_v49 = vld [vmem:[#allocation5 + $0x1d0c] ss:$16 sps:$4 sm:$0xff]  }
 0x409   :  { %v10761_v6 = vld [vmem:[#allocation5 + $0x1f28] ss:$16 sps:$4 sm:$0xff]   ;;  %v10769_v16 = vld [vmem:[#allocation5 + $0x1f0c] ss:$16 sps:$4 sm:$0xff]   ;;  %v7695_v52 = vpack.c.bf16 %v7691_v29, %v7691_v29 }
 0x40a   :  { %7613 = vmatpush1.bf16.msra.mxu0 %v10686_v44  ;;  %v10764_v17 = vld [vmem:[#allocation5 + $0x1d08] ss:$16 sps:$4 sm:$0xff]   ;;  %v10770_v27 = vld [vmem:[#allocation8 + $0x78] sm:$0xff]   ;;  %v10774_v7 = vld [vmem:[#allocation8 + $0x68] sm:$0xff]  }
 0x40b   :  { %7654 = vmatpush1.bf16.msra.mxu1 %v10689_v22  ;;  %7614 = vmatprep.subr.bf16.mxu0 %v10694_v18  ;;  %v10767_v51 = vld [vmem:[#allocation5 + $0x1f08] ss:$16 sps:$4 sm:$0xff]   ;;  %v10771_v44 = vld [vmem:[#allocation8 + $0x38] sm:$0xff]  }
 0x40c   :  { %7655 = vmatprep.subr.bf16.mxu1 %v10697_v57  ;;  %v10772_v22 = vld [vmem:[#allocation8 + $0x70] sm:$0xff]  }
 0x40e   :  { %7615 = vmatpush1.bf16.msra.mxu0 %v10692_v24  ;;  %v10773_v24 = vld [vmem:[#allocation8 + $0x30] sm:$0xff]  }
 0x40f   :  { %7656 = vmatpush1.bf16.msra.mxu1 %v10695_v34  ;;  %7616 = vmatprep.subr.bf16.mxu0 %v10700_v5 }
 0x410   :  { %7657 = vmatprep.subr.bf16.mxu1 %v10703_v36 }
 0x412   :  { %7617 = vmatpush1.bf16.msra.mxu0 %v10698_v20 }
 0x413   :  { %7658 = vmatpush1.bf16.msra.mxu1 %v10701_v25  ;;  %7618 = vmatprep.subr.bf16.mxu0 %v10706_v59 }
 0x414   :  { %7659 = vmatprep.subr.bf16.mxu1 %v10709_v60 }
 0x416   :  { %7619 = vmatpush1.bf16.msra.mxu0 %v10704_v37  ;;  %v10775_v37 = vld [vmem:[#allocation8 + $0x28] sm:$0xff]  }
 0x417   :  { %7660 = vmatpush1.bf16.msra.mxu1 %v10707_v58  ;;  %7620 = vmatprep.subr.bf16.mxu0 %v10712_v31  ;;  %v10787_v31 = vld [vmem:[#allocation8 + $0xb8] sm:$0xff]  }
 0x418   :  { %7661 = vmatprep.subr.bf16.mxu1 %v10715_v9  ;;  %v10788_v9 = vld [vmem:[#allocation8 + $0xf0] sm:$0xff]  }
 0x41a   :  { %7621 = vmatpush1.bf16.msra.mxu0 %v10710_v10  ;;  %v10777_v10 = vld [vmem:[#allocation8 + $0x20] sm:$0xff]  }
 0x41b   :  { %7662 = vmatpush1.bf16.msra.mxu1 %v10713_v11  ;;  %7622 = vmatprep.subr.bf16.mxu0 %v10718_v42  ;;  %v10789_v11 = vld [vmem:[#allocation8 + $0xb0] sm:$0xff]   ;;  %v10778_v42 = vld [vmem:[#allocation8 + $0x58] sm:$0xff]  }
 0x41c   :  { %7663 = vmatprep.subr.bf16.mxu1 %v10721_v2  ;;  %v10779_v2 = vld [vmem:[#allocation8 + $0x18] sm:$0xff]  }
 0x41e   :  { %7623 = vmatpush1.bf16.msra.mxu0 %v10716_v3  ;;  %v10791_v3 = vld [vmem:[#allocation8 + $0xa8] sm:$0xff]  }
 0x41f   :  { %7664 = vmatpush1.bf16.msra.mxu1 %v10719_v15  ;;  %7624 = vmatprep.subr.bf16.mxu0 %v10724_v19  ;;  %v10780_v15 = vld [vmem:[#allocation8 + $0x50] sm:$0xff]   ;;  %v10792_v19 = vld [vmem:[#allocation8 + $0xe0] sm:$0xff]  }
 0x420   :  { %7665 = vmatprep.subr.bf16.mxu1 %v10727_v12  ;;  %v10781_v12 = vld [vmem:[#allocation8 + $0x10] sm:$0xff]  }
 0x422   :  { %7625 = vmatpush2.bf16.msra.mxu0 %v10722_v13  ;;  %v10793_v13 = vld [vmem:[#allocation8 + $0xa0] sm:$0xff]  }
 0x423   :  { %7666 = vmatpush2.bf16.msra.mxu1 %v10725_v54  ;;  %7626 = vmatprep.subr.bf16.mxu0 %v10730_v14  ;;  %v10782_v54 = vld [vmem:[#allocation8 + $0x48] sm:$0xff]   ;;  %v10794_v14 = vld [vmem:[#allocation8 + $0xd8] sm:$0xff]  }
 0x424   :  { %7667 = vmatprep.subr.bf16.mxu1 %v10733_v21  ;;  %v10783_v21 = vld [vmem:[#allocation8 + $0x8] sm:$0xff]  }
 0x426   :  { %7627 = vmatpush2.bf16.msra.mxu0 %v10728_v30  ;;  %v10795_v30 = vld [vmem:[#allocation8 + $0x98] sm:$0xff]  }
 0x427   :  { %7668 = vmatpush2.bf16.msra.mxu1 %v10731_v32  ;;  %7628 = vmatprep.subr.bf16.mxu0 %v10736_v33  ;;  %v10784_v32 = vld [vmem:[#allocation8 + $0x40] sm:$0xff]  }
 0x428   :  { %7669 = vmatprep.subr.bf16.mxu1 %v10739_v41  ;;  %v10785_v33 = vld [vmem:[#allocation8] sm:$0xff]   ;;  %v7690_v41 = vmax.f32 %v11223_v23, 0.0 }
 0x42a   :  { %7629 = vmatpush2.bf16.msra.mxu0 %v10734_v0  ;;  %v7694_v0 = vpack.c.bf16 %v7690_v41, %v7690_v41 }
 0x42b   :  { %7670 = vmatpush2.bf16.msra.mxu1 %v10737_v8  ;;  %7630 = vmatprep.subr.bf16.mxu0 %v10742_v63  ;;  %v10796_v8 = vld [vmem:[#allocation8 + $0xd0] sm:$0xff]  }
 0x42c   :  { %7671 = vmatprep.subr.bf16.mxu1 %v10745_v4  ;;  %v10797_v63 = vld [vmem:[#allocation8 + $0x90] sm:$0xff]  }
 0x42e   :  { %7631 = vmatpush2.bf16.msra.mxu0 %v10740_v43 }
 0x42f   :  { %7672 = vmatpush2.bf16.msra.mxu1 %v10743_v53  ;;  %7632 = vmatprep.subr.bf16.mxu0 %v10748_v28 }
 0x430   :  { %7673 = vmatprep.subr.bf16.mxu1 %v10751_v47 }
 0x432   :  { %7633 = vmatpush2.bf16.msra.mxu0 %v10746_v45  ;;  %v10798_v45 = vld [vmem:[#allocation8 + $0xc8] sm:$0xff]  }
 0x433   :  { %7674 = vmatpush2.bf16.msra.mxu1 %v10749_v38  ;;  %7634 = vmatprep.subr.bf16.mxu0 %v10754_v46 }
 0x434   :  { %7675 = vmatprep.subr.bf16.mxu1 %v10757_v61  ;;  %v10799_v61 = vld [vmem:[#allocation8 + $0x88] sm:$0xff]  }
 0x436   :  { %7635 = vmatpush2.bf16.msra.mxu0 %v10752_v62 }
 0x437   :  { %7676 = vmatpush2.bf16.msra.mxu1 %v10755_v35  ;;  %7636 = vmatprep.subr.bf16.mxu0 %v10760_v40 }
 0x438   :  { %7677 = vmatprep.subr.bf16.mxu1 %v10763_v39 }
 0x43a   :  { %7637 = vmatpush2.bf16.msra.mxu0 %v10758_v48  ;;  %v10800_v48 = vld [vmem:[#allocation8 + $0xc0] sm:$0xff]  }
 0x43b   :  { %7678 = vmatpush2.bf16.msra.mxu1 %v10761_v6  ;;  %7638 = vmatprep.subr.bf16.mxu0 %v10766_v49  ;;  %v10801_v6 = vld [vmem:[#allocation8 + $0x80] sm:$0xff]  }
 0x43c   :  { %7679 = vmatprep.subr.bf16.mxu1 %v10769_v16 }
 0x43e   :  { %7639 = vmatpush2.bf16.msra.mxu0 %v10764_v17 }
 0x43f   :  { %7680 = vmatpush2.bf16.msra.mxu1 %v10767_v51  ;;  %9148 = vmatprep.subr.bf16.mxu0 %v10770_v27 }
 0x441   :  { %v7396_v26 = vpop.f32.mrf.mxu0  ;;  %7641 = vmatmul.mubr.bf16.vlgmr.msra.gmra.mxu0 %v11184_v55  ;;  %v10776_v55 = vld [vmem:[#allocation8 + $0x60] sm:$0xff]  }
 0x442   :  { %v7437_v18 = vpop.f32.mrf.mxu1  ;;  %7682 = vmatmul.mubr.bf16.vlgmr.msra.gmra.mxu1 %v11188_v56  ;;  %v7397_v57 = vadd.f32 %v7396_v26, %v11263_v50  ;;  %9149 = vmatpush3.bf16.msra.mxu0 %v10771_v44  ;;  %v10786_v50 = vld [vmem:[#allocation8 + $0xf8] sm:$0xff]  }
 0x443   :  { %7993 = vmatprep.mubr.bf16.mxu0 %v7695_v52  ;;  %v7398_v34 = vpop.f32.mrf.mxu0  ;;  %9150 = vmatprep.subr.bf16.mxu0 %v10772_v22 }
 0x444   :  { %v7439_v5 = vpop.f32.mrf.mxu1  ;;  %v7438_v36 = vadd.f32 %v7437_v18, %v7397_v57  ;;  %v7399_v20 = vadd.f32 %v7398_v34, %v11268_v1  ;;  %9170 = vmatprep.subr.bf16.mxu1 %v10786_v50  ;;  %v10790_v1 = vld [vmem:[#allocation8 + $0xe8] sm:$0xff]  }
 0x445   :  { %v7400_v25 = vpop.f32.mrf.mxu0  ;;  %9171 = vmatpush3.bf16.msra.mxu1 %v10787_v31 }
 0x446   :  { %v7441_v59 = vpop.f32.mrf.mxu1  ;;  %v7440_v60 = vadd.f32 %v7439_v5, %v7399_v20  ;;  %9151 = vmatpush3.bf16.msra.mxu0 %v10773_v24  ;;  %9172 = vmatprep.subr.bf16.mxu1 %v10788_v9 }
 0x447   :  { %v7401_v58 = vpop.f32.mrf.mxu0  ;;  %9152 = vmatprep.subr.bf16.mxu0 %v10774_v7 }
 0x448   :  { %v7442_v56 = vpop.f32.mrf.mxu1 }
 0x449   :  { %9173 = vmatpush3.bf16.msra.mxu1 %v10789_v11 }
 0x44a   :  { %9153 = vmatpush3.bf16.msra.mxu0 %v10775_v37  ;;  %9174 = vmatprep.subr.bf16.mxu1 %v10790_v1 }
 0x44b   :  { %9154 = vmatprep.subr.bf16.mxu0 %v10776_v55 }
 0x44d   :  { %9175 = vmatpush3.bf16.msra.mxu1 %v10791_v3  ;;  %v9115_v3 = vld [vmem:[#allocation10] ss:$0 sm:$0xff] }
 0x44e   :  { %9155 = vmatpush3.bf16.msra.mxu0 %v10777_v10  ;;  %9176 = vmatprep.subr.bf16.mxu1 %v10792_v19 }
 0x44f   :  { %9156 = vmatprep.subr.bf16.mxu0 %v10778_v42 }
 0x451   :  { %9177 = vmatpush3.bf16.msra.mxu1 %v10793_v13 }
 0x452   :  { %9157 = vmatpush3.bf16.msra.mxu0 %v10779_v2  ;;  %9178 = vmatprep.subr.bf16.mxu1 %v10794_v14 }
 0x453   :  { %9158 = vmatprep.subr.bf16.mxu0 %v10780_v15 }
 0x455   :  { %9179 = vmatpush3.bf16.msra.mxu1 %v10795_v30 }
 0x456   :  { %9159 = vmatpush3.bf16.msra.mxu0 %v10781_v12  ;;  %9180 = vmatprep.subr.bf16.mxu1 %v10796_v8 }
 0x457   :  { %9160 = vmatprep.subr.bf16.mxu0 %v10782_v54 }
 0x459   :  { %9181 = vmatpush3.bf16.msra.mxu1 %v10797_v63 }
 0x45a   :  { %9161 = vmatpush3.bf16.msra.mxu0 %v10783_v21  ;;  %9182 = vmatprep.subr.bf16.mxu1 %v10798_v45 }
 0x45b   :  { %9162 = vmatprep.subr.bf16.mxu0 %v10784_v32 }
 0x45d   :  { %9183 = vmatpush3.bf16.msra.mxu1 %v10799_v61 }
 0x45e   :  { %9163 = vmatpush3.bf16.msra.mxu0 %v10785_v33  ;;  %9184 = vmatprep.subr.bf16.mxu1 %v10800_v48 }
 0x461   :  { %7994 = vmatmul.mubr.bf16.vlgmr.msra.gmra.mxu0 %v7694_v0  ;;  %9185 = vmatpush3.bf16.msra.mxu1 %v10801_v6 }
 0x481   :  { %v7478_v4 = vpop.f32.mrf.mxu0 }
 0x482   :  { %v7519_v43 = vpop.f32.mrf.mxu1  ;;  %v7479_v53 = vadd.f32 %v7478_v4, %v7438_v36 }
 0x483   :  { %v7480_v28 = vpop.f32.mrf.mxu0 }
 0x484   :  { %v7521_v47 = vpop.f32.mrf.mxu1  ;;  %v7520_v38 = vadd.f32 %v7519_v43, %v7479_v53  ;;  %v7481_v46 = vadd.f32 %v7480_v28, %v7440_v60 }
 0x485   :  { %v7482_v62 = vpop.f32.mrf.mxu0 }
 0x486   :  { %v7523_v35 = vpop.f32.mrf.mxu1  ;;  %v7522_v23 = vadd.f32 %v7521_v47, %v7481_v46 }
 0x487   :  { %v7483_v40 = vpop.f32.mrf.mxu0 }
 0x488   :  { %v7524_v39 = vpop.f32.mrf.mxu1 }
 0x4c1   :  { %v7560_v49 = vpop.f32.mrf.mxu0 }
 0x4c2   :  { %v7601_v16 = vpop.f32.mrf.mxu1  ;;  %v7561_v17 = vadd.f32 %v7560_v49, %v7520_v38 }
 0x4c3   :  { %v7562_v51 = vpop.f32.mrf.mxu0 }
 0x4c4   :  { %v7603_v27 = vpop.f32.mrf.mxu1  ;;  %v7602_v29 = vadd.f32 %v7601_v16, %v7561_v17  ;;  %v7563_v18 = vadd.f32 %v7562_v51, %v7522_v23 }
 0x4c5   :  { %v7564_v44 = vpop.f32.mrf.mxu0 }
 0x4c6   :  { %v7605_v22 = vpop.f32.mrf.mxu1  ;;  %v7604_v34 = vadd.f32 %v7603_v27, %v7563_v18 }
 0x4c7   :  { %v7565_v52 = vpop.f32.mrf.mxu0 }
 0x4c8   :  { %v7606_v26 = vpop.f32.mrf.mxu1 }
 0x501   :  { %v7642_v57 = vpop.f32.mrf.mxu0 }
 0x502   :  { %v7683_v24 = vpop.f32.mrf.mxu1  ;;  %v7643_v5 = vadd.f32 %v7642_v57, %v7602_v29 }
 0x503   :  { %v7644_v7 = vpop.f32.mrf.mxu0 }
 0x504   :  { %v7685_v36 = vpop.f32.mrf.mxu1  ;;  %v7684_v20 = vadd.f32 %v7683_v24, %v7643_v5  ;;  %v7645_v25 = vadd.f32 %v7644_v7, %v7604_v34 }
 0x505   :  { %v7646_v59 = vpop.f32.mrf.mxu0 }
 0x506   :  { %v7687_v60 = vpop.f32.mrf.mxu1  ;;  %v7686_v37 = vadd.f32 %v7685_v36, %v7645_v25  ;;  %v7692_v55 = vmax.f32 %v7684_v20, 0.0 }
 0x507   :  { %v7647_v58 = vpop.f32.mrf.mxu0 }
 0x508   :  { %v7688_v56 = vpop.f32.mrf.mxu1  ;;  %v7693_v50 = vmax.f32 %v7686_v37, 0.0  ;;  %v7696_v9 = vpack.c.bf16 %v7692_v55, %v7692_v55 }
 0x50a   :  { %v7697_v31 = vpack.c.bf16 %v7693_v50, %v7693_v50 }
 0x50c   :  { %8033 = vmatprep.mubr.bf16.mxu1 %v7697_v31 }
 0x50d   :  { %8034 = vmatmul.mubr.bf16.vlgmr.msra.gmra.mxu1 %v7696_v9 }
 0x521   :  { %v9164_v10 = vpop.f32.mrf.mxu0 }
 0x523   :  { %v9165_v11 = vpop.f32.mrf.mxu0 }
 0x524   :  { %v9166_v42 = vadd.f32 %v9165_v11, %v9164_v10 }
 0x525   :  { %v9167_v1 = vpop.f32.mrf.mxu0 }
 0x526   :  { %v7996_v12 = vadd.f32 %v9166_v42, %v9115_v3 }
 0x527   :  { %v9168_v2 = vpop.f32.mrf.mxu0 }
 0x5cd   :  { %v9186_v15 = vpop.f32.mrf.mxu1 }
 0x5cf   :  { %v9187_v19 = vpop.f32.mrf.mxu1 }
 0x5d0   :  { %v9188_v13 = vadd.f32 %v9187_v19, %v9186_v15 }
 0x5d1   :  { %v9189_v54 = vpop.f32.mrf.mxu1 }
 0x5d2   :  { %v8036_v14 = vadd.f32 %v9188_v13, %v7996_v12 }
 0x5d3   :  { %v9190_v21 = vpop.f32.mrf.mxu1 }
 0x5d4   :  { %8041 = vst [vmem:[#allocation11] sm:$0xff] %v8036_v14 }
 0x5d5   :  { %10914 = shalt.err (!%p10911_p1)
}
 0x5d6   :  { %8051 = dma.vmem_to_hbm [thread:$0]  %s8049_s4, 128, %s11284_s5, [#allocation4]  }
 0x5d7   :  { %10929 = dma.done.wait [#allocation4], 128  }
 0x5d8   :  { %10930 = vsyncadd [#allocation4], 4294967168 }
 0x5d9   :  { %8055 = vsyncpa [#allocation3], 1 }
 0x5da   :  { %8056 = vsyncpa [#allocation6], 1 }
 0x5db   :  { %8057 = vsyncpa [#allocation9], 1 }
 0x5dc   :  { %8058 = vsyncpa [#allocation4], 1 }

// kernel: tpu_custom_call.1
= control target key start
LH: loop header
LB: loop body
LE: loop exit
PB: predicated region body
PF: predicated region fallthrough
CT: control target
= control target key end

     0   :  { %10 = vsyncpa [#allocation3], 0  ;;  %s11279_s0 = inlined_call_operand.hbm [shape: bf16[8,4096], index: 0, kind: input, shape index: {}]   ;;  %s11280_s1 = inlined_call_operand.hbm [shape: bf16[4096,512], index: 1, kind: input, shape index: {}]   ;;  %s11281_s2 = inlined_call_operand.hbm [shape: f32[1,512], index: 2, kind: input, shape index: {}]   ;;  %s11282_s3 = inlined_call_operand.hbm [shape: bf16[512,128], index: 3, kind: input, shape index: {}]   ;;  %s11283_s4 = inlined_call_operand.hbm [shape: f32[1,128], index: 4, kind: input, shape index: {}]   ;;  %s11284_s5 = inlined_call_operand.hbm [shape: f32[8,128], index: 5, kind: output, shape index: {}]  }
   0x1   :  { %11 = vsyncpa [#allocation6], 0 }
   0x2   :  { %12 = vsyncpa [#allocation9], 0 }
   0x3   :  { %13 = vsyncpa [#allocation4], 0  ;;  %s10931_s18 = smov [#allocation5]  }
   0x4   :  { %s29_s19 = sshll.u32 %s10931_s18, 4  ;;  %s30_s19 = int_to_ptr.vmem [resolvable:$true] %s29_s19 }
   0x5   :  { %s10811_s20 = scalar_lea.vmem %s30_s19, 131072  ;;  %p10816_p1 = scmp.lt.s32.totalorder %s30_s19, %s30_s19 }
   0x6   :  { %p10812_p0 = scmp.ne.s32.totalorder %s30_s19, %s10811_s20  ;;  %p10817_p2 = scmp.lt.s32.totalorder %s10811_s20, %s10811_s20 }
   0x8   :  { %p10818_p3 = por %p10817_p2, %p10816_p1 }
   0xa   :  { %p10819_p4 = pnand %p10818_p3, %p10812_p0 }
   0xc   :  { %10822 = shalt.err (!%p10819_p4)
}
   0xd   :  { %s10932_s21 = smov 256   ;;  %s10933_s22 = smov 16  }
   0xe   :  { %35 = dma.hbm_to_vmem [thread:$0]  %s11280_s1, 131072, %s30_s19, [#allocation6], %s10932_s21, %s10932_s21, %s10933_s22  }
   0xf   :  { %s10934_s25 = smov [#allocation8]  }
  0x10   :  { %s51_s26 = sshll.u32 %s10934_s25, 4  ;;  %s52_s26 = int_to_ptr.vmem [resolvable:$true] %s51_s26 }
  0x11   :  { %s10831_s27 = scalar_lea.vmem %s52_s26, 4096  ;;  %p10836_p6 = scmp.lt.s32.totalorder %s52_s26, %s52_s26 }
  0x12   :  { %p10832_p5 = scmp.ne.s32.totalorder %s52_s26, %s10831_s27  ;;  %p10837_p7 = scmp.lt.s32.totalorder %s10831_s27, %s10831_s27 }
  0x14   :  { %p10838_p8 = por %p10837_p7, %p10836_p6 }
  0x16   :  { %p10839_p9 = pnand %p10838_p8, %p10832_p5 }
  0x18   :  { %10842 = shalt.err (!%p10839_p9)
}
  0x19   :  { %s10935_s28 = smov 64   ;;  %s10936_s29 = smov 4  }
  0x1a   :  { %57 = dma.hbm_to_vmem [thread:$0]  %s11282_s3, 4096, %s52_s26, [#allocation9], %s10935_s28, %s10935_s28, %s10936_s29  }
  0x1b   :  { %s10937_s7 = smov [#allocation2]   ;;  %s10938_s9 = smov [#allocation7]  }
  0x1c   :  { %s20_s8 = sshll.u32 %s10937_s7, 4  ;;  %s42_s1 = sshll.u32 %s10938_s9, 4  ;;  %s21_s8 = int_to_ptr.vmem [resolvable:$true] %s20_s8  ;;  %s43_s1 = int_to_ptr.vmem [resolvable:$true] %s42_s1 }
  0x1d   :  { %s10851_s10 = scalar_lea.vmem %s21_s8, 2048  ;;  %p10856_p11 = scmp.lt.s32.totalorder %s21_s8, %s21_s8 }
  0x1e   :  { %p10852_p10 = scmp.ne.s32.totalorder %s21_s8, %s10851_s10  ;;  %p10857_p12 = scmp.lt.s32.totalorder %s10851_s10, %s10851_s10 }
  0x20   :  { %p10858_p13 = por %p10857_p12, %p10856_p11 }
  0x22   :  { %p10859_p0 = pnand %p10858_p13, %p10852_p10 }
  0x24   :  { %10862 = shalt.err (!%p10859_p0)
}
  0x25   :  { %23 = dma.hbm_to_vmem [thread:$0]  %s11279_s0, 2048, %s21_s8, [#allocation3]  }
  0x26   :  { %s10871_s13 = scalar_lea.vmem %s43_s1, 64  ;;  %p10876_p2 = scmp.lt.s32.totalorder %s43_s1, %s43_s1 }
  0x27   :  { %p10872_p1 = scmp.ne.s32.totalorder %s43_s1, %s10871_s13  ;;  %p10877_p3 = scmp.lt.s32.totalorder %s10871_s13, %s10871_s13 }
  0x29   :  { %p10878_p4 = por %p10877_p3, %p10876_p2 }
  0x2b   :  { %p10879_p5 = pnand %p10878_p4, %p10872_p1 }
  0x2d   :  { %10882 = shalt.err (!%p10879_p5)
}
  0x2e   :  { %45 = dma.hbm_to_vmem [thread:$0]  %s11281_s2, 64, %s43_s1, [#allocation6]  }
  0x2f   :  { %s10939_s15 = smov [#allocation10]  }
  0x30   :  { %s64_s16 = sshll.u32 %s10939_s15, 4  ;;  %s65_s16 = int_to_ptr.vmem [resolvable:$true] %s64_s16 }
  0x31   :  { %s10891_s17 = scalar_lea.vmem %s65_s16, 16  ;;  %s10895_s18 = scalar_lea.vmem %s65_s16, 32 }
  0x32   :  { %p10892_p6 = scmp.ne.s32.totalorder %s65_s16, %s10891_s17  ;;  %p10896_p7 = scmp.lt.s32.totalorder %s65_s16, %s65_s16 }
  0x33   :  { %p10897_p8 = scmp.lt.s32.totalorder %s10895_s18, %s10891_s17 }
  0x35   :  { %p10898_p9 = por %p10897_p8, %p10896_p7 }
  0x37   :  { %p10899_p10 = pnand %p10898_p9, %p10892_p6 }
  0x39   :  { %10902 = shalt.err (!%p10899_p10)
}
  0x3a   :  { %67 = dma.hbm_to_vmem [thread:$0]  %s11283_s4, 16, %s65_s16, [#allocation9]  }
  0x3b   :  { %10923 = dma.done.wait [#allocation3], 2048  }
  0x3c   :  { %10924 = vsyncadd [#allocation3], 4294965248 }
  0x3d   :  { %10925 = dma.done.wait [#allocation6], 131136  }
  0x3e   :  { %10926 = vsyncadd [#allocation6], 4294836160 }
  0x3f   :  { %10927 = dma.done.wait [#allocation9], 4112  }
  0x40   :  { %10928 = vsyncadd [#allocation9], 4294963184  ;;  %v9202_v0 = vld [vmem:[#allocation5 + $0xe4] ss:$16 sps:$4 sm:$0xff]   ;;  %v9206_v2 = vld [vmem:[#allocation5 + $0xe0] ss:$16 sps:$4 sm:$0xff]  }
  0x41   :  { %v9204_v1 = vld [vmem:[#allocation5 + $0x2e4] ss:$16 sps:$4 sm:$0xff]   ;;  %6378 = vmatprep.subr.bf16.mxu0 %v9202_v0  ;;  %v9207_v3 = vld [vmem:[#allocation5 + $0x2e0] ss:$16 sps:$4 sm:$0xff]   ;;  %v85_v48 = vld [vmem:[#allocation2 + $0x8] sm:$0xff]  ;;  %s10940_s2 = smov [#allocation11]  }
  0x42   :  { %6419 = vmatprep.subr.bf16.mxu1 %v9204_v1  ;;  %v9208_v4 = vld [vmem:[#allocation5 + $0xc4] ss:$16 sps:$4 sm:$0xff]   ;;  %6379 = vmatpush1.bf16.msra.mxu0 %v9206_v2  ;;  %v9212_v6 = vld [vmem:[#allocation5 + $0xc0] ss:$16 sps:$4 sm:$0xff]   ;;  %v10988_v51 = vcombine.high %v85_v48, %v85_v48  ;;  %s8048_s4 = sshll.u32 %s10940_s2, 4  ;;  %s8049_s4 = int_to_ptr.vmem [resolvable:$true] %s8048_s4 }
  0x43   :  { %6420 = vmatpush1.bf16.msra.mxu1 %v9207_v3  ;;  %v9210_v5 = vld [vmem:[#allocation5 + $0x2c4] ss:$16 sps:$4 sm:$0xff]   ;;  %6380 = vmatprep.subr.bf16.mxu0 %v9208_v4  ;;  %v9213_v7 = vld [vmem:[#allocation5 + $0x2c0] ss:$16 sps:$4 sm:$0xff]   ;;  %s10903_s20 = scalar_lea.vmem %s8049_s4, 128  ;;  %p10908_p12 = scmp.lt.s32.totalorder %s8049_s4, %s8049_s4 }
  0x44   :  { %6421 = vmatprep.subr.bf16.mxu1 %v9210_v5  ;;  %v9214_v8 = vld [vmem:[#allocation5 + $0xa4] ss:$16 sps:$4 sm:$0xff]   ;;  %v9218_v10 = vld [vmem:[#allocation5 + $0xa0] ss:$16 sps:$4 sm:$0xff]   ;;  %6451 = vmatprep.mubr.bf16.mxu1 %v10988_v51  ;;  %p10904_p11 = scmp.ne.s32.totalorder %s8049_s4, %s10903_s20  ;;  %p10909_p13 = scmp.lt.s32.totalorder %s10903_s20, %s10903_s20 }
  0x45   :  { %v9216_v9 = vld [vmem:[#allocation5 + $0x2a4] ss:$16 sps:$4 sm:$0xff]   ;;  %v9219_v11 = vld [vmem:[#allocation5 + $0x2a0] ss:$16 sps:$4 sm:$0xff]  }
  0x46   :  { %6381 = vmatpush1.bf16.msra.mxu0 %v9212_v6  ;;  %v9220_v12 = vld [vmem:[#allocation5 + $0x84] ss:$16 sps:$4 sm:$0xff]   ;;  %v9224_v14 = vld [vmem:[#allocation5 + $0x80] ss:$16 sps:$4 sm:$0xff]   ;;  %p10910_p0 = por %p10909_p13, %p10908_p12 }
  0x47   :  { %6422 = vmatpush1.bf16.msra.mxu1 %v9213_v7  ;;  %6382 = vmatprep.subr.bf16.mxu0 %v9214_v8  ;;  %v9222_v13 = vld [vmem:[#allocation5 + $0x284] ss:$16 sps:$4 sm:$0xff]   ;;  %v9225_v15 = vld [vmem:[#allocation5 + $0x280] ss:$16 sps:$4 sm:$0xff]   ;;  %v10994_v7 = vcombine.low %v85_v48, %v85_v48 }
  0x48   :  { %6423 = vmatprep.subr.bf16.mxu1 %v9216_v9  ;;  %v9226_v16 = vld [vmem:[#allocation5 + $0x64] ss:$16 sps:$4 sm:$0xff]   ;;  %v9230_v18 = vld [vmem:[#allocation5 + $0x60] ss:$16 sps:$4 sm:$0xff]   ;;  %p10911_p1 = pnand %p10910_p0, %p10904_p11 }
  0x49   :  { %v9228_v17 = vld [vmem:[#allocation5 + $0x264] ss:$16 sps:$4 sm:$0xff]   ;;  %v9231_v19 = vld [vmem:[#allocation5 + $0x260] ss:$16 sps:$4 sm:$0xff]  }
  0x4a   :  { %6383 = vmatpush1.bf16.msra.mxu0 %v9218_v10  ;;  %v9232_v20 = vld [vmem:[#allocation5 + $0x44] ss:$16 sps:$4 sm:$0xff]   ;;  %v9236_v22 = vld [vmem:[#allocation5 + $0x40] ss:$16 sps:$4 sm:$0xff]  }
  0x4b   :  { %6424 = vmatpush1.bf16.msra.mxu1 %v9219_v11  ;;  %6384 = vmatprep.subr.bf16.mxu0 %v9220_v12  ;;  %v9234_v21 = vld [vmem:[#allocation5 + $0x244] ss:$16 sps:$4 sm:$0xff]   ;;  %v9237_v23 = vld [vmem:[#allocation5 + $0x240] ss:$16 sps:$4 sm:$0xff]  }
  0x4c   :  { %6425 = vmatprep.subr.bf16.mxu1 %v9222_v13  ;;  %v9238_v24 = vld [vmem:[#allocation5 + $0x24] ss:$16 sps:$4 sm:$0xff]   ;;  %v9242_v26 = vld [vmem:[#allocation5 + $0x20] ss:$16 sps:$4 sm:$0xff]  }
  0x4d   :  { %v9240_v25 = vld [vmem:[#allocation5 + $0x224] ss:$16 sps:$4 sm:$0xff]   ;;  %v9243_v27 = vld [vmem:[#allocation5 + $0x220] ss:$16 sps:$4 sm:$0xff]  }
  0x4e   :  { %6385 = vmatpush1.bf16.msra.mxu0 %v9224_v14  ;;  %v9244_v28 = vld [vmem:[#allocation5 + $0x4] ss:$16 sps:$4 sm:$0xff]   ;;  %v9248_v30 = vld [vmem:[#allocation5] ss:$16 sps:$4 sm:$0xff]  }
  0x4f   :  { %6426 = vmatpush1.bf16.msra.mxu1 %v9225_v15  ;;  %6386 = vmatprep.subr.bf16.mxu0 %v9226_v16  ;;  %v9246_v29 = vld [vmem:[#allocation5 + $0x204] ss:$16 sps:$4 sm:$0xff]   ;;  %v9249_v31 = vld [vmem:[#allocation5 + $0x200] ss:$16 sps:$4 sm:$0xff]  }
  0x50   :  { %6427 = vmatprep.subr.bf16.mxu1 %v9228_v17  ;;  %v9250_v32 = vld [vmem:[#allocation5 + $0x1e4] ss:$16 sps:$4 sm:$0xff]   ;;  %v9254_v34 = vld [vmem:[#allocation5 + $0x1e0] ss:$16 sps:$4 sm:$0xff]  }
  0x51   :  { %v9252_v33 = vld [vmem:[#allocation5 + $0x3e4] ss:$16 sps:$4 sm:$0xff]   ;;  %v9255_v35 = vld [vmem:[#allocation5 + $0x3e0] ss:$16 sps:$4 sm:$0xff]  }
  0x52   :  { %6387 = vmatpush1.bf16.msra.mxu0 %v9230_v18  ;;  %v9256_v36 = vld [vmem:[#allocation5 + $0x1c4] ss:$16 sps:$4 sm:$0xff]   ;;  %v9260_v38 = vld [vmem:[#allocation5 + $0x1c0] ss:$16 sps:$4 sm:$0xff]  }
  0x53   :  { %6428 = vmatpush1.bf16.msra.mxu1 %v9231_v19  ;;  %6388 = vmatprep.subr.bf16.mxu0 %v9232_v20  ;;  %v9258_v37 = vld [vmem:[#allocation5 + $0x3c4] ss:$16 sps:$4 sm:$0xff]   ;;  %v9261_v39 = vld [vmem:[#allocation5 + $0x3c0] ss:$16 sps:$4 sm:$0xff]  }
  0x54   :  { %6429 = vmatprep.subr.bf16.mxu1 %v9234_v21  ;;  %v9262_v40 = vld [vmem:[#allocation5 + $0x1a4] ss:$16 sps:$4 sm:$0xff]   ;;  %v9266_v42 = vld [vmem:[#allocation5 + $0x1a0] ss:$16 sps:$4 sm:$0xff]  }
  0x55   :  { %v9264_v41 = vld [vmem:[#allocation5 + $0x3a4] ss:$16 sps:$4 sm:$0xff]   ;;  %v9267_v43 = vld [vmem:[#allocation5 + $0x3a0] ss:$16 sps:$4 sm:$0xff]  }
  0x56   :  { %6389 = vmatpush1.bf16.msra.mxu0 %v9236_v22  ;;  %v9268_v44 = vld [vmem:[#allocation5 + $0x184] ss:$16 sps:$4 sm:$0xff]   ;;  %v9272_v49 = vld [vmem:[#allocation5 + $0x180] ss:$16 sps:$4 sm:$0xff]  }
  0x57   :  { %6430 = vmatpush1.bf16.msra.mxu1 %v9237_v23  ;;  %6390 = vmatprep.subr.bf16.mxu0 %v9238_v24  ;;  %v9270_v45 = vld [vmem:[#allocation5 + $0x384] ss:$16 sps:$4 sm:$0xff]   ;;  %v9273_v50 = vld [vmem:[#allocation5 + $0x380] ss:$16 sps:$4 sm:$0xff]  }
  0x58   :  { %6431 = vmatprep.subr.bf16.mxu1 %v9240_v25  ;;  %v84_v46 = vld [vmem:[#allocation2] sm:$0xff] }
  0x59   :  { %v10986_v47 = vcombine.high %v84_v46, %v84_v46  ;;  %v9274_v52 = vld [vmem:[#allocation5 + $0x164] ss:$16 sps:$4 sm:$0xff]   ;;  %v9278_v54 = vld [vmem:[#allocation5 + $0x160] ss:$16 sps:$4 sm:$0xff]   ;;  %v10992_v6 = vcombine.low %v84_v46, %v84_v46 }
  0x5a   :  { %6391 = vmatpush1.bf16.msra.mxu0 %v9242_v26  ;;  %v9276_v53 = vld [vmem:[#allocation5 + $0x364] ss:$16 sps:$4 sm:$0xff]   ;;  %v9279_v55 = vld [vmem:[#allocation5 + $0x360] ss:$16 sps:$4 sm:$0xff]  }
  0x5b   :  { %6432 = vmatpush1.bf16.msra.mxu1 %v9243_v27  ;;  %6392 = vmatprep.subr.bf16.mxu0 %v9244_v28  ;;  %v9280_v56 = vld [vmem:[#allocation5 + $0x144] ss:$16 sps:$4 sm:$0xff]   ;;  %v9284_v58 = vld [vmem:[#allocation5 + $0x140] ss:$16 sps:$4 sm:$0xff]  }
  0x5c   :  { %6433 = vmatprep.subr.bf16.mxu1 %v9246_v29  ;;  %6410 = vmatprep.mubr.bf16.mxu0 %v10986_v47  ;;  %v9282_v57 = vld [vmem:[#allocation5 + $0x344] ss:$16 sps:$4 sm:$0xff]   ;;  %v9285_v59 = vld [vmem:[#allocation5 + $0x340] ss:$16 sps:$4 sm:$0xff]  }
  0x5d   :  { %v9286_v60 = vld [vmem:[#allocation5 + $0x124] ss:$16 sps:$4 sm:$0xff]   ;;  %v9290_v62 = vld [vmem:[#allocation5 + $0x120] ss:$16 sps:$4 sm:$0xff]  }
  0x5e   :  { %6393 = vmatpush1.bf16.msra.mxu0 %v9248_v30  ;;  %v9288_v61 = vld [vmem:[#allocation5 + $0x324] ss:$16 sps:$4 sm:$0xff]   ;;  %v9291_v63 = vld [vmem:[#allocation5 + $0x320] ss:$16 sps:$4 sm:$0xff]  }
  0x5f   :  { %6434 = vmatpush1.bf16.msra.mxu1 %v9249_v31  ;;  %6394 = vmatprep.subr.bf16.mxu0 %v9250_v32  ;;  %v9292_v0 = vld [vmem:[#allocation5 + $0x104] ss:$16 sps:$4 sm:$0xff]   ;;  %v9296_v2 = vld [vmem:[#allocation5 + $0x100] ss:$16 sps:$4 sm:$0xff]  }
  0x60   :  { %6435 = vmatprep.subr.bf16.mxu1 %v9252_v33  ;;  %v9294_v1 = vld [vmem:[#allocation5 + $0x304] ss:$16 sps:$4 sm:$0xff]   ;;  %v9297_v3 = vld [vmem:[#allocation5 + $0x300] ss:$16 sps:$4 sm:$0xff]   ;;  %v11000_v33 = vld [vmem:[#allocation2 + $0x18] sm:$0xff] }
  0x61   :  { %v9304_v4 = vld [vmem:[#allocation5 + $0x4e4] ss:$16 sps:$4 sm:$0xff]   ;;  %v9302_v8 = vld [vmem:[#allocation5 + $0x4e0] ss:$16 sps:$4 sm:$0xff]  }
  0x62   :  { %6395 = vmatpush2.bf16.msra.mxu0 %v9254_v34  ;;  %v9307_v5 = vld [vmem:[#allocation5 + $0x6e4] ss:$16 sps:$4 sm:$0xff]   ;;  %v9305_v9 = vld [vmem:[#allocation5 + $0x6e0] ss:$16 sps:$4 sm:$0xff]  }
  0x63   :  { %6436 = vmatpush2.bf16.msra.mxu1 %v9255_v35  ;;  %6396 = vmatprep.subr.bf16.mxu0 %v9256_v36  ;;  %v9310_v10 = vld [vmem:[#allocation5 + $0x4c4] ss:$16 sps:$4 sm:$0xff]   ;;  %v9308_v12 = vld [vmem:[#allocation5 + $0x4c0] ss:$16 sps:$4 sm:$0xff]  }
  0x64   :  { %6437 = vmatprep.subr.bf16.mxu1 %v9258_v37  ;;  %v9313_v11 = vld [vmem:[#allocation5 + $0x6c4] ss:$16 sps:$4 sm:$0xff]   ;;  %v9311_v13 = vld [vmem:[#allocation5 + $0x6c0] ss:$16 sps:$4 sm:$0xff]   ;;  %v11008_v37 = vcombine.high %v11000_v33, %v11000_v33 }
  0x65   :  { %v9316_v14 = vld [vmem:[#allocation5 + $0x4a4] ss:$16 sps:$4 sm:$0xff]   ;;  %v9314_v16 = vld [vmem:[#allocation5 + $0x4a0] ss:$16 sps:$4 sm:$0xff]  }
  0x66   :  { %6397 = vmatpush2.bf16.msra.mxu0 %v9260_v38  ;;  %v9319_v15 = vld [vmem:[#allocation5 + $0x6a4] ss:$16 sps:$4 sm:$0xff]   ;;  %v9317_v17 = vld [vmem:[#allocation5 + $0x6a0] ss:$16 sps:$4 sm:$0xff]  }
  0x67   :  { %6438 = vmatpush2.bf16.msra.mxu1 %v9261_v39  ;;  %6398 = vmatprep.subr.bf16.mxu0 %v9262_v40  ;;  %v9322_v18 = vld [vmem:[#allocation5 + $0x484] ss:$16 sps:$4 sm:$0xff]   ;;  %v9320_v20 = vld [vmem:[#allocation5 + $0x480] ss:$16 sps:$4 sm:$0xff]  }
  0x68   :  { %6439 = vmatprep.subr.bf16.mxu1 %v9264_v41  ;;  %v9325_v19 = vld [vmem:[#allocation5 + $0x684] ss:$16 sps:$4 sm:$0xff]   ;;  %v9323_v21 = vld [vmem:[#allocation5 + $0x680] ss:$16 sps:$4 sm:$0xff]  }
  0x69   :  { %v9328_v22 = vld [vmem:[#allocation5 + $0x464] ss:$16 sps:$4 sm:$0xff]   ;;  %v9326_v24 = vld [vmem:[#allocation5 + $0x460] ss:$16 sps:$4 sm:$0xff]  }
  0x6a   :  { %6399 = vmatpush2.bf16.msra.mxu0 %v9266_v42  ;;  %v9331_v23 = vld [vmem:[#allocation5 + $0x664] ss:$16 sps:$4 sm:$0xff]   ;;  %v9329_v25 = vld [vmem:[#allocation5 + $0x660] ss:$16 sps:$4 sm:$0xff]  }
  0x6b   :  { %6440 = vmatpush2.bf16.msra.mxu1 %v9267_v43  ;;  %6400 = vmatprep.subr.bf16.mxu0 %v9268_v44  ;;  %v9334_v26 = vld [vmem:[#allocation5 + $0x444] ss:$16 sps:$4 sm:$0xff]   ;;  %v9332_v28 = vld [vmem:[#allocation5 + $0x440] ss:$16 sps:$4 sm:$0xff]  }
  0x6c   :  { %6441 = vmatprep.subr.bf16.mxu1 %v9270_v45  ;;  %v9337_v27 = vld [vmem:[#allocation5 + $0x644] ss:$16 sps:$4 sm:$0xff]   ;;  %v9335_v29 = vld [vmem:[#allocation5 + $0x640] ss:$16 sps:$4 sm:$0xff]  }
  0x6d   :  { %v9340_v30 = vld [vmem:[#allocation5 + $0x424] ss:$16 sps:$4 sm:$0xff]   ;;  %v9338_v34 = vld [vmem:[#allocation5 + $0x420] ss:$16 sps:$4 sm:$0xff]  }
  0x6e   :  { %6401 = vmatpush2.bf16.msra.mxu0 %v9272_v49  ;;  %v9343_v31 = vld [vmem:[#allocation5 + $0x624] ss:$16 sps:$4 sm:$0xff]   ;;  %v9341_v35 = vld [vmem:[#allocation5 + $0x620] ss:$16 sps:$4 sm:$0xff]  }
  0x6f   :  { %6442 = vmatpush2.bf16.msra.mxu1 %v9273_v50  ;;  %6402 = vmatprep.subr.bf16.mxu0 %v9274_v52  ;;  %v10998_v32 = vld [vmem:[#allocation2 + $0x10] sm:$0xff] }
  0x70   :  { %6443 = vmatprep.subr.bf16.mxu1 %v9276_v53  ;;  %v11004_v36 = vcombine.high %v10998_v32, %v10998_v32  ;;  %v9346_v38 = vld [vmem:[#allocation5 + $0x404] ss:$16 sps:$4 sm:$0xff]   ;;  %v9344_v40 = vld [vmem:[#allocation5 + $0x400] ss:$16 sps:$4 sm:$0xff]  }
  0x71   :  { %v9349_v39 = vld [vmem:[#allocation5 + $0x604] ss:$16 sps:$4 sm:$0xff]   ;;  %v9347_v41 = vld [vmem:[#allocation5 + $0x600] ss:$16 sps:$4 sm:$0xff]  }
  0x72   :  { %6403 = vmatpush2.bf16.msra.mxu0 %v9278_v54  ;;  %v9352_v42 = vld [vmem:[#allocation5 + $0x5e4] ss:$16 sps:$4 sm:$0xff]   ;;  %v9350_v44 = vld [vmem:[#allocation5 + $0x5e0] ss:$16 sps:$4 sm:$0xff]  }
  0x73   :  { %6444 = vmatpush2.bf16.msra.mxu1 %v9279_v55  ;;  %6404 = vmatprep.subr.bf16.mxu0 %v9280_v56  ;;  %v9355_v43 = vld [vmem:[#allocation5 + $0x7e4] ss:$16 sps:$4 sm:$0xff]   ;;  %v9353_v45 = vld [vmem:[#allocation5 + $0x7e0] ss:$16 sps:$4 sm:$0xff]  }
  0x74   :  { %6445 = vmatprep.subr.bf16.mxu1 %v9282_v57  ;;  %v9358_v46 = vld [vmem:[#allocation5 + $0x5c4] ss:$16 sps:$4 sm:$0xff]   ;;  %v9356_v49 = vld [vmem:[#allocation5 + $0x5c0] ss:$16 sps:$4 sm:$0xff]  }
  0x75   :  { %v9361_v48 = vld [vmem:[#allocation5 + $0x7c4] ss:$16 sps:$4 sm:$0xff]   ;;  %v9359_v50 = vld [vmem:[#allocation5 + $0x7c0] ss:$16 sps:$4 sm:$0xff]  }
  0x76   :  { %6405 = vmatpush2.bf16.msra.mxu0 %v9284_v58  ;;  %v9364_v52 = vld [vmem:[#allocation5 + $0x5a4] ss:$16 sps:$4 sm:$0xff]   ;;  %v9362_v54 = vld [vmem:[#allocation5 + $0x5a0] ss:$16 sps:$4 sm:$0xff]  }
  0x77   :  { %6446 = vmatpush2.bf16.msra.mxu1 %v9285_v59  ;;  %6406 = vmatprep.subr.bf16.mxu0 %v9286_v60  ;;  %v9367_v53 = vld [vmem:[#allocation5 + $0x7a4] ss:$16 sps:$4 sm:$0xff]   ;;  %v9365_v55 = vld [vmem:[#allocation5 + $0x7a0] ss:$16 sps:$4 sm:$0xff]  }
  0x78   :  { %6447 = vmatprep.subr.bf16.mxu1 %v9288_v61  ;;  %v9370_v56 = vld [vmem:[#allocation5 + $0x584] ss:$16 sps:$4 sm:$0xff]   ;;  %v9368_v58 = vld [vmem:[#allocation5 + $0x580] ss:$16 sps:$4 sm:$0xff]  }
  0x79   :  { %v9373_v57 = vld [vmem:[#allocation5 + $0x784] ss:$16 sps:$4 sm:$0xff]   ;;  %v9371_v59 = vld [vmem:[#allocation5 + $0x780] ss:$16 sps:$4 sm:$0xff]  }
  0x7a   :  { %6407 = vmatpush2.bf16.msra.mxu0 %v9290_v62  ;;  %v9376_v60 = vld [vmem:[#allocation5 + $0x564] ss:$16 sps:$4 sm:$0xff]   ;;  %v9374_v62 = vld [vmem:[#allocation5 + $0x560] ss:$16 sps:$4 sm:$0xff]  }
  0x7b   :  { %6448 = vmatpush2.bf16.msra.mxu1 %v9291_v63  ;;  %6408 = vmatprep.subr.bf16.mxu0 %v9292_v0  ;;  %v9379_v61 = vld [vmem:[#allocation5 + $0x764] ss:$16 sps:$4 sm:$0xff]   ;;  %v9377_v63 = vld [vmem:[#allocation5 + $0x760] ss:$16 sps:$4 sm:$0xff]  }
  0x7c   :  { %6449 = vmatprep.subr.bf16.mxu1 %v9294_v1  ;;  %v9382_v0 = vld [vmem:[#allocation5 + $0x544] ss:$16 sps:$4 sm:$0xff]  }
  0x7d   :  { %v9385_v1 = vld [vmem:[#allocation5 + $0x744] ss:$16 sps:$4 sm:$0xff]  }
  0x7e   :  { %6409 = vmatpush2.bf16.msra.mxu0 %v9296_v2  ;;  %v9380_v2 = vld [vmem:[#allocation5 + $0x540] ss:$16 sps:$4 sm:$0xff]  }
  0x7f   :  { %6450 = vmatpush2.bf16.msra.mxu1 %v9297_v3  ;;  %6460 = vmatprep.subr.bf16.mxu0 %v9304_v4  ;;  %v9383_v3 = vld [vmem:[#allocation5 + $0x740] ss:$16 sps:$4 sm:$0xff]   ;;  %v9388_v4 = vld [vmem:[#allocation5 + $0x524] ss:$16 sps:$4 sm:$0xff]  }
  0x80   :  { %6501 = vmatprep.subr.bf16.mxu1 %v9307_v5  ;;  %v9391_v5 = vld [vmem:[#allocation5 + $0x724] ss:$16 sps:$4 sm:$0xff]  }
  0x81   :  { %6411 = vmatmul.mubr.bf16.vlgmr.msra.gmra.mxu0 %v10992_v6 }
  0x82   :  { %6452 = vmatmul.mubr.bf16.vlgmr.msra.gmra.mxu1 %v10994_v7  ;;  %6461 = vmatpush1.bf16.msra.mxu0 %v9302_v8  ;;  %v9386_v8 = vld [vmem:[#allocation5 + $0x520] ss:$16 sps:$4 sm:$0xff]  }
  0x83   :  { %6502 = vmatpush1.bf16.msra.mxu1 %v9305_v9  ;;  %6462 = vmatprep.subr.bf16.mxu0 %v9310_v10  ;;  %v9389_v9 = vld [vmem:[#allocation5 + $0x720] ss:$16 sps:$4 sm:$0xff]   ;;  %v9394_v10 = vld [vmem:[#allocation5 + $0x504] ss:$16 sps:$4 sm:$0xff]  }
  0x84   :  { %6503 = vmatprep.subr.bf16.mxu1 %v9313_v11  ;;  %6492 = vmatprep.mubr.bf16.mxu0 %v11004_v36  ;;  %v9397_v11 = vld [vmem:[#allocation5 + $0x704] ss:$16 sps:$4 sm:$0xff]  }
  0x85   :  { %6533 = vmatprep.mubr.bf16.mxu1 %v11008_v37 }
  0x86   :  { %6463 = vmatpush1.bf16.msra.mxu0 %v9308_v12  ;;  %v9392_v12 = vld [vmem:[#allocation5 + $0x500] ss:$16 sps:$4 sm:$0xff]  }
  0x87   :  { %6504 = vmatpush1.bf16.msra.mxu1 %v9311_v13  ;;  %6464 = vmatprep.subr.bf16.mxu0 %v9316_v14  ;;  %v9395_v13 = vld [vmem:[#allocation5 + $0x700] ss:$16 sps:$4 sm:$0xff]   ;;  %v9404_v14 = vld [vmem:[#allocation5 + $0x8e4] ss:$16 sps:$4 sm:$0xff]  }
  0x88   :  { %6505 = vmatprep.subr.bf16.mxu1 %v9319_v15  ;;  %v9407_v15 = vld [vmem:[#allocation5 + $0xae4] ss:$16 sps:$4 sm:$0xff]  }
  0x8a   :  { %6465 = vmatpush1.bf16.msra.mxu0 %v9314_v16  ;;  %v11014_v16 = vcombine.low %v10998_v32, %v10998_v32  ;;  %v9422_v32 = vld [vmem:[#allocation5 + $0x884] ss:$16 sps:$4 sm:$0xff]  }
  0x8b   :  { %6506 = vmatpush1.bf16.msra.mxu1 %v9317_v17  ;;  %6466 = vmatprep.subr.bf16.mxu0 %v9322_v18  ;;  %v11018_v17 = vcombine.low %v11000_v33, %v11000_v33  ;;  %v9402_v18 = vld [vmem:[#allocation5 + $0x8e0] ss:$16 sps:$4 sm:$0xff]   ;;  %v9425_v33 = vld [vmem:[#allocation5 + $0xa84] ss:$16 sps:$4 sm:$0xff]  }
  0x8c   :  { %6507 = vmatprep.subr.bf16.mxu1 %v9325_v19  ;;  %v9405_v19 = vld [vmem:[#allocation5 + $0xae0] ss:$16 sps:$4 sm:$0xff]  }
  0x8e   :  { %6467 = vmatpush1.bf16.msra.mxu0 %v9320_v20  ;;  %v9410_v20 = vld [vmem:[#allocation5 + $0x8c4] ss:$16 sps:$4 sm:$0xff]  }
  0x8f   :  { %6508 = vmatpush1.bf16.msra.mxu1 %v9323_v21  ;;  %6468 = vmatprep.subr.bf16.mxu0 %v9328_v22  ;;  %v9413_v21 = vld [vmem:[#allocation5 + $0xac4] ss:$16 sps:$4 sm:$0xff]  }
  0x90   :  { %6509 = vmatprep.subr.bf16.mxu1 %v9331_v23  ;;  %v11020_v22 = vld [vmem:[#allocation2 + $0x20] sm:$0xff]  ;;  %v11022_v23 = vld [vmem:[#allocation2 + $0x28] sm:$0xff] }
  0x92   :  { %6469 = vmatpush1.bf16.msra.mxu0 %v9326_v24  ;;  %v11026_v24 = vcombine.high %v11020_v22, %v11020_v22 }
  0x93   :  { %6510 = vmatpush1.bf16.msra.mxu1 %v9329_v25  ;;  %6470 = vmatprep.subr.bf16.mxu0 %v9334_v26  ;;  %v11030_v25 = vcombine.high %v11022_v23, %v11022_v23  ;;  %v9408_v26 = vld [vmem:[#allocation5 + $0x8c0] ss:$16 sps:$4 sm:$0xff]  }
  0x94   :  { %6511 = vmatprep.subr.bf16.mxu1 %v9337_v27  ;;  %v9411_v27 = vld [vmem:[#allocation5 + $0xac0] ss:$16 sps:$4 sm:$0xff]  }
  0x96   :  { %6471 = vmatpush1.bf16.msra.mxu0 %v9332_v28  ;;  %v9416_v28 = vld [vmem:[#allocation5 + $0x8a4] ss:$16 sps:$4 sm:$0xff]  }
  0x97   :  { %6512 = vmatpush1.bf16.msra.mxu1 %v9335_v29  ;;  %6472 = vmatprep.subr.bf16.mxu0 %v9340_v30  ;;  %v9419_v29 = vld [vmem:[#allocation5 + $0xaa4] ss:$16 sps:$4 sm:$0xff]   ;;  %v9414_v30 = vld [vmem:[#allocation5 + $0x8a0] ss:$16 sps:$4 sm:$0xff]  }
  0x98   :  { %6513 = vmatprep.subr.bf16.mxu1 %v9343_v31  ;;  %v9417_v31 = vld [vmem:[#allocation5 + $0xaa0] ss:$16 sps:$4 sm:$0xff]  }
  0x9a   :  { %6473 = vmatpush1.bf16.msra.mxu0 %v9338_v34  ;;  %v9420_v34 = vld [vmem:[#allocation5 + $0x880] ss:$16 sps:$4 sm:$0xff]  }
  0x9b   :  { %6514 = vmatpush1.bf16.msra.mxu1 %v9341_v35  ;;  %6474 = vmatprep.subr.bf16.mxu0 %v9346_v38  ;;  %v9423_v35 = vld [vmem:[#allocation5 + $0xa80] ss:$16 sps:$4 sm:$0xff]   ;;  %v9428_v38 = vld [vmem:[#allocation5 + $0x864] ss:$16 sps:$4 sm:$0xff]  }
  0x9c   :  { %6515 = vmatprep.subr.bf16.mxu1 %v9349_v39  ;;  %v9431_v39 = vld [vmem:[#allocation5 + $0xa64] ss:$16 sps:$4 sm:$0xff]  }
  0x9e   :  { %6475 = vmatpush1.bf16.msra.mxu0 %v9344_v40  ;;  %v9426_v40 = vld [vmem:[#allocation5 + $0x860] ss:$16 sps:$4 sm:$0xff]  }
  0x9f   :  { %6516 = vmatpush1.bf16.msra.mxu1 %v9347_v41  ;;  %6476 = vmatprep.subr.bf16.mxu0 %v9352_v42  ;;  %v9429_v41 = vld [vmem:[#allocation5 + $0xa60] ss:$16 sps:$4 sm:$0xff]   ;;  %v9434_v42 = vld [vmem:[#allocation5 + $0x844] ss:$16 sps:$4 sm:$0xff]  }
  0xa0   :  { %6517 = vmatprep.subr.bf16.mxu1 %v9355_v43  ;;  %v9437_v43 = vld [vmem:[#allocation5 + $0xa44] ss:$16 sps:$4 sm:$0xff]  }
  0xa2   :  { %6477 = vmatpush2.bf16.msra.mxu0 %v9350_v44  ;;  %v9432_v44 = vld [vmem:[#allocation5 + $0x840] ss:$16 sps:$4 sm:$0xff]  }
  0xa3   :  { %6518 = vmatpush2.bf16.msra.mxu1 %v9353_v45  ;;  %6478 = vmatprep.subr.bf16.mxu0 %v9358_v46  ;;  %v9435_v45 = vld [vmem:[#allocation5 + $0xa40] ss:$16 sps:$4 sm:$0xff]   ;;  %v9440_v46 = vld [vmem:[#allocation5 + $0x824] ss:$16 sps:$4 sm:$0xff]  }
  0xa4   :  { %6519 = vmatprep.subr.bf16.mxu1 %v9361_v48  ;;  %v9443_v48 = vld [vmem:[#allocation5 + $0xa24] ss:$16 sps:$4 sm:$0xff]  }
  0xa6   :  { %6479 = vmatpush2.bf16.msra.mxu0 %v9356_v49  ;;  %v9438_v49 = vld [vmem:[#allocation5 + $0x820] ss:$16 sps:$4 sm:$0xff]  }
  0xa7   :  { %6520 = vmatpush2.bf16.msra.mxu1 %v9359_v50  ;;  %6480 = vmatprep.subr.bf16.mxu0 %v9364_v52  ;;  %v9441_v50 = vld [vmem:[#allocation5 + $0xa20] ss:$16 sps:$4 sm:$0xff]   ;;  %v9446_v52 = vld [vmem:[#allocation5 + $0x804] ss:$16 sps:$4 sm:$0xff]  }
  0xa8   :  { %6521 = vmatprep.subr.bf16.mxu1 %v9367_v53  ;;  %v9449_v53 = vld [vmem:[#allocation5 + $0xa04] ss:$16 sps:$4 sm:$0xff]  }
  0xaa   :  { %6481 = vmatpush2.bf16.msra.mxu0 %v9362_v54  ;;  %v9444_v54 = vld [vmem:[#allocation5 + $0x800] ss:$16 sps:$4 sm:$0xff]  }
  0xab   :  { %6522 = vmatpush2.bf16.msra.mxu1 %v9365_v55  ;;  %6482 = vmatprep.subr.bf16.mxu0 %v9370_v56  ;;  %v9447_v55 = vld [vmem:[#allocation5 + $0xa00] ss:$16 sps:$4 sm:$0xff]   ;;  %v9452_v56 = vld [vmem:[#allocation5 + $0x9e4] ss:$16 sps:$4 sm:$0xff]  }
  0xac   :  { %6523 = vmatprep.subr.bf16.mxu1 %v9373_v57  ;;  %v9455_v57 = vld [vmem:[#allocation5 + $0xbe4] ss:$16 sps:$4 sm:$0xff]  }
  0xae   :  { %6483 = vmatpush2.bf16.msra.mxu0 %v9368_v58  ;;  %v9450_v58 = vld [vmem:[#allocation5 + $0x9e0] ss:$16 sps:$4 sm:$0xff]  }
  0xaf   :  { %6524 = vmatpush2.bf16.msra.mxu1 %v9371_v59  ;;  %6484 = vmatprep.subr.bf16.mxu0 %v9376_v60  ;;  %v9453_v59 = vld [vmem:[#allocation5 + $0xbe0] ss:$16 sps:$4 sm:$0xff]   ;;  %v9458_v60 = vld [vmem:[#allocation5 + $0x9c4] ss:$16 sps:$4 sm:$0xff]  }
  0xb0   :  { %6525 = vmatprep.subr.bf16.mxu1 %v9379_v61  ;;  %v9461_v61 = vld [vmem:[#allocation5 + $0xbc4] ss:$16 sps:$4 sm:$0xff]  }
  0xb2   :  { %6485 = vmatpush2.bf16.msra.mxu0 %v9374_v62  ;;  %v9456_v62 = vld [vmem:[#allocation5 + $0x9c0] ss:$16 sps:$4 sm:$0xff]  }
  0xb3   :  { %6526 = vmatpush2.bf16.msra.mxu1 %v9377_v63  ;;  %6486 = vmatprep.subr.bf16.mxu0 %v9382_v0  ;;  %v9459_v63 = vld [vmem:[#allocation5 + $0xbc0] ss:$16 sps:$4 sm:$0xff]   ;;  %v9464_v0 = vld [vmem:[#allocation5 + $0x9a4] ss:$16 sps:$4 sm:$0xff]  }
  0xb4   :  { %6527 = vmatprep.subr.bf16.mxu1 %v9385_v1  ;;  %v9467_v1 = vld [vmem:[#allocation5 + $0xba4] ss:$16 sps:$4 sm:$0xff]  }
  0xb6   :  { %6487 = vmatpush2.bf16.msra.mxu0 %v9380_v2  ;;  %v9462_v2 = vld [vmem:[#allocation5 + $0x9a0] ss:$16 sps:$4 sm:$0xff]  }
  0xb7   :  { %6528 = vmatpush2.bf16.msra.mxu1 %v9383_v3  ;;  %6488 = vmatprep.subr.bf16.mxu0 %v9388_v4  ;;  %v9465_v3 = vld [vmem:[#allocation5 + $0xba0] ss:$16 sps:$4 sm:$0xff]   ;;  %v9470_v4 = vld [vmem:[#allocation5 + $0x984] ss:$16 sps:$4 sm:$0xff]  }
  0xb8   :  { %6529 = vmatprep.subr.bf16.mxu1 %v9391_v5  ;;  %v9473_v5 = vld [vmem:[#allocation5 + $0xb84] ss:$16 sps:$4 sm:$0xff]  }
  0xba   :  { %6489 = vmatpush2.bf16.msra.mxu0 %v9386_v8  ;;  %v9468_v8 = vld [vmem:[#allocation5 + $0x980] ss:$16 sps:$4 sm:$0xff]  }
  0xbb   :  { %6530 = vmatpush2.bf16.msra.mxu1 %v9389_v9  ;;  %6490 = vmatprep.subr.bf16.mxu0 %v9394_v10  ;;  %v9471_v9 = vld [vmem:[#allocation5 + $0xb80] ss:$16 sps:$4 sm:$0xff]   ;;  %v9476_v10 = vld [vmem:[#allocation5 + $0x964] ss:$16 sps:$4 sm:$0xff]  }
  0xbc   :  { %6531 = vmatprep.subr.bf16.mxu1 %v9397_v11  ;;  %v9479_v11 = vld [vmem:[#allocation5 + $0xb64] ss:$16 sps:$4 sm:$0xff]  }
  0xbe   :  { %6491 = vmatpush2.bf16.msra.mxu0 %v9392_v12  ;;  %v9474_v12 = vld [vmem:[#allocation5 + $0x960] ss:$16 sps:$4 sm:$0xff]  }
  0xbf   :  { %6532 = vmatpush2.bf16.msra.mxu1 %v9395_v13  ;;  %6542 = vmatprep.subr.bf16.mxu0 %v9404_v14  ;;  %v9477_v13 = vld [vmem:[#allocation5 + $0xb60] ss:$16 sps:$4 sm:$0xff]   ;;  %v9482_v14 = vld [vmem:[#allocation5 + $0x944] ss:$16 sps:$4 sm:$0xff]  }
  0xc0   :  { %6583 = vmatprep.subr.bf16.mxu1 %v9407_v15  ;;  %v9485_v15 = vld [vmem:[#allocation5 + $0xb44] ss:$16 sps:$4 sm:$0xff]  }
  0xc1   :  { %6493 = vmatmul.mubr.bf16.vlgmr.msra.gmra.mxu0 %v11014_v16 }
  0xc2   :  { %6534 = vmatmul.mubr.bf16.vlgmr.msra.gmra.mxu1 %v11018_v17  ;;  %6543 = vmatpush1.bf16.msra.mxu0 %v9402_v18  ;;  %v9480_v18 = vld [vmem:[#allocation5 + $0x940] ss:$16 sps:$4 sm:$0xff]  }
  0xc3   :  { %6584 = vmatpush1.bf16.msra.mxu1 %v9405_v19  ;;  %6544 = vmatprep.subr.bf16.mxu0 %v9410_v20  ;;  %v9483_v19 = vld [vmem:[#allocation5 + $0xb40] ss:$16 sps:$4 sm:$0xff]   ;;  %v9488_v20 = vld [vmem:[#allocation5 + $0x924] ss:$16 sps:$4 sm:$0xff]  }
  0xc4   :  { %6585 = vmatprep.subr.bf16.mxu1 %v9413_v21  ;;  %6574 = vmatprep.mubr.bf16.mxu0 %v11026_v24  ;;  %v9491_v21 = vld [vmem:[#allocation5 + $0xb24] ss:$16 sps:$4 sm:$0xff]  }
  0xc5   :  { %6615 = vmatprep.mubr.bf16.mxu1 %v11030_v25 }
  0xc6   :  { %6545 = vmatpush1.bf16.msra.mxu0 %v9408_v26  ;;  %v9486_v26 = vld [vmem:[#allocation5 + $0x920] ss:$16 sps:$4 sm:$0xff]  }
  0xc7   :  { %6586 = vmatpush1.bf16.msra.mxu1 %v9411_v27  ;;  %6546 = vmatprep.subr.bf16.mxu0 %v9416_v28  ;;  %v9489_v27 = vld [vmem:[#allocation5 + $0xb20] ss:$16 sps:$4 sm:$0xff]   ;;  %v9494_v28 = vld [vmem:[#allocation5 + $0x904] ss:$16 sps:$4 sm:$0xff]  }
  0xc8   :  { %6587 = vmatprep.subr.bf16.mxu1 %v9419_v29  ;;  %v9497_v29 = vld [vmem:[#allocation5 + $0xb04] ss:$16 sps:$4 sm:$0xff]  }
  0xca   :  { %6547 = vmatpush1.bf16.msra.mxu0 %v9414_v30  ;;  %v9492_v30 = vld [vmem:[#allocation5 + $0x900] ss:$16 sps:$4 sm:$0xff]  }
  0xcb   :  { %6588 = vmatpush1.bf16.msra.mxu1 %v9417_v31  ;;  %6548 = vmatprep.subr.bf16.mxu0 %v9422_v32  ;;  %v9495_v31 = vld [vmem:[#allocation5 + $0xb00] ss:$16 sps:$4 sm:$0xff]   ;;  %v9504_v32 = vld [vmem:[#allocation5 + $0xce4] ss:$16 sps:$4 sm:$0xff]  }
  0xcc   :  { %6589 = vmatprep.subr.bf16.mxu1 %v9425_v33  ;;  %v9507_v33 = vld [vmem:[#allocation5 + $0xee4] ss:$16 sps:$4 sm:$0xff]  }
  0xce   :  { %6549 = vmatpush1.bf16.msra.mxu0 %v9420_v34  ;;  %v9502_v34 = vld [vmem:[#allocation5 + $0xce0] ss:$16 sps:$4 sm:$0xff]  }
  0xcf   :  { %6590 = vmatpush1.bf16.msra.mxu1 %v9423_v35  ;;  %6550 = vmatprep.subr.bf16.mxu0 %v9428_v38  ;;  %v11036_v35 = vld [vmem:[#allocation2 + $0x30] sm:$0xff]  ;;  %v11040_v38 = vcombine.low %v11020_v22, %v11020_v22 }
  0xd0   :  { %6591 = vmatprep.subr.bf16.mxu1 %v9431_v39  ;;  %v11044_v39 = vcombine.low %v11022_v23, %v11022_v23  ;;  %v9508_v23 = vld [vmem:[#allocation5 + $0xcc0] ss:$16 sps:$4 sm:$0xff]  }
  0xd2   :  { %6551 = vmatpush1.bf16.msra.mxu0 %v9426_v40  ;;  %v11046_v40 = vld [vmem:[#allocation2 + $0x38] sm:$0xff] }
  0xd3   :  { %6592 = vmatpush1.bf16.msra.mxu1 %v9429_v41  ;;  %6552 = vmatprep.subr.bf16.mxu0 %v9434_v42  ;;  %v9505_v41 = vld [vmem:[#allocation5 + $0xee0] ss:$16 sps:$4 sm:$0xff]   ;;  %v9510_v42 = vld [vmem:[#allocation5 + $0xcc4] ss:$16 sps:$4 sm:$0xff]   ;;  %v11054_v22 = vcombine.high %v11046_v40, %v11046_v40 }
  0xd4   :  { %6593 = vmatprep.subr.bf16.mxu1 %v9437_v43  ;;  %v9513_v43 = vld [vmem:[#allocation5 + $0xec4] ss:$16 sps:$4 sm:$0xff]  }
  0xd6   :  { %6553 = vmatpush1.bf16.msra.mxu0 %v9432_v44  ;;  %v11050_v44 = vcombine.high %v11036_v35, %v11036_v35 }
  0xd7   :  { %6594 = vmatpush1.bf16.msra.mxu1 %v9435_v45  ;;  %6554 = vmatprep.subr.bf16.mxu0 %v9440_v46  ;;  %v9511_v45 = vld [vmem:[#allocation5 + $0xec0] ss:$16 sps:$4 sm:$0xff]   ;;  %v9516_v46 = vld [vmem:[#allocation5 + $0xca4] ss:$16 sps:$4 sm:$0xff]  }
  0xd8   :  { %6595 = vmatprep.subr.bf16.mxu1 %v9443_v48  ;;  %v9519_v48 = vld [vmem:[#allocation5 + $0xea4] ss:$16 sps:$4 sm:$0xff]  }
  0xda   :  { %6555 = vmatpush1.bf16.msra.mxu0 %v9438_v49  ;;  %v9514_v49 = vld [vmem:[#allocation5 + $0xca0] ss:$16 sps:$4 sm:$0xff]  }
  0xdb   :  { %6596 = vmatpush1.bf16.msra.mxu1 %v9441_v50  ;;  %6556 = vmatprep.subr.bf16.mxu0 %v9446_v52  ;;  %v9517_v50 = vld [vmem:[#allocation5 + $0xea0] ss:$16 sps:$4 sm:$0xff]   ;;  %v9522_v52 = vld [vmem:[#allocation5 + $0xc84] ss:$16 sps:$4 sm:$0xff]  }
  0xdc   :  { %6597 = vmatprep.subr.bf16.mxu1 %v9449_v53  ;;  %v9525_v53 = vld [vmem:[#allocation5 + $0xe84] ss:$16 sps:$4 sm:$0xff]  }
  0xde   :  { %6557 = vmatpush1.bf16.msra.mxu0 %v9444_v54  ;;  %v9520_v54 = vld [vmem:[#allocation5 + $0xc80] ss:$16 sps:$4 sm:$0xff]  }
  0xdf   :  { %6598 = vmatpush1.bf16.msra.mxu1 %v9447_v55  ;;  %6558 = vmatprep.subr.bf16.mxu0 %v9452_v56  ;;  %v9523_v55 = vld [vmem:[#allocation5 + $0xe80] ss:$16 sps:$4 sm:$0xff]   ;;  %v9528_v56 = vld [vmem:[#allocation5 + $0xc64] ss:$16 sps:$4 sm:$0xff]  }
  0xe0   :  { %6599 = vmatprep.subr.bf16.mxu1 %v9455_v57  ;;  %v9531_v57 = vld [vmem:[#allocation5 + $0xe64] ss:$16 sps:$4 sm:$0xff]  }
  0xe2   :  { %6559 = vmatpush2.bf16.msra.mxu0 %v9450_v58  ;;  %v9526_v58 = vld [vmem:[#allocation5 + $0xc60] ss:$16 sps:$4 sm:$0xff]  }
  0xe3   :  { %6600 = vmatpush2.bf16.msra.mxu1 %v9453_v59  ;;  %6560 = vmatprep.subr.bf16.mxu0 %v9458_v60  ;;  %v9529_v59 = vld [vmem:[#allocation5 + $0xe60] ss:$16 sps:$4 sm:$0xff]   ;;  %v9534_v60 = vld [vmem:[#allocation5 + $0xc44] ss:$16 sps:$4 sm:$0xff]  }
  0xe4   :  { %6601 = vmatprep.subr.bf16.mxu1 %v9461_v61  ;;  %v9537_v61 = vld [vmem:[#allocation5 + $0xe44] ss:$16 sps:$4 sm:$0xff]  }
  0xe6   :  { %6561 = vmatpush2.bf16.msra.mxu0 %v9456_v62  ;;  %v9532_v62 = vld [vmem:[#allocation5 + $0xc40] ss:$16 sps:$4 sm:$0xff]  }
  0xe7   :  { %6602 = vmatpush2.bf16.msra.mxu1 %v9459_v63  ;;  %6562 = vmatprep.subr.bf16.mxu0 %v9464_v0  ;;  %v9535_v63 = vld [vmem:[#allocation5 + $0xe40] ss:$16 sps:$4 sm:$0xff]   ;;  %v9540_v0 = vld [vmem:[#allocation5 + $0xc24] ss:$16 sps:$4 sm:$0xff]  }
  0xe8   :  { %6603 = vmatprep.subr.bf16.mxu1 %v9467_v1  ;;  %v9543_v1 = vld [vmem:[#allocation5 + $0xe24] ss:$16 sps:$4 sm:$0xff]  }
  0xea   :  { %6563 = vmatpush2.bf16.msra.mxu0 %v9462_v2  ;;  %v9538_v2 = vld [vmem:[#allocation5 + $0xc20] ss:$16 sps:$4 sm:$0xff]  }
  0xeb   :  { %6604 = vmatpush2.bf16.msra.mxu1 %v9465_v3  ;;  %6564 = vmatprep.subr.bf16.mxu0 %v9470_v4  ;;  %v9541_v3 = vld [vmem:[#allocation5 + $0xe20] ss:$16 sps:$4 sm:$0xff]   ;;  %v9546_v4 = vld [vmem:[#allocation5 + $0xc04] ss:$16 sps:$4 sm:$0xff]  }
  0xec   :  { %6605 = vmatprep.subr.bf16.mxu1 %v9473_v5  ;;  %v9549_v5 = vld [vmem:[#allocation5 + $0xe04] ss:$16 sps:$4 sm:$0xff]  }
  0xee   :  { %6565 = vmatpush2.bf16.msra.mxu0 %v9468_v8  ;;  %v9544_v8 = vld [vmem:[#allocation5 + $0xc00] ss:$16 sps:$4 sm:$0xff]  }
  0xef   :  { %6606 = vmatpush2.bf16.msra.mxu1 %v9471_v9  ;;  %6566 = vmatprep.subr.bf16.mxu0 %v9476_v10  ;;  %v9547_v9 = vld [vmem:[#allocation5 + $0xe00] ss:$16 sps:$4 sm:$0xff]   ;;  %v9552_v10 = vld [vmem:[#allocation5 + $0xde4] ss:$16 sps:$4 sm:$0xff]  }
  0xf0   :  { %6607 = vmatprep.subr.bf16.mxu1 %v9479_v11  ;;  %v9555_v11 = vld [vmem:[#allocation5 + $0xfe4] ss:$16 sps:$4 sm:$0xff]  }
  0xf2   :  { %6567 = vmatpush2.bf16.msra.mxu0 %v9474_v12  ;;  %v9550_v12 = vld [vmem:[#allocation5 + $0xde0] ss:$16 sps:$4 sm:$0xff]  }
  0xf3   :  { %6608 = vmatpush2.bf16.msra.mxu1 %v9477_v13  ;;  %6568 = vmatprep.subr.bf16.mxu0 %v9482_v14  ;;  %v9553_v13 = vld [vmem:[#allocation5 + $0xfe0] ss:$16 sps:$4 sm:$0xff]   ;;  %v9558_v14 = vld [vmem:[#allocation5 + $0xdc4] ss:$16 sps:$4 sm:$0xff]  }
  0xf4   :  { %6609 = vmatprep.subr.bf16.mxu1 %v9485_v15  ;;  %v9561_v15 = vld [vmem:[#allocation5 + $0xfc4] ss:$16 sps:$4 sm:$0xff]  }
  0xf6   :  { %6569 = vmatpush2.bf16.msra.mxu0 %v9480_v18  ;;  %v9556_v18 = vld [vmem:[#allocation5 + $0xdc0] ss:$16 sps:$4 sm:$0xff]  }
  0xf7   :  { %6610 = vmatpush2.bf16.msra.mxu1 %v9483_v19  ;;  %6570 = vmatprep.subr.bf16.mxu0 %v9488_v20  ;;  %v9559_v19 = vld [vmem:[#allocation5 + $0xfc0] ss:$16 sps:$4 sm:$0xff]   ;;  %v9564_v20 = vld [vmem:[#allocation5 + $0xda4] ss:$16 sps:$4 sm:$0xff]  }
  0xf8   :  { %6611 = vmatprep.subr.bf16.mxu1 %v9491_v21  ;;  %v9567_v21 = vld [vmem:[#allocation5 + $0xfa4] ss:$16 sps:$4 sm:$0xff]  }
  0xfa   :  { %6571 = vmatpush2.bf16.msra.mxu0 %v9486_v26  ;;  %v9562_v26 = vld [vmem:[#allocation5 + $0xda0] ss:$16 sps:$4 sm:$0xff]  }
  0xfb   :  { %6612 = vmatpush2.bf16.msra.mxu1 %v9489_v27  ;;  %6572 = vmatprep.subr.bf16.mxu0 %v9494_v28  ;;  %v9565_v27 = vld [vmem:[#allocation5 + $0xfa0] ss:$16 sps:$4 sm:$0xff]   ;;  %v9570_v28 = vld [vmem:[#allocation5 + $0xd84] ss:$16 sps:$4 sm:$0xff]  }
  0xfc   :  { %6613 = vmatprep.subr.bf16.mxu1 %v9497_v29  ;;  %v9573_v29 = vld [vmem:[#allocation5 + $0xf84] ss:$16 sps:$4 sm:$0xff]  }
  0xfe   :  { %6573 = vmatpush2.bf16.msra.mxu0 %v9492_v30  ;;  %v9568_v30 = vld [vmem:[#allocation5 + $0xd80] ss:$16 sps:$4 sm:$0xff]  }
  0xff   :  { %6614 = vmatpush2.bf16.msra.mxu1 %v9495_v31  ;;  %6624 = vmatprep.subr.bf16.mxu0 %v9504_v32  ;;  %v9571_v31 = vld [vmem:[#allocation5 + $0xf80] ss:$16 sps:$4 sm:$0xff]   ;;  %v9576_v32 = vld [vmem:[#allocation5 + $0xd64] ss:$16 sps:$4 sm:$0xff]  }
 0x100   :  { %6665 = vmatprep.subr.bf16.mxu1 %v9507_v33  ;;  %v9579_v33 = vld [vmem:[#allocation5 + $0xf64] ss:$16 sps:$4 sm:$0xff]  }
 0x101   :  { %6575 = vmatmul.mubr.bf16.vlgmr.msra.gmra.mxu0 %v11040_v38 }
 0x102   :  { %6616 = vmatmul.mubr.bf16.vlgmr.msra.gmra.mxu1 %v11044_v39  ;;  %6625 = vmatpush1.bf16.msra.mxu0 %v9502_v34  ;;  %v9574_v34 = vld [vmem:[#allocation5 + $0xd60] ss:$16 sps:$4 sm:$0xff]  }
 0x103   :  { %6666 = vmatpush1.bf16.msra.mxu1 %v9505_v41  ;;  %6626 = vmatprep.subr.bf16.mxu0 %v9510_v42  ;;  %v9577_v41 = vld [vmem:[#allocation5 + $0xf60] ss:$16 sps:$4 sm:$0xff]   ;;  %v9582_v42 = vld [vmem:[#allocation5 + $0xd44] ss:$16 sps:$4 sm:$0xff]  }
 0x104   :  { %6667 = vmatprep.subr.bf16.mxu1 %v9513_v43  ;;  %6656 = vmatprep.mubr.bf16.mxu0 %v11050_v44  ;;  %v9585_v43 = vld [vmem:[#allocation5 + $0xf44] ss:$16 sps:$4 sm:$0xff]  }
 0x105   :  { %6697 = vmatprep.mubr.bf16.mxu1 %v11054_v22 }
 0x106   :  { %6627 = vmatpush1.bf16.msra.mxu0 %v9508_v23  ;;  %v9580_v23 = vld [vmem:[#allocation5 + $0xd40] ss:$16 sps:$4 sm:$0xff]  }
 0x107   :  { %6668 = vmatpush1.bf16.msra.mxu1 %v9511_v45  ;;  %6628 = vmatprep.subr.bf16.mxu0 %v9516_v46  ;;  %v9583_v45 = vld [vmem:[#allocation5 + $0xf40] ss:$16 sps:$4 sm:$0xff]   ;;  %v9588_v46 = vld [vmem:[#allocation5 + $0xd24] ss:$16 sps:$4 sm:$0xff]  }
 0x108   :  { %6669 = vmatprep.subr.bf16.mxu1 %v9519_v48  ;;  %v1126_v48 = vlaneseq }
 0x10a   :  { %6629 = vmatpush1.bf16.msra.mxu0 %v9514_v49  ;;  %v9591_v49 = vld [vmem:[#allocation5 + $0xf24] ss:$16 sps:$4 sm:$0xff]  }
 0x10b   :  { %6670 = vmatpush1.bf16.msra.mxu1 %v9517_v50  ;;  %6630 = vmatprep.subr.bf16.mxu0 %v9522_v52  ;;  %v9586_v50 = vld [vmem:[#allocation5 + $0xd20] ss:$16 sps:$4 sm:$0xff]  }
 0x10c   :  { %6671 = vmatprep.subr.bf16.mxu1 %v9525_v53  ;;  %v9589_v52 = vld [vmem:[#allocation5 + $0xf20] ss:$16 sps:$4 sm:$0xff]   ;;  %v9594_v53 = vld [vmem:[#allocation5 + $0xd04] ss:$16 sps:$4 sm:$0xff]  }
 0x10e   :  { %6631 = vmatpush1.bf16.msra.mxu0 %v9520_v54  ;;  %v11060_v54 = vshrl.u32 %v1126_v48, 7  ;;  %v9626_v48 = vld [vmem:[#allocation5 + $0x1060] ss:$16 sps:$4 sm:$0xff]  }
 0x10f   :  { %6672 = vmatpush1.bf16.msra.mxu1 %v9523_v55  ;;  %6632 = vmatprep.subr.bf16.mxu0 %v9528_v56  ;;  %v9597_v55 = vld [vmem:[#allocation5 + $0xf04] ss:$16 sps:$4 sm:$0xff]   ;;  %v9592_v56 = vld [vmem:[#allocation5 + $0xd00] ss:$16 sps:$4 sm:$0xff]  }
 0x110   :  { %6673 = vmatprep.subr.bf16.mxu1 %v9531_v57  ;;  %v9595_v57 = vld [vmem:[#allocation5 + $0xf00] ss:$16 sps:$4 sm:$0xff]  }
 0x112   :  { %6633 = vmatpush1.bf16.msra.mxu0 %v9526_v58  ;;  %v1124_v58 = vld [vmem:[#allocation7] sm:$0xf] }
 0x113   :  { %6674 = vmatpush1.bf16.msra.mxu1 %v9529_v59  ;;  %6634 = vmatprep.subr.bf16.mxu0 %v9534_v60  ;;  %v1128_v59 = vsub.s32 0, %v11060_v54  ;;  %v9604_v60 = vld [vmem:[#allocation5 + $0x10e4] ss:$16 sps:$4 sm:$0xff]  }
 0x114   :  { %6675 = vmatprep.subr.bf16.mxu1 %v9537_v61  ;;  %v9607_v61 = vld [vmem:[#allocation5 + $0x12e4] ss:$16 sps:$4 sm:$0xff]  }
 0x116   :  { %6635 = vmatpush1.bf16.msra.mxu0 %v9532_v62  ;;  %v9602_v62 = vld [vmem:[#allocation5 + $0x10e0] ss:$16 sps:$4 sm:$0xff]  }
 0x117   :  { %6676 = vmatpush1.bf16.msra.mxu1 %v9535_v63  ;;  %6636 = vmatprep.subr.bf16.mxu0 %v9540_v0  ;;  %v1132_v63 = vsub.s32 1, %v11060_v54  ;;  %v11066_v0 = vcombine.low %v11036_v35, %v11036_v35 }
 0x118   :  { %6677 = vmatprep.subr.bf16.mxu1 %v9543_v1  ;;  %v11070_v1 = vcombine.low %v11046_v40, %v11046_v40 }
 0x11a   :  { %6637 = vmatpush1.bf16.msra.mxu0 %v9538_v2  ;;  %v11072_v2 = vld [vmem:[#allocation2 + $0x40] sm:$0xff] }
 0x11b   :  { %6678 = vmatpush1.bf16.msra.mxu1 %v9541_v3  ;;  %6638 = vmatprep.subr.bf16.mxu0 %v9546_v4  ;;  %v11074_v3 = vld [vmem:[#allocation2 + $0x48] sm:$0xff]  ;;  %v1129_v4 = vrot.slane %v1124_v58, %v1128_v59  ;;  %v11078_v35 = vcombine.high %v11072_v2, %v11072_v2  ;;  %v9641_v59 = vld [vmem:[#allocation5 + $0x1220] ss:$16 sps:$4 sm:$0xff]  }
 0x11c   :  { %6679 = vmatprep.subr.bf16.mxu1 %v9549_v5  ;;  %v9605_v5 = vld [vmem:[#allocation5 + $0x12e0] ss:$16 sps:$4 sm:$0xff]   ;;  %v11082_v40 = vcombine.high %v11074_v3, %v11074_v3 }
 0x11e   :  { %6639 = vmatpush1.bf16.msra.mxu0 %v9544_v8  ;;  %v9610_v8 = vld [vmem:[#allocation5 + $0x10c4] ss:$16 sps:$4 sm:$0xff]  }
 0x11f   :  { %6680 = vmatpush1.bf16.msra.mxu1 %v9547_v9  ;;  %6640 = vmatprep.subr.bf16.mxu0 %v9552_v10  ;;  %v9613_v9 = vld [vmem:[#allocation5 + $0x12c4] ss:$16 sps:$4 sm:$0xff]   ;;  %v1133_v10 = vrot.slane %v1124_v58, %v1132_v63  ;;  %v9638_v58 = vld [vmem:[#allocation5 + $0x1020] ss:$16 sps:$4 sm:$0xff]  }
 0x120   :  { %6681 = vmatprep.subr.bf16.mxu1 %v9555_v11  ;;  %v9647_v63 = vld [vmem:[#allocation5 + $0x1200] ss:$16 sps:$4 sm:$0xff]  }
 0x122   :  { %6641 = vmatpush2.bf16.msra.mxu0 %v9550_v12 }
 0x123   :  { %6682 = vmatpush2.bf16.msra.mxu1 %v9553_v13  ;;  %6642 = vmatprep.subr.bf16.mxu0 %v9558_v14  ;;  %v9608_v13 = vld [vmem:[#allocation5 + $0x10c0] ss:$16 sps:$4 sm:$0xff]  }
 0x124   :  { %6683 = vmatprep.subr.bf16.mxu1 %v9561_v15  ;;  %v9611_v15 = vld [vmem:[#allocation5 + $0x12c0] ss:$16 sps:$4 sm:$0xff]  }
 0x126   :  { %6643 = vmatpush2.bf16.msra.mxu0 %v9556_v18 }
 0x127   :  { %6684 = vmatpush2.bf16.msra.mxu1 %v9559_v19  ;;  %6644 = vmatprep.subr.bf16.mxu0 %v9564_v20  ;;  %v9616_v20 = vld [vmem:[#allocation5 + $0x10a4] ss:$16 sps:$4 sm:$0xff]  }
 0x128   :  { %6685 = vmatprep.subr.bf16.mxu1 %v9567_v21  ;;  %v9619_v21 = vld [vmem:[#allocation5 + $0x12a4] ss:$16 sps:$4 sm:$0xff]  }
 0x12a   :  { %6645 = vmatpush2.bf16.msra.mxu0 %v9562_v26 }
 0x12b   :  { %6686 = vmatpush2.bf16.msra.mxu1 %v9565_v27  ;;  %6646 = vmatprep.subr.bf16.mxu0 %v9570_v28 }
 0x12c   :  { %6687 = vmatprep.subr.bf16.mxu1 %v9573_v29 }
 0x12e   :  { %6647 = vmatpush2.bf16.msra.mxu0 %v9568_v30  ;;  %v9614_v30 = vld [vmem:[#allocation5 + $0x10a0] ss:$16 sps:$4 sm:$0xff]  }
 0x12f   :  { %6688 = vmatpush2.bf16.msra.mxu1 %v9571_v31  ;;  %6648 = vmatprep.subr.bf16.mxu0 %v9576_v32  ;;  %v9617_v32 = vld [vmem:[#allocation5 + $0x12a0] ss:$16 sps:$4 sm:$0xff]  }
 0x130   :  { %6689 = vmatprep.subr.bf16.mxu1 %v9579_v33 }
 0x132   :  { %6649 = vmatpush2.bf16.msra.mxu0 %v9574_v34 }
 0x133   :  { %6690 = vmatpush2.bf16.msra.mxu1 %v9577_v41  ;;  %6650 = vmatprep.subr.bf16.mxu0 %v9582_v42  ;;  %v9622_v41 = vld [vmem:[#allocation5 + $0x1084] ss:$16 sps:$4 sm:$0xff]  }
 0x134   :  { %6691 = vmatprep.subr.bf16.mxu1 %v9585_v43  ;;  %v9625_v42 = vld [vmem:[#allocation5 + $0x1284] ss:$16 sps:$4 sm:$0xff]   ;;  %v9620_v43 = vld [vmem:[#allocation5 + $0x1080] ss:$16 sps:$4 sm:$0xff]  }
 0x136   :  { %6651 = vmatpush2.bf16.msra.mxu0 %v9580_v23  ;;  %v9623_v23 = vld [vmem:[#allocation5 + $0x1280] ss:$16 sps:$4 sm:$0xff]  }
 0x137   :  { %6692 = vmatpush2.bf16.msra.mxu1 %v9583_v45  ;;  %6652 = vmatprep.subr.bf16.mxu0 %v9588_v46  ;;  %v9628_v45 = vld [vmem:[#allocation5 + $0x1064] ss:$16 sps:$4 sm:$0xff]  }
 0x138   :  { %6693 = vmatprep.subr.bf16.mxu1 %v9591_v49  ;;  %v9631_v46 = vld [vmem:[#allocation5 + $0x1264] ss:$16 sps:$4 sm:$0xff]   ;;  %v9629_v49 = vld [vmem:[#allocation5 + $0x1260] ss:$16 sps:$4 sm:$0xff]  }
 0x13a   :  { %6653 = vmatpush2.bf16.msra.mxu0 %v9586_v50  ;;  %v9634_v50 = vld [vmem:[#allocation5 + $0x1044] ss:$16 sps:$4 sm:$0xff]  }
 0x13b   :  { %6694 = vmatpush2.bf16.msra.mxu1 %v9589_v52  ;;  %6654 = vmatprep.subr.bf16.mxu0 %v9594_v53  ;;  %v9637_v52 = vld [vmem:[#allocation5 + $0x1244] ss:$16 sps:$4 sm:$0xff]   ;;  %v9632_v53 = vld [vmem:[#allocation5 + $0x1040] ss:$16 sps:$4 sm:$0xff]  }
 0x13c   :  { %6695 = vmatprep.subr.bf16.mxu1 %v9597_v55  ;;  %v9635_v55 = vld [vmem:[#allocation5 + $0x1240] ss:$16 sps:$4 sm:$0xff]  }
 0x13e   :  { %6655 = vmatpush2.bf16.msra.mxu0 %v9592_v56  ;;  %v9640_v56 = vld [vmem:[#allocation5 + $0x1024] ss:$16 sps:$4 sm:$0xff]  }
 0x13f   :  { %6696 = vmatpush2.bf16.msra.mxu1 %v9595_v57  ;;  %6706 = vmatprep.subr.bf16.mxu0 %v9604_v60  ;;  %v9643_v57 = vld [vmem:[#allocation5 + $0x1224] ss:$16 sps:$4 sm:$0xff]  }
 0x140   :  { %6747 = vmatprep.subr.bf16.mxu1 %v9607_v61  ;;  %v9646_v60 = vld [vmem:[#allocation5 + $0x1004] ss:$16 sps:$4 sm:$0xff]  }
 0x141   :  { %v6412_v11 = vpop.f32.mrf.mxu0  ;;  %6657 = vmatmul.mubr.bf16.vlgmr.msra.gmra.mxu0 %v11066_v0  ;;  %v9649_v61 = vld [vmem:[#allocation5 + $0x1204] ss:$16 sps:$4 sm:$0xff]  }
 0x142   :  { %v6453_v12 = vpop.f32.mrf.mxu1  ;;  %6698 = vmatmul.mubr.bf16.vlgmr.msra.gmra.mxu1 %v11070_v1  ;;  %v6413_v14 = vadd.f32 %v6412_v11, %v1129_v4  ;;  %6707 = vmatpush1.bf16.msra.mxu0 %v9602_v62  ;;  %v9644_v62 = vld [vmem:[#allocation5 + $0x1000] ss:$16 sps:$4 sm:$0xff]   ;;  %v9652_v4 = vld [vmem:[#allocation5 + $0x11e4] ss:$16 sps:$4 sm:$0xff]  }
 0x143   :  { %6748 = vmatpush1.bf16.msra.mxu1 %v9605_v5  ;;  %v6414_v18 = vpop.f32.mrf.mxu0  ;;  %6708 = vmatprep.subr.bf16.mxu0 %v9610_v8  ;;  %v9655_v5 = vld [vmem:[#allocation5 + $0x13e4] ss:$16 sps:$4 sm:$0xff]   ;;  %v9650_v8 = vld [vmem:[#allocation5 + $0x11e0] ss:$16 sps:$4 sm:$0xff]  }
 0x144   :  { %v6455_v19 = vpop.f32.mrf.mxu1  ;;  %6749 = vmatprep.subr.bf16.mxu1 %v9613_v9  ;;  %v11086_v26 = vadd.f32 %v6453_v12, %v6413_v14  ;;  %v6415_v27 = vadd.f32 %v6414_v18, %v1133_v10  ;;  %6738 = vmatprep.mubr.bf16.mxu0 %v11078_v35  ;;  %v9653_v9 = vld [vmem:[#allocation5 + $0x13e0] ss:$16 sps:$4 sm:$0xff]   ;;  %v9658_v10 = vld [vmem:[#allocation5 + $0x11c4] ss:$16 sps:$4 sm:$0xff]  }
 0x145   :  { %6779 = vmatprep.mubr.bf16.mxu1 %v11082_v40  ;;  %v6416_v28 = vpop.f32.mrf.mxu0  ;;  %v9661_v11 = vld [vmem:[#allocation5 + $0x13c4] ss:$16 sps:$4 sm:$0xff]   ;;  %v9656_v12 = vld [vmem:[#allocation5 + $0x11c0] ss:$16 sps:$4 sm:$0xff]  }
 0x146   :  { %v6457_v29 = vpop.f32.mrf.mxu1  ;;  %v11090_v31 = vadd.f32 %v6455_v19, %v6415_v27  ;;  %6709 = vmatpush1.bf16.msra.mxu0 %v9608_v13  ;;  %v9659_v13 = vld [vmem:[#allocation5 + $0x13c0] ss:$16 sps:$4 sm:$0xff]   ;;  %v9664_v14 = vld [vmem:[#allocation5 + $0x11a4] ss:$16 sps:$4 sm:$0xff]  }
 0x147   :  { %6750 = vmatpush1.bf16.msra.mxu1 %v9611_v15  ;;  %v6417_v33 = vpop.f32.mrf.mxu0  ;;  %6710 = vmatprep.subr.bf16.mxu0 %v9616_v20  ;;  %v9667_v15 = vld [vmem:[#allocation5 + $0x13a4] ss:$16 sps:$4 sm:$0xff]   ;;  %v9662_v18 = vld [vmem:[#allocation5 + $0x11a0] ss:$16 sps:$4 sm:$0xff]  }
 0x148   :  { %v6458_v34 = vpop.f32.mrf.mxu1  ;;  %6751 = vmatprep.subr.bf16.mxu1 %v9619_v21  ;;  %v9665_v19 = vld [vmem:[#allocation5 + $0x13a0] ss:$16 sps:$4 sm:$0xff]   ;;  %v9670_v20 = vld [vmem:[#allocation5 + $0x1184] ss:$16 sps:$4 sm:$0xff]  }
 0x149   :  { %v9673_v21 = vld [vmem:[#allocation5 + $0x1384] ss:$16 sps:$4 sm:$0xff]   ;;  %v9668_v27 = vld [vmem:[#allocation5 + $0x1180] ss:$16 sps:$4 sm:$0xff]  }
 0x14a   :  { %6711 = vmatpush1.bf16.msra.mxu0 %v9614_v30  ;;  %v9671_v28 = vld [vmem:[#allocation5 + $0x1380] ss:$16 sps:$4 sm:$0xff]   ;;  %v9676_v29 = vld [vmem:[#allocation5 + $0x1164] ss:$16 sps:$4 sm:$0xff]  }
 0x14b   :  { %6752 = vmatpush1.bf16.msra.mxu1 %v9617_v32  ;;  %6712 = vmatprep.subr.bf16.mxu0 %v9622_v41  ;;  %v9679_v30 = vld [vmem:[#allocation5 + $0x1364] ss:$16 sps:$4 sm:$0xff]   ;;  %v9674_v32 = vld [vmem:[#allocation5 + $0x1160] ss:$16 sps:$4 sm:$0xff]  }
 0x14c   :  { %6753 = vmatprep.subr.bf16.mxu1 %v9625_v42  ;;  %v9677_v33 = vld [vmem:[#allocation5 + $0x1360] ss:$16 sps:$4 sm:$0xff]   ;;  %v9682_v34 = vld [vmem:[#allocation5 + $0x1144] ss:$16 sps:$4 sm:$0xff]  }
 0x14d   :  { %v9685_v41 = vld [vmem:[#allocation5 + $0x1344] ss:$16 sps:$4 sm:$0xff]   ;;  %v9680_v42 = vld [vmem:[#allocation5 + $0x1140] ss:$16 sps:$4 sm:$0xff]  }
 0x14e   :  { %6713 = vmatpush1.bf16.msra.mxu0 %v9620_v43  ;;  %v9683_v43 = vld [vmem:[#allocation5 + $0x1340] ss:$16 sps:$4 sm:$0xff]  }
 0x14f   :  { %6754 = vmatpush1.bf16.msra.mxu1 %v9623_v23  ;;  %6714 = vmatprep.subr.bf16.mxu0 %v9628_v45  ;;  %v9688_v23 = vld [vmem:[#allocation5 + $0x1124] ss:$16 sps:$4 sm:$0xff]  }
 0x150   :  { %6755 = vmatprep.subr.bf16.mxu1 %v9631_v46  ;;  %v9691_v45 = vld [vmem:[#allocation5 + $0x1324] ss:$16 sps:$4 sm:$0xff]   ;;  %v9686_v46 = vld [vmem:[#allocation5 + $0x1120] ss:$16 sps:$4 sm:$0xff]  }
 0x152   :  { %6715 = vmatpush1.bf16.msra.mxu0 %v9626_v48  ;;  %v9689_v48 = vld [vmem:[#allocation5 + $0x1320] ss:$16 sps:$4 sm:$0xff]  }
 0x153   :  { %6756 = vmatpush1.bf16.msra.mxu1 %v9629_v49  ;;  %6716 = vmatprep.subr.bf16.mxu0 %v9634_v50  ;;  %v9694_v49 = vld [vmem:[#allocation5 + $0x1104] ss:$16 sps:$4 sm:$0xff]  }
 0x154   :  { %6757 = vmatprep.subr.bf16.mxu1 %v9637_v52  ;;  %v9697_v50 = vld [vmem:[#allocation5 + $0x1304] ss:$16 sps:$4 sm:$0xff]   ;;  %v9692_v52 = vld [vmem:[#allocation5 + $0x1100] ss:$16 sps:$4 sm:$0xff]  }
 0x156   :  { %6717 = vmatpush1.bf16.msra.mxu0 %v9632_v53  ;;  %v9695_v53 = vld [vmem:[#allocation5 + $0x1300] ss:$16 sps:$4 sm:$0xff]  }
 0x157   :  { %6758 = vmatpush1.bf16.msra.mxu1 %v9635_v55  ;;  %6718 = vmatprep.subr.bf16.mxu0 %v9640_v56  ;;  %v9704_v55 = vld [vmem:[#allocation5 + $0x14e4] ss:$16 sps:$4 sm:$0xff]  }
 0x158   :  { %6759 = vmatprep.subr.bf16.mxu1 %v9643_v57  ;;  %v9707_v56 = vld [vmem:[#allocation5 + $0x16e4] ss:$16 sps:$4 sm:$0xff]   ;;  %v9702_v57 = vld [vmem:[#allocation5 + $0x14e0] ss:$16 sps:$4 sm:$0xff]  }
 0x15a   :  { %6719 = vmatpush1.bf16.msra.mxu0 %v9638_v58  ;;  %v9705_v58 = vld [vmem:[#allocation5 + $0x16e0] ss:$16 sps:$4 sm:$0xff]  }
 0x15b   :  { %6760 = vmatpush1.bf16.msra.mxu1 %v9641_v59  ;;  %6720 = vmatprep.subr.bf16.mxu0 %v9646_v60  ;;  %v11094_v59 = vcombine.low %v11072_v2, %v11072_v2  ;;  %v11098_v60 = vcombine.low %v11074_v3, %v11074_v3 }
 0x15c   :  { %6761 = vmatprep.subr.bf16.mxu1 %v9649_v61  ;;  %v11100_v61 = vld [vmem:[#allocation2 + $0x50] sm:$0xff] }
 0x15d   :  { %v11106_v2 = vcombine.high %v11100_v61, %v11100_v61 }
 0x15e   :  { %6721 = vmatpush1.bf16.msra.mxu0 %v9644_v62  ;;  %v11102_v62 = vld [vmem:[#allocation2 + $0x58] sm:$0xff] }
 0x15f   :  { %6762 = vmatpush1.bf16.msra.mxu1 %v9647_v63  ;;  %6722 = vmatprep.subr.bf16.mxu0 %v9652_v4  ;;  %v9710_v63 = vld [vmem:[#allocation5 + $0x14c4] ss:$16 sps:$4 sm:$0xff]   ;;  %v11110_v3 = vcombine.high %v11102_v62, %v11102_v62 }
 0x160   :  { %6763 = vmatprep.subr.bf16.mxu1 %v9655_v5  ;;  %v9713_v4 = vld [vmem:[#allocation5 + $0x16c4] ss:$16 sps:$4 sm:$0xff]   ;;  %v9708_v5 = vld [vmem:[#allocation5 + $0x14c0] ss:$16 sps:$4 sm:$0xff]  }
 0x162   :  { %6723 = vmatpush2.bf16.msra.mxu0 %v9650_v8  ;;  %v9711_v8 = vld [vmem:[#allocation5 + $0x16c0] ss:$16 sps:$4 sm:$0xff]  }
 0x163   :  { %6764 = vmatpush2.bf16.msra.mxu1 %v9653_v9  ;;  %6724 = vmatprep.subr.bf16.mxu0 %v9658_v10 }
 0x164   :  { %6765 = vmatprep.subr.bf16.mxu1 %v9661_v11 }
 0x166   :  { %6725 = vmatpush2.bf16.msra.mxu0 %v9656_v12 }
 0x167   :  { %6766 = vmatpush2.bf16.msra.mxu1 %v9659_v13  ;;  %6726 = vmatprep.subr.bf16.mxu0 %v9664_v14  ;;  %v9716_v14 = vld [vmem:[#allocation5 + $0x14a4] ss:$16 sps:$4 sm:$0xff]  }
 0x168   :  { %6767 = vmatprep.subr.bf16.mxu1 %v9667_v15  ;;  %v9719_v15 = vld [vmem:[#allocation5 + $0x16a4] ss:$16 sps:$4 sm:$0xff]  }
 0x16a   :  { %6727 = vmatpush2.bf16.msra.mxu0 %v9662_v18 }
 0x16b   :  { %6768 = vmatpush2.bf16.msra.mxu1 %v9665_v19  ;;  %6728 = vmatprep.subr.bf16.mxu0 %v9670_v20  ;;  %v9714_v20 = vld [vmem:[#allocation5 + $0x14a0] ss:$16 sps:$4 sm:$0xff]  }
 0x16c   :  { %6769 = vmatprep.subr.bf16.mxu1 %v9673_v21  ;;  %v9717_v21 = vld [vmem:[#allocation5 + $0x16a0] ss:$16 sps:$4 sm:$0xff]  }
 0x16e   :  { %6729 = vmatpush2.bf16.msra.mxu0 %v9668_v27 }
 0x16f   :  { %6770 = vmatpush2.bf16.msra.mxu1 %v9671_v28  ;;  %6730 = vmatprep.subr.bf16.mxu0 %v9676_v29 }
 0x170   :  { %6771 = vmatprep.subr.bf16.mxu1 %v9679_v30 }
 0x172   :  { %6731 = vmatpush2.bf16.msra.mxu0 %v9674_v32  ;;  %v9722_v32 = vld [vmem:[#allocation5 + $0x1484] ss:$16 sps:$4 sm:$0xff]  }
 0x173   :  { %6772 = vmatpush2.bf16.msra.mxu1 %v9677_v33  ;;  %6732 = vmatprep.subr.bf16.mxu0 %v9682_v34  ;;  %v9725_v33 = vld [vmem:[#allocation5 + $0x1684] ss:$16 sps:$4 sm:$0xff]   ;;  %v9723_v34 = vld [vmem:[#allocation5 + $0x1680] ss:$16 sps:$4 sm:$0xff]  }
 0x174   :  { %6773 = vmatprep.subr.bf16.mxu1 %v9685_v41  ;;  %v9728_v41 = vld [vmem:[#allocation5 + $0x1464] ss:$16 sps:$4 sm:$0xff]  }
 0x176   :  { %6733 = vmatpush2.bf16.msra.mxu0 %v9680_v42  ;;  %v9731_v42 = vld [vmem:[#allocation5 + $0x1664] ss:$16 sps:$4 sm:$0xff]  }
 0x177   :  { %6774 = vmatpush2.bf16.msra.mxu1 %v9683_v43  ;;  %6734 = vmatprep.subr.bf16.mxu0 %v9688_v23  ;;  %v9726_v43 = vld [vmem:[#allocation5 + $0x1460] ss:$16 sps:$4 sm:$0xff]  }
 0x178   :  { %6775 = vmatprep.subr.bf16.mxu1 %v9691_v45  ;;  %v9729_v23 = vld [vmem:[#allocation5 + $0x1660] ss:$16 sps:$4 sm:$0xff]   ;;  %v9734_v45 = vld [vmem:[#allocation5 + $0x1444] ss:$16 sps:$4 sm:$0xff]  }
 0x17a   :  { %6735 = vmatpush2.bf16.msra.mxu0 %v9686_v46  ;;  %v9737_v46 = vld [vmem:[#allocation5 + $0x1644] ss:$16 sps:$4 sm:$0xff]  }
 0x17b   :  { %6776 = vmatpush2.bf16.msra.mxu1 %v9689_v48  ;;  %6736 = vmatprep.subr.bf16.mxu0 %v9694_v49  ;;  %v9732_v48 = vld [vmem:[#allocation5 + $0x1440] ss:$16 sps:$4 sm:$0xff]  }
 0x17c   :  { %6777 = vmatprep.subr.bf16.mxu1 %v9697_v50  ;;  %v9735_v49 = vld [vmem:[#allocation5 + $0x1640] ss:$16 sps:$4 sm:$0xff]   ;;  %v9740_v50 = vld [vmem:[#allocation5 + $0x1424] ss:$16 sps:$4 sm:$0xff]  }
 0x17e   :  { %6737 = vmatpush2.bf16.msra.mxu0 %v9692_v52  ;;  %v9743_v52 = vld [vmem:[#allocation5 + $0x1624] ss:$16 sps:$4 sm:$0xff]  }
 0x17f   :  { %6778 = vmatpush2.bf16.msra.mxu1 %v9695_v53  ;;  %6788 = vmatprep.subr.bf16.mxu0 %v9704_v55  ;;  %v9738_v53 = vld [vmem:[#allocation5 + $0x1420] ss:$16 sps:$4 sm:$0xff]  }
 0x180   :  { %6829 = vmatprep.subr.bf16.mxu1 %v9707_v56  ;;  %v9741_v55 = vld [vmem:[#allocation5 + $0x1620] ss:$16 sps:$4 sm:$0xff]   ;;  %v9746_v56 = vld [vmem:[#allocation5 + $0x1404] ss:$16 sps:$4 sm:$0xff]  }
 0x181   :  { %v6494_v9 = vpop.f32.mrf.mxu0  ;;  %6739 = vmatmul.mubr.bf16.vlgmr.msra.gmra.mxu0 %v11094_v59 }
 0x182   :  { %v6535_v10 = vpop.f32.mrf.mxu1  ;;  %6780 = vmatmul.mubr.bf16.vlgmr.msra.gmra.mxu1 %v11098_v60  ;;  %v6495_v11 = vadd.f32 %v6494_v9, %v11086_v26  ;;  %6789 = vmatpush1.bf16.msra.mxu0 %v9702_v57  ;;  %v9749_v57 = vld [vmem:[#allocation5 + $0x1604] ss:$16 sps:$4 sm:$0xff]   ;;  %v9753_v9 = vld [vmem:[#allocation5 + $0x17e0] ss:$16 sps:$4 sm:$0xff]  }
 0x183   :  { %6830 = vmatpush1.bf16.msra.mxu1 %v9705_v58  ;;  %v6496_v12 = vpop.f32.mrf.mxu0  ;;  %6790 = vmatprep.subr.bf16.mxu0 %v9710_v63  ;;  %v9744_v58 = vld [vmem:[#allocation5 + $0x1400] ss:$16 sps:$4 sm:$0xff]  }
 0x184   :  { %v6537_v13 = vpop.f32.mrf.mxu1  ;;  %6831 = vmatprep.subr.bf16.mxu1 %v9713_v4  ;;  %v11115_v18 = vadd.f32 %v6535_v10, %v6495_v11  ;;  %v6497_v19 = vadd.f32 %v6496_v12, %v11090_v31  ;;  %6820 = vmatprep.mubr.bf16.mxu0 %v11106_v2  ;;  %v9720_v31 = vld [vmem:[#allocation5 + $0x1480] ss:$16 sps:$4 sm:$0xff]   ;;  %v9752_v4 = vld [vmem:[#allocation5 + $0x15e4] ss:$16 sps:$4 sm:$0xff]  }
 0x185   :  { %6861 = vmatprep.mubr.bf16.mxu1 %v11110_v3  ;;  %v6498_v27 = vpop.f32.mrf.mxu0  ;;  %v9747_v63 = vld [vmem:[#allocation5 + $0x1600] ss:$16 sps:$4 sm:$0xff]   ;;  %v9758_v10 = vld [vmem:[#allocation5 + $0x15c4] ss:$16 sps:$4 sm:$0xff]  }
 0x186   :  { %v6539_v26 = vpop.f32.mrf.mxu1  ;;  %v11120_v28 = vadd.f32 %v6537_v13, %v6497_v19  ;;  %6791 = vmatpush1.bf16.msra.mxu0 %v9708_v5  ;;  %v9755_v5 = vld [vmem:[#allocation5 + $0x17e4] ss:$16 sps:$4 sm:$0xff]   ;;  %v9756_v12 = vld [vmem:[#allocation5 + $0x15c0] ss:$16 sps:$4 sm:$0xff]  }
 0x187   :  { %6832 = vmatpush1.bf16.msra.mxu1 %v9711_v8  ;;  %v6499_v29 = vpop.f32.mrf.mxu0  ;;  %6792 = vmatprep.subr.bf16.mxu0 %v9716_v14  ;;  %v9750_v8 = vld [vmem:[#allocation5 + $0x15e0] ss:$16 sps:$4 sm:$0xff]   ;;  %v9761_v11 = vld [vmem:[#allocation5 + $0x17c4] ss:$16 sps:$4 sm:$0xff]  }
 0x188   :  { %v6540_v30 = vpop.f32.mrf.mxu1  ;;  %6833 = vmatprep.subr.bf16.mxu1 %v9719_v15  ;;  %v9759_v13 = vld [vmem:[#allocation5 + $0x17c0] ss:$16 sps:$4 sm:$0xff]   ;;  %v9764_v14 = vld [vmem:[#allocation5 + $0x15a4] ss:$16 sps:$4 sm:$0xff]  }
 0x189   :  { %v9767_v15 = vld [vmem:[#allocation5 + $0x17a4] ss:$16 sps:$4 sm:$0xff]   ;;  %v9762_v19 = vld [vmem:[#allocation5 + $0x15a0] ss:$16 sps:$4 sm:$0xff]  }
 0x18a   :  { %6793 = vmatpush1.bf16.msra.mxu0 %v9714_v20  ;;  %v9765_v20 = vld [vmem:[#allocation5 + $0x17a0] ss:$16 sps:$4 sm:$0xff]   ;;  %v9773_v27 = vld [vmem:[#allocation5 + $0x1784] ss:$16 sps:$4 sm:$0xff]  }
 0x18b   :  { %6834 = vmatpush1.bf16.msra.mxu1 %v9717_v21  ;;  %6794 = vmatprep.subr.bf16.mxu0 %v9722_v32  ;;  %v9770_v21 = vld [vmem:[#allocation5 + $0x1584] ss:$16 sps:$4 sm:$0xff]   ;;  %v9768_v26 = vld [vmem:[#allocation5 + $0x1580] ss:$16 sps:$4 sm:$0xff]  }
 0x18c   :  { %6835 = vmatprep.subr.bf16.mxu1 %v9725_v33  ;;  %v9771_v29 = vld [vmem:[#allocation5 + $0x1780] ss:$16 sps:$4 sm:$0xff]   ;;  %v9776_v30 = vld [vmem:[#allocation5 + $0x1564] ss:$16 sps:$4 sm:$0xff]  }
 0x18d   :  { %v9779_v32 = vld [vmem:[#allocation5 + $0x1764] ss:$16 sps:$4 sm:$0xff]   ;;  %v9774_v33 = vld [vmem:[#allocation5 + $0x1560] ss:$16 sps:$4 sm:$0xff]  }
 0x18e   :  { %6795 = vmatpush1.bf16.msra.mxu0 %v9720_v31  ;;  %v9777_v31 = vld [vmem:[#allocation5 + $0x1760] ss:$16 sps:$4 sm:$0xff]  }
 0x18f   :  { %6836 = vmatpush1.bf16.msra.mxu1 %v9723_v34  ;;  %6796 = vmatprep.subr.bf16.mxu0 %v9728_v41  ;;  %v9782_v34 = vld [vmem:[#allocation5 + $0x1544] ss:$16 sps:$4 sm:$0xff]  }
 0x190   :  { %6837 = vmatprep.subr.bf16.mxu1 %v9731_v42  ;;  %v9785_v41 = vld [vmem:[#allocation5 + $0x1744] ss:$16 sps:$4 sm:$0xff]   ;;  %v9780_v42 = vld [vmem:[#allocation5 + $0x1540] ss:$16 sps:$4 sm:$0xff]  }
 0x192   :  { %6797 = vmatpush1.bf16.msra.mxu0 %v9726_v43  ;;  %v9783_v43 = vld [vmem:[#allocation5 + $0x1740] ss:$16 sps:$4 sm:$0xff]  }
 0x193   :  { %6838 = vmatpush1.bf16.msra.mxu1 %v9729_v23  ;;  %6798 = vmatprep.subr.bf16.mxu0 %v9734_v45  ;;  %v9788_v23 = vld [vmem:[#allocation5 + $0x1524] ss:$16 sps:$4 sm:$0xff]  }
 0x194   :  { %6839 = vmatprep.subr.bf16.mxu1 %v9737_v46  ;;  %v9791_v45 = vld [vmem:[#allocation5 + $0x1724] ss:$16 sps:$4 sm:$0xff]   ;;  %v9786_v46 = vld [vmem:[#allocation5 + $0x1520] ss:$16 sps:$4 sm:$0xff]  }
 0x196   :  { %6799 = vmatpush1.bf16.msra.mxu0 %v9732_v48  ;;  %v9789_v48 = vld [vmem:[#allocation5 + $0x1720] ss:$16 sps:$4 sm:$0xff]  }
 0x197   :  { %6840 = vmatpush1.bf16.msra.mxu1 %v9735_v49  ;;  %6800 = vmatprep.subr.bf16.mxu0 %v9740_v50  ;;  %v9794_v49 = vld [vmem:[#allocation5 + $0x1504] ss:$16 sps:$4 sm:$0xff]  }
 0x198   :  { %6841 = vmatprep.subr.bf16.mxu1 %v9743_v52  ;;  %v9797_v50 = vld [vmem:[#allocation5 + $0x1704] ss:$16 sps:$4 sm:$0xff]   ;;  %v9792_v52 = vld [vmem:[#allocation5 + $0x1500] ss:$16 sps:$4 sm:$0xff]  }
 0x19a   :  { %6801 = vmatpush1.bf16.msra.mxu0 %v9738_v53  ;;  %v9795_v53 = vld [vmem:[#allocation5 + $0x1700] ss:$16 sps:$4 sm:$0xff]  }
 0x19b   :  { %6842 = vmatpush1.bf16.msra.mxu1 %v9741_v55  ;;  %6802 = vmatprep.subr.bf16.mxu0 %v9746_v56  ;;  %v9804_v55 = vld [vmem:[#allocation5 + $0x18e4] ss:$16 sps:$4 sm:$0xff]  }
 0x19c   :  { %6843 = vmatprep.subr.bf16.mxu1 %v9749_v57  ;;  %v9807_v56 = vld [vmem:[#allocation5 + $0x1ae4] ss:$16 sps:$4 sm:$0xff]   ;;  %v9802_v57 = vld [vmem:[#allocation5 + $0x18e0] ss:$16 sps:$4 sm:$0xff]  }
 0x19e   :  { %6803 = vmatpush1.bf16.msra.mxu0 %v9744_v58  ;;  %v9805_v58 = vld [vmem:[#allocation5 + $0x1ae0] ss:$16 sps:$4 sm:$0xff]  }
 0x19f   :  { %6844 = vmatpush1.bf16.msra.mxu1 %v9747_v63  ;;  %6804 = vmatprep.subr.bf16.mxu0 %v9752_v4  ;;  %v11124_v63 = vcombine.low %v11100_v61, %v11100_v61  ;;  %v11128_v4 = vcombine.low %v11102_v62, %v11102_v62 }
 0x1a0   :  { %6845 = vmatprep.subr.bf16.mxu1 %v9755_v5  ;;  %v11130_v5 = vld [vmem:[#allocation2 + $0x60] sm:$0xff] }
 0x1a1   :  { %v11136_v61 = vcombine.high %v11130_v5, %v11130_v5 }
 0x1a2   :  { %6805 = vmatpush2.bf16.msra.mxu0 %v9750_v8  ;;  %v11132_v8 = vld [vmem:[#allocation2 + $0x68] sm:$0xff] }
 0x1a3   :  { %6846 = vmatpush2.bf16.msra.mxu1 %v9753_v9  ;;  %6806 = vmatprep.subr.bf16.mxu0 %v9758_v10  ;;  %v9810_v9 = vld [vmem:[#allocation5 + $0x18c4] ss:$16 sps:$4 sm:$0xff]   ;;  %v11140_v62 = vcombine.high %v11132_v8, %v11132_v8 }
 0x1a4   :  { %6847 = vmatprep.subr.bf16.mxu1 %v9761_v11  ;;  %v9813_v10 = vld [vmem:[#allocation5 + $0x1ac4] ss:$16 sps:$4 sm:$0xff]   ;;  %v9808_v11 = vld [vmem:[#allocation5 + $0x18c0] ss:$16 sps:$4 sm:$0xff]  }
 0x1a6   :  { %6807 = vmatpush2.bf16.msra.mxu0 %v9756_v12  ;;  %v9811_v12 = vld [vmem:[#allocation5 + $0x1ac0] ss:$16 sps:$4 sm:$0xff]  }
 0x1a7   :  { %6848 = vmatpush2.bf16.msra.mxu1 %v9759_v13  ;;  %6808 = vmatprep.subr.bf16.mxu0 %v9764_v14 }
 0x1a8   :  { %6849 = vmatprep.subr.bf16.mxu1 %v9767_v15 }
 0x1aa   :  { %6809 = vmatpush2.bf16.msra.mxu0 %v9762_v19 }
 0x1ab   :  { %6850 = vmatpush2.bf16.msra.mxu1 %v9765_v20  ;;  %6810 = vmatprep.subr.bf16.mxu0 %v9770_v21  ;;  %v9816_v21 = vld [vmem:[#allocation5 + $0x18a4] ss:$16 sps:$4 sm:$0xff]  }
 0x1ac   :  { %6851 = vmatprep.subr.bf16.mxu1 %v9773_v27  ;;  %v9819_v27 = vld [vmem:[#allocation5 + $0x1aa4] ss:$16 sps:$4 sm:$0xff]  }
 0x1ae   :  { %6811 = vmatpush2.bf16.msra.mxu0 %v9768_v26 }
 0x1af   :  { %6852 = vmatpush2.bf16.msra.mxu1 %v9771_v29  ;;  %6812 = vmatprep.subr.bf16.mxu0 %v9776_v30  ;;  %v9814_v30 = vld [vmem:[#allocation5 + $0x18a0] ss:$16 sps:$4 sm:$0xff]  }
 0x1b0   :  { %6853 = vmatprep.subr.bf16.mxu1 %v9779_v32  ;;  %v9817_v32 = vld [vmem:[#allocation5 + $0x1aa0] ss:$16 sps:$4 sm:$0xff]  }
 0x1b2   :  { %6813 = vmatpush2.bf16.msra.mxu0 %v9774_v33 }
 0x1b3   :  { %6854 = vmatpush2.bf16.msra.mxu1 %v9777_v31  ;;  %6814 = vmatprep.subr.bf16.mxu0 %v9782_v34 }
 0x1b4   :  { %6855 = vmatprep.subr.bf16.mxu1 %v9785_v41 }
 0x1b6   :  { %6815 = vmatpush2.bf16.msra.mxu0 %v9780_v42  ;;  %v9822_v42 = vld [vmem:[#allocation5 + $0x1884] ss:$16 sps:$4 sm:$0xff]  }
 0x1b7   :  { %6856 = vmatpush2.bf16.msra.mxu1 %v9783_v43  ;;  %6816 = vmatprep.subr.bf16.mxu0 %v9788_v23  ;;  %v9825_v43 = vld [vmem:[#allocation5 + $0x1a84] ss:$16 sps:$4 sm:$0xff]   ;;  %v9823_v23 = vld [vmem:[#allocation5 + $0x1a80] ss:$16 sps:$4 sm:$0xff]  }
 0x1b8   :  { %6857 = vmatprep.subr.bf16.mxu1 %v9791_v45  ;;  %v9828_v45 = vld [vmem:[#allocation5 + $0x1864] ss:$16 sps:$4 sm:$0xff]  }
 0x1ba   :  { %6817 = vmatpush2.bf16.msra.mxu0 %v9786_v46  ;;  %v9831_v46 = vld [vmem:[#allocation5 + $0x1a64] ss:$16 sps:$4 sm:$0xff]  }
 0x1bb   :  { %6858 = vmatpush2.bf16.msra.mxu1 %v9789_v48  ;;  %6818 = vmatprep.subr.bf16.mxu0 %v9794_v49  ;;  %v9826_v48 = vld [vmem:[#allocation5 + $0x1860] ss:$16 sps:$4 sm:$0xff]  }
 0x1bc   :  { %6859 = vmatprep.subr.bf16.mxu1 %v9797_v50  ;;  %v9829_v49 = vld [vmem:[#allocation5 + $0x1a60] ss:$16 sps:$4 sm:$0xff]   ;;  %v9834_v50 = vld [vmem:[#allocation5 + $0x1844] ss:$16 sps:$4 sm:$0xff]  }
 0x1be   :  { %6819 = vmatpush2.bf16.msra.mxu0 %v9792_v52  ;;  %v9837_v52 = vld [vmem:[#allocation5 + $0x1a44] ss:$16 sps:$4 sm:$0xff]  }
 0x1bf   :  { %6860 = vmatpush2.bf16.msra.mxu1 %v9795_v53  ;;  %6870 = vmatprep.subr.bf16.mxu0 %v9804_v55  ;;  %v9832_v53 = vld [vmem:[#allocation5 + $0x1840] ss:$16 sps:$4 sm:$0xff]  }
 0x1c0   :  { %6911 = vmatprep.subr.bf16.mxu1 %v9807_v56  ;;  %v9835_v55 = vld [vmem:[#allocation5 + $0x1a40] ss:$16 sps:$4 sm:$0xff]   ;;  %v9840_v56 = vld [vmem:[#allocation5 + $0x1824] ss:$16 sps:$4 sm:$0xff]  }
 0x1c1   :  { %v6576_v13 = vpop.f32.mrf.mxu0  ;;  %6821 = vmatmul.mubr.bf16.vlgmr.msra.gmra.mxu0 %v11124_v63 }
 0x1c2   :  { %v6617_v14 = vpop.f32.mrf.mxu1  ;;  %6862 = vmatmul.mubr.bf16.vlgmr.msra.gmra.mxu1 %v11128_v4  ;;  %v6577_v15 = vadd.f32 %v6576_v13, %v11115_v18  ;;  %6871 = vmatpush1.bf16.msra.mxu0 %v9802_v57  ;;  %v9843_v57 = vld [vmem:[#allocation5 + $0x1a24] ss:$16 sps:$4 sm:$0xff]   ;;  %v9847_v13 = vld [vmem:[#allocation5 + $0x1a00] ss:$16 sps:$4 sm:$0xff]  }
 0x1c3   :  { %6912 = vmatpush1.bf16.msra.mxu1 %v9805_v58  ;;  %v6578_v19 = vpop.f32.mrf.mxu0  ;;  %6872 = vmatprep.subr.bf16.mxu0 %v9810_v9  ;;  %v9838_v58 = vld [vmem:[#allocation5 + $0x1820] ss:$16 sps:$4 sm:$0xff]  }
 0x1c4   :  { %v6619_v20 = vpop.f32.mrf.mxu1  ;;  %6913 = vmatprep.subr.bf16.mxu1 %v9813_v10  ;;  %v11145_v26 = vadd.f32 %v6617_v14, %v6577_v15  ;;  %v6579_v29 = vadd.f32 %v6578_v19, %v11120_v28  ;;  %6902 = vmatprep.mubr.bf16.mxu0 %v11136_v61  ;;  %v9820_v28 = vld [vmem:[#allocation5 + $0x1880] ss:$16 sps:$4 sm:$0xff]   ;;  %v9846_v10 = vld [vmem:[#allocation5 + $0x1804] ss:$16 sps:$4 sm:$0xff]  }
 0x1c5   :  { %6943 = vmatprep.mubr.bf16.mxu1 %v11140_v62  ;;  %v6580_v33 = vpop.f32.mrf.mxu0  ;;  %v9841_v9 = vld [vmem:[#allocation5 + $0x1a20] ss:$16 sps:$4 sm:$0xff]   ;;  %v9852_v14 = vld [vmem:[#allocation5 + $0x19e4] ss:$16 sps:$4 sm:$0xff]  }
 0x1c6   :  { %v6621_v18 = vpop.f32.mrf.mxu1  ;;  %v11150_v31 = vadd.f32 %v6619_v20, %v6579_v29  ;;  %6873 = vmatpush1.bf16.msra.mxu0 %v9808_v11  ;;  %v9849_v11 = vld [vmem:[#allocation5 + $0x1a04] ss:$16 sps:$4 sm:$0xff]   ;;  %v9850_v19 = vld [vmem:[#allocation5 + $0x19e0] ss:$16 sps:$4 sm:$0xff]  }
 0x1c7   :  { %6914 = vmatpush1.bf16.msra.mxu1 %v9811_v12  ;;  %v6581_v34 = vpop.f32.mrf.mxu0  ;;  %6874 = vmatprep.subr.bf16.mxu0 %v9816_v21  ;;  %v9844_v12 = vld [vmem:[#allocation5 + $0x1800] ss:$16 sps:$4 sm:$0xff]   ;;  %v9855_v15 = vld [vmem:[#allocation5 + $0x1be4] ss:$16 sps:$4 sm:$0xff]  }
 0x1c8   :  { %v6622_v41 = vpop.f32.mrf.mxu1  ;;  %6915 = vmatprep.subr.bf16.mxu1 %v9819_v27  ;;  %v9853_v20 = vld [vmem:[#allocation5 + $0x1be0] ss:$16 sps:$4 sm:$0xff]   ;;  %v9858_v21 = vld [vmem:[#allocation5 + $0x19c4] ss:$16 sps:$4 sm:$0xff]  }
 0x1c9   :  { %v9861_v27 = vld [vmem:[#allocation5 + $0x1bc4] ss:$16 sps:$4 sm:$0xff]   ;;  %v9856_v29 = vld [vmem:[#allocation5 + $0x19c0] ss:$16 sps:$4 sm:$0xff]  }
 0x1ca   :  { %6875 = vmatpush1.bf16.msra.mxu0 %v9814_v30  ;;  %v9859_v30 = vld [vmem:[#allocation5 + $0x1bc0] ss:$16 sps:$4 sm:$0xff]   ;;  %v9867_v33 = vld [vmem:[#allocation5 + $0x1ba4] ss:$16 sps:$4 sm:$0xff]  }
 0x1cb   :  { %6916 = vmatpush1.bf16.msra.mxu1 %v9817_v32  ;;  %6876 = vmatprep.subr.bf16.mxu0 %v9822_v42  ;;  %v9864_v32 = vld [vmem:[#allocation5 + $0x19a4] ss:$16 sps:$4 sm:$0xff]   ;;  %v9862_v18 = vld [vmem:[#allocation5 + $0x19a0] ss:$16 sps:$4 sm:$0xff]  }
 0x1cc   :  { %6917 = vmatprep.subr.bf16.mxu1 %v9825_v43  ;;  %v9865_v34 = vld [vmem:[#allocation5 + $0x1ba0] ss:$16 sps:$4 sm:$0xff]   ;;  %v9870_v41 = vld [vmem:[#allocation5 + $0x1984] ss:$16 sps:$4 sm:$0xff]  }
 0x1cd   :  { %v9873_v42 = vld [vmem:[#allocation5 + $0x1b84] ss:$16 sps:$4 sm:$0xff]   ;;  %v9868_v43 = vld [vmem:[#allocation5 + $0x1980] ss:$16 sps:$4 sm:$0xff]  }
 0x1ce   :  { %6877 = vmatpush1.bf16.msra.mxu0 %v9820_v28  ;;  %v9871_v28 = vld [vmem:[#allocation5 + $0x1b80] ss:$16 sps:$4 sm:$0xff]  }
 0x1cf   :  { %6918 = vmatpush1.bf16.msra.mxu1 %v9823_v23  ;;  %6878 = vmatprep.subr.bf16.mxu0 %v9828_v45  ;;  %v9876_v23 = vld [vmem:[#allocation5 + $0x1964] ss:$16 sps:$4 sm:$0xff]  }
 0x1d0   :  { %6919 = vmatprep.subr.bf16.mxu1 %v9831_v46  ;;  %v9879_v45 = vld [vmem:[#allocation5 + $0x1b64] ss:$16 sps:$4 sm:$0xff]   ;;  %v9874_v46 = vld [vmem:[#allocation5 + $0x1960] ss:$16 sps:$4 sm:$0xff]  }
 0x1d2   :  { %6879 = vmatpush1.bf16.msra.mxu0 %v9826_v48  ;;  %v9877_v48 = vld [vmem:[#allocation5 + $0x1b60] ss:$16 sps:$4 sm:$0xff]  }
 0x1d3   :  { %6920 = vmatpush1.bf16.msra.mxu1 %v9829_v49  ;;  %6880 = vmatprep.subr.bf16.mxu0 %v9834_v50  ;;  %v9882_v49 = vld [vmem:[#allocation5 + $0x1944] ss:$16 sps:$4 sm:$0xff]  }
 0x1d4   :  { %6921 = vmatprep.subr.bf16.mxu1 %v9837_v52  ;;  %v9885_v50 = vld [vmem:[#allocation5 + $0x1b44] ss:$16 sps:$4 sm:$0xff]   ;;  %v9880_v52 = vld [vmem:[#allocation5 + $0x1940] ss:$16 sps:$4 sm:$0xff]  }
 0x1d6   :  { %6881 = vmatpush1.bf16.msra.mxu0 %v9832_v53  ;;  %v9883_v53 = vld [vmem:[#allocation5 + $0x1b40] ss:$16 sps:$4 sm:$0xff]  }
 0x1d7   :  { %6922 = vmatpush1.bf16.msra.mxu1 %v9835_v55  ;;  %6882 = vmatprep.subr.bf16.mxu0 %v9840_v56  ;;  %v9888_v55 = vld [vmem:[#allocation5 + $0x1924] ss:$16 sps:$4 sm:$0xff]  }
 0x1d8   :  { %6923 = vmatprep.subr.bf16.mxu1 %v9843_v57  ;;  %v9891_v56 = vld [vmem:[#allocation5 + $0x1b24] ss:$16 sps:$4 sm:$0xff]   ;;  %v9886_v57 = vld [vmem:[#allocation5 + $0x1920] ss:$16 sps:$4 sm:$0xff]  }
 0x1da   :  { %6883 = vmatpush1.bf16.msra.mxu0 %v9838_v58  ;;  %v9889_v58 = vld [vmem:[#allocation5 + $0x1b20] ss:$16 sps:$4 sm:$0xff]  }
 0x1db   :  { %6924 = vmatpush1.bf16.msra.mxu1 %v9841_v9  ;;  %6884 = vmatprep.subr.bf16.mxu0 %v9846_v10  ;;  %v9894_v9 = vld [vmem:[#allocation5 + $0x1904] ss:$16 sps:$4 sm:$0xff]  }
 0x1dc   :  { %6925 = vmatprep.subr.bf16.mxu1 %v9849_v11  ;;  %v9897_v10 = vld [vmem:[#allocation5 + $0x1b04] ss:$16 sps:$4 sm:$0xff]   ;;  %v9892_v11 = vld [vmem:[#allocation5 + $0x1900] ss:$16 sps:$4 sm:$0xff]  }
 0x1de   :  { %6885 = vmatpush1.bf16.msra.mxu0 %v9844_v12  ;;  %v9895_v12 = vld [vmem:[#allocation5 + $0x1b00] ss:$16 sps:$4 sm:$0xff]  }
 0x1df   :  { %6926 = vmatpush1.bf16.msra.mxu1 %v9847_v13  ;;  %6886 = vmatprep.subr.bf16.mxu0 %v9852_v14  ;;  %v9904_v13 = vld [vmem:[#allocation5 + $0x1ce4] ss:$16 sps:$4 sm:$0xff]  }
 0x1e0   :  { %6927 = vmatprep.subr.bf16.mxu1 %v9855_v15  ;;  %v9907_v14 = vld [vmem:[#allocation5 + $0x1ee4] ss:$16 sps:$4 sm:$0xff]  }
 0x1e1   :  { %v11152_v15 = vld [vmem:[#allocation2 + $0x70] sm:$0xff] }
 0x1e2   :  { %6887 = vmatpush2.bf16.msra.mxu0 %v9850_v19  ;;  %v11154_v19 = vld [vmem:[#allocation2 + $0x78] sm:$0xff] }
 0x1e3   :  { %6928 = vmatpush2.bf16.msra.mxu1 %v9853_v20  ;;  %6888 = vmatprep.subr.bf16.mxu0 %v9858_v21  ;;  %v9902_v20 = vld [vmem:[#allocation5 + $0x1ce0] ss:$16 sps:$4 sm:$0xff]  }
 0x1e4   :  { %6929 = vmatprep.subr.bf16.mxu1 %v9861_v27  ;;  %v9905_v21 = vld [vmem:[#allocation5 + $0x1ee0] ss:$16 sps:$4 sm:$0xff]   ;;  %v11158_v27 = vcombine.low %v11130_v5, %v11130_v5  ;;  %v11170_v5 = vcombine.high %v11154_v19, %v11154_v19 }
 0x1e6   :  { %6889 = vmatpush2.bf16.msra.mxu0 %v9856_v29  ;;  %v11162_v29 = vcombine.low %v11132_v8, %v11132_v8 }
 0x1e7   :  { %6930 = vmatpush2.bf16.msra.mxu1 %v9859_v30  ;;  %6890 = vmatprep.subr.bf16.mxu0 %v9864_v32  ;;  %v9910_v30 = vld [vmem:[#allocation5 + $0x1cc4] ss:$16 sps:$4 sm:$0xff]  }
 0x1e8   :  { %6931 = vmatprep.subr.bf16.mxu1 %v9867_v33  ;;  %v9913_v32 = vld [vmem:[#allocation5 + $0x1ec4] ss:$16 sps:$4 sm:$0xff]   ;;  %v9908_v33 = vld [vmem:[#allocation5 + $0x1cc0] ss:$16 sps:$4 sm:$0xff]  }
 0x1ea   :  { %6891 = vmatpush2.bf16.msra.mxu0 %v9862_v18  ;;  %v9911_v18 = vld [vmem:[#allocation5 + $0x1ec0] ss:$16 sps:$4 sm:$0xff]  }
 0x1eb   :  { %6932 = vmatpush2.bf16.msra.mxu1 %v9865_v34  ;;  %6892 = vmatprep.subr.bf16.mxu0 %v9870_v41  ;;  %v11166_v34 = vcombine.high %v11152_v15, %v11152_v15 }
 0x1ec   :  { %6933 = vmatprep.subr.bf16.mxu1 %v9873_v42 }
 0x1ee   :  { %6893 = vmatpush2.bf16.msra.mxu0 %v9868_v43 }
 0x1ef   :  { %6934 = vmatpush2.bf16.msra.mxu1 %v9871_v28  ;;  %6894 = vmatprep.subr.bf16.mxu0 %v9876_v23  ;;  %v9916_v23 = vld [vmem:[#allocation5 + $0x1ca4] ss:$16 sps:$4 sm:$0xff]  }
 0x1f0   :  { %6935 = vmatprep.subr.bf16.mxu1 %v9879_v45  ;;  %v9919_v45 = vld [vmem:[#allocation5 + $0x1ea4] ss:$16 sps:$4 sm:$0xff]  }
 0x1f2   :  { %6895 = vmatpush2.bf16.msra.mxu0 %v9874_v46 }
 0x1f3   :  { %6936 = vmatpush2.bf16.msra.mxu1 %v9877_v48  ;;  %6896 = vmatprep.subr.bf16.mxu0 %v9882_v49  ;;  %v9914_v49 = vld [vmem:[#allocation5 + $0x1ca0] ss:$16 sps:$4 sm:$0xff]  }
 0x1f4   :  { %6937 = vmatprep.subr.bf16.mxu1 %v9885_v50  ;;  %v9917_v50 = vld [vmem:[#allocation5 + $0x1ea0] ss:$16 sps:$4 sm:$0xff]  }
 0x1f6   :  { %6897 = vmatpush2.bf16.msra.mxu0 %v9880_v52 }
 0x1f7   :  { %6938 = vmatpush2.bf16.msra.mxu1 %v9883_v53  ;;  %6898 = vmatprep.subr.bf16.mxu0 %v9888_v55 }
 0x1f8   :  { %6939 = vmatprep.subr.bf16.mxu1 %v9891_v56 }
 0x1fa   :  { %6899 = vmatpush2.bf16.msra.mxu0 %v9886_v57  ;;  %v9922_v57 = vld [vmem:[#allocation5 + $0x1c84] ss:$16 sps:$4 sm:$0xff]  }
 0x1fb   :  { %6940 = vmatpush2.bf16.msra.mxu1 %v9889_v58  ;;  %6900 = vmatprep.subr.bf16.mxu0 %v9894_v9  ;;  %v9925_v58 = vld [vmem:[#allocation5 + $0x1e84] ss:$16 sps:$4 sm:$0xff]   ;;  %v9923_v9 = vld [vmem:[#allocation5 + $0x1e80] ss:$16 sps:$4 sm:$0xff]  }
 0x1fc   :  { %6941 = vmatprep.subr.bf16.mxu1 %v9897_v10  ;;  %v9928_v10 = vld [vmem:[#allocation5 + $0x1c64] ss:$16 sps:$4 sm:$0xff]  }
 0x1fe   :  { %6901 = vmatpush2.bf16.msra.mxu0 %v9892_v11  ;;  %v9931_v11 = vld [vmem:[#allocation5 + $0x1e64] ss:$16 sps:$4 sm:$0xff]  }
 0x1ff   :  { %6942 = vmatpush2.bf16.msra.mxu1 %v9895_v12  ;;  %6952 = vmatprep.subr.bf16.mxu0 %v9904_v13  ;;  %v9926_v12 = vld [vmem:[#allocation5 + $0x1c60] ss:$16 sps:$4 sm:$0xff]  }
 0x200   :  { %6993 = vmatprep.subr.bf16.mxu1 %v9907_v14  ;;  %v9929_v13 = vld [vmem:[#allocation5 + $0x1e60] ss:$16 sps:$4 sm:$0xff]   ;;  %v9934_v14 = vld [vmem:[#allocation5 + $0x1c44] ss:$16 sps:$4 sm:$0xff]  }
 0x201   :  { %v6658_v41 = vpop.f32.mrf.mxu0  ;;  %6903 = vmatmul.mubr.bf16.vlgmr.msra.gmra.mxu0 %v11158_v27 }
 0x202   :  { %v6699_v42 = vpop.f32.mrf.mxu1  ;;  %6944 = vmatmul.mubr.bf16.vlgmr.msra.gmra.mxu1 %v11162_v29  ;;  %v6659_v8 = vadd.f32 %v6658_v41, %v11145_v26  ;;  %6953 = vmatpush1.bf16.msra.mxu0 %v9902_v20  ;;  %v9937_v20 = vld [vmem:[#allocation5 + $0x1e44] ss:$16 sps:$4 sm:$0xff]   ;;  %v9941_v41 = vld [vmem:[#allocation5 + $0x1e20] ss:$16 sps:$4 sm:$0xff]  }
 0x203   :  { %6994 = vmatpush1.bf16.msra.mxu1 %v9905_v21  ;;  %v6660_v43 = vpop.f32.mrf.mxu0  ;;  %6954 = vmatprep.subr.bf16.mxu0 %v9910_v30  ;;  %v9932_v21 = vld [vmem:[#allocation5 + $0x1c40] ss:$16 sps:$4 sm:$0xff]  }
 0x204   :  { %v6701_v28 = vpop.f32.mrf.mxu1  ;;  %6995 = vmatprep.subr.bf16.mxu1 %v9913_v32  ;;  %v11175_v46 = vadd.f32 %v6699_v42, %v6659_v8  ;;  %v6661_v48 = vadd.f32 %v6660_v43, %v11150_v31  ;;  %6984 = vmatprep.mubr.bf16.mxu0 %v11166_v34  ;;  %v9920_v31 = vld [vmem:[#allocation5 + $0x1c80] ss:$16 sps:$4 sm:$0xff]   ;;  %v9940_v32 = vld [vmem:[#allocation5 + $0x1c24] ss:$16 sps:$4 sm:$0xff]  }
 0x205   :  { %7025 = vmatprep.mubr.bf16.mxu1 %v11170_v5  ;;  %v6662_v52 = vpop.f32.mrf.mxu0  ;;  %v9935_v30 = vld [vmem:[#allocation5 + $0x1e40] ss:$16 sps:$4 sm:$0xff]   ;;  %v9946_v42 = vld [vmem:[#allocation5 + $0x1c04] ss:$16 sps:$4 sm:$0xff]  }
 0x206   :  { %v6703_v26 = vpop.f32.mrf.mxu1  ;;  %v11180_v53 = vadd.f32 %v6701_v28, %v6661_v48  ;;  %6955 = vmatpush1.bf16.msra.mxu0 %v9908_v33  ;;  %v9943_v33 = vld [vmem:[#allocation5 + $0x1e24] ss:$16 sps:$4 sm:$0xff]   ;;  %v9944_v43 = vld [vmem:[#allocation5 + $0x1c00] ss:$16 sps:$4 sm:$0xff]  }
 0x207   :  { %6996 = vmatpush1.bf16.msra.mxu1 %v9911_v18  ;;  %v6663_v55 = vpop.f32.mrf.mxu0  ;;  %6956 = vmatprep.subr.bf16.mxu0 %v9916_v23  ;;  %v9938_v18 = vld [vmem:[#allocation5 + $0x1c20] ss:$16 sps:$4 sm:$0xff]   ;;  %v9949_v8 = vld [vmem:[#allocation5 + $0x1e04] ss:$16 sps:$4 sm:$0xff]  }
 0x208   :  { %v6704_v56 = vpop.f32.mrf.mxu1  ;;  %6997 = vmatprep.subr.bf16.mxu1 %v9919_v45  ;;  %v9947_v28 = vld [vmem:[#allocation5 + $0x1e00] ss:$16 sps:$4 sm:$0xff]   ;;  %v9952_v23 = vld [vmem:[#allocation5 + $0x1de4] ss:$16 sps:$4 sm:$0xff]  }
 0x209   :  { %v9955_v45 = vld [vmem:[#allocation5 + $0x1fe4] ss:$16 sps:$4 sm:$0xff]   ;;  %v9950_v48 = vld [vmem:[#allocation5 + $0x1de0] ss:$16 sps:$4 sm:$0xff]  }
 0x20a   :  { %6957 = vmatpush1.bf16.msra.mxu0 %v9914_v49  ;;  %v9953_v49 = vld [vmem:[#allocation5 + $0x1fe0] ss:$16 sps:$4 sm:$0xff]   ;;  %v9961_v52 = vld [vmem:[#allocation5 + $0x1fc4] ss:$16 sps:$4 sm:$0xff]  }
 0x20b   :  { %6998 = vmatpush1.bf16.msra.mxu1 %v9917_v50  ;;  %6958 = vmatprep.subr.bf16.mxu0 %v9922_v57  ;;  %v9958_v50 = vld [vmem:[#allocation5 + $0x1dc4] ss:$16 sps:$4 sm:$0xff]   ;;  %v9956_v26 = vld [vmem:[#allocation5 + $0x1dc0] ss:$16 sps:$4 sm:$0xff]  }
 0x20c   :  { %6999 = vmatprep.subr.bf16.mxu1 %v9925_v58  ;;  %v9959_v55 = vld [vmem:[#allocation5 + $0x1fc0] ss:$16 sps:$4 sm:$0xff]   ;;  %v9964_v56 = vld [vmem:[#allocation5 + $0x1da4] ss:$16 sps:$4 sm:$0xff]  }
 0x20d   :  { %v9967_v57 = vld [vmem:[#allocation5 + $0x1fa4] ss:$16 sps:$4 sm:$0xff]   ;;  %v9962_v58 = vld [vmem:[#allocation5 + $0x1da0] ss:$16 sps:$4 sm:$0xff]  }
 0x20e   :  { %6959 = vmatpush1.bf16.msra.mxu0 %v9920_v31  ;;  %v9965_v31 = vld [vmem:[#allocation5 + $0x1fa0] ss:$16 sps:$4 sm:$0xff]  }
 0x20f   :  { %7000 = vmatpush1.bf16.msra.mxu1 %v9923_v9  ;;  %6960 = vmatprep.subr.bf16.mxu0 %v9928_v10  ;;  %v9970_v9 = vld [vmem:[#allocation5 + $0x1d84] ss:$16 sps:$4 sm:$0xff]  }
 0x210   :  { %7001 = vmatprep.subr.bf16.mxu1 %v9931_v11  ;;  %v9973_v10 = vld [vmem:[#allocation5 + $0x1f84] ss:$16 sps:$4 sm:$0xff]   ;;  %v9968_v11 = vld [vmem:[#allocation5 + $0x1d80] ss:$16 sps:$4 sm:$0xff]  }
 0x212   :  { %6961 = vmatpush1.bf16.msra.mxu0 %v9926_v12  ;;  %v9971_v12 = vld [vmem:[#allocation5 + $0x1f80] ss:$16 sps:$4 sm:$0xff]  }
 0x213   :  { %7002 = vmatpush1.bf16.msra.mxu1 %v9929_v13  ;;  %6962 = vmatprep.subr.bf16.mxu0 %v9934_v14  ;;  %v9976_v13 = vld [vmem:[#allocation5 + $0x1d64] ss:$16 sps:$4 sm:$0xff]  }
 0x214   :  { %7003 = vmatprep.subr.bf16.mxu1 %v9937_v20  ;;  %v9979_v14 = vld [vmem:[#allocation5 + $0x1f64] ss:$16 sps:$4 sm:$0xff]   ;;  %v9974_v20 = vld [vmem:[#allocation5 + $0x1d60] ss:$16 sps:$4 sm:$0xff]  }
 0x216   :  { %6963 = vmatpush1.bf16.msra.mxu0 %v9932_v21  ;;  %v9977_v21 = vld [vmem:[#allocation5 + $0x1f60] ss:$16 sps:$4 sm:$0xff]  }
 0x217   :  { %7004 = vmatpush1.bf16.msra.mxu1 %v9935_v30  ;;  %6964 = vmatprep.subr.bf16.mxu0 %v9940_v32  ;;  %v9982_v30 = vld [vmem:[#allocation5 + $0x1d44] ss:$16 sps:$4 sm:$0xff]  }
 0x218   :  { %7005 = vmatprep.subr.bf16.mxu1 %v9943_v33  ;;  %v9985_v32 = vld [vmem:[#allocation5 + $0x1f44] ss:$16 sps:$4 sm:$0xff]   ;;  %v9980_v33 = vld [vmem:[#allocation5 + $0x1d40] ss:$16 sps:$4 sm:$0xff]  }
 0x21a   :  { %6965 = vmatpush1.bf16.msra.mxu0 %v9938_v18  ;;  %v9983_v18 = vld [vmem:[#allocation5 + $0x1f40] ss:$16 sps:$4 sm:$0xff]  }
 0x21b   :  { %7006 = vmatpush1.bf16.msra.mxu1 %v9941_v41  ;;  %6966 = vmatprep.subr.bf16.mxu0 %v9946_v42  ;;  %v9988_v41 = vld [vmem:[#allocation5 + $0x1d24] ss:$16 sps:$4 sm:$0xff]  }
 0x21c   :  { %7007 = vmatprep.subr.bf16.mxu1 %v9949_v8  ;;  %v9991_v42 = vld [vmem:[#allocation5 + $0x1f24] ss:$16 sps:$4 sm:$0xff]   ;;  %v9986_v8 = vld [vmem:[#allocation5 + $0x1d20] ss:$16 sps:$4 sm:$0xff]  }
 0x21e   :  { %6967 = vmatpush1.bf16.msra.mxu0 %v9944_v43  ;;  %v9989_v43 = vld [vmem:[#allocation5 + $0x1f20] ss:$16 sps:$4 sm:$0xff]  }
 0x21f   :  { %7008 = vmatpush1.bf16.msra.mxu1 %v9947_v28  ;;  %6968 = vmatprep.subr.bf16.mxu0 %v9952_v23  ;;  %v9994_v28 = vld [vmem:[#allocation5 + $0x1d04] ss:$16 sps:$4 sm:$0xff]  }
 0x220   :  { %7009 = vmatprep.subr.bf16.mxu1 %v9955_v45  ;;  %v9997_v23 = vld [vmem:[#allocation5 + $0x1f04] ss:$16 sps:$4 sm:$0xff]   ;;  %v9992_v45 = vld [vmem:[#allocation5 + $0x1d00] ss:$16 sps:$4 sm:$0xff]  }
 0x222   :  { %6969 = vmatpush2.bf16.msra.mxu0 %v9950_v48  ;;  %v9995_v48 = vld [vmem:[#allocation5 + $0x1f00] ss:$16 sps:$4 sm:$0xff]  }
 0x223   :  { %7010 = vmatpush2.bf16.msra.mxu1 %v9953_v49  ;;  %6970 = vmatprep.subr.bf16.mxu0 %v9958_v50  ;;  %v10004_v49 = vld [vmem:[#allocation5 + $0xec] ss:$16 sps:$4 sm:$0xff]  }
 0x224   :  { %7011 = vmatprep.subr.bf16.mxu1 %v9961_v52  ;;  %v10007_v50 = vld [vmem:[#allocation5 + $0x2ec] ss:$16 sps:$4 sm:$0xff]   ;;  %v10002_v52 = vld [vmem:[#allocation5 + $0xe8] ss:$16 sps:$4 sm:$0xff]  }
 0x226   :  { %6971 = vmatpush2.bf16.msra.mxu0 %v9956_v26  ;;  %v10005_v26 = vld [vmem:[#allocation5 + $0x2e8] ss:$16 sps:$4 sm:$0xff]  }
 0x227   :  { %7012 = vmatpush2.bf16.msra.mxu1 %v9959_v55  ;;  %6972 = vmatprep.subr.bf16.mxu0 %v9964_v56  ;;  %v11184_v55 = vcombine.low %v11152_v15, %v11152_v15  ;;  %v11188_v56 = vcombine.low %v11154_v19, %v11154_v19 }
 0x228   :  { %7013 = vmatprep.subr.bf16.mxu1 %v9967_v57  ;;  %v10010_v57 = vld [vmem:[#allocation5 + $0xcc] ss:$16 sps:$4 sm:$0xff]  }
 0x22a   :  { %6973 = vmatpush2.bf16.msra.mxu0 %v9962_v58  ;;  %v10013_v58 = vld [vmem:[#allocation5 + $0x2cc] ss:$16 sps:$4 sm:$0xff]  }
 0x22b   :  { %7014 = vmatpush2.bf16.msra.mxu1 %v9965_v31  ;;  %6974 = vmatprep.subr.bf16.mxu0 %v9970_v9  ;;  %v10008_v31 = vld [vmem:[#allocation5 + $0xc8] ss:$16 sps:$4 sm:$0xff]  }
 0x22c   :  { %7015 = vmatprep.subr.bf16.mxu1 %v9973_v10  ;;  %v10011_v9 = vld [vmem:[#allocation5 + $0x2c8] ss:$16 sps:$4 sm:$0xff]  }
 0x22e   :  { %6975 = vmatpush2.bf16.msra.mxu0 %v9968_v11 }
 0x22f   :  { %7016 = vmatpush2.bf16.msra.mxu1 %v9971_v12  ;;  %6976 = vmatprep.subr.bf16.mxu0 %v9976_v13  ;;  %v10016_v13 = vld [vmem:[#allocation5 + $0xac] ss:$16 sps:$4 sm:$0xff]  }
 0x230   :  { %7017 = vmatprep.subr.bf16.mxu1 %v9979_v14  ;;  %v10019_v14 = vld [vmem:[#allocation5 + $0x2ac] ss:$16 sps:$4 sm:$0xff]  }
 0x232   :  { %6977 = vmatpush2.bf16.msra.mxu0 %v9974_v20 }
 0x233   :  { %7018 = vmatpush2.bf16.msra.mxu1 %v9977_v21  ;;  %6978 = vmatprep.subr.bf16.mxu0 %v9982_v30  ;;  %v10014_v30 = vld [vmem:[#allocation5 + $0xa8] ss:$16 sps:$4 sm:$0xff]  }
 0x234   :  { %7019 = vmatprep.subr.bf16.mxu1 %v9985_v32  ;;  %v10017_v32 = vld [vmem:[#allocation5 + $0x2a8] ss:$16 sps:$4 sm:$0xff]  }
 0x236   :  { %6979 = vmatpush2.bf16.msra.mxu0 %v9980_v33 }
 0x237   :  { %7020 = vmatpush2.bf16.msra.mxu1 %v9983_v18  ;;  %6980 = vmatprep.subr.bf16.mxu0 %v9988_v41 }
 0x238   :  { %7021 = vmatprep.subr.bf16.mxu1 %v9991_v42 }
 0x23a   :  { %6981 = vmatpush2.bf16.msra.mxu0 %v9986_v8  ;;  %v10022_v8 = vld [vmem:[#allocation5 + $0x8c] ss:$16 sps:$4 sm:$0xff]  }
 0x23b   :  { %7022 = vmatpush2.bf16.msra.mxu1 %v9989_v43  ;;  %6982 = vmatprep.subr.bf16.mxu0 %v9994_v28  ;;  %v10025_v43 = vld [vmem:[#allocation5 + $0x28c] ss:$16 sps:$4 sm:$0xff]   ;;  %v10023_v28 = vld [vmem:[#allocation5 + $0x288] ss:$16 sps:$4 sm:$0xff]  }
 0x23c   :  { %7023 = vmatprep.subr.bf16.mxu1 %v9997_v23  ;;  %v10026_v23 = vld [vmem:[#allocation5 + $0x68] ss:$16 sps:$4 sm:$0xff]  }
 0x23e   :  { %6983 = vmatpush2.bf16.msra.mxu0 %v9992_v45  ;;  %v10029_v45 = vld [vmem:[#allocation5 + $0x268] ss:$16 sps:$4 sm:$0xff]  }
 0x23f   :  { %7024 = vmatpush2.bf16.msra.mxu1 %v9995_v48  ;;  %7034 = vmatprep.subr.bf16.mxu0 %v10004_v49  ;;  %v10034_v48 = vld [vmem:[#allocation5 + $0x4c] ss:$16 sps:$4 sm:$0xff]  }
 0x240   :  { %7075 = vmatprep.subr.bf16.mxu1 %v10007_v50  ;;  %v10037_v49 = vld [vmem:[#allocation5 + $0x24c] ss:$16 sps:$4 sm:$0xff]   ;;  %v10032_v50 = vld [vmem:[#allocation5 + $0x48] ss:$16 sps:$4 sm:$0xff]  }
 0x241   :  { %v6740_v10 = vpop.f32.mrf.mxu0  ;;  %6985 = vmatmul.mubr.bf16.vlgmr.msra.gmra.mxu0 %v11184_v55 }
 0x242   :  { %v6781_v11 = vpop.f32.mrf.mxu1  ;;  %7026 = vmatmul.mubr.bf16.vlgmr.msra.gmra.mxu1 %v11188_v56  ;;  %v6741_v15 = vadd.f32 %v6740_v10, %v11175_v46  ;;  %7035 = vmatpush1.bf16.msra.mxu0 %v10002_v52  ;;  %v10035_v52 = vld [vmem:[#allocation5 + $0x248] ss:$16 sps:$4 sm:$0xff]   ;;  %v10049_v10 = vld [vmem:[#allocation5 + $0x20c] ss:$16 sps:$4 sm:$0xff]  }
 0x243   :  { %7076 = vmatpush1.bf16.msra.mxu1 %v10005_v26  ;;  %v6742_v19 = vpop.f32.mrf.mxu0  ;;  %7036 = vmatprep.subr.bf16.mxu0 %v10010_v57  ;;  %v10040_v26 = vld [vmem:[#allocation5 + $0x2c] ss:$16 sps:$4 sm:$0xff]  }
 0x244   :  { %v6783_v12 = vpop.f32.mrf.mxu1  ;;  %7077 = vmatprep.subr.bf16.mxu1 %v10013_v58  ;;  %v11193_v20 = vadd.f32 %v6781_v11, %v6741_v15  ;;  %v6743_v21 = vadd.f32 %v6742_v19, %v11180_v53  ;;  %7066 = vmatprep.mubr.bf16.mxu0 %v10986_v47  ;;  %v10020_v53 = vld [vmem:[#allocation5 + $0x88] ss:$16 sps:$4 sm:$0xff]   ;;  %v10028_v47 = vld [vmem:[#allocation5 + $0x6c] ss:$16 sps:$4 sm:$0xff]  }
 0x245   :  { %7107 = vmatprep.mubr.bf16.mxu1 %v10988_v51  ;;  %v6744_v33 = vpop.f32.mrf.mxu0  ;;  %v10031_v51 = vld [vmem:[#allocation5 + $0x26c] ss:$16 sps:$4 sm:$0xff]   ;;  %v10038_v58 = vld [vmem:[#allocation5 + $0x28] ss:$16 sps:$4 sm:$0xff]  }
 0x246   :  { %v6785_v46 = vpop.f32.mrf.mxu1  ;;  %v11198_v18 = vadd.f32 %v6783_v12, %v6743_v21  ;;  %7037 = vmatpush1.bf16.msra.mxu0 %v10008_v31  ;;  %v10043_v57 = vld [vmem:[#allocation5 + $0x22c] ss:$16 sps:$4 sm:$0xff]   ;;  %v10041_v31 = vld [vmem:[#allocation5 + $0x228] ss:$16 sps:$4 sm:$0xff]  }
 0x247   :  { %7078 = vmatpush1.bf16.msra.mxu1 %v10011_v9  ;;  %v6745_v41 = vpop.f32.mrf.mxu0  ;;  %7038 = vmatprep.subr.bf16.mxu0 %v10016_v13  ;;  %v10046_v9 = vld [vmem:[#allocation5 + $0xc] ss:$16 sps:$4 sm:$0xff]   ;;  %v10044_v11 = vld [vmem:[#allocation5 + $0x8] ss:$16 sps:$4 sm:$0xff]  }
 0x248   :  { %v6786_v42 = vpop.f32.mrf.mxu1  ;;  %7079 = vmatprep.subr.bf16.mxu1 %v10019_v14  ;;  %v10047_v15 = vld [vmem:[#allocation5 + $0x208] ss:$16 sps:$4 sm:$0xff]   ;;  %v10052_v19 = vld [vmem:[#allocation5 + $0x1ec] ss:$16 sps:$4 sm:$0xff]  }
 0x249   :  { %v10055_v12 = vld [vmem:[#allocation5 + $0x3ec] ss:$16 sps:$4 sm:$0xff]   ;;  %v10050_v13 = vld [vmem:[#allocation5 + $0x1e8] ss:$16 sps:$4 sm:$0xff]  }
 0x24a   :  { %7039 = vmatpush1.bf16.msra.mxu0 %v10014_v30  ;;  %v10053_v14 = vld [vmem:[#allocation5 + $0x3e8] ss:$16 sps:$4 sm:$0xff]   ;;  %v10058_v21 = vld [vmem:[#allocation5 + $0x1cc] ss:$16 sps:$4 sm:$0xff]  }
 0x24b   :  { %7080 = vmatpush1.bf16.msra.mxu1 %v10017_v32  ;;  %7040 = vmatprep.subr.bf16.mxu0 %v10022_v8  ;;  %v10061_v30 = vld [vmem:[#allocation5 + $0x3cc] ss:$16 sps:$4 sm:$0xff]   ;;  %v10056_v32 = vld [vmem:[#allocation5 + $0x1c8] ss:$16 sps:$4 sm:$0xff]  }
 0x24c   :  { %7081 = vmatprep.subr.bf16.mxu1 %v10025_v43  ;;  %v10059_v33 = vld [vmem:[#allocation5 + $0x3c8] ss:$16 sps:$4 sm:$0xff]   ;;  %v10064_v46 = vld [vmem:[#allocation5 + $0x1ac] ss:$16 sps:$4 sm:$0xff]  }
 0x24d   :  { %v10067_v41 = vld [vmem:[#allocation5 + $0x3ac] ss:$16 sps:$4 sm:$0xff]   ;;  %v10062_v42 = vld [vmem:[#allocation5 + $0x1a8] ss:$16 sps:$4 sm:$0xff]  }
 0x24e   :  { %7041 = vmatpush1.bf16.msra.mxu0 %v10020_v53  ;;  %v10065_v8 = vld [vmem:[#allocation5 + $0x3a8] ss:$16 sps:$4 sm:$0xff]   ;;  %v10070_v43 = vld [vmem:[#allocation5 + $0x18c] ss:$16 sps:$4 sm:$0xff]  }
 0x24f   :  { %7082 = vmatpush1.bf16.msra.mxu1 %v10023_v28  ;;  %7042 = vmatprep.subr.bf16.mxu0 %v10028_v47  ;;  %v10073_v53 = vld [vmem:[#allocation5 + $0x38c] ss:$16 sps:$4 sm:$0xff]   ;;  %v10068_v28 = vld [vmem:[#allocation5 + $0x188] ss:$16 sps:$4 sm:$0xff]  }
 0x250   :  { %7083 = vmatprep.subr.bf16.mxu1 %v10031_v51  ;;  %v10071_v47 = vld [vmem:[#allocation5 + $0x388] ss:$16 sps:$4 sm:$0xff]   ;;  %v10076_v51 = vld [vmem:[#allocation5 + $0x16c] ss:$16 sps:$4 sm:$0xff]  }
 0x252   :  { %7043 = vmatpush1.bf16.msra.mxu0 %v10026_v23  ;;  %v10079_v23 = vld [vmem:[#allocation5 + $0x36c] ss:$16 sps:$4 sm:$0xff]  }
 0x253   :  { %7084 = vmatpush1.bf16.msra.mxu1 %v10029_v45  ;;  %7044 = vmatprep.subr.bf16.mxu0 %v10034_v48  ;;  %v10074_v45 = vld [vmem:[#allocation5 + $0x168] ss:$16 sps:$4 sm:$0xff]  }
 0x254   :  { %7085 = vmatprep.subr.bf16.mxu1 %v10037_v49  ;;  %v10077_v48 = vld [vmem:[#allocation5 + $0x368] ss:$16 sps:$4 sm:$0xff]   ;;  %v10082_v49 = vld [vmem:[#allocation5 + $0x14c] ss:$16 sps:$4 sm:$0xff]  }
 0x256   :  { %7045 = vmatpush1.bf16.msra.mxu0 %v10032_v50  ;;  %v10085_v50 = vld [vmem:[#allocation5 + $0x34c] ss:$16 sps:$4 sm:$0xff]  }
 0x257   :  { %7086 = vmatpush1.bf16.msra.mxu1 %v10035_v52  ;;  %7046 = vmatprep.subr.bf16.mxu0 %v10040_v26  ;;  %v10080_v52 = vld [vmem:[#allocation5 + $0x148] ss:$16 sps:$4 sm:$0xff]  }
 0x258   :  { %7087 = vmatprep.subr.bf16.mxu1 %v10043_v57  ;;  %v10083_v26 = vld [vmem:[#allocation5 + $0x348] ss:$16 sps:$4 sm:$0xff]   ;;  %v10088_v57 = vld [vmem:[#allocation5 + $0x12c] ss:$16 sps:$4 sm:$0xff]  }
 0x25a   :  { %7047 = vmatpush1.bf16.msra.mxu0 %v10038_v58  ;;  %v10091_v58 = vld [vmem:[#allocation5 + $0x32c] ss:$16 sps:$4 sm:$0xff]  }
 0x25b   :  { %7088 = vmatpush1.bf16.msra.mxu1 %v10041_v31  ;;  %7048 = vmatprep.subr.bf16.mxu0 %v10046_v9  ;;  %v10086_v31 = vld [vmem:[#allocation5 + $0x128] ss:$16 sps:$4 sm:$0xff]  }
 0x25c   :  { %7089 = vmatprep.subr.bf16.mxu1 %v10049_v10  ;;  %v10089_v9 = vld [vmem:[#allocation5 + $0x328] ss:$16 sps:$4 sm:$0xff]   ;;  %v10094_v10 = vld [vmem:[#allocation5 + $0x10c] ss:$16 sps:$4 sm:$0xff]  }
 0x25e   :  { %7049 = vmatpush1.bf16.msra.mxu0 %v10044_v11  ;;  %v10097_v11 = vld [vmem:[#allocation5 + $0x30c] ss:$16 sps:$4 sm:$0xff]  }
 0x25f   :  { %7090 = vmatpush1.bf16.msra.mxu1 %v10047_v15  ;;  %7050 = vmatprep.subr.bf16.mxu0 %v10052_v19  ;;  %v10092_v15 = vld [vmem:[#allocation5 + $0x108] ss:$16 sps:$4 sm:$0xff]  }
 0x260   :  { %7091 = vmatprep.subr.bf16.mxu1 %v10055_v12  ;;  %v10095_v19 = vld [vmem:[#allocation5 + $0x308] ss:$16 sps:$4 sm:$0xff]   ;;  %v10100_v12 = vld [vmem:[#allocation5 + $0x4ec] ss:$16 sps:$4 sm:$0xff]  }
 0x262   :  { %7051 = vmatpush2.bf16.msra.mxu0 %v10050_v13  ;;  %v10103_v13 = vld [vmem:[#allocation5 + $0x6ec] ss:$16 sps:$4 sm:$0xff]  }
 0x263   :  { %7092 = vmatpush2.bf16.msra.mxu1 %v10053_v14  ;;  %7052 = vmatprep.subr.bf16.mxu0 %v10058_v21  ;;  %v10098_v14 = vld [vmem:[#allocation5 + $0x4e8] ss:$16 sps:$4 sm:$0xff]  }
 0x264   :  { %7093 = vmatprep.subr.bf16.mxu1 %v10061_v30  ;;  %v10101_v21 = vld [vmem:[#allocation5 + $0x6e8] ss:$16 sps:$4 sm:$0xff]   ;;  %v10106_v30 = vld [vmem:[#allocation5 + $0x4cc] ss:$16 sps:$4 sm:$0xff]  }
 0x266   :  { %7053 = vmatpush2.bf16.msra.mxu0 %v10056_v32  ;;  %v10109_v32 = vld [vmem:[#allocation5 + $0x6cc] ss:$16 sps:$4 sm:$0xff]  }
 0x267   :  { %7094 = vmatpush2.bf16.msra.mxu1 %v10059_v33  ;;  %7054 = vmatprep.subr.bf16.mxu0 %v10064_v46  ;;  %v10104_v33 = vld [vmem:[#allocation5 + $0x4c8] ss:$16 sps:$4 sm:$0xff]  }
 0x268   :  { %7095 = vmatprep.subr.bf16.mxu1 %v10067_v41  ;;  %v10107_v46 = vld [vmem:[#allocation5 + $0x6c8] ss:$16 sps:$4 sm:$0xff]  }
 0x26a   :  { %7055 = vmatpush2.bf16.msra.mxu0 %v10062_v42 }
 0x26b   :  { %7096 = vmatpush2.bf16.msra.mxu1 %v10065_v8  ;;  %7056 = vmatprep.subr.bf16.mxu0 %v10070_v43 }
 0x26c   :  { %7097 = vmatprep.subr.bf16.mxu1 %v10073_v53 }
 0x26e   :  { %7057 = vmatpush2.bf16.msra.mxu0 %v10068_v28  ;;  %v10112_v28 = vld [vmem:[#allocation5 + $0x4ac] ss:$16 sps:$4 sm:$0xff]  }
 0x26f   :  { %7098 = vmatpush2.bf16.msra.mxu1 %v10071_v47  ;;  %7058 = vmatprep.subr.bf16.mxu0 %v10076_v51  ;;  %v10115_v47 = vld [vmem:[#allocation5 + $0x6ac] ss:$16 sps:$4 sm:$0xff]  }
 0x270   :  { %7099 = vmatprep.subr.bf16.mxu1 %v10079_v23 }
 0x272   :  { %7059 = vmatpush2.bf16.msra.mxu0 %v10074_v45  ;;  %v10110_v45 = vld [vmem:[#allocation5 + $0x4a8] ss:$16 sps:$4 sm:$0xff]  }
 0x273   :  { %7100 = vmatpush2.bf16.msra.mxu1 %v10077_v48  ;;  %7060 = vmatprep.subr.bf16.mxu0 %v10082_v49  ;;  %v10113_v48 = vld [vmem:[#allocation5 + $0x6a8] ss:$16 sps:$4 sm:$0xff]  }
 0x274   :  { %7101 = vmatprep.subr.bf16.mxu1 %v10085_v50 }
 0x276   :  { %7061 = vmatpush2.bf16.msra.mxu0 %v10080_v52  ;;  %v10118_v52 = vld [vmem:[#allocation5 + $0x48c] ss:$16 sps:$4 sm:$0xff]  }
 0x277   :  { %7102 = vmatpush2.bf16.msra.mxu1 %v10083_v26  ;;  %7062 = vmatprep.subr.bf16.mxu0 %v10088_v57  ;;  %v10121_v26 = vld [vmem:[#allocation5 + $0x68c] ss:$16 sps:$4 sm:$0xff]   ;;  %v10119_v57 = vld [vmem:[#allocation5 + $0x688] ss:$16 sps:$4 sm:$0xff]  }
 0x278   :  { %7103 = vmatprep.subr.bf16.mxu1 %v10091_v58  ;;  %v10122_v58 = vld [vmem:[#allocation5 + $0x468] ss:$16 sps:$4 sm:$0xff]  }
 0x27a   :  { %7063 = vmatpush2.bf16.msra.mxu0 %v10086_v31  ;;  %v10125_v31 = vld [vmem:[#allocation5 + $0x668] ss:$16 sps:$4 sm:$0xff]  }
 0x27b   :  { %7104 = vmatpush2.bf16.msra.mxu1 %v10089_v9  ;;  %7064 = vmatprep.subr.bf16.mxu0 %v10094_v10  ;;  %v10130_v9 = vld [vmem:[#allocation5 + $0x44c] ss:$16 sps:$4 sm:$0xff]  }
 0x27c   :  { %7105 = vmatprep.subr.bf16.mxu1 %v10097_v11  ;;  %v10133_v10 = vld [vmem:[#allocation5 + $0x64c] ss:$16 sps:$4 sm:$0xff]   ;;  %v10128_v11 = vld [vmem:[#allocation5 + $0x448] ss:$16 sps:$4 sm:$0xff]  }
 0x27e   :  { %7065 = vmatpush2.bf16.msra.mxu0 %v10092_v15  ;;  %v10131_v15 = vld [vmem:[#allocation5 + $0x648] ss:$16 sps:$4 sm:$0xff]  }
 0x27f   :  { %7106 = vmatpush2.bf16.msra.mxu1 %v10095_v19  ;;  %7116 = vmatprep.subr.bf16.mxu0 %v10100_v12  ;;  %v10136_v19 = vld [vmem:[#allocation5 + $0x42c] ss:$16 sps:$4 sm:$0xff]  }
 0x280   :  { %7157 = vmatprep.subr.bf16.mxu1 %v10103_v13  ;;  %v10139_v12 = vld [vmem:[#allocation5 + $0x62c] ss:$16 sps:$4 sm:$0xff]   ;;  %v10134_v13 = vld [vmem:[#allocation5 + $0x428] ss:$16 sps:$4 sm:$0xff]  }
 0x281   :  { %v6822_v41 = vpop.f32.mrf.mxu0  ;;  %7067 = vmatmul.mubr.bf16.vlgmr.msra.gmra.mxu0 %v10992_v6 }
 0x282   :  { %v6863_v42 = vpop.f32.mrf.mxu1  ;;  %7108 = vmatmul.mubr.bf16.vlgmr.msra.gmra.mxu1 %v10994_v7  ;;  %v6823_v8 = vadd.f32 %v6822_v41, %v11193_v20  ;;  %7117 = vmatpush1.bf16.msra.mxu0 %v10098_v14  ;;  %v10137_v14 = vld [vmem:[#allocation5 + $0x628] ss:$16 sps:$4 sm:$0xff]   ;;  %v10151_v41 = vld [vmem:[#allocation5 + $0x7ec] ss:$16 sps:$4 sm:$0xff]  }
 0x283   :  { %7158 = vmatpush1.bf16.msra.mxu1 %v10101_v21  ;;  %v6824_v43 = vpop.f32.mrf.mxu0  ;;  %7118 = vmatprep.subr.bf16.mxu0 %v10106_v30  ;;  %v10142_v21 = vld [vmem:[#allocation5 + $0x40c] ss:$16 sps:$4 sm:$0xff]  }
 0x284   :  { %v6865_v53 = vpop.f32.mrf.mxu1  ;;  %7159 = vmatprep.subr.bf16.mxu1 %v10109_v32  ;;  %v11203_v51 = vadd.f32 %v6863_v42, %v6823_v8  ;;  %v6825_v23 = vadd.f32 %v6824_v43, %v11198_v18  ;;  %7148 = vmatprep.mubr.bf16.mxu0 %v11004_v36  ;;  %v10116_v18 = vld [vmem:[#allocation5 + $0x488] ss:$16 sps:$4 sm:$0xff]   ;;  %v10124_v36 = vld [vmem:[#allocation5 + $0x46c] ss:$16 sps:$4 sm:$0xff]  }
 0x285   :  { %7189 = vmatprep.mubr.bf16.mxu1 %v11008_v37  ;;  %v6826_v6 = vpop.f32.mrf.mxu0  ;;  %v10127_v37 = vld [vmem:[#allocation5 + $0x66c] ss:$16 sps:$4 sm:$0xff]   ;;  %v10140_v32 = vld [vmem:[#allocation5 + $0x408] ss:$16 sps:$4 sm:$0xff]  }
 0x286   :  { %v6867_v7 = vpop.f32.mrf.mxu1  ;;  %v11208_v20 = vadd.f32 %v6865_v53, %v6825_v23  ;;  %7119 = vmatpush1.bf16.msra.mxu0 %v10104_v33  ;;  %v10145_v30 = vld [vmem:[#allocation5 + $0x60c] ss:$16 sps:$4 sm:$0xff]   ;;  %v10143_v33 = vld [vmem:[#allocation5 + $0x608] ss:$16 sps:$4 sm:$0xff]  }
 0x287   :  { %7160 = vmatpush1.bf16.msra.mxu1 %v10107_v46  ;;  %v6827_v49 = vpop.f32.mrf.mxu0  ;;  %7120 = vmatprep.subr.bf16.mxu0 %v10112_v28  ;;  %v10148_v46 = vld [vmem:[#allocation5 + $0x5ec] ss:$16 sps:$4 sm:$0xff]   ;;  %v10146_v42 = vld [vmem:[#allocation5 + $0x5e8] ss:$16 sps:$4 sm:$0xff]  }
 0x288   :  { %v6868_v50 = vpop.f32.mrf.mxu1  ;;  %7161 = vmatprep.subr.bf16.mxu1 %v10115_v47  ;;  %v10149_v8 = vld [vmem:[#allocation5 + $0x7e8] ss:$16 sps:$4 sm:$0xff]   ;;  %v10154_v43 = vld [vmem:[#allocation5 + $0x5cc] ss:$16 sps:$4 sm:$0xff]  }
 0x289   :  { %v10157_v53 = vld [vmem:[#allocation5 + $0x7cc] ss:$16 sps:$4 sm:$0xff]   ;;  %v10152_v28 = vld [vmem:[#allocation5 + $0x5c8] ss:$16 sps:$4 sm:$0xff]  }
 0x28a   :  { %7121 = vmatpush1.bf16.msra.mxu0 %v10110_v45  ;;  %v10155_v47 = vld [vmem:[#allocation5 + $0x7c8] ss:$16 sps:$4 sm:$0xff]   ;;  %v10160_v23 = vld [vmem:[#allocation5 + $0x5ac] ss:$16 sps:$4 sm:$0xff]  }
 0x28b   :  { %7162 = vmatpush1.bf16.msra.mxu1 %v10113_v48  ;;  %7122 = vmatprep.subr.bf16.mxu0 %v10118_v52  ;;  %v10163_v45 = vld [vmem:[#allocation5 + $0x7ac] ss:$16 sps:$4 sm:$0xff]   ;;  %v10158_v48 = vld [vmem:[#allocation5 + $0x5a8] ss:$16 sps:$4 sm:$0xff]  }
 0x28c   :  { %7163 = vmatprep.subr.bf16.mxu1 %v10121_v26  ;;  %v10161_v6 = vld [vmem:[#allocation5 + $0x7a8] ss:$16 sps:$4 sm:$0xff]   ;;  %v10166_v7 = vld [vmem:[#allocation5 + $0x58c] ss:$16 sps:$4 sm:$0xff]  }
 0x28d   :  { %v10169_v49 = vld [vmem:[#allocation5 + $0x78c] ss:$16 sps:$4 sm:$0xff]   ;;  %v10164_v50 = vld [vmem:[#allocation5 + $0x588] ss:$16 sps:$4 sm:$0xff]  }
 0x28e   :  { %7123 = vmatpush1.bf16.msra.mxu0 %v10116_v18  ;;  %v10167_v52 = vld [vmem:[#allocation5 + $0x788] ss:$16 sps:$4 sm:$0xff]   ;;  %v10172_v26 = vld [vmem:[#allocation5 + $0x56c] ss:$16 sps:$4 sm:$0xff]  }
 0x28f   :  { %7164 = vmatpush1.bf16.msra.mxu1 %v10119_v57  ;;  %7124 = vmatprep.subr.bf16.mxu0 %v10124_v36  ;;  %v10175_v18 = vld [vmem:[#allocation5 + $0x76c] ss:$16 sps:$4 sm:$0xff]   ;;  %v10170_v57 = vld [vmem:[#allocation5 + $0x568] ss:$16 sps:$4 sm:$0xff]  }
 0x290   :  { %7165 = vmatprep.subr.bf16.mxu1 %v10127_v37  ;;  %v10173_v36 = vld [vmem:[#allocation5 + $0x768] ss:$16 sps:$4 sm:$0xff]   ;;  %v10178_v37 = vld [vmem:[#allocation5 + $0x54c] ss:$16 sps:$4 sm:$0xff]  }
 0x292   :  { %7125 = vmatpush1.bf16.msra.mxu0 %v10122_v58  ;;  %v10181_v58 = vld [vmem:[#allocation5 + $0x74c] ss:$16 sps:$4 sm:$0xff]  }
 0x293   :  { %7166 = vmatpush1.bf16.msra.mxu1 %v10125_v31  ;;  %7126 = vmatprep.subr.bf16.mxu0 %v10130_v9  ;;  %v10176_v31 = vld [vmem:[#allocation5 + $0x548] ss:$16 sps:$4 sm:$0xff]  }
 0x294   :  { %7167 = vmatprep.subr.bf16.mxu1 %v10133_v10  ;;  %v10179_v9 = vld [vmem:[#allocation5 + $0x748] ss:$16 sps:$4 sm:$0xff]   ;;  %v10184_v10 = vld [vmem:[#allocation5 + $0x52c] ss:$16 sps:$4 sm:$0xff]  }
 0x296   :  { %7127 = vmatpush1.bf16.msra.mxu0 %v10128_v11  ;;  %v10187_v11 = vld [vmem:[#allocation5 + $0x72c] ss:$16 sps:$4 sm:$0xff]  }
 0x297   :  { %7168 = vmatpush1.bf16.msra.mxu1 %v10131_v15  ;;  %7128 = vmatprep.subr.bf16.mxu0 %v10136_v19  ;;  %v10182_v15 = vld [vmem:[#allocation5 + $0x528] ss:$16 sps:$4 sm:$0xff]  }
 0x298   :  { %7169 = vmatprep.subr.bf16.mxu1 %v10139_v12  ;;  %v10185_v19 = vld [vmem:[#allocation5 + $0x728] ss:$16 sps:$4 sm:$0xff]   ;;  %v10190_v12 = vld [vmem:[#allocation5 + $0x50c] ss:$16 sps:$4 sm:$0xff]  }
 0x29a   :  { %7129 = vmatpush1.bf16.msra.mxu0 %v10134_v13  ;;  %v10193_v13 = vld [vmem:[#allocation5 + $0x70c] ss:$16 sps:$4 sm:$0xff]  }
 0x29b   :  { %7170 = vmatpush1.bf16.msra.mxu1 %v10137_v14  ;;  %7130 = vmatprep.subr.bf16.mxu0 %v10142_v21  ;;  %v10188_v14 = vld [vmem:[#allocation5 + $0x508] ss:$16 sps:$4 sm:$0xff]  }
 0x29c   :  { %7171 = vmatprep.subr.bf16.mxu1 %v10145_v30  ;;  %v10191_v21 = vld [vmem:[#allocation5 + $0x708] ss:$16 sps:$4 sm:$0xff]   ;;  %v10196_v30 = vld [vmem:[#allocation5 + $0x8ec] ss:$16 sps:$4 sm:$0xff]  }
 0x29e   :  { %7131 = vmatpush1.bf16.msra.mxu0 %v10140_v32  ;;  %v10199_v32 = vld [vmem:[#allocation5 + $0xaec] ss:$16 sps:$4 sm:$0xff]  }
 0x29f   :  { %7172 = vmatpush1.bf16.msra.mxu1 %v10143_v33  ;;  %7132 = vmatprep.subr.bf16.mxu0 %v10148_v46  ;;  %v10194_v33 = vld [vmem:[#allocation5 + $0x8e8] ss:$16 sps:$4 sm:$0xff]  }
 0x2a0   :  { %7173 = vmatprep.subr.bf16.mxu1 %v10151_v41  ;;  %v10197_v46 = vld [vmem:[#allocation5 + $0xae8] ss:$16 sps:$4 sm:$0xff]   ;;  %v10202_v41 = vld [vmem:[#allocation5 + $0x8cc] ss:$16 sps:$4 sm:$0xff]  }
 0x2a2   :  { %7133 = vmatpush2.bf16.msra.mxu0 %v10146_v42  ;;  %v10205_v42 = vld [vmem:[#allocation5 + $0xacc] ss:$16 sps:$4 sm:$0xff]  }
 0x2a3   :  { %7174 = vmatpush2.bf16.msra.mxu1 %v10149_v8  ;;  %7134 = vmatprep.subr.bf16.mxu0 %v10154_v43 }
 0x2a4   :  { %7175 = vmatprep.subr.bf16.mxu1 %v10157_v53 }
 0x2a6   :  { %7135 = vmatpush2.bf16.msra.mxu0 %v10152_v28  ;;  %v10200_v28 = vld [vmem:[#allocation5 + $0x8c8] ss:$16 sps:$4 sm:$0xff]  }
 0x2a7   :  { %7176 = vmatpush2.bf16.msra.mxu1 %v10155_v47  ;;  %7136 = vmatprep.subr.bf16.mxu0 %v10160_v23  ;;  %v10203_v47 = vld [vmem:[#allocation5 + $0xac8] ss:$16 sps:$4 sm:$0xff]  }
 0x2a8   :  { %7177 = vmatprep.subr.bf16.mxu1 %v10163_v45 }
 0x2aa   :  { %7137 = vmatpush2.bf16.msra.mxu0 %v10158_v48  ;;  %v10208_v48 = vld [vmem:[#allocation5 + $0x8ac] ss:$16 sps:$4 sm:$0xff]  }
 0x2ab   :  { %7178 = vmatpush2.bf16.msra.mxu1 %v10161_v6  ;;  %7138 = vmatprep.subr.bf16.mxu0 %v10166_v7  ;;  %v10211_v6 = vld [vmem:[#allocation5 + $0xaac] ss:$16 sps:$4 sm:$0xff]  }
 0x2ac   :  { %7179 = vmatprep.subr.bf16.mxu1 %v10169_v49 }
 0x2ae   :  { %7139 = vmatpush2.bf16.msra.mxu0 %v10164_v50  ;;  %v10206_v50 = vld [vmem:[#allocation5 + $0x8a8] ss:$16 sps:$4 sm:$0xff]  }
 0x2af   :  { %7180 = vmatpush2.bf16.msra.mxu1 %v10167_v52  ;;  %7140 = vmatprep.subr.bf16.mxu0 %v10172_v26  ;;  %v10209_v52 = vld [vmem:[#allocation5 + $0xaa8] ss:$16 sps:$4 sm:$0xff]  }
 0x2b0   :  { %7181 = vmatprep.subr.bf16.mxu1 %v10175_v18 }
 0x2b2   :  { %7141 = vmatpush2.bf16.msra.mxu0 %v10170_v57  ;;  %v10214_v57 = vld [vmem:[#allocation5 + $0x88c] ss:$16 sps:$4 sm:$0xff]  }
 0x2b3   :  { %7182 = vmatpush2.bf16.msra.mxu1 %v10173_v36  ;;  %7142 = vmatprep.subr.bf16.mxu0 %v10178_v37  ;;  %v10217_v36 = vld [vmem:[#allocation5 + $0xa8c] ss:$16 sps:$4 sm:$0xff]  }
 0x2b4   :  { %7183 = vmatprep.subr.bf16.mxu1 %v10181_v58  ;;  %v10223_v37 = vld [vmem:[#allocation5 + $0xa6c] ss:$16 sps:$4 sm:$0xff]   ;;  %v10218_v58 = vld [vmem:[#allocation5 + $0x868] ss:$16 sps:$4 sm:$0xff]  }
 0x2b6   :  { %7143 = vmatpush2.bf16.msra.mxu0 %v10176_v31  ;;  %v10221_v31 = vld [vmem:[#allocation5 + $0xa68] ss:$16 sps:$4 sm:$0xff]  }
 0x2b7   :  { %7184 = vmatpush2.bf16.msra.mxu1 %v10179_v9  ;;  %7144 = vmatprep.subr.bf16.mxu0 %v10184_v10  ;;  %v10226_v9 = vld [vmem:[#allocation5 + $0x84c] ss:$16 sps:$4 sm:$0xff]  }
 0x2b8   :  { %7185 = vmatprep.subr.bf16.mxu1 %v10187_v11  ;;  %v10229_v10 = vld [vmem:[#allocation5 + $0xa4c] ss:$16 sps:$4 sm:$0xff]   ;;  %v10224_v11 = vld [vmem:[#allocation5 + $0x848] ss:$16 sps:$4 sm:$0xff]  }
 0x2ba   :  { %7145 = vmatpush2.bf16.msra.mxu0 %v10182_v15  ;;  %v10227_v15 = vld [vmem:[#allocation5 + $0xa48] ss:$16 sps:$4 sm:$0xff]  }
 0x2bb   :  { %7186 = vmatpush2.bf16.msra.mxu1 %v10185_v19  ;;  %7146 = vmatprep.subr.bf16.mxu0 %v10190_v12  ;;  %v10232_v19 = vld [vmem:[#allocation5 + $0x82c] ss:$16 sps:$4 sm:$0xff]  }
 0x2bc   :  { %7187 = vmatprep.subr.bf16.mxu1 %v10193_v13  ;;  %v10235_v12 = vld [vmem:[#allocation5 + $0xa2c] ss:$16 sps:$4 sm:$0xff]   ;;  %v10230_v13 = vld [vmem:[#allocation5 + $0x828] ss:$16 sps:$4 sm:$0xff]  }
 0x2be   :  { %7147 = vmatpush2.bf16.msra.mxu0 %v10188_v14  ;;  %v10233_v14 = vld [vmem:[#allocation5 + $0xa28] ss:$16 sps:$4 sm:$0xff]  }
 0x2bf   :  { %7188 = vmatpush2.bf16.msra.mxu1 %v10191_v21  ;;  %7198 = vmatprep.subr.bf16.mxu0 %v10196_v30  ;;  %v10238_v21 = vld [vmem:[#allocation5 + $0x80c] ss:$16 sps:$4 sm:$0xff]  }
 0x2c0   :  { %7239 = vmatprep.subr.bf16.mxu1 %v10199_v32  ;;  %v10241_v30 = vld [vmem:[#allocation5 + $0xa0c] ss:$16 sps:$4 sm:$0xff]   ;;  %v10236_v32 = vld [vmem:[#allocation5 + $0x808] ss:$16 sps:$4 sm:$0xff]  }
 0x2c1   :  { %v6904_v8 = vpop.f32.mrf.mxu0  ;;  %7149 = vmatmul.mubr.bf16.vlgmr.msra.gmra.mxu0 %v11014_v16 }
 0x2c2   :  { %v6945_v43 = vpop.f32.mrf.mxu1  ;;  %7190 = vmatmul.mubr.bf16.vlgmr.msra.gmra.mxu1 %v11018_v17  ;;  %v6905_v53 = vadd.f32 %v6904_v8, %v11203_v51  ;;  %7199 = vmatpush1.bf16.msra.mxu0 %v10194_v33  ;;  %v10239_v33 = vld [vmem:[#allocation5 + $0xa08] ss:$16 sps:$4 sm:$0xff]  }
 0x2c3   :  { %7240 = vmatpush1.bf16.msra.mxu1 %v10197_v46  ;;  %v6906_v23 = vpop.f32.mrf.mxu0  ;;  %7200 = vmatprep.subr.bf16.mxu0 %v10202_v41  ;;  %v10244_v46 = vld [vmem:[#allocation5 + $0x9ec] ss:$16 sps:$4 sm:$0xff]   ;;  %v10245_v8 = vld [vmem:[#allocation5 + $0xbe8] ss:$16 sps:$4 sm:$0xff]  }
 0x2c4   :  { %v6947_v45 = vpop.f32.mrf.mxu1  ;;  %7241 = vmatprep.subr.bf16.mxu1 %v10205_v42  ;;  %v11213_v7 = vadd.f32 %v6945_v43, %v6905_v53  ;;  %v6907_v49 = vadd.f32 %v6906_v23, %v11208_v20  ;;  %7230 = vmatprep.mubr.bf16.mxu0 %v11026_v24  ;;  %v10212_v20 = vld [vmem:[#allocation5 + $0x888] ss:$16 sps:$4 sm:$0xff]   ;;  %v10247_v41 = vld [vmem:[#allocation5 + $0xbec] ss:$16 sps:$4 sm:$0xff]  }
 0x2c5   :  { %7271 = vmatprep.mubr.bf16.mxu1 %v11030_v25  ;;  %v6908_v16 = vpop.f32.mrf.mxu0  ;;  %v10215_v24 = vld [vmem:[#allocation5 + $0xa88] ss:$16 sps:$4 sm:$0xff]   ;;  %v10220_v25 = vld [vmem:[#allocation5 + $0x86c] ss:$16 sps:$4 sm:$0xff]  }
 0x2c6   :  { %v6949_v17 = vpop.f32.mrf.mxu1  ;;  %v11218_v51 = vadd.f32 %v6947_v45, %v6907_v49  ;;  %7201 = vmatpush1.bf16.msra.mxu0 %v10200_v28  ;;  %v10242_v42 = vld [vmem:[#allocation5 + $0x9e8] ss:$16 sps:$4 sm:$0xff]   ;;  %v10250_v43 = vld [vmem:[#allocation5 + $0x9cc] ss:$16 sps:$4 sm:$0xff]  }
 0x2c7   :  { %7242 = vmatpush1.bf16.msra.mxu1 %v10203_v47  ;;  %v6909_v26 = vpop.f32.mrf.mxu0  ;;  %7202 = vmatprep.subr.bf16.mxu0 %v10208_v48  ;;  %v10253_v53 = vld [vmem:[#allocation5 + $0xbcc] ss:$16 sps:$4 sm:$0xff]   ;;  %v10248_v28 = vld [vmem:[#allocation5 + $0x9c8] ss:$16 sps:$4 sm:$0xff]  }
 0x2c8   :  { %v6950_v18 = vpop.f32.mrf.mxu1  ;;  %7243 = vmatprep.subr.bf16.mxu1 %v10211_v6  ;;  %v10251_v47 = vld [vmem:[#allocation5 + $0xbc8] ss:$16 sps:$4 sm:$0xff]   ;;  %v10256_v23 = vld [vmem:[#allocation5 + $0x9ac] ss:$16 sps:$4 sm:$0xff]  }
 0x2c9   :  { %v10259_v45 = vld [vmem:[#allocation5 + $0xbac] ss:$16 sps:$4 sm:$0xff]   ;;  %v10254_v48 = vld [vmem:[#allocation5 + $0x9a8] ss:$16 sps:$4 sm:$0xff]  }
 0x2ca   :  { %7203 = vmatpush1.bf16.msra.mxu0 %v10206_v50  ;;  %v10257_v6 = vld [vmem:[#allocation5 + $0xba8] ss:$16 sps:$4 sm:$0xff]   ;;  %v10262_v49 = vld [vmem:[#allocation5 + $0x98c] ss:$16 sps:$4 sm:$0xff]  }
 0x2cb   :  { %7244 = vmatpush1.bf16.msra.mxu1 %v10209_v52  ;;  %7204 = vmatprep.subr.bf16.mxu0 %v10214_v57  ;;  %v10265_v16 = vld [vmem:[#allocation5 + $0xb8c] ss:$16 sps:$4 sm:$0xff]   ;;  %v10260_v17 = vld [vmem:[#allocation5 + $0x988] ss:$16 sps:$4 sm:$0xff]  }
 0x2cc   :  { %7245 = vmatprep.subr.bf16.mxu1 %v10217_v36  ;;  %v10263_v50 = vld [vmem:[#allocation5 + $0xb88] ss:$16 sps:$4 sm:$0xff]   ;;  %v10268_v52 = vld [vmem:[#allocation5 + $0x96c] ss:$16 sps:$4 sm:$0xff]  }
 0x2cd   :  { %v10271_v26 = vld [vmem:[#allocation5 + $0xb6c] ss:$16 sps:$4 sm:$0xff]   ;;  %v10266_v18 = vld [vmem:[#allocation5 + $0x968] ss:$16 sps:$4 sm:$0xff]  }
 0x2ce   :  { %7205 = vmatpush1.bf16.msra.mxu0 %v10212_v20  ;;  %v10269_v57 = vld [vmem:[#allocation5 + $0xb68] ss:$16 sps:$4 sm:$0xff]   ;;  %v10274_v36 = vld [vmem:[#allocation5 + $0x94c] ss:$16 sps:$4 sm:$0xff]  }
 0x2cf   :  { %7246 = vmatpush1.bf16.msra.mxu1 %v10215_v24  ;;  %7206 = vmatprep.subr.bf16.mxu0 %v10220_v25  ;;  %v10277_v20 = vld [vmem:[#allocation5 + $0xb4c] ss:$16 sps:$4 sm:$0xff]   ;;  %v10272_v24 = vld [vmem:[#allocation5 + $0x948] ss:$16 sps:$4 sm:$0xff]  }
 0x2d0   :  { %7247 = vmatprep.subr.bf16.mxu1 %v10223_v37  ;;  %v10275_v25 = vld [vmem:[#allocation5 + $0xb48] ss:$16 sps:$4 sm:$0xff]   ;;  %v10280_v37 = vld [vmem:[#allocation5 + $0x92c] ss:$16 sps:$4 sm:$0xff]  }
 0x2d2   :  { %7207 = vmatpush1.bf16.msra.mxu0 %v10218_v58  ;;  %v10283_v58 = vld [vmem:[#allocation5 + $0xb2c] ss:$16 sps:$4 sm:$0xff]  }
 0x2d3   :  { %7248 = vmatpush1.bf16.msra.mxu1 %v10221_v31  ;;  %7208 = vmatprep.subr.bf16.mxu0 %v10226_v9  ;;  %v10278_v31 = vld [vmem:[#allocation5 + $0x928] ss:$16 sps:$4 sm:$0xff]  }
 0x2d4   :  { %7249 = vmatprep.subr.bf16.mxu1 %v10229_v10  ;;  %v10281_v9 = vld [vmem:[#allocation5 + $0xb28] ss:$16 sps:$4 sm:$0xff]   ;;  %v10286_v10 = vld [vmem:[#allocation5 + $0x90c] ss:$16 sps:$4 sm:$0xff]  }
 0x2d6   :  { %7209 = vmatpush1.bf16.msra.mxu0 %v10224_v11  ;;  %v10289_v11 = vld [vmem:[#allocation5 + $0xb0c] ss:$16 sps:$4 sm:$0xff]  }
 0x2d7   :  { %7250 = vmatpush1.bf16.msra.mxu1 %v10227_v15  ;;  %7210 = vmatprep.subr.bf16.mxu0 %v10232_v19  ;;  %v10284_v15 = vld [vmem:[#allocation5 + $0x908] ss:$16 sps:$4 sm:$0xff]  }
 0x2d8   :  { %7251 = vmatprep.subr.bf16.mxu1 %v10235_v12  ;;  %v10287_v19 = vld [vmem:[#allocation5 + $0xb08] ss:$16 sps:$4 sm:$0xff]   ;;  %v10292_v12 = vld [vmem:[#allocation5 + $0xcec] ss:$16 sps:$4 sm:$0xff]  }
 0x2da   :  { %7211 = vmatpush1.bf16.msra.mxu0 %v10230_v13  ;;  %v10295_v13 = vld [vmem:[#allocation5 + $0xeec] ss:$16 sps:$4 sm:$0xff]  }
 0x2db   :  { %7252 = vmatpush1.bf16.msra.mxu1 %v10233_v14  ;;  %7212 = vmatprep.subr.bf16.mxu0 %v10238_v21  ;;  %v10290_v14 = vld [vmem:[#allocation5 + $0xce8] ss:$16 sps:$4 sm:$0xff]  }
 0x2dc   :  { %7253 = vmatprep.subr.bf16.mxu1 %v10241_v30  ;;  %v10293_v21 = vld [vmem:[#allocation5 + $0xee8] ss:$16 sps:$4 sm:$0xff]   ;;  %v10298_v30 = vld [vmem:[#allocation5 + $0xccc] ss:$16 sps:$4 sm:$0xff]  }
 0x2de   :  { %7213 = vmatpush1.bf16.msra.mxu0 %v10236_v32  ;;  %v10301_v32 = vld [vmem:[#allocation5 + $0xecc] ss:$16 sps:$4 sm:$0xff]  }
 0x2df   :  { %7254 = vmatpush1.bf16.msra.mxu1 %v10239_v33  ;;  %7214 = vmatprep.subr.bf16.mxu0 %v10244_v46 }
 0x2e0   :  { %7255 = vmatprep.subr.bf16.mxu1 %v10247_v41 }
 0x2e2   :  { %7215 = vmatpush2.bf16.msra.mxu0 %v10242_v42  ;;  %v10296_v42 = vld [vmem:[#allocation5 + $0xcc8] ss:$16 sps:$4 sm:$0xff]  }
 0x2e3   :  { %7256 = vmatpush2.bf16.msra.mxu1 %v10245_v8  ;;  %7216 = vmatprep.subr.bf16.mxu0 %v10250_v43  ;;  %v10299_v8 = vld [vmem:[#allocation5 + $0xec8] ss:$16 sps:$4 sm:$0xff]  }
 0x2e4   :  { %7257 = vmatprep.subr.bf16.mxu1 %v10253_v53 }
 0x2e6   :  { %7217 = vmatpush2.bf16.msra.mxu0 %v10248_v28  ;;  %v10304_v28 = vld [vmem:[#allocation5 + $0xcac] ss:$16 sps:$4 sm:$0xff]  }
 0x2e7   :  { %7258 = vmatpush2.bf16.msra.mxu1 %v10251_v47  ;;  %7218 = vmatprep.subr.bf16.mxu0 %v10256_v23  ;;  %v10307_v47 = vld [vmem:[#allocation5 + $0xeac] ss:$16 sps:$4 sm:$0xff]  }
 0x2e8   :  { %7259 = vmatprep.subr.bf16.mxu1 %v10259_v45 }
 0x2ea   :  { %7219 = vmatpush2.bf16.msra.mxu0 %v10254_v48  ;;  %v10302_v48 = vld [vmem:[#allocation5 + $0xca8] ss:$16 sps:$4 sm:$0xff]  }
 0x2eb   :  { %7260 = vmatpush2.bf16.msra.mxu1 %v10257_v6  ;;  %7220 = vmatprep.subr.bf16.mxu0 %v10262_v49  ;;  %v10305_v6 = vld [vmem:[#allocation5 + $0xea8] ss:$16 sps:$4 sm:$0xff]  }
 0x2ec   :  { %7261 = vmatprep.subr.bf16.mxu1 %v10265_v16 }
 0x2ee   :  { %7221 = vmatpush2.bf16.msra.mxu0 %v10260_v17  ;;  %v10310_v17 = vld [vmem:[#allocation5 + $0xc8c] ss:$16 sps:$4 sm:$0xff]  }
 0x2ef   :  { %7262 = vmatpush2.bf16.msra.mxu1 %v10263_v50  ;;  %7222 = vmatprep.subr.bf16.mxu0 %v10268_v52  ;;  %v10313_v50 = vld [vmem:[#allocation5 + $0xe8c] ss:$16 sps:$4 sm:$0xff]  }
 0x2f0   :  { %7263 = vmatprep.subr.bf16.mxu1 %v10271_v26  ;;  %v10319_v52 = vld [vmem:[#allocation5 + $0xe6c] ss:$16 sps:$4 sm:$0xff]   ;;  %v10314_v26 = vld [vmem:[#allocation5 + $0xc68] ss:$16 sps:$4 sm:$0xff]  }
 0x2f2   :  { %7223 = vmatpush2.bf16.msra.mxu0 %v10266_v18  ;;  %v10317_v18 = vld [vmem:[#allocation5 + $0xe68] ss:$16 sps:$4 sm:$0xff]  }
 0x2f3   :  { %7264 = vmatpush2.bf16.msra.mxu1 %v10269_v57  ;;  %7224 = vmatprep.subr.bf16.mxu0 %v10274_v36  ;;  %v10322_v57 = vld [vmem:[#allocation5 + $0xc4c] ss:$16 sps:$4 sm:$0xff]  }
 0x2f4   :  { %7265 = vmatprep.subr.bf16.mxu1 %v10277_v20  ;;  %v10325_v36 = vld [vmem:[#allocation5 + $0xe4c] ss:$16 sps:$4 sm:$0xff]   ;;  %v10320_v20 = vld [vmem:[#allocation5 + $0xc48] ss:$16 sps:$4 sm:$0xff]  }
 0x2f6   :  { %7225 = vmatpush2.bf16.msra.mxu0 %v10272_v24  ;;  %v10323_v24 = vld [vmem:[#allocation5 + $0xe48] ss:$16 sps:$4 sm:$0xff]  }
 0x2f7   :  { %7266 = vmatpush2.bf16.msra.mxu1 %v10275_v25  ;;  %7226 = vmatprep.subr.bf16.mxu0 %v10280_v37  ;;  %v10328_v25 = vld [vmem:[#allocation5 + $0xc2c] ss:$16 sps:$4 sm:$0xff]  }
 0x2f8   :  { %7267 = vmatprep.subr.bf16.mxu1 %v10283_v58  ;;  %v10331_v37 = vld [vmem:[#allocation5 + $0xe2c] ss:$16 sps:$4 sm:$0xff]   ;;  %v10326_v58 = vld [vmem:[#allocation5 + $0xc28] ss:$16 sps:$4 sm:$0xff]  }
 0x2fa   :  { %7227 = vmatpush2.bf16.msra.mxu0 %v10278_v31  ;;  %v10329_v31 = vld [vmem:[#allocation5 + $0xe28] ss:$16 sps:$4 sm:$0xff]  }
 0x2fb   :  { %7268 = vmatpush2.bf16.msra.mxu1 %v10281_v9  ;;  %7228 = vmatprep.subr.bf16.mxu0 %v10286_v10  ;;  %v10334_v9 = vld [vmem:[#allocation5 + $0xc0c] ss:$16 sps:$4 sm:$0xff]  }
 0x2fc   :  { %7269 = vmatprep.subr.bf16.mxu1 %v10289_v11  ;;  %v10337_v10 = vld [vmem:[#allocation5 + $0xe0c] ss:$16 sps:$4 sm:$0xff]   ;;  %v10332_v11 = vld [vmem:[#allocation5 + $0xc08] ss:$16 sps:$4 sm:$0xff]  }
 0x2fe   :  { %7229 = vmatpush2.bf16.msra.mxu0 %v10284_v15  ;;  %v10335_v15 = vld [vmem:[#allocation5 + $0xe08] ss:$16 sps:$4 sm:$0xff]  }
 0x2ff   :  { %7270 = vmatpush2.bf16.msra.mxu1 %v10287_v19  ;;  %7280 = vmatprep.subr.bf16.mxu0 %v10292_v12  ;;  %v10340_v19 = vld [vmem:[#allocation5 + $0xdec] ss:$16 sps:$4 sm:$0xff]  }
 0x300   :  { %7321 = vmatprep.subr.bf16.mxu1 %v10295_v13  ;;  %v10343_v12 = vld [vmem:[#allocation5 + $0xfec] ss:$16 sps:$4 sm:$0xff]   ;;  %v10338_v13 = vld [vmem:[#allocation5 + $0xde8] ss:$16 sps:$4 sm:$0xff]  }
 0x301   :  { %v6986_v33 = vpop.f32.mrf.mxu0  ;;  %7231 = vmatmul.mubr.bf16.vlgmr.msra.gmra.mxu0 %v11040_v38 }
 0x302   :  { %v7027_v46 = vpop.f32.mrf.mxu1  ;;  %7272 = vmatmul.mubr.bf16.vlgmr.msra.gmra.mxu1 %v11044_v39  ;;  %v6987_v41 = vadd.f32 %v6986_v33, %v11213_v7  ;;  %7281 = vmatpush1.bf16.msra.mxu0 %v10290_v14  ;;  %v10341_v14 = vld [vmem:[#allocation5 + $0xfe8] ss:$16 sps:$4 sm:$0xff]  }
 0x303   :  { %7322 = vmatpush1.bf16.msra.mxu1 %v10293_v21  ;;  %v6988_v43 = vpop.f32.mrf.mxu0  ;;  %7282 = vmatprep.subr.bf16.mxu0 %v10298_v30  ;;  %v10346_v21 = vld [vmem:[#allocation5 + $0xdcc] ss:$16 sps:$4 sm:$0xff]   ;;  %v10347_v33 = vld [vmem:[#allocation5 + $0xfc8] ss:$16 sps:$4 sm:$0xff]  }
 0x304   :  { %v7029_v53 = vpop.f32.mrf.mxu1  ;;  %7323 = vmatprep.subr.bf16.mxu1 %v10301_v32  ;;  %v11223_v23 = vadd.f32 %v7027_v46, %v6987_v41  ;;  %v6989_v45 = vadd.f32 %v6988_v43, %v11218_v51  ;;  %7312 = vmatprep.mubr.bf16.mxu0 %v11050_v44  ;;  %v10308_v51 = vld [vmem:[#allocation5 + $0xc88] ss:$16 sps:$4 sm:$0xff]   ;;  %v10349_v30 = vld [vmem:[#allocation5 + $0xfcc] ss:$16 sps:$4 sm:$0xff]  }
 0x305   :  { %7353 = vmatprep.mubr.bf16.mxu1 %v11054_v22  ;;  %v6990_v38 = vpop.f32.mrf.mxu0  ;;  %v10311_v44 = vld [vmem:[#allocation5 + $0xe88] ss:$16 sps:$4 sm:$0xff]   ;;  %v10316_v22 = vld [vmem:[#allocation5 + $0xc6c] ss:$16 sps:$4 sm:$0xff]  }
 0x306   :  { %v7031_v39 = vpop.f32.mrf.mxu1  ;;  %v11228_v7 = vadd.f32 %v7029_v53, %v6989_v45  ;;  %7283 = vmatpush1.bf16.msra.mxu0 %v10296_v42  ;;  %v10344_v32 = vld [vmem:[#allocation5 + $0xdc8] ss:$16 sps:$4 sm:$0xff]   ;;  %v10352_v46 = vld [vmem:[#allocation5 + $0xdac] ss:$16 sps:$4 sm:$0xff]  }
 0x307   :  { %7324 = vmatpush1.bf16.msra.mxu1 %v10299_v8  ;;  %v6991_v49 = vpop.f32.mrf.mxu0  ;;  %7284 = vmatprep.subr.bf16.mxu0 %v10304_v28  ;;  %v10355_v41 = vld [vmem:[#allocation5 + $0xfac] ss:$16 sps:$4 sm:$0xff]   ;;  %v10350_v42 = vld [vmem:[#allocation5 + $0xda8] ss:$16 sps:$4 sm:$0xff]  }
 0x308   :  { %v7032_v16 = vpop.f32.mrf.mxu1  ;;  %7325 = vmatprep.subr.bf16.mxu1 %v10307_v47  ;;  %v10353_v8 = vld [vmem:[#allocation5 + $0xfa8] ss:$16 sps:$4 sm:$0xff]   ;;  %v10358_v43 = vld [vmem:[#allocation5 + $0xd8c] ss:$16 sps:$4 sm:$0xff]  }
 0x309   :  { %v10361_v53 = vld [vmem:[#allocation5 + $0xf8c] ss:$16 sps:$4 sm:$0xff]   ;;  %v10356_v28 = vld [vmem:[#allocation5 + $0xd88] ss:$16 sps:$4 sm:$0xff]  }
 0x30a   :  { %7285 = vmatpush1.bf16.msra.mxu0 %v10302_v48  ;;  %v10359_v47 = vld [vmem:[#allocation5 + $0xf88] ss:$16 sps:$4 sm:$0xff]   ;;  %v10364_v45 = vld [vmem:[#allocation5 + $0xd6c] ss:$16 sps:$4 sm:$0xff]  }
 0x30b   :  { %7326 = vmatpush1.bf16.msra.mxu1 %v10305_v6  ;;  %7286 = vmatprep.subr.bf16.mxu0 %v10310_v17  ;;  %v10367_v38 = vld [vmem:[#allocation5 + $0xf6c] ss:$16 sps:$4 sm:$0xff]   ;;  %v10362_v39 = vld [vmem:[#allocation5 + $0xd68] ss:$16 sps:$4 sm:$0xff]  }
 0x30c   :  { %7327 = vmatprep.subr.bf16.mxu1 %v10313_v50  ;;  %v10365_v48 = vld [vmem:[#allocation5 + $0xf68] ss:$16 sps:$4 sm:$0xff]   ;;  %v10370_v6 = vld [vmem:[#allocation5 + $0xd4c] ss:$16 sps:$4 sm:$0xff]  }
 0x30d   :  { %v10373_v49 = vld [vmem:[#allocation5 + $0xf4c] ss:$16 sps:$4 sm:$0xff]   ;;  %v10368_v16 = vld [vmem:[#allocation5 + $0xd48] ss:$16 sps:$4 sm:$0xff]  }
 0x30e   :  { %7287 = vmatpush1.bf16.msra.mxu0 %v10308_v51  ;;  %v10371_v17 = vld [vmem:[#allocation5 + $0xf48] ss:$16 sps:$4 sm:$0xff]   ;;  %v10376_v50 = vld [vmem:[#allocation5 + $0xd2c] ss:$16 sps:$4 sm:$0xff]  }
 0x30f   :  { %7328 = vmatpush1.bf16.msra.mxu1 %v10311_v44  ;;  %7288 = vmatprep.subr.bf16.mxu0 %v10316_v22  ;;  %v10379_v51 = vld [vmem:[#allocation5 + $0xf2c] ss:$16 sps:$4 sm:$0xff]   ;;  %v10374_v44 = vld [vmem:[#allocation5 + $0xd28] ss:$16 sps:$4 sm:$0xff]  }
 0x310   :  { %7329 = vmatprep.subr.bf16.mxu1 %v10319_v52  ;;  %v10377_v22 = vld [vmem:[#allocation5 + $0xf28] ss:$16 sps:$4 sm:$0xff]   ;;  %v10382_v52 = vld [vmem:[#allocation5 + $0xd0c] ss:$16 sps:$4 sm:$0xff]  }
 0x312   :  { %7289 = vmatpush1.bf16.msra.mxu0 %v10314_v26  ;;  %v10385_v26 = vld [vmem:[#allocation5 + $0xf0c] ss:$16 sps:$4 sm:$0xff]  }
 0x313   :  { %7330 = vmatpush1.bf16.msra.mxu1 %v10317_v18  ;;  %7290 = vmatprep.subr.bf16.mxu0 %v10322_v57  ;;  %v10380_v18 = vld [vmem:[#allocation5 + $0xd08] ss:$16 sps:$4 sm:$0xff]  }
 0x314   :  { %7331 = vmatprep.subr.bf16.mxu1 %v10325_v36  ;;  %v10383_v57 = vld [vmem:[#allocation5 + $0xf08] ss:$16 sps:$4 sm:$0xff]   ;;  %v1136_v36 = vsub.s32 2, %v11060_v54 }
 0x316   :  { %7291 = vmatpush1.bf16.msra.mxu0 %v10320_v20  ;;  %v10388_v20 = vld [vmem:[#allocation5 + $0x10ec] ss:$16 sps:$4 sm:$0xff]  }
 0x317   :  { %7332 = vmatpush1.bf16.msra.mxu1 %v10323_v24  ;;  %7292 = vmatprep.subr.bf16.mxu0 %v10328_v25  ;;  %v10391_v24 = vld [vmem:[#allocation5 + $0x12ec] ss:$16 sps:$4 sm:$0xff]   ;;  %v1140_v25 = vsub.s32 3, %v11060_v54  ;;  %v10392_v54 = vld [vmem:[#allocation5 + $0x10c8] ss:$16 sps:$4 sm:$0xff]  }
 0x318   :  { %7333 = vmatprep.subr.bf16.mxu1 %v10331_v37  ;;  %v10802_v37 = vld [vmem:[#allocation7] sm:$0xf] }
 0x31a   :  { %7293 = vmatpush1.bf16.msra.mxu0 %v10326_v58  ;;  %v1137_v58 = vrot.slane %v10802_v37, %v1136_v36  ;;  %v10431_v36 = vld [vmem:[#allocation5 + $0x1208] ss:$16 sps:$4 sm:$0xff]  }
 0x31b   :  { %7334 = vmatpush1.bf16.msra.mxu1 %v10329_v31  ;;  %7294 = vmatprep.subr.bf16.mxu0 %v10334_v9  ;;  %v10386_v31 = vld [vmem:[#allocation5 + $0x10e8] ss:$16 sps:$4 sm:$0xff]  }
 0x31c   :  { %7335 = vmatprep.subr.bf16.mxu1 %v10337_v10  ;;  %v10389_v9 = vld [vmem:[#allocation5 + $0x12e8] ss:$16 sps:$4 sm:$0xff]   ;;  %v10394_v10 = vld [vmem:[#allocation5 + $0x10cc] ss:$16 sps:$4 sm:$0xff]  }
 0x31e   :  { %7295 = vmatpush1.bf16.msra.mxu0 %v10332_v11  ;;  %v10397_v11 = vld [vmem:[#allocation5 + $0x12cc] ss:$16 sps:$4 sm:$0xff]  }
 0x31f   :  { %7336 = vmatpush1.bf16.msra.mxu1 %v10335_v15  ;;  %7296 = vmatprep.subr.bf16.mxu0 %v10340_v19  ;;  %v1141_v15 = vrot.slane %v10802_v37, %v1140_v25  ;;  %v10434_v25 = vld [vmem:[#allocation5 + $0x11e8] ss:$16 sps:$4 sm:$0xff]  }
 0x320   :  { %7337 = vmatprep.subr.bf16.mxu1 %v10343_v12  ;;  %v10437_v37 = vld [vmem:[#allocation5 + $0x13e8] ss:$16 sps:$4 sm:$0xff]  }
 0x322   :  { %7297 = vmatpush2.bf16.msra.mxu0 %v10338_v13 }
 0x323   :  { %7338 = vmatpush2.bf16.msra.mxu1 %v10341_v14  ;;  %7298 = vmatprep.subr.bf16.mxu0 %v10346_v21  ;;  %v10395_v14 = vld [vmem:[#allocation5 + $0x12c8] ss:$16 sps:$4 sm:$0xff]  }
 0x324   :  { %7339 = vmatprep.subr.bf16.mxu1 %v10349_v30 }
 0x326   :  { %7299 = vmatpush2.bf16.msra.mxu0 %v10344_v32  ;;  %v10400_v32 = vld [vmem:[#allocation5 + $0x10ac] ss:$16 sps:$4 sm:$0xff]  }
 0x327   :  { %7340 = vmatpush2.bf16.msra.mxu1 %v10347_v33  ;;  %7300 = vmatprep.subr.bf16.mxu0 %v10352_v46  ;;  %v10403_v33 = vld [vmem:[#allocation5 + $0x12ac] ss:$16 sps:$4 sm:$0xff]  }
 0x328   :  { %7341 = vmatprep.subr.bf16.mxu1 %v10355_v41 }
 0x32a   :  { %7301 = vmatpush2.bf16.msra.mxu0 %v10350_v42 }
 0x32b   :  { %7342 = vmatpush2.bf16.msra.mxu1 %v10353_v8  ;;  %7302 = vmatprep.subr.bf16.mxu0 %v10358_v43  ;;  %v10398_v8 = vld [vmem:[#allocation5 + $0x10a8] ss:$16 sps:$4 sm:$0xff]  }
 0x32c   :  { %7343 = vmatprep.subr.bf16.mxu1 %v10361_v53  ;;  %v10401_v43 = vld [vmem:[#allocation5 + $0x12a8] ss:$16 sps:$4 sm:$0xff]  }
 0x32e   :  { %7303 = vmatpush2.bf16.msra.mxu0 %v10356_v28 }
 0x32f   :  { %7344 = vmatpush2.bf16.msra.mxu1 %v10359_v47  ;;  %7304 = vmatprep.subr.bf16.mxu0 %v10364_v45  ;;  %v10406_v47 = vld [vmem:[#allocation5 + $0x108c] ss:$16 sps:$4 sm:$0xff]  }
 0x330   :  { %7345 = vmatprep.subr.bf16.mxu1 %v10367_v38  ;;  %v10409_v45 = vld [vmem:[#allocation5 + $0x128c] ss:$16 sps:$4 sm:$0xff]   ;;  %v10404_v38 = vld [vmem:[#allocation5 + $0x1088] ss:$16 sps:$4 sm:$0xff]  }
 0x332   :  { %7305 = vmatpush2.bf16.msra.mxu0 %v10362_v39  ;;  %v10415_v39 = vld [vmem:[#allocation5 + $0x126c] ss:$16 sps:$4 sm:$0xff]  }
 0x333   :  { %7346 = vmatpush2.bf16.msra.mxu1 %v10365_v48  ;;  %7306 = vmatprep.subr.bf16.mxu0 %v10370_v6  ;;  %v10410_v48 = vld [vmem:[#allocation5 + $0x1068] ss:$16 sps:$4 sm:$0xff]  }
 0x334   :  { %7347 = vmatprep.subr.bf16.mxu1 %v10373_v49  ;;  %v10413_v6 = vld [vmem:[#allocation5 + $0x1268] ss:$16 sps:$4 sm:$0xff]   ;;  %v10418_v49 = vld [vmem:[#allocation5 + $0x104c] ss:$16 sps:$4 sm:$0xff]  }
 0x336   :  { %7307 = vmatpush2.bf16.msra.mxu0 %v10368_v16  ;;  %v10421_v16 = vld [vmem:[#allocation5 + $0x124c] ss:$16 sps:$4 sm:$0xff]  }
 0x337   :  { %7348 = vmatpush2.bf16.msra.mxu1 %v10371_v17  ;;  %7308 = vmatprep.subr.bf16.mxu0 %v10376_v50  ;;  %v10416_v17 = vld [vmem:[#allocation5 + $0x1048] ss:$16 sps:$4 sm:$0xff]  }
 0x338   :  { %7349 = vmatprep.subr.bf16.mxu1 %v10379_v51  ;;  %v10419_v50 = vld [vmem:[#allocation5 + $0x1248] ss:$16 sps:$4 sm:$0xff]   ;;  %v10424_v51 = vld [vmem:[#allocation5 + $0x102c] ss:$16 sps:$4 sm:$0xff]  }
 0x33a   :  { %7309 = vmatpush2.bf16.msra.mxu0 %v10374_v44  ;;  %v10427_v44 = vld [vmem:[#allocation5 + $0x122c] ss:$16 sps:$4 sm:$0xff]  }
 0x33b   :  { %7350 = vmatpush2.bf16.msra.mxu1 %v10377_v22  ;;  %7310 = vmatprep.subr.bf16.mxu0 %v10382_v52  ;;  %v10422_v22 = vld [vmem:[#allocation5 + $0x1028] ss:$16 sps:$4 sm:$0xff]  }
 0x33c   :  { %7351 = vmatprep.subr.bf16.mxu1 %v10385_v26  ;;  %v10425_v52 = vld [vmem:[#allocation5 + $0x1228] ss:$16 sps:$4 sm:$0xff]   ;;  %v10430_v26 = vld [vmem:[#allocation5 + $0x100c] ss:$16 sps:$4 sm:$0xff]  }
 0x33e   :  { %7311 = vmatpush2.bf16.msra.mxu0 %v10380_v18  ;;  %v10433_v18 = vld [vmem:[#allocation5 + $0x120c] ss:$16 sps:$4 sm:$0xff]  }
 0x33f   :  { %7352 = vmatpush2.bf16.msra.mxu1 %v10383_v57  ;;  %7362 = vmatprep.subr.bf16.mxu0 %v10388_v20  ;;  %v10428_v57 = vld [vmem:[#allocation5 + $0x1008] ss:$16 sps:$4 sm:$0xff]   ;;  %v10436_v20 = vld [vmem:[#allocation5 + $0x11ec] ss:$16 sps:$4 sm:$0xff]  }
 0x340   :  { %7403 = vmatprep.subr.bf16.mxu1 %v10391_v24  ;;  %v10439_v24 = vld [vmem:[#allocation5 + $0x13ec] ss:$16 sps:$4 sm:$0xff]  }
 0x341   :  { %v7068_v19 = vpop.f32.mrf.mxu0  ;;  %7313 = vmatmul.mubr.bf16.vlgmr.msra.gmra.mxu0 %v11066_v0 }
 0x342   :  { %v7109_v12 = vpop.f32.mrf.mxu1  ;;  %7354 = vmatmul.mubr.bf16.vlgmr.msra.gmra.mxu1 %v11070_v1  ;;  %v7069_v13 = vadd.f32 %v7068_v19, %v1137_v58  ;;  %7363 = vmatpush1.bf16.msra.mxu0 %v10386_v31  ;;  %v10442_v58 = vld [vmem:[#allocation5 + $0x11cc] ss:$16 sps:$4 sm:$0xff]   ;;  %v10446_v19 = vld [vmem:[#allocation5 + $0x11a8] ss:$16 sps:$4 sm:$0xff]  }
 0x343   :  { %7404 = vmatpush1.bf16.msra.mxu1 %v10389_v9  ;;  %v7070_v21 = vpop.f32.mrf.mxu0  ;;  %7364 = vmatprep.subr.bf16.mxu0 %v10394_v10  ;;  %v10445_v31 = vld [vmem:[#allocation5 + $0x13cc] ss:$16 sps:$4 sm:$0xff]   ;;  %v10440_v9 = vld [vmem:[#allocation5 + $0x11c8] ss:$16 sps:$4 sm:$0xff]  }
 0x344   :  { %v7111_v30 = vpop.f32.mrf.mxu1  ;;  %7405 = vmatprep.subr.bf16.mxu1 %v10397_v11  ;;  %v11234_v46 = vadd.f32 %v7109_v12, %v7069_v13  ;;  %v7071_v41 = vadd.f32 %v7070_v21, %v1141_v15  ;;  %7394 = vmatprep.mubr.bf16.mxu0 %v11078_v35  ;;  %v10407_v35 = vld [vmem:[#allocation5 + $0x1288] ss:$16 sps:$4 sm:$0xff]   ;;  %v10448_v11 = vld [vmem:[#allocation5 + $0x11ac] ss:$16 sps:$4 sm:$0xff]  }
 0x345   :  { %7435 = vmatprep.mubr.bf16.mxu1 %v11082_v40  ;;  %v7072_v0 = vpop.f32.mrf.mxu0  ;;  %v10412_v40 = vld [vmem:[#allocation5 + $0x106c] ss:$16 sps:$4 sm:$0xff]   ;;  %v10443_v10 = vld [vmem:[#allocation5 + $0x13c8] ss:$16 sps:$4 sm:$0xff]  }
 0x346   :  { %v7113_v1 = vpop.f32.mrf.mxu1  ;;  %v11238_v42 = vadd.f32 %v7111_v30, %v7071_v41  ;;  %7365 = vmatpush1.bf16.msra.mxu0 %v10392_v54  ;;  %v10451_v15 = vld [vmem:[#allocation5 + $0x13ac] ss:$16 sps:$4 sm:$0xff]   ;;  %v10449_v12 = vld [vmem:[#allocation5 + $0x13a8] ss:$16 sps:$4 sm:$0xff]  }
 0x347   :  { %7406 = vmatpush1.bf16.msra.mxu1 %v10395_v14  ;;  %v7073_v53 = vpop.f32.mrf.mxu0  ;;  %7366 = vmatprep.subr.bf16.mxu0 %v10400_v32  ;;  %v10454_v13 = vld [vmem:[#allocation5 + $0x118c] ss:$16 sps:$4 sm:$0xff]   ;;  %v10452_v14 = vld [vmem:[#allocation5 + $0x1188] ss:$16 sps:$4 sm:$0xff]  }
 0x348   :  { %v7114_v28 = vpop.f32.mrf.mxu1  ;;  %7407 = vmatprep.subr.bf16.mxu1 %v10403_v33  ;;  %v10457_v54 = vld [vmem:[#allocation5 + $0x138c] ss:$16 sps:$4 sm:$0xff]   ;;  %v10455_v21 = vld [vmem:[#allocation5 + $0x1388] ss:$16 sps:$4 sm:$0xff]  }
 0x349   :  { %v10460_v30 = vld [vmem:[#allocation5 + $0x116c] ss:$16 sps:$4 sm:$0xff]   ;;  %v10458_v33 = vld [vmem:[#allocation5 + $0x1168] ss:$16 sps:$4 sm:$0xff]  }
 0x34a   :  { %7367 = vmatpush1.bf16.msra.mxu0 %v10398_v8  ;;  %v10463_v32 = vld [vmem:[#allocation5 + $0x136c] ss:$16 sps:$4 sm:$0xff]   ;;  %v10461_v41 = vld [vmem:[#allocation5 + $0x1368] ss:$16 sps:$4 sm:$0xff]  }
 0x34b   :  { %7408 = vmatpush1.bf16.msra.mxu1 %v10401_v43  ;;  %7368 = vmatprep.subr.bf16.mxu0 %v10406_v47  ;;  %v10466_v0 = vld [vmem:[#allocation5 + $0x114c] ss:$16 sps:$4 sm:$0xff]   ;;  %v10464_v8 = vld [vmem:[#allocation5 + $0x1148] ss:$16 sps:$4 sm:$0xff]  }
 0x34c   :  { %7409 = vmatprep.subr.bf16.mxu1 %v10409_v45  ;;  %v10469_v1 = vld [vmem:[#allocation5 + $0x134c] ss:$16 sps:$4 sm:$0xff]   ;;  %v10467_v43 = vld [vmem:[#allocation5 + $0x1348] ss:$16 sps:$4 sm:$0xff]  }
 0x34d   :  { %v10472_v53 = vld [vmem:[#allocation5 + $0x112c] ss:$16 sps:$4 sm:$0xff]   ;;  %v10470_v47 = vld [vmem:[#allocation5 + $0x1128] ss:$16 sps:$4 sm:$0xff]  }
 0x34e   :  { %7369 = vmatpush1.bf16.msra.mxu0 %v10404_v38  ;;  %v10475_v28 = vld [vmem:[#allocation5 + $0x132c] ss:$16 sps:$4 sm:$0xff]   ;;  %v10473_v45 = vld [vmem:[#allocation5 + $0x1328] ss:$16 sps:$4 sm:$0xff]  }
 0x34f   :  { %7410 = vmatpush1.bf16.msra.mxu1 %v10407_v35  ;;  %7370 = vmatprep.subr.bf16.mxu0 %v10412_v40  ;;  %v10478_v38 = vld [vmem:[#allocation5 + $0x110c] ss:$16 sps:$4 sm:$0xff]   ;;  %v10476_v40 = vld [vmem:[#allocation5 + $0x1108] ss:$16 sps:$4 sm:$0xff]  }
 0x350   :  { %7411 = vmatprep.subr.bf16.mxu1 %v10415_v39  ;;  %v10481_v35 = vld [vmem:[#allocation5 + $0x130c] ss:$16 sps:$4 sm:$0xff]   ;;  %v10479_v39 = vld [vmem:[#allocation5 + $0x1308] ss:$16 sps:$4 sm:$0xff]  }
 0x352   :  { %7371 = vmatpush1.bf16.msra.mxu0 %v10410_v48  ;;  %v10484_v48 = vld [vmem:[#allocation5 + $0x14ec] ss:$16 sps:$4 sm:$0xff]  }
 0x353   :  { %7412 = vmatpush1.bf16.msra.mxu1 %v10413_v6  ;;  %7372 = vmatprep.subr.bf16.mxu0 %v10418_v49  ;;  %v10487_v6 = vld [vmem:[#allocation5 + $0x16ec] ss:$16 sps:$4 sm:$0xff]   ;;  %v10482_v49 = vld [vmem:[#allocation5 + $0x14e8] ss:$16 sps:$4 sm:$0xff]  }
 0x354   :  { %7413 = vmatprep.subr.bf16.mxu1 %v10421_v16  ;;  %v10485_v16 = vld [vmem:[#allocation5 + $0x16e8] ss:$16 sps:$4 sm:$0xff]  }
 0x356   :  { %7373 = vmatpush1.bf16.msra.mxu0 %v10416_v17  ;;  %v10490_v17 = vld [vmem:[#allocation5 + $0x14cc] ss:$16 sps:$4 sm:$0xff]  }
 0x357   :  { %7414 = vmatpush1.bf16.msra.mxu1 %v10419_v50  ;;  %7374 = vmatprep.subr.bf16.mxu0 %v10424_v51  ;;  %v10493_v50 = vld [vmem:[#allocation5 + $0x16cc] ss:$16 sps:$4 sm:$0xff]  }
 0x358   :  { %7415 = vmatprep.subr.bf16.mxu1 %v10427_v44 }
 0x35a   :  { %7375 = vmatpush1.bf16.msra.mxu0 %v10422_v22 }
 0x35b   :  { %7416 = vmatpush1.bf16.msra.mxu1 %v10425_v52  ;;  %7376 = vmatprep.subr.bf16.mxu0 %v10430_v26  ;;  %v10488_v52 = vld [vmem:[#allocation5 + $0x14c8] ss:$16 sps:$4 sm:$0xff]  }
 0x35c   :  { %7417 = vmatprep.subr.bf16.mxu1 %v10433_v18  ;;  %v10491_v26 = vld [vmem:[#allocation5 + $0x16c8] ss:$16 sps:$4 sm:$0xff]  }
 0x35e   :  { %7377 = vmatpush1.bf16.msra.mxu0 %v10428_v57 }
 0x35f   :  { %7418 = vmatpush1.bf16.msra.mxu1 %v10431_v36  ;;  %7378 = vmatprep.subr.bf16.mxu0 %v10436_v20  ;;  %v10496_v36 = vld [vmem:[#allocation5 + $0x14ac] ss:$16 sps:$4 sm:$0xff]  }
 0x360   :  { %7419 = vmatprep.subr.bf16.mxu1 %v10439_v24  ;;  %v10499_v20 = vld [vmem:[#allocation5 + $0x16ac] ss:$16 sps:$4 sm:$0xff]  }
 0x362   :  { %7379 = vmatpush2.bf16.msra.mxu0 %v10434_v25 }
 0x363   :  { %7420 = vmatpush2.bf16.msra.mxu1 %v10437_v37  ;;  %7380 = vmatprep.subr.bf16.mxu0 %v10442_v58  ;;  %v10494_v37 = vld [vmem:[#allocation5 + $0x14a8] ss:$16 sps:$4 sm:$0xff]  }
 0x364   :  { %7421 = vmatprep.subr.bf16.mxu1 %v10445_v31  ;;  %v10497_v58 = vld [vmem:[#allocation5 + $0x16a8] ss:$16 sps:$4 sm:$0xff]  }
 0x366   :  { %7381 = vmatpush2.bf16.msra.mxu0 %v10440_v9 }
 0x367   :  { %7422 = vmatpush2.bf16.msra.mxu1 %v10443_v10  ;;  %7382 = vmatprep.subr.bf16.mxu0 %v10448_v11  ;;  %v10502_v10 = vld [vmem:[#allocation5 + $0x148c] ss:$16 sps:$4 sm:$0xff]  }
 0x368   :  { %7423 = vmatprep.subr.bf16.mxu1 %v10451_v15  ;;  %v10505_v11 = vld [vmem:[#allocation5 + $0x168c] ss:$16 sps:$4 sm:$0xff]  }
 0x369   :  { %v10511_v15 = vld [vmem:[#allocation5 + $0x166c] ss:$16 sps:$4 sm:$0xff]  }
 0x36a   :  { %7383 = vmatpush2.bf16.msra.mxu0 %v10446_v19  ;;  %v10506_v19 = vld [vmem:[#allocation5 + $0x1468] ss:$16 sps:$4 sm:$0xff]  }
 0x36b   :  { %7424 = vmatpush2.bf16.msra.mxu1 %v10449_v12  ;;  %7384 = vmatprep.subr.bf16.mxu0 %v10454_v13  ;;  %v10509_v12 = vld [vmem:[#allocation5 + $0x1668] ss:$16 sps:$4 sm:$0xff]   ;;  %v10514_v13 = vld [vmem:[#allocation5 + $0x144c] ss:$16 sps:$4 sm:$0xff]  }
 0x36c   :  { %7425 = vmatprep.subr.bf16.mxu1 %v10457_v54  ;;  %v10517_v54 = vld [vmem:[#allocation5 + $0x164c] ss:$16 sps:$4 sm:$0xff]  }
 0x36e   :  { %7385 = vmatpush2.bf16.msra.mxu0 %v10452_v14  ;;  %v10512_v14 = vld [vmem:[#allocation5 + $0x1448] ss:$16 sps:$4 sm:$0xff]  }
 0x36f   :  { %7426 = vmatpush2.bf16.msra.mxu1 %v10455_v21  ;;  %7386 = vmatprep.subr.bf16.mxu0 %v10460_v30  ;;  %v10515_v21 = vld [vmem:[#allocation5 + $0x1648] ss:$16 sps:$4 sm:$0xff]   ;;  %v10520_v30 = vld [vmem:[#allocation5 + $0x142c] ss:$16 sps:$4 sm:$0xff]  }
 0x370   :  { %7427 = vmatprep.subr.bf16.mxu1 %v10463_v32  ;;  %v10523_v32 = vld [vmem:[#allocation5 + $0x162c] ss:$16 sps:$4 sm:$0xff]  }
 0x372   :  { %7387 = vmatpush2.bf16.msra.mxu0 %v10458_v33  ;;  %v10518_v33 = vld [vmem:[#allocation5 + $0x1428] ss:$16 sps:$4 sm:$0xff]  }
 0x373   :  { %7428 = vmatpush2.bf16.msra.mxu1 %v10461_v41  ;;  %7388 = vmatprep.subr.bf16.mxu0 %v10466_v0  ;;  %v10521_v41 = vld [vmem:[#allocation5 + $0x1628] ss:$16 sps:$4 sm:$0xff]   ;;  %v10526_v0 = vld [vmem:[#allocation5 + $0x140c] ss:$16 sps:$4 sm:$0xff]  }
 0x374   :  { %7429 = vmatprep.subr.bf16.mxu1 %v10469_v1  ;;  %v10529_v1 = vld [vmem:[#allocation5 + $0x160c] ss:$16 sps:$4 sm:$0xff]  }
 0x376   :  { %7389 = vmatpush2.bf16.msra.mxu0 %v10464_v8  ;;  %v10524_v8 = vld [vmem:[#allocation5 + $0x1408] ss:$16 sps:$4 sm:$0xff]  }
 0x377   :  { %7430 = vmatpush2.bf16.msra.mxu1 %v10467_v43  ;;  %7390 = vmatprep.subr.bf16.mxu0 %v10472_v53  ;;  %v10527_v43 = vld [vmem:[#allocation5 + $0x1608] ss:$16 sps:$4 sm:$0xff]   ;;  %v10532_v53 = vld [vmem:[#allocation5 + $0x15ec] ss:$16 sps:$4 sm:$0xff]  }
 0x378   :  { %7431 = vmatprep.subr.bf16.mxu1 %v10475_v28  ;;  %v10535_v28 = vld [vmem:[#allocation5 + $0x17ec] ss:$16 sps:$4 sm:$0xff]  }
 0x37a   :  { %7391 = vmatpush2.bf16.msra.mxu0 %v10470_v47  ;;  %v10530_v47 = vld [vmem:[#allocation5 + $0x15e8] ss:$16 sps:$4 sm:$0xff]  }
 0x37b   :  { %7432 = vmatpush2.bf16.msra.mxu1 %v10473_v45  ;;  %7392 = vmatprep.subr.bf16.mxu0 %v10478_v38  ;;  %v10533_v45 = vld [vmem:[#allocation5 + $0x17e8] ss:$16 sps:$4 sm:$0xff]   ;;  %v10538_v38 = vld [vmem:[#allocation5 + $0x15cc] ss:$16 sps:$4 sm:$0xff]  }
 0x37c   :  { %7433 = vmatprep.subr.bf16.mxu1 %v10481_v35  ;;  %v10541_v35 = vld [vmem:[#allocation5 + $0x17cc] ss:$16 sps:$4 sm:$0xff]  }
 0x37e   :  { %7393 = vmatpush2.bf16.msra.mxu0 %v10476_v40  ;;  %v10536_v40 = vld [vmem:[#allocation5 + $0x15c8] ss:$16 sps:$4 sm:$0xff]  }
 0x37f   :  { %7434 = vmatpush2.bf16.msra.mxu1 %v10479_v39  ;;  %7444 = vmatprep.subr.bf16.mxu0 %v10484_v48  ;;  %v10539_v39 = vld [vmem:[#allocation5 + $0x17c8] ss:$16 sps:$4 sm:$0xff]   ;;  %v10544_v48 = vld [vmem:[#allocation5 + $0x15ac] ss:$16 sps:$4 sm:$0xff]  }
 0x380   :  { %7485 = vmatprep.subr.bf16.mxu1 %v10487_v6  ;;  %v10547_v6 = vld [vmem:[#allocation5 + $0x17ac] ss:$16 sps:$4 sm:$0xff]  }
 0x381   :  { %v7150_v51 = vpop.f32.mrf.mxu0  ;;  %7395 = vmatmul.mubr.bf16.vlgmr.msra.gmra.mxu0 %v11094_v59 }
 0x382   :  { %v7191_v44 = vpop.f32.mrf.mxu1  ;;  %7436 = vmatmul.mubr.bf16.vlgmr.msra.gmra.mxu1 %v11098_v60  ;;  %v7151_v22 = vadd.f32 %v7150_v51, %v11234_v46  ;;  %7445 = vmatpush1.bf16.msra.mxu0 %v10482_v49  ;;  %v10542_v49 = vld [vmem:[#allocation5 + $0x15a8] ss:$16 sps:$4 sm:$0xff]  }
 0x383   :  { %7486 = vmatpush1.bf16.msra.mxu1 %v10485_v16  ;;  %v7152_v18 = vpop.f32.mrf.mxu0  ;;  %7446 = vmatprep.subr.bf16.mxu0 %v10490_v17  ;;  %v10545_v16 = vld [vmem:[#allocation5 + $0x17a8] ss:$16 sps:$4 sm:$0xff]   ;;  %v10550_v17 = vld [vmem:[#allocation5 + $0x158c] ss:$16 sps:$4 sm:$0xff]  }
 0x384   :  { %v7193_v57 = vpop.f32.mrf.mxu1  ;;  %7487 = vmatprep.subr.bf16.mxu1 %v10493_v50  ;;  %v11243_v24 = vadd.f32 %v7191_v44, %v7151_v22  ;;  %v7153_v25 = vadd.f32 %v7152_v18, %v11238_v42  ;;  %7476 = vmatprep.mubr.bf16.mxu0 %v11106_v2  ;;  %v10500_v42 = vld [vmem:[#allocation5 + $0x1488] ss:$16 sps:$4 sm:$0xff]   ;;  %v10553_v50 = vld [vmem:[#allocation5 + $0x178c] ss:$16 sps:$4 sm:$0xff]  }
 0x385   :  { %7517 = vmatprep.mubr.bf16.mxu1 %v11110_v3  ;;  %v7154_v59 = vpop.f32.mrf.mxu0  ;;  %v10503_v2 = vld [vmem:[#allocation5 + $0x1688] ss:$16 sps:$4 sm:$0xff]   ;;  %v10508_v3 = vld [vmem:[#allocation5 + $0x146c] ss:$16 sps:$4 sm:$0xff]  }
 0x386   :  { %v7195_v60 = vpop.f32.mrf.mxu1  ;;  %v11248_v46 = vadd.f32 %v7193_v57, %v7153_v25  ;;  %7447 = vmatpush1.bf16.msra.mxu0 %v10488_v52  ;;  %v10548_v51 = vld [vmem:[#allocation5 + $0x1588] ss:$16 sps:$4 sm:$0xff]   ;;  %v10556_v22 = vld [vmem:[#allocation5 + $0x156c] ss:$16 sps:$4 sm:$0xff]  }
 0x387   :  { %7488 = vmatpush1.bf16.msra.mxu1 %v10491_v26  ;;  %v7155_v31 = vpop.f32.mrf.mxu0  ;;  %7448 = vmatprep.subr.bf16.mxu0 %v10496_v36  ;;  %v10551_v44 = vld [vmem:[#allocation5 + $0x1788] ss:$16 sps:$4 sm:$0xff]   ;;  %v10559_v52 = vld [vmem:[#allocation5 + $0x176c] ss:$16 sps:$4 sm:$0xff]  }
 0x388   :  { %v7196_v9 = vpop.f32.mrf.mxu1  ;;  %7489 = vmatprep.subr.bf16.mxu1 %v10499_v20  ;;  %v10554_v26 = vld [vmem:[#allocation5 + $0x1568] ss:$16 sps:$4 sm:$0xff]   ;;  %v10562_v57 = vld [vmem:[#allocation5 + $0x154c] ss:$16 sps:$4 sm:$0xff]  }
 0x389   :  { %v10557_v18 = vld [vmem:[#allocation5 + $0x1768] ss:$16 sps:$4 sm:$0xff]   ;;  %v10565_v36 = vld [vmem:[#allocation5 + $0x174c] ss:$16 sps:$4 sm:$0xff]  }
 0x38a   :  { %7449 = vmatpush1.bf16.msra.mxu0 %v10494_v37  ;;  %v10560_v20 = vld [vmem:[#allocation5 + $0x1548] ss:$16 sps:$4 sm:$0xff]   ;;  %v10568_v59 = vld [vmem:[#allocation5 + $0x152c] ss:$16 sps:$4 sm:$0xff]  }
 0x38b   :  { %7490 = vmatpush1.bf16.msra.mxu1 %v10497_v58  ;;  %7450 = vmatprep.subr.bf16.mxu0 %v10502_v10  ;;  %v10563_v25 = vld [vmem:[#allocation5 + $0x1748] ss:$16 sps:$4 sm:$0xff]   ;;  %v10571_v60 = vld [vmem:[#allocation5 + $0x172c] ss:$16 sps:$4 sm:$0xff]  }
 0x38c   :  { %7491 = vmatprep.subr.bf16.mxu1 %v10505_v11  ;;  %v10566_v37 = vld [vmem:[#allocation5 + $0x1528] ss:$16 sps:$4 sm:$0xff]   ;;  %v10574_v31 = vld [vmem:[#allocation5 + $0x150c] ss:$16 sps:$4 sm:$0xff]  }
 0x38d   :  { %v10569_v58 = vld [vmem:[#allocation5 + $0x1728] ss:$16 sps:$4 sm:$0xff]   ;;  %v10577_v9 = vld [vmem:[#allocation5 + $0x170c] ss:$16 sps:$4 sm:$0xff]  }
 0x38e   :  { %7451 = vmatpush1.bf16.msra.mxu0 %v10500_v42  ;;  %v10572_v10 = vld [vmem:[#allocation5 + $0x1508] ss:$16 sps:$4 sm:$0xff]   ;;  %v10580_v42 = vld [vmem:[#allocation5 + $0x18ec] ss:$16 sps:$4 sm:$0xff]  }
 0x38f   :  { %7492 = vmatpush1.bf16.msra.mxu1 %v10503_v2  ;;  %7452 = vmatprep.subr.bf16.mxu0 %v10508_v3  ;;  %v10575_v11 = vld [vmem:[#allocation5 + $0x1708] ss:$16 sps:$4 sm:$0xff]   ;;  %v10583_v2 = vld [vmem:[#allocation5 + $0x1aec] ss:$16 sps:$4 sm:$0xff]  }
 0x390   :  { %7493 = vmatprep.subr.bf16.mxu1 %v10511_v15  ;;  %v10578_v3 = vld [vmem:[#allocation5 + $0x18e8] ss:$16 sps:$4 sm:$0xff]  }
 0x391   :  { %v10581_v15 = vld [vmem:[#allocation5 + $0x1ae8] ss:$16 sps:$4 sm:$0xff]  }
 0x392   :  { %7453 = vmatpush1.bf16.msra.mxu0 %v10506_v19  ;;  %v10586_v19 = vld [vmem:[#allocation5 + $0x18cc] ss:$16 sps:$4 sm:$0xff]  }
 0x393   :  { %7494 = vmatpush1.bf16.msra.mxu1 %v10509_v12  ;;  %7454 = vmatprep.subr.bf16.mxu0 %v10514_v13  ;;  %v10589_v12 = vld [vmem:[#allocation5 + $0x1acc] ss:$16 sps:$4 sm:$0xff]  }
 0x394   :  { %7495 = vmatprep.subr.bf16.mxu1 %v10517_v54 }
 0x396   :  { %7455 = vmatpush1.bf16.msra.mxu0 %v10512_v14 }
 0x397   :  { %7496 = vmatpush1.bf16.msra.mxu1 %v10515_v21  ;;  %7456 = vmatprep.subr.bf16.mxu0 %v10520_v30  ;;  %v10584_v21 = vld [vmem:[#allocation5 + $0x18c8] ss:$16 sps:$4 sm:$0xff]  }
 0x398   :  { %7497 = vmatprep.subr.bf16.mxu1 %v10523_v32  ;;  %v10587_v30 = vld [vmem:[#allocation5 + $0x1ac8] ss:$16 sps:$4 sm:$0xff]  }
 0x39a   :  { %7457 = vmatpush1.bf16.msra.mxu0 %v10518_v33 }
 0x39b   :  { %7498 = vmatpush1.bf16.msra.mxu1 %v10521_v41  ;;  %7458 = vmatprep.subr.bf16.mxu0 %v10526_v0  ;;  %v10592_v41 = vld [vmem:[#allocation5 + $0x18ac] ss:$16 sps:$4 sm:$0xff]  }
 0x39c   :  { %7499 = vmatprep.subr.bf16.mxu1 %v10529_v1  ;;  %v10595_v0 = vld [vmem:[#allocation5 + $0x1aac] ss:$16 sps:$4 sm:$0xff]  }
 0x39e   :  { %7459 = vmatpush1.bf16.msra.mxu0 %v10524_v8 }
 0x39f   :  { %7500 = vmatpush1.bf16.msra.mxu1 %v10527_v43  ;;  %7460 = vmatprep.subr.bf16.mxu0 %v10532_v53  ;;  %v10590_v43 = vld [vmem:[#allocation5 + $0x18a8] ss:$16 sps:$4 sm:$0xff]  }
 0x3a0   :  { %7501 = vmatprep.subr.bf16.mxu1 %v10535_v28  ;;  %v10593_v53 = vld [vmem:[#allocation5 + $0x1aa8] ss:$16 sps:$4 sm:$0xff]  }
 0x3a2   :  { %7461 = vmatpush2.bf16.msra.mxu0 %v10530_v47 }
 0x3a3   :  { %7502 = vmatpush2.bf16.msra.mxu1 %v10533_v45  ;;  %7462 = vmatprep.subr.bf16.mxu0 %v10538_v38  ;;  %v10598_v45 = vld [vmem:[#allocation5 + $0x188c] ss:$16 sps:$4 sm:$0xff]  }
 0x3a4   :  { %7503 = vmatprep.subr.bf16.mxu1 %v10541_v35  ;;  %v10601_v38 = vld [vmem:[#allocation5 + $0x1a8c] ss:$16 sps:$4 sm:$0xff]  }
 0x3a5   :  { %v10607_v35 = vld [vmem:[#allocation5 + $0x1a6c] ss:$16 sps:$4 sm:$0xff]  }
 0x3a6   :  { %7463 = vmatpush2.bf16.msra.mxu0 %v10536_v40  ;;  %v10602_v40 = vld [vmem:[#allocation5 + $0x1868] ss:$16 sps:$4 sm:$0xff]  }
 0x3a7   :  { %7504 = vmatpush2.bf16.msra.mxu1 %v10539_v39  ;;  %7464 = vmatprep.subr.bf16.mxu0 %v10544_v48  ;;  %v10605_v39 = vld [vmem:[#allocation5 + $0x1a68] ss:$16 sps:$4 sm:$0xff]   ;;  %v10610_v48 = vld [vmem:[#allocation5 + $0x184c] ss:$16 sps:$4 sm:$0xff]  }
 0x3a8   :  { %7505 = vmatprep.subr.bf16.mxu1 %v10547_v6  ;;  %v10613_v6 = vld [vmem:[#allocation5 + $0x1a4c] ss:$16 sps:$4 sm:$0xff]  }
 0x3aa   :  { %7465 = vmatpush2.bf16.msra.mxu0 %v10542_v49  ;;  %v10608_v49 = vld [vmem:[#allocation5 + $0x1848] ss:$16 sps:$4 sm:$0xff]  }
 0x3ab   :  { %7506 = vmatpush2.bf16.msra.mxu1 %v10545_v16  ;;  %7466 = vmatprep.subr.bf16.mxu0 %v10550_v17  ;;  %v10611_v16 = vld [vmem:[#allocation5 + $0x1a48] ss:$16 sps:$4 sm:$0xff]   ;;  %v10616_v17 = vld [vmem:[#allocation5 + $0x182c] ss:$16 sps:$4 sm:$0xff]  }
 0x3ac   :  { %7507 = vmatprep.subr.bf16.mxu1 %v10553_v50  ;;  %v10619_v50 = vld [vmem:[#allocation5 + $0x1a2c] ss:$16 sps:$4 sm:$0xff]  }
 0x3ae   :  { %7467 = vmatpush2.bf16.msra.mxu0 %v10548_v51  ;;  %v10614_v51 = vld [vmem:[#allocation5 + $0x1828] ss:$16 sps:$4 sm:$0xff]  }
 0x3af   :  { %7508 = vmatpush2.bf16.msra.mxu1 %v10551_v44  ;;  %7468 = vmatprep.subr.bf16.mxu0 %v10556_v22  ;;  %v10617_v44 = vld [vmem:[#allocation5 + $0x1a28] ss:$16 sps:$4 sm:$0xff]   ;;  %v10622_v22 = vld [vmem:[#allocation5 + $0x180c] ss:$16 sps:$4 sm:$0xff]  }
 0x3b0   :  { %7509 = vmatprep.subr.bf16.mxu1 %v10559_v52  ;;  %v10625_v52 = vld [vmem:[#allocation5 + $0x1a0c] ss:$16 sps:$4 sm:$0xff]  }
 0x3b2   :  { %7469 = vmatpush2.bf16.msra.mxu0 %v10554_v26  ;;  %v10620_v26 = vld [vmem:[#allocation5 + $0x1808] ss:$16 sps:$4 sm:$0xff]  }
 0x3b3   :  { %7510 = vmatpush2.bf16.msra.mxu1 %v10557_v18  ;;  %7470 = vmatprep.subr.bf16.mxu0 %v10562_v57  ;;  %v10623_v18 = vld [vmem:[#allocation5 + $0x1a08] ss:$16 sps:$4 sm:$0xff]   ;;  %v10628_v57 = vld [vmem:[#allocation5 + $0x19ec] ss:$16 sps:$4 sm:$0xff]  }
 0x3b4   :  { %7511 = vmatprep.subr.bf16.mxu1 %v10565_v36  ;;  %v10631_v36 = vld [vmem:[#allocation5 + $0x1bec] ss:$16 sps:$4 sm:$0xff]  }
 0x3b6   :  { %7471 = vmatpush2.bf16.msra.mxu0 %v10560_v20  ;;  %v10626_v20 = vld [vmem:[#allocation5 + $0x19e8] ss:$16 sps:$4 sm:$0xff]  }
 0x3b7   :  { %7512 = vmatpush2.bf16.msra.mxu1 %v10563_v25  ;;  %7472 = vmatprep.subr.bf16.mxu0 %v10568_v59  ;;  %v10629_v25 = vld [vmem:[#allocation5 + $0x1be8] ss:$16 sps:$4 sm:$0xff]   ;;  %v10634_v59 = vld [vmem:[#allocation5 + $0x19cc] ss:$16 sps:$4 sm:$0xff]  }
 0x3b8   :  { %7513 = vmatprep.subr.bf16.mxu1 %v10571_v60  ;;  %v10637_v60 = vld [vmem:[#allocation5 + $0x1bcc] ss:$16 sps:$4 sm:$0xff]  }
 0x3ba   :  { %7473 = vmatpush2.bf16.msra.mxu0 %v10566_v37  ;;  %v10632_v37 = vld [vmem:[#allocation5 + $0x19c8] ss:$16 sps:$4 sm:$0xff]  }
 0x3bb   :  { %7514 = vmatpush2.bf16.msra.mxu1 %v10569_v58  ;;  %7474 = vmatprep.subr.bf16.mxu0 %v10574_v31  ;;  %v10635_v58 = vld [vmem:[#allocation5 + $0x1bc8] ss:$16 sps:$4 sm:$0xff]   ;;  %v10640_v31 = vld [vmem:[#allocation5 + $0x19ac] ss:$16 sps:$4 sm:$0xff]  }
 0x3bc   :  { %7515 = vmatprep.subr.bf16.mxu1 %v10577_v9  ;;  %v10643_v9 = vld [vmem:[#allocation5 + $0x1bac] ss:$16 sps:$4 sm:$0xff]  }
 0x3be   :  { %7475 = vmatpush2.bf16.msra.mxu0 %v10572_v10  ;;  %v10638_v10 = vld [vmem:[#allocation5 + $0x19a8] ss:$16 sps:$4 sm:$0xff]  }
 0x3bf   :  { %7516 = vmatpush2.bf16.msra.mxu1 %v10575_v11  ;;  %7526 = vmatprep.subr.bf16.mxu0 %v10580_v42  ;;  %v10641_v11 = vld [vmem:[#allocation5 + $0x1ba8] ss:$16 sps:$4 sm:$0xff]   ;;  %v10646_v42 = vld [vmem:[#allocation5 + $0x198c] ss:$16 sps:$4 sm:$0xff]  }
 0x3c0   :  { %7567 = vmatprep.subr.bf16.mxu1 %v10583_v2  ;;  %v10649_v2 = vld [vmem:[#allocation5 + $0x1b8c] ss:$16 sps:$4 sm:$0xff]  }
 0x3c1   :  { %v7232_v13 = vpop.f32.mrf.mxu0  ;;  %7477 = vmatmul.mubr.bf16.vlgmr.msra.gmra.mxu0 %v11124_v63 }
 0x3c2   :  { %v7273_v54 = vpop.f32.mrf.mxu1  ;;  %7518 = vmatmul.mubr.bf16.vlgmr.msra.gmra.mxu1 %v11128_v4  ;;  %v7233_v14 = vadd.f32 %v7232_v13, %v11243_v24  ;;  %7527 = vmatpush1.bf16.msra.mxu0 %v10578_v3  ;;  %v10644_v3 = vld [vmem:[#allocation5 + $0x1988] ss:$16 sps:$4 sm:$0xff]  }
 0x3c3   :  { %7568 = vmatpush1.bf16.msra.mxu1 %v10581_v15  ;;  %v7234_v32 = vpop.f32.mrf.mxu0  ;;  %7528 = vmatprep.subr.bf16.mxu0 %v10586_v19  ;;  %v10647_v15 = vld [vmem:[#allocation5 + $0x1b88] ss:$16 sps:$4 sm:$0xff]   ;;  %v10652_v19 = vld [vmem:[#allocation5 + $0x196c] ss:$16 sps:$4 sm:$0xff]  }
 0x3c4   :  { %v7275_v33 = vpop.f32.mrf.mxu1  ;;  %7569 = vmatprep.subr.bf16.mxu1 %v10589_v12  ;;  %v11253_v1 = vadd.f32 %v7273_v54, %v7233_v14  ;;  %v7235_v8 = vadd.f32 %v7234_v32, %v11248_v46  ;;  %7558 = vmatprep.mubr.bf16.mxu0 %v11136_v61  ;;  %v10596_v46 = vld [vmem:[#allocation5 + $0x1888] ss:$16 sps:$4 sm:$0xff]   ;;  %v10655_v12 = vld [vmem:[#allocation5 + $0x1b6c] ss:$16 sps:$4 sm:$0xff]  }
 0x3c5   :  { %7599 = vmatprep.mubr.bf16.mxu1 %v11140_v62  ;;  %v7236_v63 = vpop.f32.mrf.mxu0  ;;  %v10599_v61 = vld [vmem:[#allocation5 + $0x1a88] ss:$16 sps:$4 sm:$0xff]   ;;  %v10604_v62 = vld [vmem:[#allocation5 + $0x186c] ss:$16 sps:$4 sm:$0xff]  }
 0x3c6   :  { %v7277_v4 = vpop.f32.mrf.mxu1  ;;  %v11258_v24 = vadd.f32 %v7275_v33, %v7235_v8  ;;  %7529 = vmatpush1.bf16.msra.mxu0 %v10584_v21  ;;  %v10650_v13 = vld [vmem:[#allocation5 + $0x1968] ss:$16 sps:$4 sm:$0xff]   ;;  %v10658_v14 = vld [vmem:[#allocation5 + $0x194c] ss:$16 sps:$4 sm:$0xff]  }
 0x3c7   :  { %7570 = vmatpush1.bf16.msra.mxu1 %v10587_v30  ;;  %v7237_v28 = vpop.f32.mrf.mxu0  ;;  %7530 = vmatprep.subr.bf16.mxu0 %v10592_v41  ;;  %v10653_v54 = vld [vmem:[#allocation5 + $0x1b68] ss:$16 sps:$4 sm:$0xff]   ;;  %v10661_v21 = vld [vmem:[#allocation5 + $0x1b4c] ss:$16 sps:$4 sm:$0xff]  }
 0x3c8   :  { %v7278_v47 = vpop.f32.mrf.mxu1  ;;  %7571 = vmatprep.subr.bf16.mxu1 %v10595_v0  ;;  %v10656_v30 = vld [vmem:[#allocation5 + $0x1948] ss:$16 sps:$4 sm:$0xff]   ;;  %v10664_v33 = vld [vmem:[#allocation5 + $0x192c] ss:$16 sps:$4 sm:$0xff]  }
 0x3c9   :  { %v10659_v32 = vld [vmem:[#allocation5 + $0x1b48] ss:$16 sps:$4 sm:$0xff]   ;;  %v10667_v41 = vld [vmem:[#allocation5 + $0x1b2c] ss:$16 sps:$4 sm:$0xff]  }
 0x3ca   :  { %7531 = vmatpush1.bf16.msra.mxu0 %v10590_v43  ;;  %v10662_v0 = vld [vmem:[#allocation5 + $0x1928] ss:$16 sps:$4 sm:$0xff]   ;;  %v10670_v63 = vld [vmem:[#allocation5 + $0x190c] ss:$16 sps:$4 sm:$0xff]  }
 0x3cb   :  { %7572 = vmatpush1.bf16.msra.mxu1 %v10593_v53  ;;  %7532 = vmatprep.subr.bf16.mxu0 %v10598_v45  ;;  %v10665_v8 = vld [vmem:[#allocation5 + $0x1b28] ss:$16 sps:$4 sm:$0xff]   ;;  %v10673_v4 = vld [vmem:[#allocation5 + $0x1b0c] ss:$16 sps:$4 sm:$0xff]  }
 0x3cc   :  { %7573 = vmatprep.subr.bf16.mxu1 %v10601_v38  ;;  %v10668_v43 = vld [vmem:[#allocation5 + $0x1908] ss:$16 sps:$4 sm:$0xff]   ;;  %v10676_v28 = vld [vmem:[#allocation5 + $0x1cec] ss:$16 sps:$4 sm:$0xff]  }
 0x3cd   :  { %v10671_v53 = vld [vmem:[#allocation5 + $0x1b08] ss:$16 sps:$4 sm:$0xff]   ;;  %v10679_v47 = vld [vmem:[#allocation5 + $0x1eec] ss:$16 sps:$4 sm:$0xff]  }
 0x3ce   :  { %7533 = vmatpush1.bf16.msra.mxu0 %v10596_v46  ;;  %v10674_v45 = vld [vmem:[#allocation5 + $0x1ce8] ss:$16 sps:$4 sm:$0xff]   ;;  %v10682_v46 = vld [vmem:[#allocation5 + $0x1ccc] ss:$16 sps:$4 sm:$0xff]  }
 0x3cf   :  { %7574 = vmatpush1.bf16.msra.mxu1 %v10599_v61  ;;  %7534 = vmatprep.subr.bf16.mxu0 %v10604_v62  ;;  %v10677_v38 = vld [vmem:[#allocation5 + $0x1ee8] ss:$16 sps:$4 sm:$0xff]   ;;  %v10685_v61 = vld [vmem:[#allocation5 + $0x1ecc] ss:$16 sps:$4 sm:$0xff]  }
 0x3d0   :  { %7575 = vmatprep.subr.bf16.mxu1 %v10607_v35 }
 0x3d2   :  { %7535 = vmatpush1.bf16.msra.mxu0 %v10602_v40 }
 0x3d3   :  { %7576 = vmatpush1.bf16.msra.mxu1 %v10605_v39  ;;  %7536 = vmatprep.subr.bf16.mxu0 %v10610_v48  ;;  %v10680_v39 = vld [vmem:[#allocation5 + $0x1cc8] ss:$16 sps:$4 sm:$0xff]  }
 0x3d4   :  { %7577 = vmatprep.subr.bf16.mxu1 %v10613_v6  ;;  %v10683_v48 = vld [vmem:[#allocation5 + $0x1ec8] ss:$16 sps:$4 sm:$0xff]  }
 0x3d6   :  { %7537 = vmatpush1.bf16.msra.mxu0 %v10608_v49 }
 0x3d7   :  { %7578 = vmatpush1.bf16.msra.mxu1 %v10611_v16  ;;  %7538 = vmatprep.subr.bf16.mxu0 %v10616_v17  ;;  %v10688_v16 = vld [vmem:[#allocation5 + $0x1cac] ss:$16 sps:$4 sm:$0xff]  }
 0x3d8   :  { %7579 = vmatprep.subr.bf16.mxu1 %v10619_v50  ;;  %v10691_v17 = vld [vmem:[#allocation5 + $0x1eac] ss:$16 sps:$4 sm:$0xff]  }
 0x3da   :  { %7539 = vmatpush1.bf16.msra.mxu0 %v10614_v51 }
 0x3db   :  { %7580 = vmatpush1.bf16.msra.mxu1 %v10617_v44  ;;  %7540 = vmatprep.subr.bf16.mxu0 %v10622_v22  ;;  %v10686_v44 = vld [vmem:[#allocation5 + $0x1ca8] ss:$16 sps:$4 sm:$0xff]  }
 0x3dc   :  { %7581 = vmatprep.subr.bf16.mxu1 %v10625_v52  ;;  %v10689_v22 = vld [vmem:[#allocation5 + $0x1ea8] ss:$16 sps:$4 sm:$0xff]  }
 0x3de   :  { %7541 = vmatpush1.bf16.msra.mxu0 %v10620_v26 }
 0x3df   :  { %7582 = vmatpush1.bf16.msra.mxu1 %v10623_v18  ;;  %7542 = vmatprep.subr.bf16.mxu0 %v10628_v57  ;;  %v10694_v18 = vld [vmem:[#allocation5 + $0x1c8c] ss:$16 sps:$4 sm:$0xff]  }
 0x3e0   :  { %7583 = vmatprep.subr.bf16.mxu1 %v10631_v36  ;;  %v10697_v57 = vld [vmem:[#allocation5 + $0x1e8c] ss:$16 sps:$4 sm:$0xff]  }
 0x3e1   :  { %v10703_v36 = vld [vmem:[#allocation5 + $0x1e6c] ss:$16 sps:$4 sm:$0xff]  }
 0x3e2   :  { %7543 = vmatpush2.bf16.msra.mxu0 %v10626_v20  ;;  %v10698_v20 = vld [vmem:[#allocation5 + $0x1c68] ss:$16 sps:$4 sm:$0xff]  }
 0x3e3   :  { %7584 = vmatpush2.bf16.msra.mxu1 %v10629_v25  ;;  %7544 = vmatprep.subr.bf16.mxu0 %v10634_v59  ;;  %v10701_v25 = vld [vmem:[#allocation5 + $0x1e68] ss:$16 sps:$4 sm:$0xff]   ;;  %v10706_v59 = vld [vmem:[#allocation5 + $0x1c4c] ss:$16 sps:$4 sm:$0xff]  }
 0x3e4   :  { %7585 = vmatprep.subr.bf16.mxu1 %v10637_v60  ;;  %v10709_v60 = vld [vmem:[#allocation5 + $0x1e4c] ss:$16 sps:$4 sm:$0xff]  }
 0x3e6   :  { %7545 = vmatpush2.bf16.msra.mxu0 %v10632_v37  ;;  %v10704_v37 = vld [vmem:[#allocation5 + $0x1c48] ss:$16 sps:$4 sm:$0xff]  }
 0x3e7   :  { %7586 = vmatpush2.bf16.msra.mxu1 %v10635_v58  ;;  %7546 = vmatprep.subr.bf16.mxu0 %v10640_v31  ;;  %v10707_v58 = vld [vmem:[#allocation5 + $0x1e48] ss:$16 sps:$4 sm:$0xff]   ;;  %v10712_v31 = vld [vmem:[#allocation5 + $0x1c2c] ss:$16 sps:$4 sm:$0xff]  }
 0x3e8   :  { %7587 = vmatprep.subr.bf16.mxu1 %v10643_v9  ;;  %v10715_v9 = vld [vmem:[#allocation5 + $0x1e2c] ss:$16 sps:$4 sm:$0xff]  }
 0x3ea   :  { %7547 = vmatpush2.bf16.msra.mxu0 %v10638_v10  ;;  %v10710_v10 = vld [vmem:[#allocation5 + $0x1c28] ss:$16 sps:$4 sm:$0xff]  }
 0x3eb   :  { %7588 = vmatpush2.bf16.msra.mxu1 %v10641_v11  ;;  %7548 = vmatprep.subr.bf16.mxu0 %v10646_v42  ;;  %v10713_v11 = vld [vmem:[#allocation5 + $0x1e28] ss:$16 sps:$4 sm:$0xff]   ;;  %v10718_v42 = vld [vmem:[#allocation5 + $0x1c0c] ss:$16 sps:$4 sm:$0xff]  }
 0x3ec   :  { %7589 = vmatprep.subr.bf16.mxu1 %v10649_v2  ;;  %v10721_v2 = vld [vmem:[#allocation5 + $0x1e0c] ss:$16 sps:$4 sm:$0xff]  }
 0x3ee   :  { %7549 = vmatpush2.bf16.msra.mxu0 %v10644_v3  ;;  %v10716_v3 = vld [vmem:[#allocation5 + $0x1c08] ss:$16 sps:$4 sm:$0xff]  }
 0x3ef   :  { %7590 = vmatpush2.bf16.msra.mxu1 %v10647_v15  ;;  %7550 = vmatprep.subr.bf16.mxu0 %v10652_v19  ;;  %v10719_v15 = vld [vmem:[#allocation5 + $0x1e08] ss:$16 sps:$4 sm:$0xff]   ;;  %v10724_v19 = vld [vmem:[#allocation5 + $0x1dec] ss:$16 sps:$4 sm:$0xff]  }
 0x3f0   :  { %7591 = vmatprep.subr.bf16.mxu1 %v10655_v12  ;;  %v10727_v12 = vld [vmem:[#allocation5 + $0x1fec] ss:$16 sps:$4 sm:$0xff]  }
 0x3f2   :  { %7551 = vmatpush2.bf16.msra.mxu0 %v10650_v13  ;;  %v10722_v13 = vld [vmem:[#allocation5 + $0x1de8] ss:$16 sps:$4 sm:$0xff]  }
 0x3f3   :  { %7592 = vmatpush2.bf16.msra.mxu1 %v10653_v54  ;;  %7552 = vmatprep.subr.bf16.mxu0 %v10658_v14  ;;  %v10725_v54 = vld [vmem:[#allocation5 + $0x1fe8] ss:$16 sps:$4 sm:$0xff]   ;;  %v10730_v14 = vld [vmem:[#allocation5 + $0x1dcc] ss:$16 sps:$4 sm:$0xff]  }
 0x3f4   :  { %7593 = vmatprep.subr.bf16.mxu1 %v10661_v21  ;;  %v10733_v21 = vld [vmem:[#allocation5 + $0x1fcc] ss:$16 sps:$4 sm:$0xff]  }
 0x3f6   :  { %7553 = vmatpush2.bf16.msra.mxu0 %v10656_v30  ;;  %v10728_v30 = vld [vmem:[#allocation5 + $0x1dc8] ss:$16 sps:$4 sm:$0xff]  }
 0x3f7   :  { %7594 = vmatpush2.bf16.msra.mxu1 %v10659_v32  ;;  %7554 = vmatprep.subr.bf16.mxu0 %v10664_v33  ;;  %v10731_v32 = vld [vmem:[#allocation5 + $0x1fc8] ss:$16 sps:$4 sm:$0xff]   ;;  %v10736_v33 = vld [vmem:[#allocation5 + $0x1dac] ss:$16 sps:$4 sm:$0xff]  }
 0x3f8   :  { %7595 = vmatprep.subr.bf16.mxu1 %v10667_v41  ;;  %v10739_v41 = vld [vmem:[#allocation5 + $0x1fac] ss:$16 sps:$4 sm:$0xff]  }
 0x3fa   :  { %7555 = vmatpush2.bf16.msra.mxu0 %v10662_v0  ;;  %v10734_v0 = vld [vmem:[#allocation5 + $0x1da8] ss:$16 sps:$4 sm:$0xff]  }
 0x3fb   :  { %7596 = vmatpush2.bf16.msra.mxu1 %v10665_v8  ;;  %7556 = vmatprep.subr.bf16.mxu0 %v10670_v63  ;;  %v10737_v8 = vld [vmem:[#allocation5 + $0x1fa8] ss:$16 sps:$4 sm:$0xff]   ;;  %v10742_v63 = vld [vmem:[#allocation5 + $0x1d8c] ss:$16 sps:$4 sm:$0xff]  }
 0x3fc   :  { %7597 = vmatprep.subr.bf16.mxu1 %v10673_v4  ;;  %v10745_v4 = vld [vmem:[#allocation5 + $0x1f8c] ss:$16 sps:$4 sm:$0xff]  }
 0x3fe   :  { %7557 = vmatpush2.bf16.msra.mxu0 %v10668_v43  ;;  %v10740_v43 = vld [vmem:[#allocation5 + $0x1d88] ss:$16 sps:$4 sm:$0xff]  }
 0x3ff   :  { %7598 = vmatpush2.bf16.msra.mxu1 %v10671_v53  ;;  %7608 = vmatprep.subr.bf16.mxu0 %v10676_v28  ;;  %v10743_v53 = vld [vmem:[#allocation5 + $0x1f88] ss:$16 sps:$4 sm:$0xff]   ;;  %v10748_v28 = vld [vmem:[#allocation5 + $0x1d6c] ss:$16 sps:$4 sm:$0xff]  }
 0x400   :  { %7649 = vmatprep.subr.bf16.mxu1 %v10679_v47  ;;  %v10751_v47 = vld [vmem:[#allocation5 + $0x1f6c] ss:$16 sps:$4 sm:$0xff]  }
 0x401   :  { %v7314_v62 = vpop.f32.mrf.mxu0  ;;  %7559 = vmatmul.mubr.bf16.vlgmr.msra.gmra.mxu0 %v11158_v27 }
 0x402   :  { %v7355_v35 = vpop.f32.mrf.mxu1  ;;  %7600 = vmatmul.mubr.bf16.vlgmr.msra.gmra.mxu1 %v11162_v29  ;;  %v7315_v40 = vadd.f32 %v7314_v62, %v11253_v1  ;;  %7609 = vmatpush1.bf16.msra.mxu0 %v10674_v45  ;;  %v10746_v45 = vld [vmem:[#allocation5 + $0x1d68] ss:$16 sps:$4 sm:$0xff]  }
 0x403   :  { %7650 = vmatpush1.bf16.msra.mxu1 %v10677_v38  ;;  %v7316_v6 = vpop.f32.mrf.mxu0  ;;  %7610 = vmatprep.subr.bf16.mxu0 %v10682_v46  ;;  %v10749_v38 = vld [vmem:[#allocation5 + $0x1f68] ss:$16 sps:$4 sm:$0xff]   ;;  %v10754_v46 = vld [vmem:[#allocation5 + $0x1d4c] ss:$16 sps:$4 sm:$0xff]  }
 0x404   :  { %v7357_v49 = vpop.f32.mrf.mxu1  ;;  %7651 = vmatprep.subr.bf16.mxu1 %v10685_v61  ;;  %v11263_v50 = vadd.f32 %v7355_v35, %v7315_v40  ;;  %v7317_v51 = vadd.f32 %v7316_v6, %v11258_v24  ;;  %7640 = vmatprep.mubr.bf16.mxu0 %v11166_v34  ;;  %v10692_v24 = vld [vmem:[#allocation5 + $0x1c88] ss:$16 sps:$4 sm:$0xff]   ;;  %v10757_v61 = vld [vmem:[#allocation5 + $0x1f4c] ss:$16 sps:$4 sm:$0xff]  }
 0x405   :  { %7681 = vmatprep.mubr.bf16.mxu1 %v11170_v5  ;;  %v7318_v27 = vpop.f32.mrf.mxu0  ;;  %v10695_v34 = vld [vmem:[#allocation5 + $0x1e88] ss:$16 sps:$4 sm:$0xff]   ;;  %v10700_v5 = vld [vmem:[#allocation5 + $0x1c6c] ss:$16 sps:$4 sm:$0xff]  }
 0x406   :  { %v7359_v29 = vpop.f32.mrf.mxu1  ;;  %v11268_v1 = vadd.f32 %v7357_v49, %v7317_v51  ;;  %7611 = vmatpush1.bf16.msra.mxu0 %v10680_v39  ;;  %v10752_v62 = vld [vmem:[#allocation5 + $0x1d48] ss:$16 sps:$4 sm:$0xff]   ;;  %v10760_v40 = vld [vmem:[#allocation5 + $0x1d2c] ss:$16 sps:$4 sm:$0xff]  }
 0x407   :  { %7652 = vmatpush1.bf16.msra.mxu1 %v10683_v48  ;;  %v7319_v52 = vpop.f32.mrf.mxu0  ;;  %7612 = vmatprep.subr.bf16.mxu0 %v10688_v16  ;;  %v10755_v35 = vld [vmem:[#allocation5 + $0x1f48] ss:$16 sps:$4 sm:$0xff]   ;;  %v10763_v39 = vld [vmem:[#allocation5 + $0x1f2c] ss:$16 sps:$4 sm:$0xff]   ;;  %v7691_v29 = vmax.f32 %v11228_v7, 0.0 }
 0x408   :  { %v7360_v26 = vpop.f32.mrf.mxu1  ;;  %7653 = vmatprep.subr.bf16.mxu1 %v10691_v17  ;;  %v10758_v48 = vld [vmem:[#allocation5 + $0x1d28] ss:$16 sps:$4 sm:$0xff]   ;;  %v10766_v49 = vld [vmem:[#allocation5 + $0x1d0c] ss:$16 sps:$4 sm:$0xff]  }
 0x409   :  { %v10761_v6 = vld [vmem:[#allocation5 + $0x1f28] ss:$16 sps:$4 sm:$0xff]   ;;  %v10769_v16 = vld [vmem:[#allocation5 + $0x1f0c] ss:$16 sps:$4 sm:$0xff]   ;;  %v7695_v52 = vpack.c.bf16 %v7691_v29, %v7691_v29 }
 0x40a   :  { %7613 = vmatpush1.bf16.msra.mxu0 %v10686_v44  ;;  %v10764_v17 = vld [vmem:[#allocation5 + $0x1d08] ss:$16 sps:$4 sm:$0xff]   ;;  %v10770_v27 = vld [vmem:[#allocation8 + $0x78] sm:$0xff]   ;;  %v10774_v7 = vld [vmem:[#allocation8 + $0x68] sm:$0xff]  }
 0x40b   :  { %7654 = vmatpush1.bf16.msra.mxu1 %v10689_v22  ;;  %7614 = vmatprep.subr.bf16.mxu0 %v10694_v18  ;;  %v10767_v51 = vld [vmem:[#allocation5 + $0x1f08] ss:$16 sps:$4 sm:$0xff]   ;;  %v10771_v44 = vld [vmem:[#allocation8 + $0x38] sm:$0xff]  }
 0x40c   :  { %7655 = vmatprep.subr.bf16.mxu1 %v10697_v57  ;;  %v10772_v22 = vld [vmem:[#allocation8 + $0x70] sm:$0xff]  }
 0x40e   :  { %7615 = vmatpush1.bf16.msra.mxu0 %v10692_v24  ;;  %v10773_v24 = vld [vmem:[#allocation8 + $0x30] sm:$0xff]  }
 0x40f   :  { %7656 = vmatpush1.bf16.msra.mxu1 %v10695_v34  ;;  %7616 = vmatprep.subr.bf16.mxu0 %v10700_v5 }
 0x410   :  { %7657 = vmatprep.subr.bf16.mxu1 %v10703_v36 }
 0x412   :  { %7617 = vmatpush1.bf16.msra.mxu0 %v10698_v20 }
 0x413   :  { %7658 = vmatpush1.bf16.msra.mxu1 %v10701_v25  ;;  %7618 = vmatprep.subr.bf16.mxu0 %v10706_v59 }
 0x414   :  { %7659 = vmatprep.subr.bf16.mxu1 %v10709_v60 }
 0x416   :  { %7619 = vmatpush1.bf16.msra.mxu0 %v10704_v37  ;;  %v10775_v37 = vld [vmem:[#allocation8 + $0x28] sm:$0xff]  }
 0x417   :  { %7660 = vmatpush1.bf16.msra.mxu1 %v10707_v58  ;;  %7620 = vmatprep.subr.bf16.mxu0 %v10712_v31  ;;  %v10787_v31 = vld [vmem:[#allocation8 + $0xb8] sm:$0xff]  }
 0x418   :  { %7661 = vmatprep.subr.bf16.mxu1 %v10715_v9  ;;  %v10788_v9 = vld [vmem:[#allocation8 + $0xf0] sm:$0xff]  }
 0x41a   :  { %7621 = vmatpush1.bf16.msra.mxu0 %v10710_v10  ;;  %v10777_v10 = vld [vmem:[#allocation8 + $0x20] sm:$0xff]  }
 0x41b   :  { %7662 = vmatpush1.bf16.msra.mxu1 %v10713_v11  ;;  %7622 = vmatprep.subr.bf16.mxu0 %v10718_v42  ;;  %v10789_v11 = vld [vmem:[#allocation8 + $0xb0] sm:$0xff]   ;;  %v10778_v42 = vld [vmem:[#allocation8 + $0x58] sm:$0xff]  }
 0x41c   :  { %7663 = vmatprep.subr.bf16.mxu1 %v10721_v2  ;;  %v10779_v2 = vld [vmem:[#allocation8 + $0x18] sm:$0xff]  }
 0x41e   :  { %7623 = vmatpush1.bf16.msra.mxu0 %v10716_v3  ;;  %v10791_v3 = vld [vmem:[#allocation8 + $0xa8] sm:$0xff]  }
 0x41f   :  { %7664 = vmatpush1.bf16.msra.mxu1 %v10719_v15  ;;  %7624 = vmatprep.subr.bf16.mxu0 %v10724_v19  ;;  %v10780_v15 = vld [vmem:[#allocation8 + $0x50] sm:$0xff]   ;;  %v10792_v19 = vld [vmem:[#allocation8 + $0xe0] sm:$0xff]  }
 0x420   :  { %7665 = vmatprep.subr.bf16.mxu1 %v10727_v12  ;;  %v10781_v12 = vld [vmem:[#allocation8 + $0x10] sm:$0xff]  }
 0x422   :  { %7625 = vmatpush2.bf16.msra.mxu0 %v10722_v13  ;;  %v10793_v13 = vld [vmem:[#allocation8 + $0xa0] sm:$0xff]  }
 0x423   :  { %7666 = vmatpush2.bf16.msra.mxu1 %v10725_v54  ;;  %7626 = vmatprep.subr.bf16.mxu0 %v10730_v14  ;;  %v10782_v54 = vld [vmem:[#allocation8 + $0x48] sm:$0xff]   ;;  %v10794_v14 = vld [vmem:[#allocation8 + $0xd8] sm:$0xff]  }
 0x424   :  { %7667 = vmatprep.subr.bf16.mxu1 %v10733_v21  ;;  %v10783_v21 = vld [vmem:[#allocation8 + $0x8] sm:$0xff]  }
 0x426   :  { %7627 = vmatpush2.bf16.msra.mxu0 %v10728_v30  ;;  %v10795_v30 = vld [vmem:[#allocation8 + $0x98] sm:$0xff]  }
 0x427   :  { %7668 = vmatpush2.bf16.msra.mxu1 %v10731_v32  ;;  %7628 = vmatprep.subr.bf16.mxu0 %v10736_v33  ;;  %v10784_v32 = vld [vmem:[#allocation8 + $0x40] sm:$0xff]  }
 0x428   :  { %7669 = vmatprep.subr.bf16.mxu1 %v10739_v41  ;;  %v10785_v33 = vld [vmem:[#allocation8] sm:$0xff]   ;;  %v7690_v41 = vmax.f32 %v11223_v23, 0.0 }
 0x42a   :  { %7629 = vmatpush2.bf16.msra.mxu0 %v10734_v0  ;;  %v7694_v0 = vpack.c.bf16 %v7690_v41, %v7690_v41 }
 0x42b   :  { %7670 = vmatpush2.bf16.msra.mxu1 %v10737_v8  ;;  %7630 = vmatprep.subr.bf16.mxu0 %v10742_v63  ;;  %v10796_v8 = vld [vmem:[#allocation8 + $0xd0] sm:$0xff]  }
 0x42c   :  { %7671 = vmatprep.subr.bf16.mxu1 %v10745_v4  ;;  %v10797_v63 = vld [vmem:[#allocation8 + $0x90] sm:$0xff]  }
 0x42e   :  { %7631 = vmatpush2.bf16.msra.mxu0 %v10740_v43 }
 0x42f   :  { %7672 = vmatpush2.bf16.msra.mxu1 %v10743_v53  ;;  %7632 = vmatprep.subr.bf16.mxu0 %v10748_v28 }
 0x430   :  { %7673 = vmatprep.subr.bf16.mxu1 %v10751_v47 }
 0x432   :  { %7633 = vmatpush2.bf16.msra.mxu0 %v10746_v45  ;;  %v10798_v45 = vld [vmem:[#allocation8 + $0xc8] sm:$0xff]  }
 0x433   :  { %7674 = vmatpush2.bf16.msra.mxu1 %v10749_v38  ;;  %7634 = vmatprep.subr.bf16.mxu0 %v10754_v46 }
 0x434   :  { %7675 = vmatprep.subr.bf16.mxu1 %v10757_v61  ;;  %v10799_v61 = vld [vmem:[#allocation8 + $0x88] sm:$0xff]  }
 0x436   :  { %7635 = vmatpush2.bf16.msra.mxu0 %v10752_v62 }
 0x437   :  { %7676 = vmatpush2.bf16.msra.mxu1 %v10755_v35  ;;  %7636 = vmatprep.subr.bf16.mxu0 %v10760_v40 }
 0x438   :  { %7677 = vmatprep.subr.bf16.mxu1 %v10763_v39 }
 0x43a   :  { %7637 = vmatpush2.bf16.msra.mxu0 %v10758_v48  ;;  %v10800_v48 = vld [vmem:[#allocation8 + $0xc0] sm:$0xff]  }
 0x43b   :  { %7678 = vmatpush2.bf16.msra.mxu1 %v10761_v6  ;;  %7638 = vmatprep.subr.bf16.mxu0 %v10766_v49  ;;  %v10801_v6 = vld [vmem:[#allocation8 + $0x80] sm:$0xff]  }
 0x43c   :  { %7679 = vmatprep.subr.bf16.mxu1 %v10769_v16 }
 0x43e   :  { %7639 = vmatpush2.bf16.msra.mxu0 %v10764_v17 }
 0x43f   :  { %7680 = vmatpush2.bf16.msra.mxu1 %v10767_v51  ;;  %9148 = vmatprep.subr.bf16.mxu0 %v10770_v27 }
 0x441   :  { %v7396_v26 = vpop.f32.mrf.mxu0  ;;  %7641 = vmatmul.mubr.bf16.vlgmr.msra.gmra.mxu0 %v11184_v55  ;;  %v10776_v55 = vld [vmem:[#allocation8 + $0x60] sm:$0xff]  }
 0x442   :  { %v7437_v18 = vpop.f32.mrf.mxu1  ;;  %7682 = vmatmul.mubr.bf16.vlgmr.msra.gmra.mxu1 %v11188_v56  ;;  %v7397_v57 = vadd.f32 %v7396_v26, %v11263_v50  ;;  %9149 = vmatpush3.bf16.msra.mxu0 %v10771_v44  ;;  %v10786_v50 = vld [vmem:[#allocation8 + $0xf8] sm:$0xff]  }
 0x443   :  { %7993 = vmatprep.mubr.bf16.mxu0 %v7695_v52  ;;  %v7398_v34 = vpop.f32.mrf.mxu0  ;;  %9150 = vmatprep.subr.bf16.mxu0 %v10772_v22 }
 0x444   :  { %v7439_v5 = vpop.f32.mrf.mxu1  ;;  %v7438_v36 = vadd.f32 %v7437_v18, %v7397_v57  ;;  %v7399_v20 = vadd.f32 %v7398_v34, %v11268_v1  ;;  %9170 = vmatprep.subr.bf16.mxu1 %v10786_v50  ;;  %v10790_v1 = vld [vmem:[#allocation8 + $0xe8] sm:$0xff]  }
 0x445   :  { %v7400_v25 = vpop.f32.mrf.mxu0  ;;  %9171 = vmatpush3.bf16.msra.mxu1 %v10787_v31 }
 0x446   :  { %v7441_v59 = vpop.f32.mrf.mxu1  ;;  %v7440_v60 = vadd.f32 %v7439_v5, %v7399_v20  ;;  %9151 = vmatpush3.bf16.msra.mxu0 %v10773_v24  ;;  %9172 = vmatprep.subr.bf16.mxu1 %v10788_v9 }
 0x447   :  { %v7401_v58 = vpop.f32.mrf.mxu0  ;;  %9152 = vmatprep.subr.bf16.mxu0 %v10774_v7 }
 0x448   :  { %v7442_v56 = vpop.f32.mrf.mxu1 }
 0x449   :  { %9173 = vmatpush3.bf16.msra.mxu1 %v10789_v11 }
 0x44a   :  { %9153 = vmatpush3.bf16.msra.mxu0 %v10775_v37  ;;  %9174 = vmatprep.subr.bf16.mxu1 %v10790_v1 }
 0x44b   :  { %9154 = vmatprep.subr.bf16.mxu0 %v10776_v55 }
 0x44d   :  { %9175 = vmatpush3.bf16.msra.mxu1 %v10791_v3  ;;  %v9115_v3 = vld [vmem:[#allocation10] ss:$0 sm:$0xff] }
 0x44e   :  { %9155 = vmatpush3.bf16.msra.mxu0 %v10777_v10  ;;  %9176 = vmatprep.subr.bf16.mxu1 %v10792_v19 }
 0x44f   :  { %9156 = vmatprep.subr.bf16.mxu0 %v10778_v42 }
 0x451   :  { %9177 = vmatpush3.bf16.msra.mxu1 %v10793_v13 }
 0x452   :  { %9157 = vmatpush3.bf16.msra.mxu0 %v10779_v2  ;;  %9178 = vmatprep.subr.bf16.mxu1 %v10794_v14 }
 0x453   :  { %9158 = vmatprep.subr.bf16.mxu0 %v10780_v15 }
 0x455   :  { %9179 = vmatpush3.bf16.msra.mxu1 %v10795_v30 }
 0x456   :  { %9159 = vmatpush3.bf16.msra.mxu0 %v10781_v12  ;;  %9180 = vmatprep.subr.bf16.mxu1 %v10796_v8 }
 0x457   :  { %9160 = vmatprep.subr.bf16.mxu0 %v10782_v54 }
 0x459   :  { %9181 = vmatpush3.bf16.msra.mxu1 %v10797_v63 }
 0x45a   :  { %9161 = vmatpush3.bf16.msra.mxu0 %v10783_v21  ;;  %9182 = vmatprep.subr.bf16.mxu1 %v10798_v45 }
 0x45b   :  { %9162 = vmatprep.subr.bf16.mxu0 %v10784_v32 }
 0x45d   :  { %9183 = vmatpush3.bf16.msra.mxu1 %v10799_v61 }
 0x45e   :  { %9163 = vmatpush3.bf16.msra.mxu0 %v10785_v33  ;;  %9184 = vmatprep.subr.bf16.mxu1 %v10800_v48 }
 0x461   :  { %7994 = vmatmul.mubr.bf16.vlgmr.msra.gmra.mxu0 %v7694_v0  ;;  %9185 = vmatpush3.bf16.msra.mxu1 %v10801_v6 }
 0x481   :  { %v7478_v4 = vpop.f32.mrf.mxu0 }
 0x482   :  { %v7519_v43 = vpop.f32.mrf.mxu1  ;;  %v7479_v53 = vadd.f32 %v7478_v4, %v7438_v36 }
 0x483   :  { %v7480_v28 = vpop.f32.mrf.mxu0 }
 0x484   :  { %v7521_v47 = vpop.f32.mrf.mxu1  ;;  %v7520_v38 = vadd.f32 %v7519_v43, %v7479_v53  ;;  %v7481_v46 = vadd.f32 %v7480_v28, %v7440_v60 }
 0x485   :  { %v7482_v62 = vpop.f32.mrf.mxu0 }
 0x486   :  { %v7523_v35 = vpop.f32.mrf.mxu1  ;;  %v7522_v23 = vadd.f32 %v7521_v47, %v7481_v46 }
 0x487   :  { %v7483_v40 = vpop.f32.mrf.mxu0 }
 0x488   :  { %v7524_v39 = vpop.f32.mrf.mxu1 }
 0x4c1   :  { %v7560_v49 = vpop.f32.mrf.mxu0 }
 0x4c2   :  { %v7601_v16 = vpop.f32.mrf.mxu1  ;;  %v7561_v17 = vadd.f32 %v7560_v49, %v7520_v38 }
 0x4c3   :  { %v7562_v51 = vpop.f32.mrf.mxu0 }
 0x4c4   :  { %v7603_v27 = vpop.f32.mrf.mxu1  ;;  %v7602_v29 = vadd.f32 %v7601_v16, %v7561_v17  ;;  %v7563_v18 = vadd.f32 %v7562_v51, %v7522_v23 }
 0x4c5   :  { %v7564_v44 = vpop.f32.mrf.mxu0 }
 0x4c6   :  { %v7605_v22 = vpop.f32.mrf.mxu1  ;;  %v7604_v34 = vadd.f32 %v7603_v27, %v7563_v18 }
 0x4c7   :  { %v7565_v52 = vpop.f32.mrf.mxu0 }
 0x4c8   :  { %v7606_v26 = vpop.f32.mrf.mxu1 }
 0x501   :  { %v7642_v57 = vpop.f32.mrf.mxu0 }
 0x502   :  { %v7683_v24 = vpop.f32.mrf.mxu1  ;;  %v7643_v5 = vadd.f32 %v7642_v57, %v7602_v29 }
 0x503   :  { %v7644_v7 = vpop.f32.mrf.mxu0 }
 0x504   :  { %v7685_v36 = vpop.f32.mrf.mxu1  ;;  %v7684_v20 = vadd.f32 %v7683_v24, %v7643_v5  ;;  %v7645_v25 = vadd.f32 %v7644_v7, %v7604_v34 }
 0x505   :  { %v7646_v59 = vpop.f32.mrf.mxu0 }
 0x506   :  { %v7687_v60 = vpop.f32.mrf.mxu1  ;;  %v7686_v37 = vadd.f32 %v7685_v36, %v7645_v25  ;;  %v7692_v55 = vmax.f32 %v7684_v20, 0.0 }
 0x507   :  { %v7647_v58 = vpop.f32.mrf.mxu0 }
 0x508   :  { %v7688_v56 = vpop.f32.mrf.mxu1  ;;  %v7693_v50 = vmax.f32 %v7686_v37, 0.0  ;;  %v7696_v9 = vpack.c.bf16 %v7692_v55, %v7692_v55 }
 0x50a   :  { %v7697_v31 = vpack.c.bf16 %v7693_v50, %v7693_v50 }
 0x50c   :  { %8033 = vmatprep.mubr.bf16.mxu1 %v7697_v31 }
 0x50d   :  { %8034 = vmatmul.mubr.bf16.vlgmr.msra.gmra.mxu1 %v7696_v9 }
 0x521   :  { %v9164_v10 = vpop.f32.mrf.mxu0 }
 0x523   :  { %v9165_v11 = vpop.f32.mrf.mxu0 }
 0x524   :  { %v9166_v42 = vadd.f32 %v9165_v11, %v9164_v10 }
 0x525   :  { %v9167_v1 = vpop.f32.mrf.mxu0 }
 0x526   :  { %v7996_v12 = vadd.f32 %v9166_v42, %v9115_v3 }
 0x527   :  { %v9168_v2 = vpop.f32.mrf.mxu0 }
 0x5cd   :  { %v9186_v15 = vpop.f32.mrf.mxu1 }
 0x5cf   :  { %v9187_v19 = vpop.f32.mrf.mxu1 }
 0x5d0   :  { %v9188_v13 = vadd.f32 %v9187_v19, %v9186_v15 }
 0x5d1   :  { %v9189_v54 = vpop.f32.mrf.mxu1 }
 0x5d2   :  { %v8036_v14 = vadd.f32 %v9188_v13, %v7996_v12 }
 0x5d3   :  { %v9190_v21 = vpop.f32.mrf.mxu1 }
 0x5d4   :  { %8041 = vst [vmem:[#allocation11] sm:$0xff] %v8036_v14 }
 0x5d5   :  { %10914 = shalt.err (!%p10911_p1)
}
 0x5d6   :  { %8051 = dma.vmem_to_hbm [thread:$0]  %s8049_s4, 128, %s11284_s5, [#allocation4]  }
 0x5d7   :  { %10929 = dma.done.wait [#allocation4], 128  }
 0x5d8   :  { %10930 = vsyncadd [#allocation4], 4294967168 }
 0x5d9   :  { %8055 = vsyncpa [#allocation3], 1 }
 0x5da   :  { %8056 = vsyncpa [#allocation6], 1 }
 0x5db   :  { %8057 = vsyncpa [#allocation9], 1 }
 0x5dc   :  { %8058 = vsyncpa [#allocation4], 1 }

</bundles_post_ra>
